<compile_context>
chip_gen: v5e
topology: v5e:2x2
jax: 0.10.0
libtpu: 0.0.40
codegen_flags: <defaults>
</compile_context>

<pallas_src>
import functools
import math

import jax
import jax.numpy as jnp
from jax.experimental import pallas as pl
from jax.experimental.pallas import tpu as pltpu

LANE = 128


def _round_up(x, m):
    return (x + m - 1) // m * m


def _pad2(a, rows, cols, dtype):
    a = jnp.asarray(a)
    out = jnp.pad(a, ((0, rows - a.shape[0]), (0, cols - a.shape[1])))
    return out.astype(dtype)


# ----------------- kernel 1: row-tiled feature transform  XW = X @ W ---------


def _xw_kernel(x_ref, w_ref, o_ref):
    o_ref[...] = jnp.dot(
        x_ref[...], w_ref[...], preferred_element_type=jnp.float32
    ).astype(o_ref.dtype)


def _feature_transform(x_p, w_p, *, tm):
    n_p, f_in = x_p.shape
    f_out = w_p.shape[1]
    return pl.pallas_call(
        _xw_kernel,
        out_shape=jax.ShapeDtypeStruct((n_p, f_out), jnp.bfloat16),
        grid_spec=pltpu.PrefetchScalarGridSpec(
            num_scalar_prefetch=0,
            grid=(n_p // tm,),
            in_specs=[
                pl.BlockSpec((tm, f_in), lambda i: (i, 0)),
                pl.BlockSpec((f_in, f_out), lambda i: (0, 0)),
            ],
            out_specs=pl.BlockSpec((tm, f_out), lambda i: (i, 0)),
        ),
        compiler_params=pltpu.CompilerParams(dimension_semantics=("parallel",)),
    )(x_p, w_p)


# ---- kernel 2: tiled aggregation  out = epilogue(scale * (A_q @ XW) + b) ----
#
# A_q is int8 (per-row quantized A_hat); the dequant scale multiplies the f32
# accumulator in the finalize.  Two epilogues:
#   "relu_matmul":  out = relu(h) @ W2          (conv1 fused with H1 @ W2)
#   "log_softmax":  out = log_softmax(h) masked to the true class count


def _aggregate_kernel(a_ref, xw_ref, scale_ref, b_ref, *rest, epilogue,
                      valid_cols):
    if epilogue == "relu_matmul":
        w2_ref, o_ref, acc_ref = rest
    else:
        o_ref, acc_ref = rest

    k = pl.program_id(1)

    @pl.when(k == 0)
    def _():
        acc_ref[...] = jnp.zeros_like(acc_ref)

    # int8 -> f32 -> bf16 widen (portable MXU path on v5e/v6e/v7x), f32 accum.
    a_bf16 = a_ref[...].astype(jnp.float32).astype(jnp.bfloat16)
    acc_ref[...] += jnp.dot(
        a_bf16, xw_ref[...], preferred_element_type=jnp.float32
    )

    @pl.when(k == pl.num_programs(1) - 1)
    def _():
        h = acc_ref[...] * scale_ref[...] + b_ref[...]
        if epilogue == "relu_matmul":
            h = jnp.maximum(h, 0.0)
            # TODO(synk): F.dropout(x, training=True) would mask h right here
            # (pltpu.prng_seed / pltpu.prng_random_bits); eval mode is identity.
            o_ref[...] = jnp.dot(
                h.astype(jnp.bfloat16), w2_ref[...],
                preferred_element_type=jnp.float32,
            ).astype(o_ref.dtype)
        else:  # log_softmax over the true (un-padded) class columns
            col = jax.lax.broadcasted_iota(jnp.int32, h.shape, 1)
            valid = col < valid_cols
            h_m = jnp.where(valid, h, -1e30)
            m = jnp.max(h_m, axis=-1, keepdims=True)
            z = h_m - m
            e = jnp.where(valid, jnp.exp(z), 0.0)
            lse = jnp.log(jnp.sum(e, axis=-1, keepdims=True))
            o_ref[...] = (z - lse).astype(o_ref.dtype)


def _aggregate(a_q, xw_p, scale_p, b_p, w2_p, *, tm, tk, epilogue, valid_cols,
               out_dtype):
    n_p = a_q.shape[0]
    f_mid = xw_p.shape[1]
    f_out = w2_p.shape[1] if w2_p is not None else f_mid

    kernel = functools.partial(
        _aggregate_kernel, epilogue=epilogue, valid_cols=valid_cols
    )

    in_specs = [
        pl.BlockSpec((tm, tk), lambda i, k: (i, k)),      # A_q tile (streamed)
        pl.BlockSpec((tk, f_mid), lambda i, k: (k, 0)),   # XW tile (k-streamed)
        pl.BlockSpec((tm, 1), lambda i, k: (i, 0)),       # per-row dequant scale
        pl.BlockSpec((1, f_mid), lambda i, k: (0, 0)),    # bias
    ]
    args = [a_q, xw_p, scale_p, b_p]
    if w2_p is not None:
        in_specs.append(pl.BlockSpec((f_mid, f_out), lambda i, k: (0, 0)))
        args.append(w2_p)

    return pl.pallas_call(
        kernel,
        out_shape=jax.ShapeDtypeStruct((n_p, f_out), out_dtype),
        grid_spec=pltpu.PrefetchScalarGridSpec(
            num_scalar_prefetch=0,
            grid=(n_p // tm, n_p // tk),
            in_specs=in_specs,
            out_specs=pl.BlockSpec((tm, f_out), lambda i, k: (i, 0)),
            scratch_shapes=[pltpu.VMEM((tm, f_mid), jnp.float32)],
        ),
        compiler_params=pltpu.CompilerParams(
            dimension_semantics=("parallel", "arbitrary")
        ),
    )(*args)


# ------------------------------ full GCN forward ------------------------------


def gcn_forward(x, a_hat, w1, b1, w2, b2, *, tm=512, tk=512):
    assert tm % 8 == 0 and tk % LANE == 0, "tm must be 8-aligned, tk 128-aligned"
    n, f_in = x.shape
    hidden = w1.shape[1]
    num_classes = w2.shape[1]

    n_p = _round_up(n, math.lcm(tm, tk))    # lcm so both tm and tk divide n_p
    fin_p = _round_up(f_in, LANE)
    hid_p = _round_up(hidden, LANE)
    cls_p = _round_up(num_classes, LANE)

    # int8 A_hat with a per-row scale (entries are just d_i^-1/2 d_j^-1/2):
    # halves the dominant N^2 HBM stream vs bf16; dequant folded into finalize.
    a_f32 = _pad2(a_hat, n_p, n_p, jnp.float32)
    row_max = jnp.max(jnp.abs(a_f32), axis=1, keepdims=True)
    scale = jnp.where(row_max > 0.0, row_max, 1.0) / 127.0          # (n_p, 1)
    a_q = jnp.round(a_f32 / scale).astype(jnp.int8)

    x_p = _pad2(x, n_p, fin_p, jnp.bfloat16)
    w1_p = _pad2(w1, fin_p, hid_p, jnp.bfloat16)
    b1_p = _pad2(jnp.reshape(b1, (1, -1)), 1, hid_p, jnp.float32)
    w2_p = _pad2(w2, hid_p, cls_p, jnp.bfloat16)
    b2_p = _pad2(jnp.reshape(b2, (1, -1)), 1, cls_p, jnp.float32)

    # conv1 feature transform:  XW1 = X @ W1   (one small row-tiled pass).
    xw1 = _feature_transform(x_p, w1_p, tm=tm)

    # conv1 aggregation, fused with H1 @ W2:
    #   HW2 = relu(A_hat @ XW1 + b1) @ W2      (dropout: eval-mode identity)
    hw2 = _aggregate(a_q, xw1, scale, b1_p, w2_p, tm=tm, tk=tk,
                     epilogue="relu_matmul", valid_cols=hidden,
                     out_dtype=jnp.bfloat16)

    # conv2 aggregation:  out = log_softmax(A_hat @ HW2 + b2)
    out_p = _aggregate(a_q, hw2, scale, b2_p, None, tm=tm, tk=tk,
                       epilogue="log_softmax", valid_cols=num_classes,
                       out_dtype=jnp.float32)

    return out_p[:n, :num_classes]


# ------------------------- graph preprocessing (glue) -------------------------


def build_normalized_adjacency(edge_index, num_nodes):
    """Dense D^{-1/2} (A + I) D^{-1/2} from edge_index [2, E] (plain JAX glue).

    Diagonal is set (not added) to 1, matching PyG add_remaining_self_loops.
    Duplicate edges dedupe to weight 1 via the .set scatter.
    TODO(synk): O(N^2) dense materialization — replace with block-CSR for big graphs.
    """
    src, dst = edge_index[0], edge_index[1]
    a = jnp.zeros((num_nodes, num_nodes), dtype=jnp.float32)
    a = a.at[dst, src].set(1.0)                       # message src -> dst
    diag = jnp.arange(num_nodes)
    a = a.at[diag, diag].set(1.0)                     # remaining self-loops
    deg = jnp.sum(a, axis=1)
    d_inv_sqrt = jnp.where(deg > 0, 1.0 / jnp.sqrt(deg), 0.0)
    return d_inv_sqrt[:, None] * a * d_inv_sqrt[None, :]


def gcn_reference(x, a_hat, w1, b1, w2, b2):
    h1 = jnp.maximum(a_hat @ (x @ w1) + b1.reshape(1, -1), 0.0)
    h2 = a_hat @ (h1 @ w2) + b2.reshape(1, -1)
    return jax.nn.log_softmax(h2, axis=1)


if __name__ == "__main__":
    # Small graph consistent with the module: num_node_features = 8,
    # hidden = 16, num_classes = 4.  N = 600 nodes pads to 1024 with the 512
    # tiles -> a 2x2 (row-tile, k-tile) grid, so the accumulate / finalize path
    # and the fused epilogues are actually exercised.
    N, F_IN, HIDDEN, NUM_CLASSES = 600, 8, 16, 4

    key = jax.random.PRNGKey(0)
    k_x, k_w1, k_w2, k_b1, k_b2, k_e1, k_e2 = jax.random.split(key, 7)

    # Node features.
    x = jax.random.normal(k_x, (N, F_IN), dtype=jnp.float32)

    # Deterministic edge_index: bidirectional ring + explicit self-loops
    # (exercises diagonal handling) + random bidirectional shortcuts so node
    # degrees are non-uniform and the int8 A_hat quantization is exercised.
    idx = jnp.arange(N)
    extra_src = jax.random.randint(k_e1, (64,), 0, N)
    extra_dst = jax.random.randint(k_e2, (64,), 0, N)
    src = jnp.concatenate([idx, (idx + 1) % N, idx, extra_src, extra_dst])
    dst = jnp.concatenate([(idx + 1) % N, idx, idx, extra_dst, extra_src])
    edge_index = jnp.stack([src, dst], axis=0)

    a_hat = build_normalized_adjacency(edge_index, N)

    # GCNConv parameters (Glorot-style init, deterministic).
    def glorot(k, shape):
        limit = jnp.sqrt(6.0 / (shape[0] + shape[1]))
        return jax.random.uniform(k, shape, jnp.float32, -limit, limit)

    w1 = glorot(k_w1, (F_IN, HIDDEN))
    b1 = 0.1 * jax.random.normal(k_b1, (HIDDEN,), dtype=jnp.float32)
    w2 = glorot(k_w2, (HIDDEN, NUM_CLASSES))
    b2 = 0.1 * jax.random.normal(k_b2, (NUM_CLASSES,), dtype=jnp.float32)

    out = jax.jit(gcn_forward)(x, a_hat, w1, b1, w2, b2)
    jax.block_until_ready(out)

    # Sanity: shape, log_softmax rows sum to 1 in prob space, matches f32 ref.
    ref = gcn_reference(x, a_hat, w1, b1, w2, b2)
    row_sums = jnp.sum(jnp.exp(out), axis=1)
    assert out.shape == (N, NUM_CLASSES)
    assert bool(jnp.all(jnp.abs(row_sums - 1.0) < 1e-3))
    # bf16 operands + int8-A (per-row scale) tolerance vs the f32 reference.
    assert bool(jnp.max(jnp.abs(out - ref)) < 1.5e-1)

    print("KERNEL_OK")
</pallas_src>

<mosaic_0001>
module attributes {stable_mosaic.version = 11 : i64} {
  func.func @_xw_kernel(%arg0: i32, %arg1: memref<512x128xbf16, #tpu.memory_space<vmem>>, %arg2: memref<128x128xbf16, #tpu.memory_space<vmem>>, %arg3: memref<512x128xbf16, #tpu.memory_space<vmem>>) attributes {dimension_semantics = [#tpu.dimension_semantics<parallel>], iteration_bounds = array<i64: 2>, scalar_prefetch = 0 : i64, scratch_operands = 0 : i64, tpu.core_type = #tpu.core_type<tc>, window_params = [{transform_indices = @transform_0, window_bounds = array<i64: 512, 128>}, {pipeline_mode = #tpu.pipeline_mode<synchronous>, transform_indices = @transform_1, window_bounds = array<i64: 128, 128>}, {transform_indices = @transform_2, window_bounds = array<i64: 512, 128>}]} {
    %c0 = arith.constant 0 : index
    %c0_0 = arith.constant 0 : index
    %0 = vector.load %arg1[%c0, %c0_0] : memref<512x128xbf16, #tpu.memory_space<vmem>>, vector<512x128xbf16>
    %c0_1 = arith.constant 0 : index
    %c0_2 = arith.constant 0 : index
    %1 = vector.load %arg2[%c0_1, %c0_2] : memref<128x128xbf16, #tpu.memory_space<vmem>>, vector<128x128xbf16>
    %cst = arith.constant dense<0.000000e+00> : vector<512x128xf32>
    %2 = tpu.matmul %0, %1, %cst {dimension_numbers = #tpu.dot_dimension_numbers<[1], [0], [0], [1], [0, 0, 1, 1], [], []>} : vector<512x128xbf16>, vector<128x128xbf16>, vector<512x128xf32> -> vector<512x128xf32>
    %3 = arith.truncf %2 : vector<512x128xf32> to vector<512x128xbf16>
    %c0_3 = arith.constant 0 : index
    %c0_4 = arith.constant 0 : index
    %4 = vector.load %arg3[%c0_3, %c0_4] : memref<512x128xbf16, #tpu.memory_space<vmem>>, vector<512x128xbf16>
    tpu.vector_store %arg3[%c0_3, %c0_4], %3 {strides = array<i32>} : memref<512x128xbf16, #tpu.memory_space<vmem>>, vector<512x128xbf16>,
    return
  }
  func.func @transform_0(%arg0: i32) -> (i32, i32) {
    %c0_i32 = arith.constant 0 : i32
    %c0_i32_0 = arith.constant 0 : i32
    return %arg0, %c0_i32 : i32, i32
  }
  func.func @transform_1(%arg0: i32) -> (i32, i32) {
    %c0_i32 = arith.constant 0 : i32
    %c0_i32_0 = arith.constant 0 : i32
    %c0_i32_1 = arith.constant 0 : i32
    return %c0_i32, %c0_i32_0 : i32, i32
  }
  func.func @transform_2(%arg0: i32) -> (i32, i32) {
    %c0_i32 = arith.constant 0 : i32
    %c0_i32_0 = arith.constant 0 : i32
    return %arg0, %c0_i32 : i32, i32
  }
}

module attributes {stable_mosaic.version = 11 : i64} {
  func.func @_aggregate_kernel(%arg0: i32, %arg1: i32, %arg2: memref<512x512xi8, #tpu.memory_space<vmem>>, %arg3: memref<512x128xbf16, #tpu.memory_space<vmem>>, %arg4: memref<512x1xf32, #tpu.memory_space<vmem>>, %arg5: memref<1x128xf32, #tpu.memory_space<vmem>>, %arg6: memref<128x128xbf16, #tpu.memory_space<vmem>>, %arg7: memref<512x128xbf16, #tpu.memory_space<vmem>>, %arg8: memref<512x128xf32, #tpu.memory_space<vmem>>) attributes {dimension_semantics = [#tpu.dimension_semantics<parallel>, #tpu.dimension_semantics<arbitrary>], iteration_bounds = array<i64: 2, 2>, scalar_prefetch = 0 : i64, scratch_operands = 1 : i64, tpu.core_type = #tpu.core_type<tc>, window_params = [{transform_indices = @transform_0, window_bounds = array<i64: 512, 512>}, {transform_indices = @transform_1, window_bounds = array<i64: 512, 128>}, {transform_indices = @transform_2, window_bounds = array<i64: 512, 1>}, {pipeline_mode = #tpu.pipeline_mode<synchronous>, transform_indices = @transform_3, window_bounds = array<i64: 1, 128>}, {pipeline_mode = #tpu.pipeline_mode<synchronous>, transform_indices = @transform_4, window_bounds = array<i64: 128, 128>}, {transform_indices = @transform_5, window_bounds = array<i64: 512, 128>}]} {
    %c0_i32 = arith.constant 0 : i32
    %0 = arith.cmpi eq, %arg1, %c0_i32 : i32
    %1 = arith.extui %0 : i1 to i32
    %c0_i32_0 = arith.constant 0 : i32
    %2 = arith.cmpi ne, %1, %c0_i32_0 : i32
    scf.if %2 {
      %cst_9 = arith.constant 0.000000e+00 : f32
      %14 = vector.broadcast %cst_9 : f32 to vector<512x128xf32>
      %c0_10 = arith.constant 0 : index
      %c0_11 = arith.constant 0 : index
      %15 = vector.load %arg8[%c0_10, %c0_11] : memref<512x128xf32, #tpu.memory_space<vmem>>, vector<512x128xf32>
      tpu.vector_store %arg8[%c0_10, %c0_11], %14 {strides = array<i32>} : memref<512x128xf32, #tpu.memory_space<vmem>>, vector<512x128xf32>,
    } else {
    }
    %c0 = arith.constant 0 : index
    %c0_1 = arith.constant 0 : index
    %3 = vector.load %arg2[%c0, %c0_1] : memref<512x512xi8, #tpu.memory_space<vmem>>, vector<512x512xi8>
    %4 = arith.sitofp %3 : vector<512x512xi8> to vector<512x512xf32>
    %5 = arith.truncf %4 : vector<512x512xf32> to vector<512x512xbf16>
    %c0_2 = arith.constant 0 : index
    %c0_3 = arith.constant 0 : index
    %6 = vector.load %arg8[%c0_2, %c0_3] : memref<512x128xf32, #tpu.memory_space<vmem>>, vector<512x128xf32>
    %c0_4 = arith.constant 0 : index
    %c0_5 = arith.constant 0 : index
    %7 = vector.load %arg3[%c0_4, %c0_5] : memref<512x128xbf16, #tpu.memory_space<vmem>>, vector<512x128xbf16>
    %cst = arith.constant dense<0.000000e+00> : vector<512x128xf32>
    %8 = tpu.matmul %5, %7, %cst {dimension_numbers = #tpu.dot_dimension_numbers<[1], [0], [0], [1], [0, 0, 1, 1], [], []>} : vector<512x512xbf16>, vector<512x128xbf16>, vector<512x128xf32> -> vector<512x128xf32>
    %9 = arith.addf %6, %8 : vector<512x128xf32>
    %c0_6 = arith.constant 0 : index
    %c0_7 = arith.constant 0 : index
    %10 = vector.load %arg8[%c0_6, %c0_7] : memref<512x128xf32, #tpu.memory_space<vmem>>, vector<512x128xf32>
    tpu.vector_store %arg8[%c0_6, %c0_7], %9 {strides = array<i32>} : memref<512x128xf32, #tpu.memory_space<vmem>>, vector<512x128xf32>,
    %c1_i32 = arith.constant 1 : i32
    %11 = arith.cmpi eq, %arg1, %c1_i32 : i32
    %12 = arith.extui %11 : i1 to i32
    %c0_i32_8 = arith.constant 0 : i32
    %13 = arith.cmpi ne, %12, %c0_i32_8 : i32
    scf.if %13 {
      %c0_9 = arith.constant 0 : index
      %c0_10 = arith.constant 0 : index
      %14 = vector.load %arg8[%c0_9, %c0_10] : memref<512x128xf32, #tpu.memory_space<vmem>>, vector<512x128xf32>
      %c0_11 = arith.constant 0 : index
      %c0_12 = arith.constant 0 : index
      %15 = vector.load %arg4[%c0_11, %c0_12] : memref<512x1xf32, #tpu.memory_space<vmem>>, vector<512x1xf32>
      %16 = vector.broadcast %15 : vector<512x1xf32> to vector<512x128xf32>
      %17 = arith.mulf %14, %16 : vector<512x128xf32>
      %c0_13 = arith.constant 0 : index
      %c0_14 = arith.constant 0 : index
      %18 = vector.load %arg5[%c0_13, %c0_14] : memref<1x128xf32, #tpu.memory_space<vmem>>, vector<1x128xf32>
      %19 = vector.broadcast %18 : vector<1x128xf32> to vector<512x128xf32>
      %20 = arith.addf %17, %19 : vector<512x128xf32>
      %cst_15 = arith.constant 0.000000e+00 : f32
      %21 = vector.broadcast %cst_15 : f32 to vector<512x128xf32>
      %22 = arith.maximumf %20, %21 : vector<512x128xf32>
      %23 = arith.truncf %22 : vector<512x128xf32> to vector<512x128xbf16>
      %c0_16 = arith.constant 0 : index
      %c0_17 = arith.constant 0 : index
      %24 = vector.load %arg6[%c0_16, %c0_17] : memref<128x128xbf16, #tpu.memory_space<vmem>>, vector<128x128xbf16>
      %cst_18 = arith.constant dense<0.000000e+00> : vector<512x128xf32>
      %25 = tpu.matmul %23, %24, %cst_18 {dimension_numbers = #tpu.dot_dimension_numbers<[1], [0], [0], [1], [0, 0, 1, 1], [], []>} : vector<512x128xbf16>, vector<128x128xbf16>, vector<512x128xf32> -> vector<512x128xf32>
      %26 = arith.truncf %25 : vector<512x128xf32> to vector<512x128xbf16>
      %c0_19 = arith.constant 0 : index
      %c0_20 = arith.constant 0 : index
      %27 = vector.load %arg7[%c0_19, %c0_20] : memref<512x128xbf16, #tpu.memory_space<vmem>>, vector<512x128xbf16>
      tpu.vector_store %arg7[%c0_19, %c0_20], %26 {strides = array<i32>} : memref<512x128xbf16, #tpu.memory_space<vmem>>, vector<512x128xbf16>,
    } else {
    }
    return
  }
  func.func @transform_0(%arg0: i32, %arg1: i32) -> (i32, i32) {
    %c0_i32 = arith.constant 0 : i32
    return %arg0, %arg1 : i32, i32
  }
  func.func @transform_1(%arg0: i32, %arg1: i32) -> (i32, i32) {
    %c0_i32 = arith.constant 0 : i32
    %c0_i32_0 = arith.constant 0 : i32
    return %arg1, %c0_i32 : i32, i32
  }
  func.func @transform_2(%arg0: i32, %arg1: i32) -> (i32, i32) {
    %c0_i32 = arith.constant 0 : i32
    %c0_i32_0 = arith.constant 0 : i32
    return %arg0, %c0_i32 : i32, i32
  }
  func.func @transform_3(%arg0: i32, %arg1: i32) -> (i32, i32) {
    %c0_i32 = arith.constant 0 : i32
    %c0_i32_0 = arith.constant 0 : i32
    %c0_i32_1 = arith.constant 0 : i32
    return %c0_i32, %c0_i32_0 : i32, i32
  }
  func.func @transform_4(%arg0: i32, %arg1: i32) -> (i32, i32) {
    %c0_i32 = arith.constant 0 : i32
    %c0_i32_0 = arith.constant 0 : i32
    %c0_i32_1 = arith.constant 0 : i32
    return %c0_i32, %c0_i32_0 : i32, i32
  }
  func.func @transform_5(%arg0: i32, %arg1: i32) -> (i32, i32) {
    %c0_i32 = arith.constant 0 : i32
    %c0_i32_0 = arith.constant 0 : i32
    return %arg0, %c0_i32 : i32, i32
  }
}

module attributes {stable_mosaic.version = 11 : i64} {
  func.func @_aggregate_kernel(%arg0: i32, %arg1: i32, %arg2: memref<512x512xi8, #tpu.memory_space<vmem>>, %arg3: memref<512x128xbf16, #tpu.memory_space<vmem>>, %arg4: memref<512x1xf32, #tpu.memory_space<vmem>>, %arg5: memref<1x128xf32, #tpu.memory_space<vmem>>, %arg6: memref<512x128xf32, #tpu.memory_space<vmem>>, %arg7: memref<512x128xf32, #tpu.memory_space<vmem>>) attributes {dimension_semantics = [#tpu.dimension_semantics<parallel>, #tpu.dimension_semantics<arbitrary>], iteration_bounds = array<i64: 2, 2>, scalar_prefetch = 0 : i64, scratch_operands = 1 : i64, tpu.core_type = #tpu.core_type<tc>, window_params = [{transform_indices = @transform_0, window_bounds = array<i64: 512, 512>}, {transform_indices = @transform_1, window_bounds = array<i64: 512, 128>}, {transform_indices = @transform_2, window_bounds = array<i64: 512, 1>}, {pipeline_mode = #tpu.pipeline_mode<synchronous>, transform_indices = @transform_3, window_bounds = array<i64: 1, 128>}, {transform_indices = @transform_4, window_bounds = array<i64: 512, 128>}]} {
    %c0_i32 = arith.constant 0 : i32
    %0 = arith.cmpi eq, %arg1, %c0_i32 : i32
    %1 = arith.extui %0 : i1 to i32
    %c0_i32_0 = arith.constant 0 : i32
    %2 = arith.cmpi ne, %1, %c0_i32_0 : i32
    scf.if %2 {
      %cst_9 = arith.constant 0.000000e+00 : f32
      %14 = vector.broadcast %cst_9 : f32 to vector<512x128xf32>
      %c0_10 = arith.constant 0 : index
      %c0_11 = arith.constant 0 : index
      %15 = vector.load %arg7[%c0_10, %c0_11] : memref<512x128xf32, #tpu.memory_space<vmem>>, vector<512x128xf32>
      tpu.vector_store %arg7[%c0_10, %c0_11], %14 {strides = array<i32>} : memref<512x128xf32, #tpu.memory_space<vmem>>, vector<512x128xf32>,
    } else {
    }
    %c0 = arith.constant 0 : index
    %c0_1 = arith.constant 0 : index
    %3 = vector.load %arg2[%c0, %c0_1] : memref<512x512xi8, #tpu.memory_space<vmem>>, vector<512x512xi8>
    %4 = arith.sitofp %3 : vector<512x512xi8> to vector<512x512xf32>
    %5 = arith.truncf %4 : vector<512x512xf32> to vector<512x512xbf16>
    %c0_2 = arith.constant 0 : index
    %c0_3 = arith.constant 0 : index
    %6 = vector.load %arg7[%c0_2, %c0_3] : memref<512x128xf32, #tpu.memory_space<vmem>>, vector<512x128xf32>
    %c0_4 = arith.constant 0 : index
    %c0_5 = arith.constant 0 : index
    %7 = vector.load %arg3[%c0_4, %c0_5] : memref<512x128xbf16, #tpu.memory_space<vmem>>, vector<512x128xbf16>
    %cst = arith.constant dense<0.000000e+00> : vector<512x128xf32>
    %8 = tpu.matmul %5, %7, %cst {dimension_numbers = #tpu.dot_dimension_numbers<[1], [0], [0], [1], [0, 0, 1, 1], [], []>} : vector<512x512xbf16>, vector<512x128xbf16>, vector<512x128xf32> -> vector<512x128xf32>
    %9 = arith.addf %6, %8 : vector<512x128xf32>
    %c0_6 = arith.constant 0 : index
    %c0_7 = arith.constant 0 : index
    %10 = vector.load %arg7[%c0_6, %c0_7] : memref<512x128xf32, #tpu.memory_space<vmem>>, vector<512x128xf32>
    tpu.vector_store %arg7[%c0_6, %c0_7], %9 {strides = array<i32>} : memref<512x128xf32, #tpu.memory_space<vmem>>, vector<512x128xf32>,
    %c1_i32 = arith.constant 1 : i32
    %11 = arith.cmpi eq, %arg1, %c1_i32 : i32
    %12 = arith.extui %11 : i1 to i32
    %c0_i32_8 = arith.constant 0 : i32
    %13 = arith.cmpi ne, %12, %c0_i32_8 : i32
    scf.if %13 {
      %c0_9 = arith.constant 0 : index
      %c0_10 = arith.constant 0 : index
      %14 = vector.load %arg7[%c0_9, %c0_10] : memref<512x128xf32, #tpu.memory_space<vmem>>, vector<512x128xf32>
      %c0_11 = arith.constant 0 : index
      %c0_12 = arith.constant 0 : index
      %15 = vector.load %arg4[%c0_11, %c0_12] : memref<512x1xf32, #tpu.memory_space<vmem>>, vector<512x1xf32>
      %16 = vector.broadcast %15 : vector<512x1xf32> to vector<512x128xf32>
      %17 = arith.mulf %14, %16 : vector<512x128xf32>
      %c0_13 = arith.constant 0 : index
      %c0_14 = arith.constant 0 : index
      %18 = vector.load %arg5[%c0_13, %c0_14] : memref<1x128xf32, #tpu.memory_space<vmem>>, vector<1x128xf32>
      %19 = vector.broadcast %18 : vector<1x128xf32> to vector<512x128xf32>
      %20 = arith.addf %17, %19 : vector<512x128xf32>
      %21 = tpu.iota {dimensions = array<i32: 1>} : vector<512x128xi32>
      %c4_i32 = arith.constant 4 : i32
      %22 = vector.broadcast %c4_i32 : i32 to vector<512x128xi32>
      %23 = arith.cmpi slt, %21, %22 : vector<512x128xi32>
      %cst_15 = arith.constant -1.000000e+30 : f32
      %24 = vector.broadcast %cst_15 : f32 to vector<512x128xf32>
      %25 = arith.select %23, %20, %24 : vector<512x128xi1>, vector<512x128xf32>
      %cst_16 = arith.constant dense<0xFF800000> : vector<512xf32>
      %26 = vector.multi_reduction <maximumf>, %25, %cst_16 [1] : vector<512x128xf32> to vector<512xf32>
      %27 = vector.shape_cast %26 : vector<512xf32> to vector<512x1xf32>
      %28 = vector.broadcast %27 : vector<512x1xf32> to vector<512x128xf32>
      %29 = arith.subf %25, %28 : vector<512x128xf32>
      %30 = math.exp %29 : vector<512x128xf32>
      %cst_17 = arith.constant 0.000000e+00 : f32
      %31 = vector.broadcast %cst_17 : f32 to vector<512x128xf32>
      %32 = arith.select %23, %30, %31 : vector<512x128xi1>, vector<512x128xf32>
      %cst_18 = arith.constant dense<0.000000e+00> : vector<512xf32>
      %33 = vector.multi_reduction <add>, %32, %cst_18 [1] : vector<512x128xf32> to vector<512xf32>
      %34 = vector.shape_cast %33 : vector<512xf32> to vector<512x1xf32>
      %35 = math.log %34 : vector<512x1xf32>
      %36 = vector.broadcast %35 : vector<512x1xf32> to vector<512x128xf32>
      %37 = arith.subf %29, %36 : vector<512x128xf32>
      %c0_19 = arith.constant 0 : index
      %c0_20 = arith.constant 0 : index
      %38 = vector.load %arg6[%c0_19, %c0_20] : memref<512x128xf32, #tpu.memory_space<vmem>>, vector<512x128xf32>
      tpu.vector_store %arg6[%c0_19, %c0_20], %37 {strides = array<i32>} : memref<512x128xf32, #tpu.memory_space<vmem>>, vector<512x128xf32>,
    } else {
    }
    return
  }
  func.func @transform_0(%arg0: i32, %arg1: i32) -> (i32, i32) {
    %c0_i32 = arith.constant 0 : i32
    return %arg0, %arg1 : i32, i32
  }
  func.func @transform_1(%arg0: i32, %arg1: i32) -> (i32, i32) {
    %c0_i32 = arith.constant 0 : i32
    %c0_i32_0 = arith.constant 0 : i32
    return %arg1, %c0_i32 : i32, i32
  }
  func.func @transform_2(%arg0: i32, %arg1: i32) -> (i32, i32) {
    %c0_i32 = arith.constant 0 : i32
    %c0_i32_0 = arith.constant 0 : i32
    return %arg0, %c0_i32 : i32, i32
  }
  func.func @transform_3(%arg0: i32, %arg1: i32) -> (i32, i32) {
    %c0_i32 = arith.constant 0 : i32
    %c0_i32_0 = arith.constant 0 : i32
    %c0_i32_1 = arith.constant 0 : i32
    return %c0_i32, %c0_i32_0 : i32, i32
  }
  func.func @transform_4(%arg0: i32, %arg1: i32) -> (i32, i32) {
    %c0_i32 = arith.constant 0 : i32
    %c0_i32_0 = arith.constant 0 : i32
    return %arg0, %c0_i32 : i32, i32
  }
}

</mosaic_0001>

<bundles_post_ra>
// kernel: gcn_forward.3
= control target key start
LH: loop header
LB: loop body
LE: loop exit
PB: predicated region body
PF: predicated region fallthrough
CT: control target
= control target key end

     0   :  { %s1277_s9 = smov 0   ;;  %s1393_s0 = inlined_call_operand.vmem [shape: bf16[1024,128], index: 0, kind: input, shape index: {}]   ;;  %s1394_s1 = inlined_call_operand.vmem [shape: bf16[128,128], index: 1, kind: input, shape index: {}]   ;;  %s1395_s2 = inlined_call_operand.vmem [shape: bf16[1024,128], index: 2, kind: output, shape index: {}]  }
   0x1 LB: > { %s820_s10 = sadd.s32 4294967295, %s1260_s9   ;;  %p824_p0 = scmp.ge.s32.totalorder %s1260_s9, 1  ;;  %s1260_s9 = sphi %s1277_s9, %s12_s9  }
   0x2   : > { %p113_p1 = scmp.lt.s32.totalorder %s1260_s9, 3 }
   0x4   : > { %p114_p2 = pnand %p824_p0, %p113_p1 }
   0x5   : > { %s825_s19 = sshll.u32 (!%p114_p2), %s820_s10, 6 }
   0x6   : > { %117 = sbr.rel (%p114_p2) target bundleno = 300 (0x12c), region = 28  ;;  %p136_p3 = scmp.lt.s32.totalorder (!%p114_p2), %s825_s19, 127 }
   0xb   : > { %v1030_v0 = vld [vmem:[%s1394_s1 + $0x38] sm:$0xff]  ;;  %v1029_v1 = vld [vmem:[%s1394_s1 + $0x30] sm:$0xff]  ;;  %v1028_v2 = vld [vmem:[%s1394_s1 + $0x28] sm:$0xff]  ;;  %s1397_s19 = smov (!%p136_p3, %s825_s19), 127 }
   0xc   : > { %467 = vmatpush.bf16.msra.mxu0 %v1030_v0  ;;  %1222 = vmatpush.bf16.msra.mxu1 %v1030_v0  ;;  %v1027_v3 = vld [vmem:[%s1394_s1 + $0x20] sm:$0xff]  ;;  %v1026_v4 = vld [vmem:[%s1394_s1 + $0x18] sm:$0xff]  ;;  %v1025_v5 = vld [vmem:[%s1394_s1 + $0x10] sm:$0xff]  ;;  %s826_s26 = sshll.u32 %s1397_s19, 2 }
   0xd   : > { %1223 = vmatpush.bf16.msra.mxu2 %v1030_v0  ;;  %1224 = vmatpush.bf16.msra.mxu3 %v1030_v0  ;;  %v1024_v6 = vld [vmem:[%s1394_s1 + $0x8] sm:$0xff]  ;;  %v1023_v7 = vld [vmem:[%s1394_s1] sm:$0xff]  ;;  %s1317_s3 = scalar_lea.vmem %s1393_s0, %s826_s26  ;;  %s1356_s6 = scalar_lea.vmem %s1395_s2, %s826_s26 }
   0xe   : > { %v991_v8 = vld [vmem:[%s1317_s3] sm:$0xff]  ;;  %v992_v12 = vld [vmem:[%s1317_s3 + $0x8] sm:$0xff]  ;;  %v993_v16 = vld [vmem:[%s1317_s3 + $0x10] sm:$0xff] }
   0xf   : > { %v999_v9 = vld [vmem:[%s1317_s3 + $0x40] sm:$0xff]  ;;  %v1000_v13 = vld [vmem:[%s1317_s3 + $0x48] sm:$0xff]  ;;  %v1001_v17 = vld [vmem:[%s1317_s3 + $0x50] sm:$0xff] }
  0x10   : > { %468 = vmatpush.bf16.msra.mxu0 %v1029_v1  ;;  %1225 = vmatpush.bf16.msra.mxu1 %v1029_v1  ;;  %v1007_v10 = vld [vmem:[%s1317_s3 + $0x80] sm:$0xff]  ;;  %v1008_v14 = vld [vmem:[%s1317_s3 + $0x88] sm:$0xff]  ;;  %v1009_v18 = vld [vmem:[%s1317_s3 + $0x90] sm:$0xff] }
  0x11   : > { %1226 = vmatpush.bf16.msra.mxu2 %v1029_v1  ;;  %1227 = vmatpush.bf16.msra.mxu3 %v1029_v1  ;;  %v1015_v11 = vld [vmem:[%s1317_s3 + $0xc0] sm:$0xff]  ;;  %v1016_v15 = vld [vmem:[%s1317_s3 + $0xc8] sm:$0xff]  ;;  %v1017_v19 = vld [vmem:[%s1317_s3 + $0xd0] sm:$0xff] }
  0x12   : > { %v994_v20 = vld [vmem:[%s1317_s3 + $0x18] sm:$0xff]  ;;  %v995_v24 = vld [vmem:[%s1317_s3 + $0x20] sm:$0xff]  ;;  %v996_v28 = vld [vmem:[%s1317_s3 + $0x28] sm:$0xff] }
  0x13   : > { %v1002_v21 = vld [vmem:[%s1317_s3 + $0x58] sm:$0xff]  ;;  %v1003_v25 = vld [vmem:[%s1317_s3 + $0x60] sm:$0xff]  ;;  %v1004_v29 = vld [vmem:[%s1317_s3 + $0x68] sm:$0xff] }
  0x14   : > { %469 = vmatpush.bf16.msra.mxu0 %v1028_v2  ;;  %1228 = vmatpush.bf16.msra.mxu1 %v1028_v2  ;;  %v1010_v22 = vld [vmem:[%s1317_s3 + $0x98] sm:$0xff]  ;;  %v1011_v26 = vld [vmem:[%s1317_s3 + $0xa0] sm:$0xff]  ;;  %v1012_v30 = vld [vmem:[%s1317_s3 + $0xa8] sm:$0xff] }
  0x15   : > { %1229 = vmatpush.bf16.msra.mxu2 %v1028_v2  ;;  %1230 = vmatpush.bf16.msra.mxu3 %v1028_v2  ;;  %v1018_v23 = vld [vmem:[%s1317_s3 + $0xd8] sm:$0xff]  ;;  %v1019_v27 = vld [vmem:[%s1317_s3 + $0xe0] sm:$0xff]  ;;  %v1020_v31 = vld [vmem:[%s1317_s3 + $0xe8] sm:$0xff] }
  0x16   : > { %v997_v32 = vld [vmem:[%s1317_s3 + $0x30] sm:$0xff]  ;;  %v998_v36 = vld [vmem:[%s1317_s3 + $0x38] sm:$0xff] }
  0x17   : > { %v1005_v33 = vld [vmem:[%s1317_s3 + $0x70] sm:$0xff]  ;;  %v1006_v37 = vld [vmem:[%s1317_s3 + $0x78] sm:$0xff] }
  0x18   : > { %470 = vmatpush.bf16.msra.mxu0 %v1027_v3  ;;  %1231 = vmatpush.bf16.msra.mxu1 %v1027_v3  ;;  %v1013_v34 = vld [vmem:[%s1317_s3 + $0xb0] sm:$0xff]  ;;  %v1014_v38 = vld [vmem:[%s1317_s3 + $0xb8] sm:$0xff] }
  0x19   : > { %1232 = vmatpush.bf16.msra.mxu2 %v1027_v3  ;;  %1233 = vmatpush.bf16.msra.mxu3 %v1027_v3  ;;  %v1021_v35 = vld [vmem:[%s1317_s3 + $0xf0] sm:$0xff]  ;;  %v1022_v39 = vld [vmem:[%s1317_s3 + $0xf8] sm:$0xff] }
  0x1c   : > { %471 = vmatpush.bf16.msra.mxu0 %v1026_v4  ;;  %1234 = vmatpush.bf16.msra.mxu1 %v1026_v4 }
  0x1d   : > { %1235 = vmatpush.bf16.msra.mxu2 %v1026_v4  ;;  %1236 = vmatpush.bf16.msra.mxu3 %v1026_v4 }
  0x20   : > { %472 = vmatpush.bf16.msra.mxu0 %v1025_v5  ;;  %1237 = vmatpush.bf16.msra.mxu1 %v1025_v5 }
  0x21   : > { %1238 = vmatpush.bf16.msra.mxu2 %v1025_v5  ;;  %1239 = vmatpush.bf16.msra.mxu3 %v1025_v5 }
  0x24   : > { %473 = vmatpush.bf16.msra.mxu0 %v1024_v6  ;;  %1240 = vmatpush.bf16.msra.mxu1 %v1024_v6 }
  0x25   : > { %1241 = vmatpush.bf16.msra.mxu2 %v1024_v6  ;;  %1242 = vmatpush.bf16.msra.mxu3 %v1024_v6 }
  0x28   : > { %474 = vmatpush.bf16.msra.mxu0 %v1023_v7  ;;  %1243 = vmatpush.bf16.msra.mxu1 %v1023_v7 }
  0x29   : > { %1244 = vmatpush.bf16.msra.mxu2 %v1023_v7  ;;  %1245 = vmatpush.bf16.msra.mxu3 %v1023_v7 }
  0x2b   : > { %475 = vmatmul.bf16.vlgmr.msra.gmra.mxu0 %v991_v8  ;;  %515 = vmatmul.bf16.vlgmr.msra.gmra.mxu1 %v999_v9 }
  0x2c   : > { %555 = vmatmul.bf16.vlgmr.msra.gmra.mxu2 %v1007_v10  ;;  %595 = vmatmul.bf16.vlgmr.msra.gmra.mxu3 %v1015_v11 }
  0x3b   : > { %480 = vmatmul.bf16.gmra.mxu0 %v992_v12  ;;  %520 = vmatmul.bf16.gmra.mxu1 %v1000_v13 }
  0x3c   : > { %560 = vmatmul.bf16.gmra.mxu2 %v1008_v14  ;;  %600 = vmatmul.bf16.gmra.mxu3 %v1016_v15 }
  0x4b   : > { %485 = vmatmul.bf16.gmra.mxu0 %v993_v16  ;;  %525 = vmatmul.bf16.gmra.mxu1 %v1001_v17 }
  0x4c   : > { %565 = vmatmul.bf16.gmra.mxu2 %v1009_v18  ;;  %605 = vmatmul.bf16.gmra.mxu3 %v1017_v19 }
  0x5b   : > { %490 = vmatmul.bf16.gmra.mxu0 %v994_v20  ;;  %530 = vmatmul.bf16.gmra.mxu1 %v1002_v21 }
  0x5c   : > { %570 = vmatmul.bf16.gmra.mxu2 %v1010_v22  ;;  %610 = vmatmul.bf16.gmra.mxu3 %v1018_v23 }
  0x6b   : > { %495 = vmatmul.bf16.gmra.mxu0 %v995_v24  ;;  %535 = vmatmul.bf16.gmra.mxu1 %v1003_v25 }
  0x6c   : > { %575 = vmatmul.bf16.gmra.mxu2 %v1011_v26  ;;  %615 = vmatmul.bf16.gmra.mxu3 %v1019_v27 }
  0x7b   : > { %500 = vmatmul.bf16.gmra.mxu0 %v996_v28  ;;  %540 = vmatmul.bf16.gmra.mxu1 %v1004_v29 }
  0x7c   : > { %580 = vmatmul.bf16.gmra.mxu2 %v1012_v30  ;;  %620 = vmatmul.bf16.gmra.mxu3 %v1020_v31 }
  0x8b   : > { %505 = vmatmul.bf16.gmra.mxu0 %v997_v32  ;;  %545 = vmatmul.bf16.gmra.mxu1 %v1005_v33 }
  0x8c   : > { %585 = vmatmul.bf16.gmra.mxu2 %v1013_v34  ;;  %625 = vmatmul.bf16.gmra.mxu3 %v1021_v35 }
  0x9b   : > { %510 = vmatmul.bf16.gmra.mxu0 %v998_v36  ;;  %550 = vmatmul.bf16.gmra.mxu1 %v1006_v37 }
  0x9c   : > { %590 = vmatmul.bf16.gmra.mxu2 %v1014_v38  ;;  %630 = vmatmul.bf16.gmra.mxu3 %v1022_v39 }
  0xa8   : > { %v476_v40 = vpop.f32.mrf.mxu0  ;;  %v516_v41 = vpop.f32.mrf.mxu1 }
  0xaf   : > { %v556_v42 = vpop.f32.mrf.mxu2  ;;  %v596_v43 = vpop.f32.mrf.mxu3 }
  0xb0   : > { %v478_v44 = vpop.f32.mrf.mxu0  ;;  %v518_v45 = vpop.f32.mrf.mxu1 }
  0xb1   : > { %v1034_v46 = vpack.c.bf16 %v478_v44, %v476_v40  ;;  %v1074_v47 = vpack.c.bf16 %v518_v45, %v516_v41 }
  0xb3   : > { %1035 = vst [vmem:[%s1356_s6] sm:$0xff] %v1034_v46  }
  0xb4   : > { %1198 = vst [vmem:[%s1356_s6 + $0x40] sm:$0xff] %v1074_v47  }
  0xb7   : > { %v558_v48 = vpop.f32.mrf.mxu2  ;;  %v598_v49 = vpop.f32.mrf.mxu3 }
  0xb8   : > { %v1114_v50 = vpack.c.bf16 %v558_v48, %v556_v42  ;;  %v1154_v51 = vpack.c.bf16 %v598_v49, %v596_v43  ;;  %v481_v52 = vpop.f32.mrf.mxu0  ;;  %v521_v53 = vpop.f32.mrf.mxu1 }
  0xba   : > { %1206 = vst [vmem:[%s1356_s6 + $0x80] sm:$0xff] %v1114_v50  }
  0xbb   : > { %1214 = vst [vmem:[%s1356_s6 + $0xc0] sm:$0xff] %v1154_v51  }
  0xbf   : > { %v561_v54 = vpop.f32.mrf.mxu2  ;;  %v601_v55 = vpop.f32.mrf.mxu3 }
  0xc0   : > { %v483_v56 = vpop.f32.mrf.mxu0  ;;  %v523_v57 = vpop.f32.mrf.mxu1 }
  0xc1   : > { %v1039_v58 = vpack.c.bf16 %v483_v56, %v481_v52  ;;  %v1079_v59 = vpack.c.bf16 %v523_v57, %v521_v53 }
  0xc3   : > { %1191 = vst [vmem:[%s1356_s6 + $0x8] sm:$0xff] %v1039_v58  }
  0xc4   : > { %1199 = vst [vmem:[%s1356_s6 + $0x48] sm:$0xff] %v1079_v59  }
  0xc7   : > { %v563_v60 = vpop.f32.mrf.mxu2  ;;  %v603_v61 = vpop.f32.mrf.mxu3 }
  0xc8   : > { %v1119_v62 = vpack.c.bf16 %v563_v60, %v561_v54  ;;  %v1159_v63 = vpack.c.bf16 %v603_v61, %v601_v55  ;;  %v486_v0 = vpop.f32.mrf.mxu0  ;;  %v526_v1 = vpop.f32.mrf.mxu1 }
  0xca   : > { %1207 = vst [vmem:[%s1356_s6 + $0x88] sm:$0xff] %v1119_v62  }
  0xcb   : > { %1215 = vst [vmem:[%s1356_s6 + $0xc8] sm:$0xff] %v1159_v63  }
  0xcf   : > { %v566_v2 = vpop.f32.mrf.mxu2  ;;  %v606_v3 = vpop.f32.mrf.mxu3 }
  0xd0   : > { %v488_v4 = vpop.f32.mrf.mxu0  ;;  %v528_v5 = vpop.f32.mrf.mxu1 }
  0xd1   : > { %v1044_v6 = vpack.c.bf16 %v488_v4, %v486_v0  ;;  %v1084_v7 = vpack.c.bf16 %v528_v5, %v526_v1 }
  0xd3   : > { %1192 = vst [vmem:[%s1356_s6 + $0x10] sm:$0xff] %v1044_v6  }
  0xd4   : > { %1200 = vst [vmem:[%s1356_s6 + $0x50] sm:$0xff] %v1084_v7  }
  0xd7   : > { %v568_v8 = vpop.f32.mrf.mxu2  ;;  %v608_v9 = vpop.f32.mrf.mxu3 }
  0xd8   : > { %v1124_v10 = vpack.c.bf16 %v568_v8, %v566_v2  ;;  %v1164_v11 = vpack.c.bf16 %v608_v9, %v606_v3  ;;  %v491_v12 = vpop.f32.mrf.mxu0  ;;  %v531_v13 = vpop.f32.mrf.mxu1 }
  0xda   : > { %1208 = vst [vmem:[%s1356_s6 + $0x90] sm:$0xff] %v1124_v10  }
  0xdb   : > { %1216 = vst [vmem:[%s1356_s6 + $0xd0] sm:$0xff] %v1164_v11  }
  0xdf   : > { %v571_v14 = vpop.f32.mrf.mxu2  ;;  %v611_v15 = vpop.f32.mrf.mxu3 }
  0xe0   : > { %v493_v16 = vpop.f32.mrf.mxu0  ;;  %v533_v17 = vpop.f32.mrf.mxu1 }
  0xe1   : > { %v1049_v18 = vpack.c.bf16 %v493_v16, %v491_v12  ;;  %v1089_v19 = vpack.c.bf16 %v533_v17, %v531_v13 }
  0xe3   : > { %1193 = vst [vmem:[%s1356_s6 + $0x18] sm:$0xff] %v1049_v18  }
  0xe4   : > { %1201 = vst [vmem:[%s1356_s6 + $0x58] sm:$0xff] %v1089_v19  }
  0xe7   : > { %v573_v20 = vpop.f32.mrf.mxu2  ;;  %v613_v21 = vpop.f32.mrf.mxu3 }
  0xe8   : > { %v1129_v22 = vpack.c.bf16 %v573_v20, %v571_v14  ;;  %v1169_v23 = vpack.c.bf16 %v613_v21, %v611_v15  ;;  %v496_v24 = vpop.f32.mrf.mxu0  ;;  %v536_v25 = vpop.f32.mrf.mxu1 }
  0xea   : > { %1209 = vst [vmem:[%s1356_s6 + $0x98] sm:$0xff] %v1129_v22  }
  0xeb   : > { %1217 = vst [vmem:[%s1356_s6 + $0xd8] sm:$0xff] %v1169_v23  }
  0xef   : > { %v576_v26 = vpop.f32.mrf.mxu2  ;;  %v616_v27 = vpop.f32.mrf.mxu3 }
  0xf0   : > { %v498_v28 = vpop.f32.mrf.mxu0  ;;  %v538_v29 = vpop.f32.mrf.mxu1 }
  0xf1   : > { %v1054_v30 = vpack.c.bf16 %v498_v28, %v496_v24  ;;  %v1094_v31 = vpack.c.bf16 %v538_v29, %v536_v25 }
  0xf3   : > { %1194 = vst [vmem:[%s1356_s6 + $0x20] sm:$0xff] %v1054_v30  }
  0xf4   : > { %1202 = vst [vmem:[%s1356_s6 + $0x60] sm:$0xff] %v1094_v31  }
  0xf7   : > { %v578_v32 = vpop.f32.mrf.mxu2  ;;  %v618_v33 = vpop.f32.mrf.mxu3 }
  0xf8   : > { %v1134_v34 = vpack.c.bf16 %v578_v32, %v576_v26  ;;  %v1174_v35 = vpack.c.bf16 %v618_v33, %v616_v27  ;;  %v501_v36 = vpop.f32.mrf.mxu0  ;;  %v541_v37 = vpop.f32.mrf.mxu1 }
  0xfa   : > { %1210 = vst [vmem:[%s1356_s6 + $0xa0] sm:$0xff] %v1134_v34  }
  0xfb   : > { %1218 = vst [vmem:[%s1356_s6 + $0xe0] sm:$0xff] %v1174_v35  }
  0xff   : > { %v581_v38 = vpop.f32.mrf.mxu2  ;;  %v621_v39 = vpop.f32.mrf.mxu3 }
 0x100   : > { %v503_v40 = vpop.f32.mrf.mxu0  ;;  %v543_v41 = vpop.f32.mrf.mxu1 }
 0x101   : > { %v1059_v42 = vpack.c.bf16 %v503_v40, %v501_v36  ;;  %v1099_v43 = vpack.c.bf16 %v543_v41, %v541_v37 }
 0x103   : > { %1195 = vst [vmem:[%s1356_s6 + $0x28] sm:$0xff] %v1059_v42  }
 0x104   : > { %1203 = vst [vmem:[%s1356_s6 + $0x68] sm:$0xff] %v1099_v43  }
 0x107   : > { %v583_v44 = vpop.f32.mrf.mxu2  ;;  %v623_v45 = vpop.f32.mrf.mxu3 }
 0x108   : > { %v1139_v46 = vpack.c.bf16 %v583_v44, %v581_v38  ;;  %v1179_v47 = vpack.c.bf16 %v623_v45, %v621_v39  ;;  %v506_v48 = vpop.f32.mrf.mxu0  ;;  %v546_v49 = vpop.f32.mrf.mxu1 }
 0x10a   : > { %1211 = vst [vmem:[%s1356_s6 + $0xa8] sm:$0xff] %v1139_v46  }
 0x10b   : > { %1219 = vst [vmem:[%s1356_s6 + $0xe8] sm:$0xff] %v1179_v47  }
 0x10f   : > { %v586_v50 = vpop.f32.mrf.mxu2  ;;  %v626_v51 = vpop.f32.mrf.mxu3 }
 0x110   : > { %v508_v52 = vpop.f32.mrf.mxu0  ;;  %v548_v53 = vpop.f32.mrf.mxu1 }
 0x111   : > { %v1064_v54 = vpack.c.bf16 %v508_v52, %v506_v48  ;;  %v1104_v55 = vpack.c.bf16 %v548_v53, %v546_v49 }
 0x113   : > { %1196 = vst [vmem:[%s1356_s6 + $0x30] sm:$0xff] %v1064_v54  }
 0x114   : > { %1204 = vst [vmem:[%s1356_s6 + $0x70] sm:$0xff] %v1104_v55  }
 0x117   : > { %v588_v56 = vpop.f32.mrf.mxu2  ;;  %v628_v57 = vpop.f32.mrf.mxu3 }
 0x118   : > { %v1144_v58 = vpack.c.bf16 %v588_v56, %v586_v50  ;;  %v1184_v59 = vpack.c.bf16 %v628_v57, %v626_v51  ;;  %v511_v60 = vpop.f32.mrf.mxu0  ;;  %v551_v61 = vpop.f32.mrf.mxu1 }
 0x11a   : > { %1212 = vst [vmem:[%s1356_s6 + $0xb0] sm:$0xff] %v1144_v58  }
 0x11b   : > { %1220 = vst [vmem:[%s1356_s6 + $0xf0] sm:$0xff] %v1184_v59  }
 0x11f   : > { %v591_v62 = vpop.f32.mrf.mxu2  ;;  %v631_v63 = vpop.f32.mrf.mxu3 }
 0x120   : > { %v513_v0 = vpop.f32.mrf.mxu0  ;;  %v553_v1 = vpop.f32.mrf.mxu1 }
 0x121   : > { %v1069_v2 = vpack.c.bf16 %v513_v0, %v511_v60  ;;  %v1109_v3 = vpack.c.bf16 %v553_v1, %v551_v61 }
 0x123   : > { %1197 = vst [vmem:[%s1356_s6 + $0x38] sm:$0xff] %v1069_v2  }
 0x124   : > { %1205 = vst [vmem:[%s1356_s6 + $0x78] sm:$0xff] %v1109_v3  }
 0x127   : > { %v593_v4 = vpop.f32.mrf.mxu2  ;;  %v633_v5 = vpop.f32.mrf.mxu3 }
 0x128   : > { %v1149_v6 = vpack.c.bf16 %v593_v4, %v591_v62  ;;  %v1189_v7 = vpack.c.bf16 %v633_v5, %v631_v63 }
 0x12a   : > { %1213 = vst [vmem:[%s1356_s6 + $0xb8] sm:$0xff] %v1149_v6  }
 0x12b   : > { %1221 = vst [vmem:[%s1356_s6 + $0xf8] sm:$0xff] %v1189_v7  }
 0x12c PF: > { %s12_s9 = sadd.s32 1, %s1260_s9  }
 0x12d   : > { %p9_p4 = scmp.ge.s32.totalorder %s12_s9, 4  }
 0x12f   :  { %11 = sbr.rel (!%p9_p4) target bundleno = 1 (0x1), region = 58 }

// kernel: gcn_forward.4
= control target key start
LH: loop header
LB: loop body
LE: loop exit
PB: predicated region body
PF: predicated region fallthrough
CT: control target
= control target key end

     0   :  { %s4060_s18 = smov 0   ;;  %s4062_s19 = smov 0   ;;  %s4955_s0 = inlined_call_operand.vmem [shape: s8[1024,1024], index: 0, kind: input, shape index: {}]   ;;  %s4956_s1 = inlined_call_operand.vmem [shape: bf16[1024,128], index: 1, kind: input, shape index: {}]   ;;  %s4957_s2 = inlined_call_operand.vmem [shape: f32[1024,1], index: 2, kind: input, shape index: {}]   ;;  %s4958_s3 = inlined_call_operand.vmem [shape: f32[1,128], index: 3, kind: input, shape index: {}]   ;;  %s4959_s4 = inlined_call_operand.vmem [shape: bf16[128,128], index: 4, kind: input, shape index: {}]   ;;  %s4960_s5 = inlined_call_operand.vmem [shape: bf16[1024,128], index: 5, kind: output, shape index: {}]  }
   0x1   :  { %s4064_s20 = smov 0   ;;  %s4066_s21 = smov 0  }
   0x2   :  { %s4068_s22 = smov 0   ;;  %s4070_s23 = smov 0  }
   0x3   :  { %s4072_s24 = smov 0  }
   0x4 LB: > { %s24_s25 = sadd.s32 1, %s4018_s22  ;;  %s27_s26 = sadd.s32 1, %s4022_s23  ;;  %s4026_s24 = sphi %s4072_s24, %s15_s24   ;;  %s4022_s23 = sphi %s4070_s23, %s4966_s23   ;;  %s4018_s22 = sphi %s4068_s22, %s4965_s22   ;;  %s4014_s21 = sphi %s4066_s21, %s4964_s21   ;;  %s4010_s20 = sphi %s4064_s20, %s4963_s20   ;;  %s4006_s19 = sphi %s4062_s19, %s4962_s19   ;;  %s4002_s18 = sphi %s4060_s18, %s4961_s18  }
   0x5   : > { %p25_p0 = scmp.ge.s32.totalorder %s24_s25, 2  ;;  %p43_p1 = scmp.ne.s32.totalorder %s4006_s19, %s4002_s18 }
   0x6   : > { %p44_p2 = scmp.eq.s32.totalorder %s4026_s24, 0  ;;  %s36_s30 = sadd.s32 1, %s4006_s19 }
   0x7   : > { %s4968_s25 = smov (%p25_p0, %s24_s25), 0  ;;  %s4970_s26 = smov (!%p25_p0, %s27_s26), %s4022_s23 }
   0x8   : > { %p45_p3 = por %p44_p2, %p43_p1  ;;  %p29_p4 = scmp.ge.s32.totalorder %s4970_s26, 2 }
   0x9   : > { %s32_s27 = ssub.s32 %s4018_s22, %s4968_s25  ;;  %p3476_p6 = scmp.ge.s32.totalorder %s4026_s24, 4 }
   0xa   : > { %s4972_s26 = smov (%p29_p4, %s4970_s26), 0 }
   0xb   : > { %s31_s28 = ssub.s32 %s4022_s23, %s4972_s26  ;;  %195 = sbr.rel (%p3476_p6) target bundleno = 87 (0x57), region = 24 }
   0xc   : > { %s33_s29 = sor.u32 %s32_s27, %s31_s28 }
   0xd   : > { %p34_p5 = scmp.eq.s32.totalorder %s33_s29, 0 }
   0xf   : > { %s4111_s6 = scalar_select %p34_p5, %s4006_s19, %s36_s30  }
  0x10   : > { %198 = sbr.rel (!%p45_p3) target bundleno = 87 (0x57), region = 28  ;;  %s200_s7 = sand.u32 (%p45_p3), 1, %s4006_s19  }
  0x11   : > { %s3479_s8 = sshll.u32 (%p45_p3), %s4018_s22, 2  ;;  %s3477_s9 = sshll.u32 (%p45_p3), %s200_s7, 9 }
  0x12   : > { %s3654_s10 = sshll.u32 (%p45_p3), %s4022_s23, 7  ;;  %s4125_s16 = scalar_lea.vmem (%p45_p3), [#allocation3], %s3477_s9 }
  0x13   : > { %s206_s11 = sadd.s32 (%p45_p3), %s3654_s10, %s3479_s8 }
  0x14   : > { %s3481_s12 = sshll.u32 (%p45_p3), %s206_s11, 3 }
  0x15   : > { %s4120_s15 = scalar_lea.vmem %s4955_s0, %s3481_s12 }
  0x16   : > { %v221_v0 = vld [vmem:[%s4120_s15] sm:$0xff]  ;;  %v223_v1 = vld [vmem:[%s4120_s15 + $0x8] sm:$0xff]  ;;  %v225_v2 = vld [vmem:[%s4120_s15 + $0x10] sm:$0xff] }
  0x17   : > { %222 = vst [vmem:[%s4125_s16] sm:$0xff] %v221_v0  ;;  %v227_v3 = vld [vmem:[%s4120_s15 + $0x18] sm:$0xff]  ;;  %v229_v4 = vld [vmem:[%s4120_s15 + $0x40] sm:$0xff]  ;;  %v231_v5 = vld [vmem:[%s4120_s15 + $0x48] sm:$0xff] }
  0x18   : > { %224 = vst [vmem:[%s4125_s16 + $0x8] sm:$0xff] %v223_v1  ;;  %v233_v6 = vld [vmem:[%s4120_s15 + $0x50] sm:$0xff]  ;;  %v235_v7 = vld [vmem:[%s4120_s15 + $0x58] sm:$0xff]  ;;  %v237_v8 = vld [vmem:[%s4120_s15 + $0x80] sm:$0xff] }
  0x19   : > { %226 = vst [vmem:[%s4125_s16 + $0x10] sm:$0xff] %v225_v2  ;;  %v239_v9 = vld [vmem:[%s4120_s15 + $0x88] sm:$0xff]  ;;  %v241_v10 = vld [vmem:[%s4120_s15 + $0x90] sm:$0xff]  ;;  %v243_v11 = vld [vmem:[%s4120_s15 + $0x98] sm:$0xff] }
  0x1a   : > { %228 = vst [vmem:[%s4125_s16 + $0x18] sm:$0xff] %v227_v3  ;;  %v245_v12 = vld [vmem:[%s4120_s15 + $0xc0] sm:$0xff]  ;;  %v247_v13 = vld [vmem:[%s4120_s15 + $0xc8] sm:$0xff]  ;;  %v249_v14 = vld [vmem:[%s4120_s15 + $0xd0] sm:$0xff] }
  0x1b   : > { %230 = vst [vmem:[%s4125_s16 + $0x20] sm:$0xff] %v229_v4  ;;  %v251_v15 = vld [vmem:[%s4120_s15 + $0xd8] sm:$0xff]  ;;  %v253_v16 = vld [vmem:[%s4120_s15 + $0x100] sm:$0xff]  ;;  %v255_v17 = vld [vmem:[%s4120_s15 + $0x108] sm:$0xff] }
  0x1c   : > { %232 = vst [vmem:[%s4125_s16 + $0x28] sm:$0xff] %v231_v5  ;;  %v257_v18 = vld [vmem:[%s4120_s15 + $0x110] sm:$0xff]  ;;  %v259_v19 = vld [vmem:[%s4120_s15 + $0x118] sm:$0xff]  ;;  %v261_v20 = vld [vmem:[%s4120_s15 + $0x140] sm:$0xff] }
  0x1d   : > { %234 = vst [vmem:[%s4125_s16 + $0x30] sm:$0xff] %v233_v6  ;;  %v263_v21 = vld [vmem:[%s4120_s15 + $0x148] sm:$0xff]  ;;  %v265_v22 = vld [vmem:[%s4120_s15 + $0x150] sm:$0xff]  ;;  %v267_v23 = vld [vmem:[%s4120_s15 + $0x158] sm:$0xff] }
  0x1e   : > { %236 = vst [vmem:[%s4125_s16 + $0x38] sm:$0xff] %v235_v7  ;;  %v269_v24 = vld [vmem:[%s4120_s15 + $0x180] sm:$0xff]  ;;  %v271_v25 = vld [vmem:[%s4120_s15 + $0x188] sm:$0xff]  ;;  %v273_v26 = vld [vmem:[%s4120_s15 + $0x190] sm:$0xff] }
  0x1f   : > { %238 = vst [vmem:[%s4125_s16 + $0x40] sm:$0xff] %v237_v8  ;;  %v275_v27 = vld [vmem:[%s4120_s15 + $0x198] sm:$0xff]  ;;  %v277_v28 = vld [vmem:[%s4120_s15 + $0x1c0] sm:$0xff]  ;;  %v279_v29 = vld [vmem:[%s4120_s15 + $0x1c8] sm:$0xff] }
  0x20   : > { %240 = vst [vmem:[%s4125_s16 + $0x48] sm:$0xff] %v239_v9  ;;  %v281_v30 = vld [vmem:[%s4120_s15 + $0x1d0] sm:$0xff]  ;;  %v283_v31 = vld [vmem:[%s4120_s15 + $0x1d8] sm:$0xff]  ;;  %v285_v32 = vld [vmem:[%s4120_s15 + $0x200] sm:$0xff] }
  0x21   : > { %242 = vst [vmem:[%s4125_s16 + $0x50] sm:$0xff] %v241_v10  ;;  %v287_v33 = vld [vmem:[%s4120_s15 + $0x208] sm:$0xff]  ;;  %v289_v34 = vld [vmem:[%s4120_s15 + $0x210] sm:$0xff]  ;;  %v291_v35 = vld [vmem:[%s4120_s15 + $0x218] sm:$0xff] }
  0x22   : > { %244 = vst [vmem:[%s4125_s16 + $0x58] sm:$0xff] %v243_v11  ;;  %v293_v36 = vld [vmem:[%s4120_s15 + $0x240] sm:$0xff]  ;;  %v295_v37 = vld [vmem:[%s4120_s15 + $0x248] sm:$0xff]  ;;  %v297_v38 = vld [vmem:[%s4120_s15 + $0x250] sm:$0xff] }
  0x23   : > { %246 = vst [vmem:[%s4125_s16 + $0x60] sm:$0xff] %v245_v12  ;;  %v299_v39 = vld [vmem:[%s4120_s15 + $0x258] sm:$0xff]  ;;  %v301_v40 = vld [vmem:[%s4120_s15 + $0x280] sm:$0xff]  ;;  %v303_v41 = vld [vmem:[%s4120_s15 + $0x288] sm:$0xff] }
  0x24   : > { %248 = vst [vmem:[%s4125_s16 + $0x68] sm:$0xff] %v247_v13  ;;  %v305_v42 = vld [vmem:[%s4120_s15 + $0x290] sm:$0xff]  ;;  %v307_v43 = vld [vmem:[%s4120_s15 + $0x298] sm:$0xff]  ;;  %v309_v44 = vld [vmem:[%s4120_s15 + $0x2c0] sm:$0xff] }
  0x25   : > { %250 = vst [vmem:[%s4125_s16 + $0x70] sm:$0xff] %v249_v14  ;;  %v311_v45 = vld [vmem:[%s4120_s15 + $0x2c8] sm:$0xff]  ;;  %v313_v46 = vld [vmem:[%s4120_s15 + $0x2d0] sm:$0xff]  ;;  %v315_v47 = vld [vmem:[%s4120_s15 + $0x2d8] sm:$0xff] }
  0x26   : > { %252 = vst [vmem:[%s4125_s16 + $0x78] sm:$0xff] %v251_v15  ;;  %v317_v48 = vld [vmem:[%s4120_s15 + $0x300] sm:$0xff]  ;;  %v319_v49 = vld [vmem:[%s4120_s15 + $0x308] sm:$0xff]  ;;  %v321_v50 = vld [vmem:[%s4120_s15 + $0x310] sm:$0xff] }
  0x27   : > { %254 = vst [vmem:[%s4125_s16 + $0x80] sm:$0xff] %v253_v16  ;;  %v323_v51 = vld [vmem:[%s4120_s15 + $0x318] sm:$0xff]  ;;  %v325_v52 = vld [vmem:[%s4120_s15 + $0x340] sm:$0xff]  ;;  %v327_v53 = vld [vmem:[%s4120_s15 + $0x348] sm:$0xff] }
  0x28   : > { %256 = vst [vmem:[%s4125_s16 + $0x88] sm:$0xff] %v255_v17  ;;  %v329_v54 = vld [vmem:[%s4120_s15 + $0x350] sm:$0xff]  ;;  %v331_v55 = vld [vmem:[%s4120_s15 + $0x358] sm:$0xff]  ;;  %v333_v56 = vld [vmem:[%s4120_s15 + $0x380] sm:$0xff] }
  0x29   : > { %258 = vst [vmem:[%s4125_s16 + $0x90] sm:$0xff] %v257_v18  ;;  %v335_v57 = vld [vmem:[%s4120_s15 + $0x388] sm:$0xff]  ;;  %v337_v58 = vld [vmem:[%s4120_s15 + $0x390] sm:$0xff]  ;;  %v339_v59 = vld [vmem:[%s4120_s15 + $0x398] sm:$0xff] }
  0x2a   : > { %260 = vst [vmem:[%s4125_s16 + $0x98] sm:$0xff] %v259_v19  ;;  %v341_v60 = vld [vmem:[%s4120_s15 + $0x3c0] sm:$0xff]  ;;  %v343_v61 = vld [vmem:[%s4120_s15 + $0x3c8] sm:$0xff]  ;;  %v345_v62 = vld [vmem:[%s4120_s15 + $0x3d0] sm:$0xff] }
  0x2b   : > { %262 = vst [vmem:[%s4125_s16 + $0xa0] sm:$0xff] %v261_v20  ;;  %v347_v63 = vld [vmem:[%s4120_s15 + $0x3d8] sm:$0xff] }
  0x2c   : > { %264 = vst [vmem:[%s4125_s16 + $0xa8] sm:$0xff] %v263_v21 }
  0x2d   : > { %266 = vst [vmem:[%s4125_s16 + $0xb0] sm:$0xff] %v265_v22 }
  0x2e   : > { %268 = vst [vmem:[%s4125_s16 + $0xb8] sm:$0xff] %v267_v23 }
  0x2f   : > { %270 = vst [vmem:[%s4125_s16 + $0xc0] sm:$0xff] %v269_v24 }
  0x30   : > { %272 = vst [vmem:[%s4125_s16 + $0xc8] sm:$0xff] %v271_v25 }
  0x31   : > { %274 = vst [vmem:[%s4125_s16 + $0xd0] sm:$0xff] %v273_v26 }
  0x32   : > { %276 = vst [vmem:[%s4125_s16 + $0xd8] sm:$0xff] %v275_v27 }
  0x33   : > { %278 = vst [vmem:[%s4125_s16 + $0xe0] sm:$0xff] %v277_v28 }
  0x34   : > { %280 = vst [vmem:[%s4125_s16 + $0xe8] sm:$0xff] %v279_v29 }
  0x35   : > { %282 = vst [vmem:[%s4125_s16 + $0xf0] sm:$0xff] %v281_v30 }
  0x36   : > { %284 = vst [vmem:[%s4125_s16 + $0xf8] sm:$0xff] %v283_v31 }
  0x37   : > { %286 = vst [vmem:[%s4125_s16 + $0x100] sm:$0xff] %v285_v32 }
  0x38   : > { %288 = vst [vmem:[%s4125_s16 + $0x108] sm:$0xff] %v287_v33 }
  0x39   : > { %290 = vst [vmem:[%s4125_s16 + $0x110] sm:$0xff] %v289_v34 }
  0x3a   : > { %292 = vst [vmem:[%s4125_s16 + $0x118] sm:$0xff] %v291_v35 }
  0x3b   : > { %294 = vst [vmem:[%s4125_s16 + $0x120] sm:$0xff] %v293_v36 }
  0x3c   : > { %296 = vst [vmem:[%s4125_s16 + $0x128] sm:$0xff] %v295_v37 }
  0x3d   : > { %298 = vst [vmem:[%s4125_s16 + $0x130] sm:$0xff] %v297_v38 }
  0x3e   : > { %300 = vst [vmem:[%s4125_s16 + $0x138] sm:$0xff] %v299_v39 }
  0x3f   : > { %302 = vst [vmem:[%s4125_s16 + $0x140] sm:$0xff] %v301_v40 }
  0x40   : > { %304 = vst [vmem:[%s4125_s16 + $0x148] sm:$0xff] %v303_v41 }
  0x41   : > { %306 = vst [vmem:[%s4125_s16 + $0x150] sm:$0xff] %v305_v42 }
  0x42   : > { %308 = vst [vmem:[%s4125_s16 + $0x158] sm:$0xff] %v307_v43 }
  0x43   : > { %310 = vst [vmem:[%s4125_s16 + $0x160] sm:$0xff] %v309_v44 }
  0x44   : > { %312 = vst [vmem:[%s4125_s16 + $0x168] sm:$0xff] %v311_v45 }
  0x45   : > { %314 = vst [vmem:[%s4125_s16 + $0x170] sm:$0xff] %v313_v46 }
  0x46   : > { %316 = vst [vmem:[%s4125_s16 + $0x178] sm:$0xff] %v315_v47 }
  0x47   : > { %318 = vst [vmem:[%s4125_s16 + $0x180] sm:$0xff] %v317_v48 }
  0x48   : > { %320 = vst [vmem:[%s4125_s16 + $0x188] sm:$0xff] %v319_v49 }
  0x49   : > { %322 = vst [vmem:[%s4125_s16 + $0x190] sm:$0xff] %v321_v50 }
  0x4a   : > { %324 = vst [vmem:[%s4125_s16 + $0x198] sm:$0xff] %v323_v51 }
  0x4b   : > { %326 = vst [vmem:[%s4125_s16 + $0x1a0] sm:$0xff] %v325_v52 }
  0x4c   : > { %328 = vst [vmem:[%s4125_s16 + $0x1a8] sm:$0xff] %v327_v53 }
  0x4d   : > { %330 = vst [vmem:[%s4125_s16 + $0x1b0] sm:$0xff] %v329_v54 }
  0x4e   : > { %332 = vst [vmem:[%s4125_s16 + $0x1b8] sm:$0xff] %v331_v55 }
  0x4f   : > { %334 = vst [vmem:[%s4125_s16 + $0x1c0] sm:$0xff] %v333_v56 }
  0x50   : > { %336 = vst [vmem:[%s4125_s16 + $0x1c8] sm:$0xff] %v335_v57 }
  0x51   : > { %338 = vst [vmem:[%s4125_s16 + $0x1d0] sm:$0xff] %v337_v58 }
  0x52   : > { %340 = vst [vmem:[%s4125_s16 + $0x1d8] sm:$0xff] %v339_v59 }
  0x53   : > { %342 = vst [vmem:[%s4125_s16 + $0x1e0] sm:$0xff] %v341_v60 }
  0x54   : > { %344 = vst [vmem:[%s4125_s16 + $0x1e8] sm:$0xff] %v343_v61 }
  0x55   : > { %346 = vst [vmem:[%s4125_s16 + $0x1f0] sm:$0xff] %v345_v62 }
  0x56   : > { %348 = vst [vmem:[%s4125_s16 + $0x1f8] sm:$0xff] %v347_v63 }
  0x57 PF: > { %p3482_p7 = scmp.ge.s32.totalorder %s4026_s24, 1  ;;  %p371_p8 = scmp.lt.s32.totalorder %s4026_s24, 5 }
  0x59   : > { %p372_p9 = pnand %p3482_p7, %p371_p8 }
  0x5a   : > { %s378_s17 = sand.u32 (!%p372_p9), 1, %s4002_s18   ;;  %s3484_s27 = sshll.u32 (!%p372_p9), %s4010_s20, 6 }
  0x5b   : > { %375 = sbr.rel (%p372_p9) target bundleno = 1278 (0x4fe), region = 59  ;;  %s3483_s28 = sshll.u32 (!%p372_p9), %s378_s17, 9 }
  0x5c   : > { %p418_p10 = scmp.lt.s32.totalorder (!%p372_p9), %s3484_s27, 127  ;;  %s3486_s29 = sshll.u32 (!%p372_p9), %s4014_s21, 6 }
  0x5d   : > { %p424_p11 = scmp.lt.s32.totalorder (!%p372_p9), %s3486_s29, 127  ;;  %s4272_s16 = scalar_lea.vmem (!%p372_p9), [#allocation3], %s3483_s28 }
  0x5e   : > { %p3490_p12 = scmp.ne.s32.totalorder (!%p372_p9), %s4010_s20, 0 }
  0x60   : > { %s4974_s27 = smov (!%p418_p10, %s3484_s27), 127  ;;  %s4976_s29 = smov (!%p424_p11, %s3486_s29), 127 }
  0x61   : > { %s3485_s30 = sshll.u32 %s4974_s27, 2  ;;  %s3487_s10 = sshll.u32 %s4976_s29, 3 }
  0x62   : > { %s4260_s9 = scalar_lea.vmem %s4956_s1, %s3485_s30  ;;  %s3489_s11 = sshll.u32 %s4976_s29, 2 }
  0x63   : > { %s4265_s14 = scalar_lea.vmem %s4957_s2, %s3487_s10  ;;  %s4270_s21 = scalar_lea.vmem %s4960_s5, %s3489_s11 }
  0x64   : > { %438 = sbr.rel (%p3490_p12) target bundleno = 170 (0xaa), region = 67 }
  0x69   : > { %v4028_v0 = vmov 0.0  }
  0x6a   : > { %439 = vst [vmem:[#allocation2 + $0xb0] sm:$0xff] %v4028_v0 }
  0x6b   : > { %440 = vst [vmem:[#allocation2 + $0x1b0] sm:$0xff] %v4028_v0 }
  0x6c   : > { %441 = vst [vmem:[#allocation2 + $0xd8] sm:$0xff] %v4028_v0 }
  0x6d   : > { %442 = vst [vmem:[#allocation2 + $0x18] sm:$0xff] %v4028_v0 }
  0x6e   : > { %443 = vst [vmem:[#allocation2 + $0x50] sm:$0xff] %v4028_v0 }
  0x6f   : > { %444 = vst [vmem:[#allocation2 + $0x168] sm:$0xff] %v4028_v0 }
  0x70   : > { %445 = vst [vmem:[#allocation2 + $0x130] sm:$0xff] %v4028_v0 }
  0x71   : > { %446 = vst [vmem:[#allocation2 + $0x48] sm:$0xff] %v4028_v0 }
  0x72   : > { %447 = vst [vmem:[#allocation2 + $0x180] sm:$0xff] %v4028_v0 }
  0x73   : > { %448 = vst [vmem:[#allocation2 + $0x110] sm:$0xff] %v4028_v0 }
  0x74   : > { %449 = vst [vmem:[#allocation2 + $0x118] sm:$0xff] %v4028_v0 }
  0x75   : > { %450 = vst [vmem:[#allocation2 + $0x98] sm:$0xff] %v4028_v0 }
  0x76   : > { %451 = vst [vmem:[#allocation2 + $0x120] sm:$0xff] %v4028_v0 }
  0x77   : > { %452 = vst [vmem:[#allocation2 + $0x150] sm:$0xff] %v4028_v0 }
  0x78   : > { %453 = vst [vmem:[#allocation2 + $0x108] sm:$0xff] %v4028_v0 }
  0x79   : > { %454 = vst [vmem:[#allocation2 + $0x60] sm:$0xff] %v4028_v0 }
  0x7a   : > { %455 = vst [vmem:[#allocation2 + $0xe0] sm:$0xff] %v4028_v0 }
  0x7b   : > { %456 = vst [vmem:[#allocation2 + $0x188] sm:$0xff] %v4028_v0 }
  0x7c   : > { %457 = vst [vmem:[#allocation2 + $0x138] sm:$0xff] %v4028_v0 }
  0x7d   : > { %458 = vst [vmem:[#allocation2 + $0x140] sm:$0xff] %v4028_v0 }
  0x7e   : > { %459 = vst [vmem:[#allocation2 + $0x80] sm:$0xff] %v4028_v0 }
  0x7f   : > { %460 = vst [vmem:[#allocation2 + $0x1a8] sm:$0xff] %v4028_v0 }
  0x80   : > { %461 = vst [vmem:[#allocation2 + $0x1b8] sm:$0xff] %v4028_v0 }
  0x81   : > { %462 = vst [vmem:[#allocation2 + $0x28] sm:$0xff] %v4028_v0 }
  0x82   : > { %463 = vst [vmem:[#allocation2 + $0x1e8] sm:$0xff] %v4028_v0 }
  0x83   : > { %464 = vst [vmem:[#allocation2 + $0xf8] sm:$0xff] %v4028_v0 }
  0x84   : > { %465 = vst [vmem:[#allocation2 + $0x160] sm:$0xff] %v4028_v0 }
  0x85   : > { %466 = vst [vmem:[#allocation2 + $0x30] sm:$0xff] %v4028_v0 }
  0x86   : > { %467 = vst [vmem:[#allocation2 + $0x1e0] sm:$0xff] %v4028_v0 }
  0x87   : > { %468 = vst [vmem:[#allocation2] sm:$0xff] %v4028_v0 }
  0x88   : > { %469 = vst [vmem:[#allocation2 + $0xf0] sm:$0xff] %v4028_v0 }
  0x89   : > { %470 = vst [vmem:[#allocation2 + $0x8] sm:$0xff] %v4028_v0 }
  0x8a   : > { %471 = vst [vmem:[#allocation2 + $0x148] sm:$0xff] %v4028_v0 }
  0x8b   : > { %472 = vst [vmem:[#allocation2 + $0x1d0] sm:$0xff] %v4028_v0 }
  0x8c   : > { %473 = vst [vmem:[#allocation2 + $0x100] sm:$0xff] %v4028_v0 }
  0x8d   : > { %474 = vst [vmem:[#allocation2 + $0xc8] sm:$0xff] %v4028_v0 }
  0x8e   : > { %475 = vst [vmem:[#allocation2 + $0x40] sm:$0xff] %v4028_v0 }
  0x8f   : > { %476 = vst [vmem:[#allocation2 + $0x1f8] sm:$0xff] %v4028_v0 }
  0x90   : > { %477 = vst [vmem:[#allocation2 + $0x20] sm:$0xff] %v4028_v0 }
  0x91   : > { %478 = vst [vmem:[#allocation2 + $0x128] sm:$0xff] %v4028_v0 }
  0x92   : > { %479 = vst [vmem:[#allocation2 + $0x1a0] sm:$0xff] %v4028_v0 }
  0x93   : > { %480 = vst [vmem:[#allocation2 + $0x1f0] sm:$0xff] %v4028_v0 }
  0x94   : > { %481 = vst [vmem:[#allocation2 + $0xe8] sm:$0xff] %v4028_v0 }
  0x95   : > { %482 = vst [vmem:[#allocation2 + $0x78] sm:$0xff] %v4028_v0 }
  0x96   : > { %483 = vst [vmem:[#allocation2 + $0x70] sm:$0xff] %v4028_v0 }
  0x97   : > { %484 = vst [vmem:[#allocation2 + $0x90] sm:$0xff] %v4028_v0 }
  0x98   : > { %485 = vst [vmem:[#allocation2 + $0x1d8] sm:$0xff] %v4028_v0 }
  0x99   : > { %486 = vst [vmem:[#allocation2 + $0xd0] sm:$0xff] %v4028_v0 }
  0x9a   : > { %487 = vst [vmem:[#allocation2 + $0xb8] sm:$0xff] %v4028_v0 }
  0x9b   : > { %488 = vst [vmem:[#allocation2 + $0x88] sm:$0xff] %v4028_v0 }
  0x9c   : > { %489 = vst [vmem:[#allocation2 + $0xa8] sm:$0xff] %v4028_v0 }
  0x9d   : > { %490 = vst [vmem:[#allocation2 + $0x1c8] sm:$0xff] %v4028_v0 }
  0x9e   : > { %491 = vst [vmem:[#allocation2 + $0x170] sm:$0xff] %v4028_v0 }
  0x9f   : > { %492 = vst [vmem:[#allocation2 + $0x178] sm:$0xff] %v4028_v0 }
  0xa0   : > { %493 = vst [vmem:[#allocation2 + $0x68] sm:$0xff] %v4028_v0 }
  0xa1   : > { %494 = vst [vmem:[#allocation2 + $0x190] sm:$0xff] %v4028_v0 }
  0xa2   : > { %495 = vst [vmem:[#allocation2 + $0x198] sm:$0xff] %v4028_v0 }
  0xa3   : > { %496 = vst [vmem:[#allocation2 + $0x38] sm:$0xff] %v4028_v0 }
  0xa4   : > { %497 = vst [vmem:[#allocation2 + $0xc0] sm:$0xff] %v4028_v0 }
  0xa5   : > { %498 = vst [vmem:[#allocation2 + $0x1c0] sm:$0xff] %v4028_v0 }
  0xa6   : > { %499 = vst [vmem:[#allocation2 + $0x158] sm:$0xff] %v4028_v0 }
  0xa7   : > { %500 = vst [vmem:[#allocation2 + $0x10] sm:$0xff] %v4028_v0 }
  0xa8   : > { %501 = vst [vmem:[#allocation2 + $0x58] sm:$0xff] %v4028_v0 }
  0xa9   : > { %502 = vst [vmem:[#allocation2 + $0xa0] sm:$0xff] %v4028_v0 }
  0xaa PF: > { %v3662_v1 = vld [vmem:[%s4260_s9 + $0x38] sm:$0xff]  ;;  %v3661_v5 = vld [vmem:[%s4260_s9 + $0x30] sm:$0xff]  ;;  %v3660_v9 = vld [vmem:[%s4260_s9 + $0x28] sm:$0xff]  ;;  %p3619_p13 = scmp.ne.s32.totalorder %s4010_s20, 1 }
  0xab   : > { %v3670_v2 = vld [vmem:[%s4260_s9 + $0x78] sm:$0xff]  ;;  %1527 = vmatpush.bf16.msra.mxu0 %v3662_v1  ;;  %v3669_v6 = vld [vmem:[%s4260_s9 + $0x70] sm:$0xff]  ;;  %v3668_v10 = vld [vmem:[%s4260_s9 + $0x68] sm:$0xff] }
  0xac   : > { %v3678_v3 = vld [vmem:[%s4260_s9 + $0xb8] sm:$0xff]  ;;  %1696 = vmatpush.bf16.msra.mxu1 %v3670_v2  ;;  %v3677_v7 = vld [vmem:[%s4260_s9 + $0xb0] sm:$0xff]  ;;  %v3676_v11 = vld [vmem:[%s4260_s9 + $0xa8] sm:$0xff] }
  0xad   : > { %v3686_v4 = vld [vmem:[%s4260_s9 + $0xf8] sm:$0xff]  ;;  %1865 = vmatpush.bf16.msra.mxu2 %v3678_v3  ;;  %v3685_v8 = vld [vmem:[%s4260_s9 + $0xf0] sm:$0xff]  ;;  %v3684_v12 = vld [vmem:[%s4260_s9 + $0xe8] sm:$0xff] }
  0xae   : > { %2034 = vmatpush.bf16.msra.mxu3 %v3686_v4  ;;  %v3659_v13 = vld [vmem:[%s4260_s9 + $0x20] sm:$0xff]  ;;  %v3658_v17 = vld [vmem:[%s4260_s9 + $0x18] sm:$0xff]  ;;  %v3657_v21 = vld [vmem:[%s4260_s9 + $0x10] sm:$0xff] }
  0xaf   : > { %1528 = vmatpush.bf16.msra.mxu0 %v3661_v5  ;;  %v3667_v14 = vld [vmem:[%s4260_s9 + $0x60] sm:$0xff]  ;;  %v3666_v18 = vld [vmem:[%s4260_s9 + $0x58] sm:$0xff]  ;;  %v3665_v22 = vld [vmem:[%s4260_s9 + $0x50] sm:$0xff] }
  0xb0   : > { %1697 = vmatpush.bf16.msra.mxu1 %v3669_v6  ;;  %v3675_v15 = vld [vmem:[%s4260_s9 + $0xa0] sm:$0xff]  ;;  %v3674_v19 = vld [vmem:[%s4260_s9 + $0x98] sm:$0xff]  ;;  %v3673_v23 = vld [vmem:[%s4260_s9 + $0x90] sm:$0xff] }
  0xb1   : > { %1866 = vmatpush.bf16.msra.mxu2 %v3677_v7  ;;  %v3683_v16 = vld [vmem:[%s4260_s9 + $0xe0] sm:$0xff]  ;;  %v3682_v20 = vld [vmem:[%s4260_s9 + $0xd8] sm:$0xff]  ;;  %v504_v25 = vld [vmem:[%s4272_s16 + $0x8] sm:$0xff] }
  0xb2   : > { %2035 = vmatpush.bf16.msra.mxu3 %v3685_v8  ;;  %v503_v24 = vld [vmem:[%s4272_s16] sm:$0xff]  ;;  %v3681_v26 = vld [vmem:[%s4260_s9 + $0xd0] sm:$0xff]  ;;  %v506_v28 = vld [vmem:[%s4272_s16 + $0x18] sm:$0xff]  ;;  %v568_v31 = vunpack.c.0.s8 %v504_v25  ;;  %v572_v32 = vunpack.c.1.s8 %v504_v25  ;;  %v576_v59 = vunpack.c.2.s8 %v504_v25  ;;  %v580_v60 = vunpack.c.3.s8 %v504_v25 }
  0xb3   : > { %1529 = vmatpush.bf16.msra.mxu0 %v3660_v9  ;;  %v505_v27 = vld [vmem:[%s4272_s16 + $0x10] sm:$0xff]  ;;  %v567_v29 = vunpack.c.0.s8 %v503_v24  ;;  %v571_v30 = vunpack.c.1.s8 %v503_v24  ;;  %v3656_v33 = vld [vmem:[%s4260_s9 + $0x8] sm:$0xff]  ;;  %v570_v37 = vunpack.c.0.s8 %v506_v28  ;;  %v574_v38 = vunpack.c.1.s8 %v506_v28  ;;  %v3655_v45 = vld [vmem:[%s4260_s9] sm:$0xff] }
  0xb4   : > { %1698 = vmatpush.bf16.msra.mxu1 %v3668_v10  ;;  %v3664_v34 = vld [vmem:[%s4260_s9 + $0x48] sm:$0xff]  ;;  %v569_v35 = vunpack.c.0.s8 %v505_v27  ;;  %v573_v36 = vunpack.c.1.s8 %v505_v27  ;;  %v824_v43 = vcvt.s32.f32 %v568_v31  ;;  %v828_v44 = vcvt.s32.f32 %v572_v32  ;;  %v3663_v46 = vld [vmem:[%s4260_s9 + $0x40] sm:$0xff] }
  0xb5   : > { %1867 = vmatpush.bf16.msra.mxu2 %v3676_v11  ;;  %v3672_v39 = vld [vmem:[%s4260_s9 + $0x88] sm:$0xff]  ;;  %v823_v41 = vcvt.s32.f32 %v567_v29  ;;  %v827_v42 = vcvt.s32.f32 %v571_v30  ;;  %v826_v49 = vcvt.s32.f32 %v570_v37  ;;  %v830_v50 = vcvt.s32.f32 %v574_v38  ;;  %v3671_v51 = vld [vmem:[%s4260_s9 + $0x80] sm:$0xff] }
  0xb6   : > { %2036 = vmatpush.bf16.msra.mxu3 %v3684_v12  ;;  %v3680_v40 = vld [vmem:[%s4260_s9 + $0xc8] sm:$0xff]  ;;  %v825_v47 = vcvt.s32.f32 %v569_v35  ;;  %v829_v48 = vcvt.s32.f32 %v573_v36  ;;  %v3679_v52 = vld [vmem:[%s4260_s9 + $0xc0] sm:$0xff]  ;;  %v1080_v54 = vpack.c.bf16 %v828_v44, %v824_v43  ;;  %v575_v57 = vunpack.c.2.s8 %v503_v24 }
  0xb7   : > { %1530 = vmatpush.bf16.msra.mxu0 %v3659_v13  ;;  %v1079_v53 = vpack.c.bf16 %v827_v42, %v823_v41  ;;  %v1082_v56 = vpack.c.bf16 %v830_v50, %v826_v49  ;;  %v579_v58 = vunpack.c.3.s8 %v503_v24  ;;  %v577_v61 = vunpack.c.2.s8 %v505_v27  ;;  %v507_v13 = vld [vmem:[%s4272_s16 + $0x20] sm:$0xff] }
  0xb8   : > { %1699 = vmatpush.bf16.msra.mxu1 %v3667_v14  ;;  %v1081_v55 = vpack.c.bf16 %v829_v48, %v825_v47  ;;  %v581_v62 = vunpack.c.3.s8 %v505_v27  ;;  %v578_v63 = vunpack.c.2.s8 %v506_v28  ;;  %v582_v0 = vunpack.c.3.s8 %v506_v28  ;;  %v508_v14 = vld [vmem:[%s4272_s16 + $0x28] sm:$0xff] }
  0xb9   : > { %1868 = vmatpush.bf16.msra.mxu2 %v3675_v15  ;;  %v831_v1 = vcvt.s32.f32 %v575_v57  ;;  %v835_v2 = vcvt.s32.f32 %v579_v58  ;;  %v832_v3 = vcvt.s32.f32 %v576_v59  ;;  %v836_v4 = vcvt.s32.f32 %v580_v60  ;;  %v509_v15 = vld [vmem:[%s4272_s16 + $0x30] sm:$0xff]  ;;  %v511_v57 = vld [vmem:[%s4272_s16 + $0x40] sm:$0xff]  ;;  %v512_v58 = vld [vmem:[%s4272_s16 + $0x48] sm:$0xff] }
  0xba   : > { %2037 = vmatpush.bf16.msra.mxu3 %v3683_v16  ;;  %v833_v5 = vcvt.s32.f32 %v577_v61  ;;  %v837_v6 = vcvt.s32.f32 %v581_v62  ;;  %v834_v7 = vcvt.s32.f32 %v578_v63  ;;  %v838_v8 = vcvt.s32.f32 %v582_v0  ;;  %v510_v16 = vld [vmem:[%s4272_s16 + $0x38] sm:$0xff]  ;;  %v513_v59 = vld [vmem:[%s4272_s16 + $0x50] sm:$0xff] }
  0xbb   : > { %1531 = vmatpush.bf16.msra.mxu0 %v3658_v17  ;;  %v1083_v9 = vpack.c.bf16 %v835_v2, %v831_v1  ;;  %v1084_v10 = vpack.c.bf16 %v836_v4, %v832_v3  ;;  %v583_v17 = vunpack.c.0.s8 %v507_v13  ;;  %v590_v24 = vunpack.c.1.s8 %v510_v16  ;;  %v514_v60 = vld [vmem:[%s4272_s16 + $0x58] sm:$0xff] }
  0xbc   : > { %1700 = vmatpush.bf16.msra.mxu1 %v3666_v18  ;;  %v1085_v11 = vpack.c.bf16 %v837_v6, %v833_v5  ;;  %v1086_v12 = vpack.c.bf16 %v838_v8, %v834_v7  ;;  %v587_v18 = vunpack.c.1.s8 %v507_v13  ;;  %v591_v37 = vunpack.c.2.s8 %v507_v13 }
  0xbd   : > { %1869 = vmatpush.bf16.msra.mxu2 %v3674_v19  ;;  %v584_v19 = vunpack.c.0.s8 %v508_v14  ;;  %v839_v25 = vcvt.s32.f32 %v583_v17  ;;  %v846_v32 = vcvt.s32.f32 %v590_v24  ;;  %v595_v38 = vunpack.c.3.s8 %v507_v13 }
  0xbe   : > { %2038 = vmatpush.bf16.msra.mxu3 %v3682_v20  ;;  %v588_v20 = vunpack.c.1.s8 %v508_v14  ;;  %v593_v41 = vunpack.c.2.s8 %v509_v15  ;;  %v597_v42 = vunpack.c.3.s8 %v509_v15  ;;  %v594_v43 = vunpack.c.2.s8 %v510_v16 }
  0xbf   : > { %1532 = vmatpush.bf16.msra.mxu0 %v3657_v21  ;;  %v585_v21 = vunpack.c.0.s8 %v509_v15  ;;  %v840_v27 = vcvt.s32.f32 %v584_v19  ;;  %v598_v44 = vunpack.c.3.s8 %v510_v16  ;;  %v599_v61 = vunpack.c.0.s8 %v511_v57 }
  0xc0   : > { %1701 = vmatpush.bf16.msra.mxu1 %v3665_v22  ;;  %v589_v22 = vunpack.c.1.s8 %v509_v15  ;;  %v844_v28 = vcvt.s32.f32 %v588_v20  ;;  %v849_v49 = vcvt.s32.f32 %v593_v41  ;;  %v853_v50 = vcvt.s32.f32 %v597_v42 }
  0xc1   : > { %1870 = vmatpush.bf16.msra.mxu2 %v3673_v23  ;;  %v586_v23 = vunpack.c.0.s8 %v510_v16  ;;  %v841_v29 = vcvt.s32.f32 %v585_v21  ;;  %v603_v62 = vunpack.c.1.s8 %v511_v57  ;;  %v600_v63 = vunpack.c.0.s8 %v512_v58 }
  0xc2   : > { %2039 = vmatpush.bf16.msra.mxu3 %v3681_v26  ;;  %v843_v26 = vcvt.s32.f32 %v587_v18  ;;  %v845_v30 = vcvt.s32.f32 %v589_v22  ;;  %v604_v0 = vunpack.c.1.s8 %v512_v58  ;;  %v601_v1 = vunpack.c.0.s8 %v513_v59 }
  0xc3   : > { %1533 = vmatpush.bf16.msra.mxu0 %v3656_v33  ;;  %v842_v31 = vcvt.s32.f32 %v586_v23  ;;  %v605_v2 = vunpack.c.1.s8 %v513_v59  ;;  %v602_v3 = vunpack.c.0.s8 %v514_v60  ;;  %v606_v4 = vunpack.c.1.s8 %v514_v60 }
  0xc4   : > { %1702 = vmatpush.bf16.msra.mxu1 %v3664_v34  ;;  %v1087_v33 = vpack.c.bf16 %v843_v26, %v839_v25  ;;  %v1088_v34 = vpack.c.bf16 %v844_v28, %v840_v27  ;;  %v1089_v35 = vpack.c.bf16 %v845_v30, %v841_v29  ;;  %v855_v5 = vcvt.s32.f32 %v599_v61 }
  0xc5   : > { %1871 = vmatpush.bf16.msra.mxu2 %v3672_v39  ;;  %v1090_v36 = vpack.c.bf16 %v846_v32, %v842_v31  ;;  %v592_v39 = vunpack.c.2.s8 %v508_v14  ;;  %v859_v6 = vcvt.s32.f32 %v603_v62  ;;  %v856_v7 = vcvt.s32.f32 %v600_v63 }
  0xc6   : > { %2040 = vmatpush.bf16.msra.mxu3 %v3680_v40  ;;  %v596_v40 = vunpack.c.3.s8 %v508_v14  ;;  %v860_v8 = vcvt.s32.f32 %v604_v0  ;;  %v607_v17 = vunpack.c.2.s8 %v511_v57  ;;  %v611_v18 = vunpack.c.3.s8 %v511_v57 }
  0xc7   : > { %1534 = vmatpush.bf16.msra.mxu0 %v3655_v45  ;;  %v847_v45 = vcvt.s32.f32 %v591_v37  ;;  %v848_v47 = vcvt.s32.f32 %v592_v39  ;;  %v1095_v13 = vpack.c.bf16 %v859_v6, %v855_v5  ;;  %v608_v19 = vunpack.c.2.s8 %v512_v58  ;;  %v515_v37 = vld [vmem:[%s4272_s16 + $0x60] sm:$0xff]  ;;  %v517_v39 = vld [vmem:[%s4272_s16 + $0x70] sm:$0xff] }
  0xc8   : > { %1703 = vmatpush.bf16.msra.mxu1 %v3663_v46  ;;  %v851_v46 = vcvt.s32.f32 %v595_v38  ;;  %v852_v48 = vcvt.s32.f32 %v596_v40  ;;  %v1096_v14 = vpack.c.bf16 %v860_v8, %v856_v7  ;;  %v612_v20 = vunpack.c.3.s8 %v512_v58  ;;  %v516_v38 = vld [vmem:[%s4272_s16 + $0x68] sm:$0xff]  ;;  %v518_v40 = vld [vmem:[%s4272_s16 + $0x78] sm:$0xff] }
  0xc9   : > { %1872 = vmatpush.bf16.msra.mxu2 %v3671_v51  ;;  %v850_v51 = vcvt.s32.f32 %v594_v43  ;;  %v609_v21 = vunpack.c.2.s8 %v513_v59  ;;  %v613_v22 = vunpack.c.3.s8 %v513_v59  ;;  %v610_v23 = vunpack.c.2.s8 %v514_v60 }
  0xca   : > { %2041 = vmatpush.bf16.msra.mxu3 %v3679_v52  ;;  %1535 = vmatmul.bf16.vlgmr.msra.gmra.mxu0 %v1079_v53  ;;  %v854_v52 = vcvt.s32.f32 %v598_v44  ;;  %v1091_v53 = vpack.c.bf16 %v851_v46, %v847_v45  ;;  %v614_v24 = vunpack.c.3.s8 %v514_v60  ;;  %v863_v25 = vcvt.s32.f32 %v607_v17  ;;  %v519_v17 = vld [vmem:[%s4272_s16 + $0x80] sm:$0xff] }
  0xcb   : > { %1704 = vmatmul.bf16.vlgmr.msra.gmra.mxu1 %v1080_v54  ;;  %v1092_v54 = vpack.c.bf16 %v852_v48, %v848_v47  ;;  %v867_v26 = vcvt.s32.f32 %v611_v18  ;;  %v864_v27 = vcvt.s32.f32 %v608_v19  ;;  %v868_v28 = vcvt.s32.f32 %v612_v20  ;;  %v520_v18 = vld [vmem:[%s4272_s16 + $0x88] sm:$0xff]  ;;  %v521_v19 = vld [vmem:[%s4272_s16 + $0x90] sm:$0xff]  ;;  %v522_v20 = vld [vmem:[%s4272_s16 + $0x98] sm:$0xff] }
  0xcc   : > { %1873 = vmatmul.bf16.vlgmr.msra.gmra.mxu2 %v1081_v55  ;;  %v1093_v55 = vpack.c.bf16 %v853_v50, %v849_v49  ;;  %v865_v29 = vcvt.s32.f32 %v609_v21  ;;  %v869_v30 = vcvt.s32.f32 %v613_v22  ;;  %v866_v31 = vcvt.s32.f32 %v610_v23 }
  0xcd   : > { %2042 = vmatmul.bf16.vlgmr.msra.gmra.mxu3 %v1082_v56  ;;  %v1094_v56 = vpack.c.bf16 %v854_v52, %v850_v51  ;;  %v870_v32 = vcvt.s32.f32 %v614_v24  ;;  %v615_v41 = vunpack.c.0.s8 %v515_v37  ;;  %v619_v42 = vunpack.c.1.s8 %v515_v37 }
  0xce   : > { %v616_v43 = vunpack.c.0.s8 %v516_v38  ;;  %v620_v44 = vunpack.c.1.s8 %v516_v38  ;;  %v617_v45 = vunpack.c.0.s8 %v517_v39  ;;  %v621_v46 = vunpack.c.1.s8 %v517_v39 }
  0xcf   : > { %v618_v47 = vunpack.c.0.s8 %v518_v40  ;;  %v622_v48 = vunpack.c.1.s8 %v518_v40  ;;  %v871_v49 = vcvt.s32.f32 %v615_v41  ;;  %v875_v50 = vcvt.s32.f32 %v619_v42 }
  0xd0   : > { %v872_v51 = vcvt.s32.f32 %v616_v43  ;;  %v876_v52 = vcvt.s32.f32 %v620_v44  ;;  %v623_v61 = vunpack.c.2.s8 %v515_v37  ;;  %v627_v62 = vunpack.c.3.s8 %v515_v37 }
  0xd1   : > { %v1103_v57 = vpack.c.bf16 %v875_v50, %v871_v49  ;;  %v624_v63 = vunpack.c.2.s8 %v516_v38  ;;  %v628_v0 = vunpack.c.3.s8 %v516_v38  ;;  %v631_v21 = vunpack.c.0.s8 %v519_v17 }
  0xd2   : > { %v1104_v58 = vpack.c.bf16 %v876_v52, %v872_v51  ;;  %v879_v5 = vcvt.s32.f32 %v623_v61  ;;  %v883_v6 = vcvt.s32.f32 %v627_v62  ;;  %v635_v22 = vunpack.c.1.s8 %v519_v17 }
  0xd3   : > { %v880_v7 = vcvt.s32.f32 %v624_v63  ;;  %v884_v8 = vcvt.s32.f32 %v628_v0  ;;  %v632_v23 = vunpack.c.0.s8 %v520_v18  ;;  %v636_v24 = vunpack.c.1.s8 %v520_v18 }
  0xd4   : > { %v639_v44 = vunpack.c.2.s8 %v519_v17  ;;  %v644_v49 = vunpack.c.3.s8 %v520_v18  ;;  %v641_v50 = vunpack.c.2.s8 %v521_v19 }
  0xd6   : > { %v900_v62 = vcvt.s32.f32 %v644_v49  ;;  %v897_v63 = vcvt.s32.f32 %v641_v50 }
  0xda   : > { %1540 = vmatmul.bf16.gmra.mxu0 %v1083_v9  ;;  %v857_v9 = vcvt.s32.f32 %v601_v1  ;;  %v625_v1 = vunpack.c.2.s8 %v517_v39 }
  0xdb   : > { %1709 = vmatmul.bf16.gmra.mxu1 %v1084_v10  ;;  %v861_v10 = vcvt.s32.f32 %v605_v2  ;;  %v629_v2 = vunpack.c.3.s8 %v517_v39 }
  0xdc   : > { %1878 = vmatmul.bf16.gmra.mxu2 %v1085_v11  ;;  %v858_v11 = vcvt.s32.f32 %v602_v3  ;;  %v626_v3 = vunpack.c.2.s8 %v518_v40 }
  0xdd   : > { %2047 = vmatmul.bf16.gmra.mxu3 %v1086_v12  ;;  %v862_v12 = vcvt.s32.f32 %v606_v4  ;;  %v1097_v15 = vpack.c.bf16 %v861_v10, %v857_v9  ;;  %v630_v4 = vunpack.c.3.s8 %v518_v40  ;;  %v881_v9 = vcvt.s32.f32 %v625_v1 }
  0xde   : > { %v885_v10 = vcvt.s32.f32 %v629_v2 }
  0xdf   : > { %v1098_v16 = vpack.c.bf16 %v862_v12, %v858_v11  ;;  %v882_v11 = vcvt.s32.f32 %v626_v3  ;;  %v886_v12 = vcvt.s32.f32 %v630_v4 }
  0xea   : > { %1545 = vmatmul.bf16.gmra.mxu0 %v1087_v33  ;;  %v1099_v33 = vpack.c.bf16 %v867_v26, %v863_v25  ;;  %v633_v25 = vunpack.c.0.s8 %v521_v19  ;;  %v637_v26 = vunpack.c.1.s8 %v521_v19 }
  0xeb   : > { %1714 = vmatmul.bf16.gmra.mxu1 %v1088_v34  ;;  %v1100_v34 = vpack.c.bf16 %v868_v28, %v864_v27  ;;  %v634_v27 = vunpack.c.0.s8 %v522_v20  ;;  %v638_v28 = vunpack.c.1.s8 %v522_v20 }
  0xec   : > { %1883 = vmatmul.bf16.gmra.mxu2 %v1089_v35  ;;  %v1101_v35 = vpack.c.bf16 %v869_v30, %v865_v29  ;;  %v887_v29 = vcvt.s32.f32 %v631_v21  ;;  %v891_v30 = vcvt.s32.f32 %v635_v22  ;;  %v4401_v21 = vld [vmem:[%s4272_s16 + $0xb8] sm:$0xff] }
  0xed   : > { %2052 = vmatmul.bf16.gmra.mxu3 %v1090_v36  ;;  %v1102_v36 = vpack.c.bf16 %v870_v32, %v866_v31  ;;  %v888_v31 = vcvt.s32.f32 %v632_v23  ;;  %v892_v32 = vcvt.s32.f32 %v636_v24 }
  0xee   : > { %v1111_v37 = vpack.c.bf16 %v891_v30, %v887_v29 }
  0xef   : > { %v1112_v38 = vpack.c.bf16 %v892_v32, %v888_v31 }
  0xfa   : > { %1550 = vmatmul.bf16.gmra.mxu0 %v1091_v53  ;;  %v873_v53 = vcvt.s32.f32 %v617_v45 }
  0xfb   : > { %1719 = vmatmul.bf16.gmra.mxu1 %v1092_v54  ;;  %v877_v54 = vcvt.s32.f32 %v621_v46 }
  0xfc   : > { %1888 = vmatmul.bf16.gmra.mxu2 %v1093_v55  ;;  %v874_v55 = vcvt.s32.f32 %v618_v47  ;;  %v643_v47 = vunpack.c.3.s8 %v519_v17 }
  0xfd   : > { %2057 = vmatmul.bf16.gmra.mxu3 %v1094_v56  ;;  %v878_v56 = vcvt.s32.f32 %v622_v48  ;;  %v1105_v59 = vpack.c.bf16 %v877_v54, %v873_v53  ;;  %v640_v48 = vunpack.c.2.s8 %v520_v18  ;;  %v645_v54 = vunpack.c.3.s8 %v521_v19  ;;  %v4395_v19 = vld [vmem:[%s4272_s16 + $0xa8] sm:$0xff] }
  0xff   : > { %v1106_v60 = vpack.c.bf16 %v878_v56, %v874_v55  ;;  %v642_v55 = vunpack.c.2.s8 %v522_v20  ;;  %v646_v56 = vunpack.c.3.s8 %v522_v20  ;;  %v896_v61 = vcvt.s32.f32 %v640_v48  ;;  %v4398_v20 = vld [vmem:[%s4272_s16 + $0xb0] sm:$0xff] }
 0x100   : > { %v901_v1 = vcvt.s32.f32 %v645_v54  ;;  %v653_v32 = vunpack.c.1.s8 %v4398_v20 }
 0x101   : > { %v898_v2 = vcvt.s32.f32 %v642_v55  ;;  %v902_v3 = vcvt.s32.f32 %v646_v56  ;;  %v1210_v56 = vld [vmem:[#allocation2 + $0x18] sm:$0xff] }
 0x10a   : > { %1555 = vmatmul.bf16.gmra.mxu0 %v1095_v13  ;;  %v1107_v13 = vpack.c.bf16 %v883_v6, %v879_v5 }
 0x10b   : > { %1724 = vmatmul.bf16.gmra.mxu1 %v1096_v14  ;;  %v1108_v14 = vpack.c.bf16 %v884_v8, %v880_v7  ;;  %v1116_v8 = vpack.c.bf16 %v900_v62, %v896_v61 }
 0x10c   : > { %1893 = vmatmul.bf16.gmra.mxu2 %v1097_v15  ;;  %v1109_v15 = vpack.c.bf16 %v885_v10, %v881_v9 }
 0x10d   : > { %2062 = vmatmul.bf16.gmra.mxu3 %v1098_v16  ;;  %v1110_v16 = vpack.c.bf16 %v886_v12, %v882_v11  ;;  %v1117_v12 = vpack.c.bf16 %v901_v1, %v897_v63  ;;  %v660_v1 = vunpack.c.3.s8 %v4395_v19 }
 0x11a   : > { %1560 = vmatmul.bf16.gmra.mxu0 %v1099_v33  ;;  %v889_v33 = vcvt.s32.f32 %v633_v25 }
 0x11b   : > { %1729 = vmatmul.bf16.gmra.mxu1 %v1100_v34  ;;  %v893_v34 = vcvt.s32.f32 %v637_v26  ;;  %v648_v26 = vunpack.c.0.s8 %v4395_v19 }
 0x11c   : > { %1898 = vmatmul.bf16.gmra.mxu2 %v1101_v35  ;;  %v890_v35 = vcvt.s32.f32 %v634_v27  ;;  %v652_v27 = vunpack.c.1.s8 %v4395_v19 }
 0x11d   : > { %2067 = vmatmul.bf16.gmra.mxu3 %v1102_v36  ;;  %v894_v36 = vcvt.s32.f32 %v638_v28  ;;  %v1113_v41 = vpack.c.bf16 %v893_v34, %v889_v33  ;;  %v649_v28 = vunpack.c.0.s8 %v4398_v20  ;;  %v650_v33 = vunpack.c.0.s8 %v4401_v21 }
 0x11e   : > { %v654_v34 = vunpack.c.1.s8 %v4401_v21 }
 0x11f   : > { %v1114_v42 = vpack.c.bf16 %v894_v36, %v890_v35  ;;  %v1209_v35 = vld [vmem:[#allocation2 + $0xd8] sm:$0xff] }
 0x12a   : > { %1565 = vmatmul.bf16.gmra.mxu0 %v1103_v57  ;;  %v1207_v57 = vld [vmem:[#allocation2 + $0xb0] sm:$0xff] }
 0x12b   : > { %1734 = vmatmul.bf16.gmra.mxu1 %v1104_v58 }
 0x12c   : > { %1903 = vmatmul.bf16.gmra.mxu2 %v1105_v59  ;;  %v895_v59 = vcvt.s32.f32 %v639_v44  ;;  %v906_v44 = vcvt.s32.f32 %v650_v33 }
 0x12d   : > { %2072 = vmatmul.bf16.gmra.mxu3 %v1106_v60  ;;  %v899_v60 = vcvt.s32.f32 %v643_v47 }
 0x12f   : > { %v1115_v7 = vpack.c.bf16 %v899_v60, %v895_v59 }
 0x13a   : > { %1570 = vmatmul.bf16.gmra.mxu0 %v1107_v13  ;;  %v1118_v13 = vpack.c.bf16 %v902_v3, %v898_v2  ;;  %v657_v2 = vunpack.c.2.s8 %v4398_v20 }
 0x13b   : > { %1739 = vmatmul.bf16.gmra.mxu1 %v1108_v14  ;;  %v1208_v14 = vld [vmem:[#allocation2 + $0x1b0] sm:$0xff] }
 0x13c   : > { %1908 = vmatmul.bf16.gmra.mxu2 %v1109_v15 }
 0x13d   : > { %2077 = vmatmul.bf16.gmra.mxu3 %v1110_v16  ;;  %v4392_v16 = vld [vmem:[%s4272_s16 + $0xa0] sm:$0xff] }
 0x13e   : > { %v647_v22 = vunpack.c.0.s8 %v4392_v16  ;;  %v651_v25 = vunpack.c.1.s8 %v4392_v16  ;;  %v655_v60 = vunpack.c.2.s8 %v4392_v16  ;;  %v659_v63 = vunpack.c.3.s8 %v4392_v16 }
 0x147   : > { %v1536_v39 = vpop.f32.mrf.mxu0 }
 0x148   : > { %v1705_v40 = vpop.f32.mrf.mxu1 }
 0x149   : > { %v1706_v43 = vadd.f32 %v1705_v40, %v1536_v39  ;;  %v904_v39 = vcvt.s32.f32 %v648_v26  ;;  %v908_v40 = vcvt.s32.f32 %v652_v27 }
 0x14a   : > { %1575 = vmatmul.bf16.gmra.mxu0 %v1111_v37  ;;  %v903_v37 = vcvt.s32.f32 %v647_v22 }
 0x14b   : > { %1744 = vmatmul.bf16.gmra.mxu1 %v1112_v38  ;;  %v907_v38 = vcvt.s32.f32 %v651_v25  ;;  %v1120_v50 = vpack.c.bf16 %v908_v40, %v904_v39 }
 0x14c   : > { %1913 = vmatmul.bf16.gmra.mxu2 %v1113_v41  ;;  %v905_v41 = vcvt.s32.f32 %v649_v28 }
 0x14d   : > { %2082 = vmatmul.bf16.gmra.mxu3 %v1114_v42  ;;  %v1119_v49 = vpack.c.bf16 %v907_v38, %v903_v37  ;;  %v4429_v37 = vld [vmem:[%s4272_s16 + $0xd8] sm:$0xff] }
 0x14f   : > { %v1874_v45 = vpop.f32.mrf.mxu2  ;;  %v1538_v52 = vpop.f32.mrf.mxu0 }
 0x150   : > { %v2043_v46 = vpop.f32.mrf.mxu3  ;;  %v1875_v51 = vadd.f32 %v1874_v45, %v1706_v43  ;;  %v1707_v53 = vpop.f32.mrf.mxu1  ;;  %v909_v43 = vcvt.s32.f32 %v653_v32  ;;  %v910_v45 = vcvt.s32.f32 %v654_v34  ;;  %v4420_v32 = vld [vmem:[%s4272_s16 + $0xc0] sm:$0xff] }
 0x151   : > { %v1708_v4 = vadd.f32 %v1707_v53, %v1538_v52  ;;  %v663_v38 = vunpack.c.0.s8 %v4420_v32 }
 0x152   : > { %v2044_v58 = vadd.f32 %v2043_v46, %v1875_v51  ;;  %v1121_v54 = vpack.c.bf16 %v909_v43, %v905_v41  ;;  %v1122_v55 = vpack.c.bf16 %v910_v45, %v906_v44  ;;  %v667_v41 = vunpack.c.1.s8 %v4420_v32 }
 0x154   : > { %v2203_v0 = vadd.f32 %v2044_v58, %v1207_v57 }
 0x156   : > { %2267 = vst [vmem:[#allocation2 + $0xb0] sm:$0xff] %v2203_v0  ;;  %v656_v0 = vunpack.c.2.s8 %v4395_v19 }
 0x157   : > { %v1876_v5 = vpop.f32.mrf.mxu2  ;;  %v1541_v10 = vpop.f32.mrf.mxu0 }
 0x158   : > { %v2045_v6 = vpop.f32.mrf.mxu3  ;;  %v1877_v9 = vadd.f32 %v1876_v5, %v1708_v4  ;;  %v1710_v11 = vpop.f32.mrf.mxu1 }
 0x159   : > { %v1711_v18 = vadd.f32 %v1710_v11, %v1541_v10  ;;  %v911_v11 = vcvt.s32.f32 %v655_v60 }
 0x15a   : > { %v2046_v15 = vadd.f32 %v2045_v6, %v1877_v9  ;;  %1580 = vmatmul.bf16.gmra.mxu0 %v1115_v7  ;;  %v661_v6 = vunpack.c.3.s8 %v4398_v20  ;;  %v658_v7 = vunpack.c.2.s8 %v4401_v21  ;;  %v1211_v9 = vld [vmem:[#allocation2 + $0x50] sm:$0xff] }
 0x15b   : > { %1749 = vmatmul.bf16.gmra.mxu1 %v1116_v8  ;;  %v662_v8 = vunpack.c.3.s8 %v4401_v21 }
 0x15c   : > { %v2204_v17 = vadd.f32 %v2046_v15, %v1208_v14  ;;  %1918 = vmatmul.bf16.gmra.mxu2 %v1117_v12  ;;  %v915_v12 = vcvt.s32.f32 %v659_v63  ;;  %v916_v14 = vcvt.s32.f32 %v660_v1  ;;  %v913_v15 = vcvt.s32.f32 %v657_v2 }
 0x15d   : > { %2087 = vmatmul.bf16.gmra.mxu3 %v1118_v13  ;;  %v912_v13 = vcvt.s32.f32 %v656_v0  ;;  %v918_v19 = vcvt.s32.f32 %v662_v8  ;;  %v1214_v8 = vld [vmem:[#allocation2 + $0x48] sm:$0xff] }
 0x15e   : > { %2268 = vst [vmem:[#allocation2 + $0x1b0] sm:$0xff] %v2204_v17  ;;  %v917_v17 = vcvt.s32.f32 %v661_v6 }
 0x15f   : > { %v1879_v23 = vpop.f32.mrf.mxu2  ;;  %v1543_v30 = vpop.f32.mrf.mxu0  ;;  %v1124_v25 = vpack.c.bf16 %v916_v14, %v912_v13 }
 0x160   : > { %v2048_v24 = vpop.f32.mrf.mxu3  ;;  %v1880_v29 = vadd.f32 %v1879_v23, %v1711_v18  ;;  %v1712_v31 = vpop.f32.mrf.mxu1  ;;  %v914_v18 = vcvt.s32.f32 %v658_v7  ;;  %v1125_v28 = vpack.c.bf16 %v917_v17, %v913_v15  ;;  %v675_v15 = vunpack.c.3.s8 %v4420_v32 }
 0x161   : > { %v1713_v46 = vadd.f32 %v1712_v31, %v1543_v30  ;;  %v1212_v30 = vld [vmem:[#allocation2 + $0x168] sm:$0xff] }
 0x162   : > { %v2049_v36 = vadd.f32 %v2048_v24, %v1880_v29  ;;  %v1123_v24 = vpack.c.bf16 %v915_v12, %v911_v11  ;;  %v1126_v29 = vpack.c.bf16 %v918_v19, %v914_v18  ;;  %v671_v12 = vunpack.c.2.s8 %v4420_v32 }
 0x164   : > { %v2205_v42 = vadd.f32 %v2049_v36, %v1209_v35  ;;  %v4423_v35 = vld [vmem:[%s4272_s16 + $0xc8] sm:$0xff]  ;;  %v4426_v36 = vld [vmem:[%s4272_s16 + $0xd0] sm:$0xff] }
 0x165   : > { %v668_v43 = vunpack.c.1.s8 %v4423_v35  ;;  %v665_v44 = vunpack.c.0.s8 %v4426_v36  ;;  %v676_v17 = vunpack.c.3.s8 %v4423_v35  ;;  %v673_v18 = vunpack.c.2.s8 %v4426_v36 }
 0x166   : > { %2269 = vst [vmem:[#allocation2 + $0xd8] sm:$0xff] %v2205_v42  ;;  %v664_v42 = vunpack.c.0.s8 %v4423_v35 }
 0x167   : > { %v1881_v47 = vpop.f32.mrf.mxu2  ;;  %v1546_v52 = vpop.f32.mrf.mxu0 }
 0x168   : > { %v2050_v48 = vpop.f32.mrf.mxu3  ;;  %v1882_v51 = vadd.f32 %v1881_v47, %v1713_v46  ;;  %v1715_v53 = vpop.f32.mrf.mxu1 }
 0x169   : > { %v1716_v59 = vadd.f32 %v1715_v53, %v1546_v52  ;;  %v919_v53 = vcvt.s32.f32 %v663_v38 }
 0x16a   : > { %v2051_v57 = vadd.f32 %v2050_v48, %v1882_v51  ;;  %1585 = vmatmul.bf16.gmra.mxu0 %v1119_v49  ;;  %v669_v48 = vunpack.c.1.s8 %v4426_v36  ;;  %v666_v49 = vunpack.c.0.s8 %v4429_v37  ;;  %v1213_v51 = vld [vmem:[#allocation2 + $0x130] sm:$0xff] }
 0x16b   : > { %1754 = vmatmul.bf16.gmra.mxu1 %v1120_v50  ;;  %v670_v50 = vunpack.c.1.s8 %v4429_v37 }
 0x16c   : > { %v2206_v58 = vadd.f32 %v2051_v57, %v1210_v56  ;;  %1923 = vmatmul.bf16.gmra.mxu2 %v1121_v54  ;;  %v923_v54 = vcvt.s32.f32 %v667_v41  ;;  %v924_v56 = vcvt.s32.f32 %v668_v43  ;;  %v921_v57 = vcvt.s32.f32 %v665_v44 }
 0x16d   : > { %2092 = vmatmul.bf16.gmra.mxu3 %v1122_v55  ;;  %v920_v55 = vcvt.s32.f32 %v664_v42  ;;  %v922_v60 = vcvt.s32.f32 %v666_v49 }
 0x16e   : > { %2270 = vst [vmem:[#allocation2 + $0x18] sm:$0xff] %v2206_v58  ;;  %v1127_v1 = vpack.c.bf16 %v923_v54, %v919_v53  ;;  %v4457_v53 = vld [vmem:[%s4272_s16 + $0xf8] sm:$0xff] }
 0x16f   : > { %v1884_v61 = vpop.f32.mrf.mxu2  ;;  %v1548_v4 = vpop.f32.mrf.mxu0  ;;  %v1128_v2 = vpack.c.bf16 %v924_v56, %v920_v55 }
 0x170   : > { %v2053_v62 = vpop.f32.mrf.mxu3  ;;  %v1885_v3 = vadd.f32 %v1884_v61, %v1716_v59  ;;  %v1717_v5 = vpop.f32.mrf.mxu1  ;;  %v925_v59 = vcvt.s32.f32 %v669_v48  ;;  %v926_v61 = vcvt.s32.f32 %v670_v50  ;;  %v4448_v48 = vld [vmem:[%s4272_s16 + $0xe0] sm:$0xff] }
 0x171   : > { %v1718_v22 = vadd.f32 %v1717_v5, %v1548_v4  ;;  %v679_v54 = vunpack.c.0.s8 %v4448_v48 }
 0x172   : > { %v2054_v10 = vadd.f32 %v2053_v62, %v1885_v3  ;;  %v1129_v6 = vpack.c.bf16 %v925_v59, %v921_v57  ;;  %v1130_v7 = vpack.c.bf16 %v926_v61, %v922_v60  ;;  %v683_v57 = vunpack.c.1.s8 %v4448_v48 }
 0x174   : > { %v2207_v16 = vadd.f32 %v2054_v10, %v1211_v9 }
 0x176   : > { %2271 = vst [vmem:[#allocation2 + $0x50] sm:$0xff] %v2207_v16  ;;  %v672_v16 = vunpack.c.2.s8 %v4423_v35 }
 0x177   : > { %v1886_v23 = vpop.f32.mrf.mxu2  ;;  %v1551_v26 = vpop.f32.mrf.mxu0 }
 0x178   : > { %v2055_v20 = vpop.f32.mrf.mxu3  ;;  %v1887_v21 = vadd.f32 %v1886_v23, %v1718_v22  ;;  %v1720_v27 = vpop.f32.mrf.mxu1 }
 0x179   : > { %v1721_v34 = vadd.f32 %v1720_v27, %v1551_v26  ;;  %v927_v27 = vcvt.s32.f32 %v671_v12 }
 0x17a   : > { %v2056_v31 = vadd.f32 %v2055_v20, %v1887_v21  ;;  %1590 = vmatmul.bf16.gmra.mxu0 %v1123_v24  ;;  %v677_v20 = vunpack.c.3.s8 %v4426_v36  ;;  %v674_v24 = vunpack.c.2.s8 %v4429_v37  ;;  %v1215_v21 = vld [vmem:[#allocation2 + $0x180] sm:$0xff] }
 0x17b   : > { %1759 = vmatmul.bf16.gmra.mxu1 %v1124_v25  ;;  %v678_v25 = vunpack.c.3.s8 %v4429_v37 }
 0x17c   : > { %v2208_v33 = vadd.f32 %v2056_v31, %v1212_v30  ;;  %1928 = vmatmul.bf16.gmra.mxu2 %v1125_v28  ;;  %v931_v28 = vcvt.s32.f32 %v675_v15  ;;  %v932_v30 = vcvt.s32.f32 %v676_v17  ;;  %v929_v31 = vcvt.s32.f32 %v673_v18 }
 0x17d   : > { %2097 = vmatmul.bf16.gmra.mxu3 %v1126_v29  ;;  %v928_v29 = vcvt.s32.f32 %v672_v16  ;;  %v934_v35 = vcvt.s32.f32 %v678_v25  ;;  %v1218_v25 = vld [vmem:[#allocation2 + $0x98] sm:$0xff] }
 0x17e   : > { %2272 = vst [vmem:[#allocation2 + $0x168] sm:$0xff] %v2208_v33  ;;  %v933_v33 = vcvt.s32.f32 %v677_v20 }
 0x17f   : > { %v1889_v39 = vpop.f32.mrf.mxu2  ;;  %v1553_v46 = vpop.f32.mrf.mxu0  ;;  %v1132_v41 = vpack.c.bf16 %v932_v30, %v928_v29 }
 0x180   : > { %v2058_v40 = vpop.f32.mrf.mxu3  ;;  %v1890_v45 = vadd.f32 %v1889_v39, %v1721_v34  ;;  %v1722_v47 = vpop.f32.mrf.mxu1  ;;  %v930_v34 = vcvt.s32.f32 %v674_v24  ;;  %v1133_v44 = vpack.c.bf16 %v933_v33, %v929_v31  ;;  %v691_v31 = vunpack.c.3.s8 %v4448_v48 }
 0x181   : > { %v1723_v62 = vadd.f32 %v1722_v47, %v1553_v46  ;;  %v1216_v46 = vld [vmem:[#allocation2 + $0x110] sm:$0xff] }
 0x182   : > { %v2059_v52 = vadd.f32 %v2058_v40, %v1890_v45  ;;  %v1131_v40 = vpack.c.bf16 %v931_v28, %v927_v27  ;;  %v1134_v45 = vpack.c.bf16 %v934_v35, %v930_v34  ;;  %v687_v28 = vunpack.c.2.s8 %v4448_v48 }
 0x184   : > { %v2209_v58 = vadd.f32 %v2059_v52, %v1213_v51  ;;  %v4451_v51 = vld [vmem:[%s4272_s16 + $0xe8] sm:$0xff]  ;;  %v4454_v52 = vld [vmem:[%s4272_s16 + $0xf0] sm:$0xff] }
 0x185   : > { %v684_v59 = vunpack.c.1.s8 %v4451_v51  ;;  %v681_v60 = vunpack.c.0.s8 %v4454_v52  ;;  %v692_v33 = vunpack.c.3.s8 %v4451_v51  ;;  %v689_v34 = vunpack.c.2.s8 %v4454_v52 }
 0x186   : > { %2273 = vst [vmem:[#allocation2 + $0x130] sm:$0xff] %v2209_v58  ;;  %v680_v58 = vunpack.c.0.s8 %v4451_v51 }
 0x187   : > { %v1891_v63 = vpop.f32.mrf.mxu2  ;;  %v1556_v4 = vpop.f32.mrf.mxu0 }
 0x188   : > { %v2060_v0 = vpop.f32.mrf.mxu3  ;;  %v1892_v3 = vadd.f32 %v1891_v63, %v1723_v62  ;;  %v1725_v5 = vpop.f32.mrf.mxu1 }
 0x189   : > { %v1726_v11 = vadd.f32 %v1725_v5, %v1556_v4  ;;  %v935_v5 = vcvt.s32.f32 %v679_v54 }
 0x18a   : > { %v2061_v9 = vadd.f32 %v2060_v0, %v1892_v3  ;;  %1595 = vmatmul.bf16.gmra.mxu0 %v1127_v1  ;;  %v685_v0 = vunpack.c.1.s8 %v4454_v52  ;;  %v682_v1 = vunpack.c.0.s8 %v4457_v53  ;;  %v1217_v3 = vld [vmem:[#allocation2 + $0x118] sm:$0xff] }
 0x18b   : > { %1764 = vmatmul.bf16.gmra.mxu1 %v1128_v2  ;;  %v686_v2 = vunpack.c.1.s8 %v4457_v53 }
 0x18c   : > { %v2210_v10 = vadd.f32 %v2061_v9, %v1214_v8  ;;  %1933 = vmatmul.bf16.gmra.mxu2 %v1129_v6  ;;  %v939_v6 = vcvt.s32.f32 %v683_v57  ;;  %v940_v8 = vcvt.s32.f32 %v684_v59  ;;  %v937_v9 = vcvt.s32.f32 %v681_v60 }
 0x18d   : > { %2102 = vmatmul.bf16.gmra.mxu3 %v1130_v7  ;;  %v936_v7 = vcvt.s32.f32 %v680_v58  ;;  %v938_v12 = vcvt.s32.f32 %v682_v1 }
 0x18e   : > { %2274 = vst [vmem:[#allocation2 + $0x48] sm:$0xff] %v2210_v10  ;;  %v1135_v17 = vpack.c.bf16 %v939_v6, %v935_v5  ;;  %v4485_v5 = vld [vmem:[%s4272_s16 + $0x118] sm:$0xff] }
 0x18f   : > { %v1894_v13 = vpop.f32.mrf.mxu2  ;;  %v1558_v22 = vpop.f32.mrf.mxu0  ;;  %v1136_v18 = vpack.c.bf16 %v940_v8, %v936_v7 }
 0x190   : > { %v2063_v14 = vpop.f32.mrf.mxu3  ;;  %v1895_v19 = vadd.f32 %v1894_v13, %v1726_v11  ;;  %v1727_v23 = vpop.f32.mrf.mxu1  ;;  %v941_v11 = vcvt.s32.f32 %v685_v0  ;;  %v942_v13 = vcvt.s32.f32 %v686_v2  ;;  %v4476_v0 = vld [vmem:[%s4272_s16 + $0x100] sm:$0xff] }
 0x191   : > { %v1728_v38 = vadd.f32 %v1727_v23, %v1558_v22  ;;  %v695_v6 = vunpack.c.0.s8 %v4476_v0 }
 0x192   : > { %v2064_v26 = vadd.f32 %v2063_v14, %v1895_v19  ;;  %v1137_v20 = vpack.c.bf16 %v941_v11, %v937_v9  ;;  %v1138_v24 = vpack.c.bf16 %v942_v13, %v938_v12  ;;  %v699_v9 = vunpack.c.1.s8 %v4476_v0 }
 0x194   : > { %v2211_v32 = vadd.f32 %v2064_v26, %v1215_v21 }
 0x196   : > { %2275 = vst [vmem:[#allocation2 + $0x180] sm:$0xff] %v2211_v32  ;;  %v688_v32 = vunpack.c.2.s8 %v4451_v51 }
 0x197   : > { %v1896_v39 = vpop.f32.mrf.mxu2  ;;  %v1561_v42 = vpop.f32.mrf.mxu0 }
 0x198   : > { %v2065_v36 = vpop.f32.mrf.mxu3  ;;  %v1897_v37 = vadd.f32 %v1896_v39, %v1728_v38  ;;  %v1730_v43 = vpop.f32.mrf.mxu1 }
 0x199   : > { %v1731_v50 = vadd.f32 %v1730_v43, %v1561_v42  ;;  %v943_v43 = vcvt.s32.f32 %v687_v28 }
 0x19a   : > { %v2066_v47 = vadd.f32 %v2065_v36, %v1897_v37  ;;  %1600 = vmatmul.bf16.gmra.mxu0 %v1131_v40  ;;  %v693_v36 = vunpack.c.3.s8 %v4454_v52  ;;  %v690_v40 = vunpack.c.2.s8 %v4457_v53  ;;  %v1219_v37 = vld [vmem:[#allocation2 + $0x120] sm:$0xff] }
 0x19b   : > { %1769 = vmatmul.bf16.gmra.mxu1 %v1132_v41  ;;  %v694_v41 = vunpack.c.3.s8 %v4457_v53 }
 0x19c   : > { %v2212_v49 = vadd.f32 %v2066_v47, %v1216_v46  ;;  %1938 = vmatmul.bf16.gmra.mxu2 %v1133_v44  ;;  %v947_v44 = vcvt.s32.f32 %v691_v31  ;;  %v948_v46 = vcvt.s32.f32 %v692_v33  ;;  %v945_v47 = vcvt.s32.f32 %v689_v34 }
 0x19d   : > { %2107 = vmatmul.bf16.gmra.mxu3 %v1134_v45  ;;  %v944_v45 = vcvt.s32.f32 %v688_v32  ;;  %v950_v51 = vcvt.s32.f32 %v694_v41  ;;  %v1222_v41 = vld [vmem:[#allocation2 + $0x60] sm:$0xff] }
 0x19e   : > { %2276 = vst [vmem:[#allocation2 + $0x110] sm:$0xff] %v2212_v49  ;;  %v949_v49 = vcvt.s32.f32 %v693_v36 }
 0x19f   : > { %v1899_v55 = vpop.f32.mrf.mxu2  ;;  %v1563_v62 = vpop.f32.mrf.mxu0  ;;  %v1140_v57 = vpack.c.bf16 %v948_v46, %v944_v45 }
 0x1a0   : > { %v2068_v56 = vpop.f32.mrf.mxu3  ;;  %v1900_v61 = vadd.f32 %v1899_v55, %v1731_v50  ;;  %v1732_v63 = vpop.f32.mrf.mxu1  ;;  %v946_v50 = vcvt.s32.f32 %v690_v40  ;;  %v1141_v60 = vpack.c.bf16 %v949_v49, %v945_v47  ;;  %v707_v47 = vunpack.c.3.s8 %v4476_v0 }
 0x1a1   : > { %v1733_v14 = vadd.f32 %v1732_v63, %v1563_v62  ;;  %v1220_v62 = vld [vmem:[#allocation2 + $0x150] sm:$0xff] }
 0x1a2   : > { %v2069_v4 = vadd.f32 %v2068_v56, %v1900_v61  ;;  %v1139_v56 = vpack.c.bf16 %v947_v44, %v943_v43  ;;  %v1142_v61 = vpack.c.bf16 %v950_v51, %v946_v50  ;;  %v703_v44 = vunpack.c.2.s8 %v4476_v0 }
 0x1a4   : > { %v2213_v10 = vadd.f32 %v2069_v4, %v1217_v3  ;;  %v4479_v3 = vld [vmem:[%s4272_s16 + $0x108] sm:$0xff]  ;;  %v4482_v4 = vld [vmem:[%s4272_s16 + $0x110] sm:$0xff] }
 0x1a5   : > { %v700_v11 = vunpack.c.1.s8 %v4479_v3  ;;  %v697_v12 = vunpack.c.0.s8 %v4482_v4  ;;  %v708_v49 = vunpack.c.3.s8 %v4479_v3  ;;  %v705_v50 = vunpack.c.2.s8 %v4482_v4 }
 0x1a6   : > { %2277 = vst [vmem:[#allocation2 + $0x118] sm:$0xff] %v2213_v10  ;;  %v696_v10 = vunpack.c.0.s8 %v4479_v3 }
 0x1a7   : > { %v1901_v15 = vpop.f32.mrf.mxu2  ;;  %v1566_v22 = vpop.f32.mrf.mxu0 }
 0x1a8   : > { %v2070_v16 = vpop.f32.mrf.mxu3  ;;  %v1902_v19 = vadd.f32 %v1901_v15, %v1733_v14  ;;  %v1735_v23 = vpop.f32.mrf.mxu1 }
 0x1a9   : > { %v1736_v27 = vadd.f32 %v1735_v23, %v1566_v22  ;;  %v951_v23 = vcvt.s32.f32 %v695_v6 }
 0x1aa   : > { %v2071_v21 = vadd.f32 %v2070_v16, %v1902_v19  ;;  %1605 = vmatmul.bf16.gmra.mxu0 %v1135_v17  ;;  %v701_v16 = vunpack.c.1.s8 %v4482_v4  ;;  %v698_v17 = vunpack.c.0.s8 %v4485_v5  ;;  %v1221_v19 = vld [vmem:[#allocation2 + $0x108] sm:$0xff] }
 0x1ab   : > { %1774 = vmatmul.bf16.gmra.mxu1 %v1136_v18  ;;  %v702_v18 = vunpack.c.1.s8 %v4485_v5 }
 0x1ac   : > { %v2214_v26 = vadd.f32 %v2071_v21, %v1218_v25  ;;  %1943 = vmatmul.bf16.gmra.mxu2 %v1137_v20  ;;  %v955_v20 = vcvt.s32.f32 %v699_v9  ;;  %v956_v25 = vcvt.s32.f32 %v700_v11  ;;  %v953_v21 = vcvt.s32.f32 %v697_v12 }
 0x1ad   : > { %2112 = vmatmul.bf16.gmra.mxu3 %v1138_v24  ;;  %v952_v24 = vcvt.s32.f32 %v696_v10  ;;  %v954_v28 = vcvt.s32.f32 %v698_v17 }
 0x1ae   : > { %2278 = vst [vmem:[#allocation2 + $0x98] sm:$0xff] %v2214_v26  ;;  %v1143_v33 = vpack.c.bf16 %v955_v20, %v951_v23  ;;  %v4513_v23 = vld [vmem:[%s4272_s16 + $0x138] sm:$0xff] }
 0x1af   : > { %v1904_v29 = vpop.f32.mrf.mxu2  ;;  %v1568_v38 = vpop.f32.mrf.mxu0  ;;  %v1144_v34 = vpack.c.bf16 %v956_v25, %v952_v24 }
 0x1b0   : > { %v2073_v30 = vpop.f32.mrf.mxu3  ;;  %v1905_v35 = vadd.f32 %v1904_v29, %v1736_v27  ;;  %v1737_v39 = vpop.f32.mrf.mxu1  ;;  %v957_v27 = vcvt.s32.f32 %v701_v16  ;;  %v958_v29 = vcvt.s32.f32 %v702_v18  ;;  %v4504_v16 = vld [vmem:[%s4272_s16 + $0x120] sm:$0xff] }
 0x1b1   : > { %v1738_v54 = vadd.f32 %v1737_v39, %v1568_v38  ;;  %v711_v20 = vunpack.c.0.s8 %v4504_v16 }
 0x1b2   : > { %v2074_v42 = vadd.f32 %v2073_v30, %v1905_v35  ;;  %v1145_v36 = vpack.c.bf16 %v957_v27, %v953_v21  ;;  %v1146_v40 = vpack.c.bf16 %v958_v29, %v954_v28  ;;  %v715_v21 = vunpack.c.1.s8 %v4504_v16 }
 0x1b4   : > { %v2215_v48 = vadd.f32 %v2074_v42, %v1219_v37 }
 0x1b6   : > { %2279 = vst [vmem:[#allocation2 + $0x120] sm:$0xff] %v2215_v48  ;;  %v704_v48 = vunpack.c.2.s8 %v4479_v3 }
 0x1b7   : > { %v1906_v55 = vpop.f32.mrf.mxu2  ;;  %v1571_v58 = vpop.f32.mrf.mxu0 }
 0x1b8   : > { %v2075_v52 = vpop.f32.mrf.mxu3  ;;  %v1907_v53 = vadd.f32 %v1906_v55, %v1738_v54  ;;  %v1740_v59 = vpop.f32.mrf.mxu1 }
 0x1b9   : > { %v1741_v2 = vadd.f32 %v1740_v59, %v1571_v58  ;;  %v959_v59 = vcvt.s32.f32 %v703_v44 }
 0x1ba   : > { %v2076_v63 = vadd.f32 %v2075_v52, %v1907_v53  ;;  %1610 = vmatmul.bf16.gmra.mxu0 %v1139_v56  ;;  %v709_v52 = vunpack.c.3.s8 %v4482_v4  ;;  %v706_v56 = vunpack.c.2.s8 %v4485_v5  ;;  %v1223_v53 = vld [vmem:[#allocation2 + $0xe0] sm:$0xff] }
 0x1bb   : > { %1779 = vmatmul.bf16.gmra.mxu1 %v1140_v57  ;;  %v710_v57 = vunpack.c.3.s8 %v4485_v5 }
 0x1bc   : > { %v2216_v1 = vadd.f32 %v2076_v63, %v1220_v62  ;;  %1948 = vmatmul.bf16.gmra.mxu2 %v1141_v60  ;;  %v963_v60 = vcvt.s32.f32 %v707_v47  ;;  %v964_v62 = vcvt.s32.f32 %v708_v49  ;;  %v961_v63 = vcvt.s32.f32 %v705_v50 }
 0x1bd   : > { %2117 = vmatmul.bf16.gmra.mxu3 %v1142_v61  ;;  %v960_v61 = vcvt.s32.f32 %v704_v48  ;;  %v966_v3 = vcvt.s32.f32 %v710_v57  ;;  %v1226_v57 = vld [vmem:[#allocation2 + $0x140] sm:$0xff] }
 0x1be   : > { %2280 = vst [vmem:[#allocation2 + $0x150] sm:$0xff] %v2216_v1  ;;  %v965_v1 = vcvt.s32.f32 %v709_v52 }
 0x1bf   : > { %v1909_v7 = vpop.f32.mrf.mxu2  ;;  %v1573_v14 = vpop.f32.mrf.mxu0  ;;  %v1148_v9 = vpack.c.bf16 %v964_v62, %v960_v61 }
 0x1c0   : > { %v2078_v8 = vpop.f32.mrf.mxu3  ;;  %v1910_v13 = vadd.f32 %v1909_v7, %v1741_v2  ;;  %v1742_v15 = vpop.f32.mrf.mxu1  ;;  %v962_v2 = vcvt.s32.f32 %v706_v56  ;;  %v1149_v12 = vpack.c.bf16 %v965_v1, %v961_v63  ;;  %v723_v63 = vunpack.c.3.s8 %v4504_v16 }
 0x1c1   : > { %v1743_v30 = vadd.f32 %v1742_v15, %v1573_v14  ;;  %v1224_v14 = vld [vmem:[#allocation2 + $0x188] sm:$0xff] }
 0x1c2   : > { %v2079_v22 = vadd.f32 %v2078_v8, %v1910_v13  ;;  %v1147_v8 = vpack.c.bf16 %v963_v60, %v959_v59  ;;  %v1150_v13 = vpack.c.bf16 %v966_v3, %v962_v2  ;;  %v719_v60 = vunpack.c.2.s8 %v4504_v16 }
 0x1c4   : > { %v2217_v26 = vadd.f32 %v2079_v22, %v1221_v19  ;;  %v4507_v19 = vld [vmem:[%s4272_s16 + $0x128] sm:$0xff]  ;;  %v4510_v22 = vld [vmem:[%s4272_s16 + $0x130] sm:$0xff] }
 0x1c5   : > { %v716_v27 = vunpack.c.1.s8 %v4507_v19  ;;  %v713_v28 = vunpack.c.0.s8 %v4510_v22  ;;  %v724_v1 = vunpack.c.3.s8 %v4507_v19  ;;  %v721_v2 = vunpack.c.2.s8 %v4510_v22 }
 0x1c6   : > { %2281 = vst [vmem:[#allocation2 + $0x108] sm:$0xff] %v2217_v26  ;;  %v712_v26 = vunpack.c.0.s8 %v4507_v19 }
 0x1c7   : > { %v1911_v31 = vpop.f32.mrf.mxu2  ;;  %v1576_v38 = vpop.f32.mrf.mxu0 }
 0x1c8   : > { %v2080_v32 = vpop.f32.mrf.mxu3  ;;  %v1912_v35 = vadd.f32 %v1911_v31, %v1743_v30  ;;  %v1745_v39 = vpop.f32.mrf.mxu1 }
 0x1c9   : > { %v1746_v43 = vadd.f32 %v1745_v39, %v1576_v38  ;;  %v967_v39 = vcvt.s32.f32 %v711_v20 }
 0x1ca   : > { %v2081_v37 = vadd.f32 %v2080_v32, %v1912_v35  ;;  %1615 = vmatmul.bf16.gmra.mxu0 %v1143_v33  ;;  %v717_v32 = vunpack.c.1.s8 %v4510_v22  ;;  %v714_v33 = vunpack.c.0.s8 %v4513_v23  ;;  %v1225_v35 = vld [vmem:[#allocation2 + $0x138] sm:$0xff] }
 0x1cb   : > { %1784 = vmatmul.bf16.gmra.mxu1 %v1144_v34  ;;  %v718_v34 = vunpack.c.1.s8 %v4513_v23 }
 0x1cc   : > { %v2218_v42 = vadd.f32 %v2081_v37, %v1222_v41  ;;  %1953 = vmatmul.bf16.gmra.mxu2 %v1145_v36  ;;  %v971_v36 = vcvt.s32.f32 %v715_v21  ;;  %v972_v41 = vcvt.s32.f32 %v716_v27  ;;  %v969_v37 = vcvt.s32.f32 %v713_v28 }
 0x1cd   : > { %2122 = vmatmul.bf16.gmra.mxu3 %v1146_v40  ;;  %v968_v40 = vcvt.s32.f32 %v712_v26  ;;  %v970_v44 = vcvt.s32.f32 %v714_v33 }
 0x1ce   : > { %2282 = vst [vmem:[#allocation2 + $0x60] sm:$0xff] %v2218_v42  ;;  %v1151_v49 = vpack.c.bf16 %v971_v36, %v967_v39  ;;  %v4541_v39 = vld [vmem:[%s4272_s16 + $0x158] sm:$0xff] }
 0x1cf   : > { %v1914_v45 = vpop.f32.mrf.mxu2  ;;  %v1578_v54 = vpop.f32.mrf.mxu0  ;;  %v1152_v50 = vpack.c.bf16 %v972_v41, %v968_v40 }
 0x1d0   : > { %v2083_v46 = vpop.f32.mrf.mxu3  ;;  %v1915_v51 = vadd.f32 %v1914_v45, %v1746_v43  ;;  %v1747_v55 = vpop.f32.mrf.mxu1  ;;  %v973_v43 = vcvt.s32.f32 %v717_v32  ;;  %v974_v45 = vcvt.s32.f32 %v718_v34  ;;  %v4532_v32 = vld [vmem:[%s4272_s16 + $0x140] sm:$0xff] }
 0x1d1   : > { %v1748_v6 = vadd.f32 %v1747_v55, %v1578_v54  ;;  %v727_v36 = vunpack.c.0.s8 %v4532_v32 }
 0x1d2   : > { %v2084_v58 = vadd.f32 %v2083_v46, %v1915_v51  ;;  %v1153_v52 = vpack.c.bf16 %v973_v43, %v969_v37  ;;  %v1154_v56 = vpack.c.bf16 %v974_v45, %v970_v44  ;;  %v731_v37 = vunpack.c.1.s8 %v4532_v32 }
 0x1d4   : > { %v2219_v0 = vadd.f32 %v2084_v58, %v1223_v53 }
 0x1d6   : > { %2283 = vst [vmem:[#allocation2 + $0xe0] sm:$0xff] %v2219_v0  ;;  %v720_v0 = vunpack.c.2.s8 %v4507_v19 }
 0x1d7   : > { %v1916_v7 = vpop.f32.mrf.mxu2  ;;  %v1581_v10 = vpop.f32.mrf.mxu0 }
 0x1d8   : > { %v2085_v4 = vpop.f32.mrf.mxu3  ;;  %v1917_v5 = vadd.f32 %v1916_v7, %v1748_v6  ;;  %v1750_v11 = vpop.f32.mrf.mxu1 }
 0x1d9   : > { %v1751_v18 = vadd.f32 %v1750_v11, %v1581_v10  ;;  %v975_v11 = vcvt.s32.f32 %v719_v60 }
 0x1da   : > { %v2086_v15 = vadd.f32 %v2085_v4, %v1917_v5  ;;  %1620 = vmatmul.bf16.gmra.mxu0 %v1147_v8  ;;  %v725_v4 = vunpack.c.3.s8 %v4510_v22  ;;  %v722_v8 = vunpack.c.2.s8 %v4513_v23  ;;  %v1227_v5 = vld [vmem:[#allocation2 + $0x80] sm:$0xff] }
 0x1db   : > { %1789 = vmatmul.bf16.gmra.mxu1 %v1148_v9  ;;  %v726_v9 = vunpack.c.3.s8 %v4513_v23 }
 0x1dc   : > { %v2220_v17 = vadd.f32 %v2086_v15, %v1224_v14  ;;  %1958 = vmatmul.bf16.gmra.mxu2 %v1149_v12  ;;  %v979_v12 = vcvt.s32.f32 %v723_v63  ;;  %v980_v14 = vcvt.s32.f32 %v724_v1  ;;  %v977_v15 = vcvt.s32.f32 %v721_v2 }
 0x1dd   : > { %2127 = vmatmul.bf16.gmra.mxu3 %v1150_v13  ;;  %v976_v13 = vcvt.s32.f32 %v720_v0  ;;  %v982_v19 = vcvt.s32.f32 %v726_v9  ;;  %v1230_v9 = vld [vmem:[#allocation2 + $0x28] sm:$0xff] }
 0x1de   : > { %2284 = vst [vmem:[#allocation2 + $0x188] sm:$0xff] %v2220_v17  ;;  %v981_v17 = vcvt.s32.f32 %v725_v4 }
 0x1df   : > { %v1919_v24 = vpop.f32.mrf.mxu2  ;;  %v1583_v30 = vpop.f32.mrf.mxu0  ;;  %v1156_v21 = vpack.c.bf16 %v980_v14, %v976_v13 }
 0x1e0   : > { %v2088_v25 = vpop.f32.mrf.mxu3  ;;  %v1920_v29 = vadd.f32 %v1919_v24, %v1751_v18  ;;  %v1752_v31 = vpop.f32.mrf.mxu1  ;;  %v978_v18 = vcvt.s32.f32 %v722_v8  ;;  %v1157_v28 = vpack.c.bf16 %v981_v17, %v977_v15  ;;  %v739_v15 = vunpack.c.3.s8 %v4532_v32 }
 0x1e1   : > { %v1753_v46 = vadd.f32 %v1752_v31, %v1583_v30  ;;  %v1228_v30 = vld [vmem:[#allocation2 + $0x1a8] sm:$0xff] }
 0x1e2   : > { %v2089_v38 = vadd.f32 %v2088_v25, %v1920_v29  ;;  %v1155_v25 = vpack.c.bf16 %v979_v12, %v975_v11  ;;  %v1158_v29 = vpack.c.bf16 %v982_v19, %v978_v18  ;;  %v735_v12 = vunpack.c.2.s8 %v4532_v32 }
 0x1e4   : > { %v2221_v42 = vadd.f32 %v2089_v38, %v1225_v35  ;;  %v4535_v35 = vld [vmem:[%s4272_s16 + $0x148] sm:$0xff]  ;;  %v4538_v38 = vld [vmem:[%s4272_s16 + $0x150] sm:$0xff] }
 0x1e5   : > { %v732_v43 = vunpack.c.1.s8 %v4535_v35  ;;  %v729_v44 = vunpack.c.0.s8 %v4538_v38  ;;  %v740_v17 = vunpack.c.3.s8 %v4535_v35  ;;  %v737_v18 = vunpack.c.2.s8 %v4538_v38 }
 0x1e6   : > { %2285 = vst [vmem:[#allocation2 + $0x138] sm:$0xff] %v2221_v42  ;;  %v728_v42 = vunpack.c.0.s8 %v4535_v35 }
 0x1e7   : > { %v1921_v47 = vpop.f32.mrf.mxu2  ;;  %v1586_v54 = vpop.f32.mrf.mxu0 }
 0x1e8   : > { %v2090_v48 = vpop.f32.mrf.mxu3  ;;  %v1922_v51 = vadd.f32 %v1921_v47, %v1753_v46  ;;  %v1755_v55 = vpop.f32.mrf.mxu1 }
 0x1e9   : > { %v1756_v59 = vadd.f32 %v1755_v55, %v1586_v54  ;;  %v983_v55 = vcvt.s32.f32 %v727_v36 }
 0x1ea   : > { %v2091_v53 = vadd.f32 %v2090_v48, %v1922_v51  ;;  %1625 = vmatmul.bf16.gmra.mxu0 %v1151_v49  ;;  %v733_v48 = vunpack.c.1.s8 %v4538_v38  ;;  %v730_v49 = vunpack.c.0.s8 %v4541_v39  ;;  %v1229_v51 = vld [vmem:[#allocation2 + $0x1b8] sm:$0xff] }
 0x1eb   : > { %1794 = vmatmul.bf16.gmra.mxu1 %v1152_v50  ;;  %v734_v50 = vunpack.c.1.s8 %v4541_v39 }
 0x1ec   : > { %v2222_v58 = vadd.f32 %v2091_v53, %v1226_v57  ;;  %1963 = vmatmul.bf16.gmra.mxu2 %v1153_v52  ;;  %v987_v52 = vcvt.s32.f32 %v731_v37  ;;  %v988_v57 = vcvt.s32.f32 %v732_v43  ;;  %v985_v53 = vcvt.s32.f32 %v729_v44 }
 0x1ed   : > { %2132 = vmatmul.bf16.gmra.mxu3 %v1154_v56  ;;  %v984_v56 = vcvt.s32.f32 %v728_v42  ;;  %v986_v60 = vcvt.s32.f32 %v730_v49 }
 0x1ee   : > { %2286 = vst [vmem:[#allocation2 + $0x140] sm:$0xff] %v2222_v58  ;;  %v1159_v1 = vpack.c.bf16 %v987_v52, %v983_v55  ;;  %v4569_v55 = vld [vmem:[%s4272_s16 + $0x178] sm:$0xff] }
 0x1ef   : > { %v1924_v61 = vpop.f32.mrf.mxu2  ;;  %v1588_v6 = vpop.f32.mrf.mxu0  ;;  %v1160_v2 = vpack.c.bf16 %v988_v57, %v984_v56 }
 0x1f0   : > { %v2093_v62 = vpop.f32.mrf.mxu3  ;;  %v1925_v3 = vadd.f32 %v1924_v61, %v1756_v59  ;;  %v1757_v7 = vpop.f32.mrf.mxu1  ;;  %v989_v59 = vcvt.s32.f32 %v733_v48  ;;  %v990_v61 = vcvt.s32.f32 %v734_v50  ;;  %v4560_v48 = vld [vmem:[%s4272_s16 + $0x160] sm:$0xff] }
 0x1f1   : > { %v1758_v20 = vadd.f32 %v1757_v7, %v1588_v6  ;;  %v743_v52 = vunpack.c.0.s8 %v4560_v48 }
 0x1f2   : > { %v2094_v10 = vadd.f32 %v2093_v62, %v1925_v3  ;;  %v1161_v4 = vpack.c.bf16 %v989_v59, %v985_v53  ;;  %v1162_v8 = vpack.c.bf16 %v990_v61, %v986_v60  ;;  %v747_v53 = vunpack.c.1.s8 %v4560_v48 }
 0x1f4   : > { %v2223_v16 = vadd.f32 %v2094_v10, %v1227_v5 }
 0x1f6   : > { %2287 = vst [vmem:[#allocation2 + $0x80] sm:$0xff] %v2223_v16  ;;  %v736_v16 = vunpack.c.2.s8 %v4535_v35 }
 0x1f7   : > { %v1926_v24 = vpop.f32.mrf.mxu2  ;;  %v1591_v26 = vpop.f32.mrf.mxu0 }
 0x1f8   : > { %v2095_v22 = vpop.f32.mrf.mxu3  ;;  %v1927_v23 = vadd.f32 %v1926_v24, %v1758_v20  ;;  %v1760_v27 = vpop.f32.mrf.mxu1 }
 0x1f9   : > { %v1761_v34 = vadd.f32 %v1760_v27, %v1591_v26  ;;  %v991_v27 = vcvt.s32.f32 %v735_v12 }
 0x1fa   : > { %v2096_v31 = vadd.f32 %v2095_v22, %v1927_v23  ;;  %1630 = vmatmul.bf16.gmra.mxu0 %v1155_v25  ;;  %v741_v22 = vunpack.c.3.s8 %v4538_v38  ;;  %v738_v25 = vunpack.c.2.s8 %v4541_v39  ;;  %v1231_v23 = vld [vmem:[#allocation2 + $0x1e8] sm:$0xff] }
 0x1fb   : > { %1799 = vmatmul.bf16.gmra.mxu1 %v1156_v21  ;;  %v742_v21 = vunpack.c.3.s8 %v4541_v39 }
 0x1fc   : > { %v2224_v33 = vadd.f32 %v2096_v31, %v1228_v30  ;;  %1968 = vmatmul.bf16.gmra.mxu2 %v1157_v28  ;;  %v995_v28 = vcvt.s32.f32 %v739_v15  ;;  %v996_v30 = vcvt.s32.f32 %v740_v17  ;;  %v993_v31 = vcvt.s32.f32 %v737_v18 }
 0x1fd   : > { %2137 = vmatmul.bf16.gmra.mxu3 %v1158_v29  ;;  %v992_v29 = vcvt.s32.f32 %v736_v16  ;;  %v998_v35 = vcvt.s32.f32 %v742_v21  ;;  %v1234_v21 = vld [vmem:[#allocation2 + $0x30] sm:$0xff] }
 0x1fe   : > { %2288 = vst [vmem:[#allocation2 + $0x1a8] sm:$0xff] %v2224_v33  ;;  %v997_v33 = vcvt.s32.f32 %v741_v22 }
 0x1ff   : > { %v1929_v40 = vpop.f32.mrf.mxu2  ;;  %v1593_v46 = vpop.f32.mrf.mxu0  ;;  %v1164_v37 = vpack.c.bf16 %v996_v30, %v992_v29 }
 0x200   : > { %v2098_v41 = vpop.f32.mrf.mxu3  ;;  %v1930_v45 = vadd.f32 %v1929_v40, %v1761_v34  ;;  %v1762_v47 = vpop.f32.mrf.mxu1  ;;  %v994_v34 = vcvt.s32.f32 %v738_v25  ;;  %v1165_v44 = vpack.c.bf16 %v997_v33, %v993_v31  ;;  %v755_v31 = vunpack.c.3.s8 %v4560_v48 }
 0x201   : > { %v1763_v62 = vadd.f32 %v1762_v47, %v1593_v46  ;;  %v1232_v46 = vld [vmem:[#allocation2 + $0xf8] sm:$0xff] }
 0x202   : > { %v2099_v54 = vadd.f32 %v2098_v41, %v1930_v45  ;;  %v1163_v41 = vpack.c.bf16 %v995_v28, %v991_v27  ;;  %v1166_v45 = vpack.c.bf16 %v998_v35, %v994_v34  ;;  %v751_v28 = vunpack.c.2.s8 %v4560_v48 }
 0x204   : > { %v2225_v58 = vadd.f32 %v2099_v54, %v1229_v51  ;;  %v4563_v51 = vld [vmem:[%s4272_s16 + $0x168] sm:$0xff]  ;;  %v4566_v54 = vld [vmem:[%s4272_s16 + $0x170] sm:$0xff] }
 0x205   : > { %v748_v59 = vunpack.c.1.s8 %v4563_v51  ;;  %v745_v60 = vunpack.c.0.s8 %v4566_v54  ;;  %v756_v33 = vunpack.c.3.s8 %v4563_v51  ;;  %v753_v34 = vunpack.c.2.s8 %v4566_v54 }
 0x206   : > { %2289 = vst [vmem:[#allocation2 + $0x1b8] sm:$0xff] %v2225_v58  ;;  %v744_v58 = vunpack.c.0.s8 %v4563_v51 }
 0x207   : > { %v1931_v63 = vpop.f32.mrf.mxu2  ;;  %v1596_v6 = vpop.f32.mrf.mxu0 }
 0x208   : > { %v2100_v0 = vpop.f32.mrf.mxu3  ;;  %v1932_v3 = vadd.f32 %v1931_v63, %v1763_v62  ;;  %v1765_v7 = vpop.f32.mrf.mxu1 }
 0x209   : > { %v1766_v11 = vadd.f32 %v1765_v7, %v1596_v6  ;;  %v999_v7 = vcvt.s32.f32 %v743_v52 }
 0x20a   : > { %v2101_v5 = vadd.f32 %v2100_v0, %v1932_v3  ;;  %1635 = vmatmul.bf16.gmra.mxu0 %v1159_v1  ;;  %v749_v0 = vunpack.c.1.s8 %v4566_v54  ;;  %v746_v1 = vunpack.c.0.s8 %v4569_v55  ;;  %v1233_v3 = vld [vmem:[#allocation2 + $0x160] sm:$0xff] }
 0x20b   : > { %1804 = vmatmul.bf16.gmra.mxu1 %v1160_v2  ;;  %v750_v2 = vunpack.c.1.s8 %v4569_v55 }
 0x20c   : > { %v2226_v10 = vadd.f32 %v2101_v5, %v1230_v9  ;;  %1973 = vmatmul.bf16.gmra.mxu2 %v1161_v4  ;;  %v1003_v4 = vcvt.s32.f32 %v747_v53  ;;  %v1004_v9 = vcvt.s32.f32 %v748_v59  ;;  %v1001_v5 = vcvt.s32.f32 %v745_v60 }
 0x20d   : > { %2142 = vmatmul.bf16.gmra.mxu3 %v1162_v8  ;;  %v1000_v8 = vcvt.s32.f32 %v744_v58  ;;  %v1002_v12 = vcvt.s32.f32 %v746_v1 }
 0x20e   : > { %2290 = vst [vmem:[#allocation2 + $0x28] sm:$0xff] %v2226_v10  ;;  %v1167_v17 = vpack.c.bf16 %v1003_v4, %v999_v7  ;;  %v4597_v7 = vld [vmem:[%s4272_s16 + $0x198] sm:$0xff] }
 0x20f   : > { %v1934_v13 = vpop.f32.mrf.mxu2  ;;  %v1598_v20 = vpop.f32.mrf.mxu0  ;;  %v1168_v18 = vpack.c.bf16 %v1004_v9, %v1000_v8 }
 0x210   : > { %v2103_v14 = vpop.f32.mrf.mxu3  ;;  %v1935_v19 = vadd.f32 %v1934_v13, %v1766_v11  ;;  %v1767_v24 = vpop.f32.mrf.mxu1  ;;  %v1005_v11 = vcvt.s32.f32 %v749_v0  ;;  %v1006_v13 = vcvt.s32.f32 %v750_v2  ;;  %v4588_v0 = vld [vmem:[%s4272_s16 + $0x180] sm:$0xff] }
 0x211   : > { %v1768_v36 = vadd.f32 %v1767_v24, %v1598_v20  ;;  %v759_v4 = vunpack.c.0.s8 %v4588_v0 }
 0x212   : > { %v2104_v26 = vadd.f32 %v2103_v14, %v1935_v19  ;;  %v1169_v22 = vpack.c.bf16 %v1005_v11, %v1001_v5  ;;  %v1170_v25 = vpack.c.bf16 %v1006_v13, %v1002_v12  ;;  %v763_v5 = vunpack.c.1.s8 %v4588_v0 }
 0x214   : > { %v2227_v32 = vadd.f32 %v2104_v26, %v1231_v23 }
 0x216   : > { %2291 = vst [vmem:[#allocation2 + $0x1e8] sm:$0xff] %v2227_v32  ;;  %v752_v32 = vunpack.c.2.s8 %v4563_v51 }
 0x217   : > { %v1936_v40 = vpop.f32.mrf.mxu2  ;;  %v1601_v42 = vpop.f32.mrf.mxu0 }
 0x218   : > { %v2105_v38 = vpop.f32.mrf.mxu3  ;;  %v1937_v39 = vadd.f32 %v1936_v40, %v1768_v36  ;;  %v1770_v43 = vpop.f32.mrf.mxu1 }
 0x219   : > { %v1771_v50 = vadd.f32 %v1770_v43, %v1601_v42  ;;  %v1007_v43 = vcvt.s32.f32 %v751_v28 }
 0x21a   : > { %v2106_v47 = vadd.f32 %v2105_v38, %v1937_v39  ;;  %1640 = vmatmul.bf16.gmra.mxu0 %v1163_v41  ;;  %v757_v38 = vunpack.c.3.s8 %v4566_v54  ;;  %v754_v41 = vunpack.c.2.s8 %v4569_v55  ;;  %v1235_v39 = vld [vmem:[#allocation2 + $0x1e0] sm:$0xff] }
 0x21b   : > { %1809 = vmatmul.bf16.gmra.mxu1 %v1164_v37  ;;  %v758_v37 = vunpack.c.3.s8 %v4569_v55 }
 0x21c   : > { %v2228_v49 = vadd.f32 %v2106_v47, %v1232_v46  ;;  %1978 = vmatmul.bf16.gmra.mxu2 %v1165_v44  ;;  %v1011_v44 = vcvt.s32.f32 %v755_v31  ;;  %v1012_v46 = vcvt.s32.f32 %v756_v33  ;;  %v1009_v47 = vcvt.s32.f32 %v753_v34 }
 0x21d   : > { %2147 = vmatmul.bf16.gmra.mxu3 %v1166_v45  ;;  %v1008_v45 = vcvt.s32.f32 %v752_v32  ;;  %v1014_v51 = vcvt.s32.f32 %v758_v37  ;;  %v1238_v37 = vld [vmem:[#allocation2 + $0x8] sm:$0xff] }
 0x21e   : > { %2292 = vst [vmem:[#allocation2 + $0xf8] sm:$0xff] %v2228_v49  ;;  %v1013_v49 = vcvt.s32.f32 %v757_v38 }
 0x21f   : > { %v1939_v56 = vpop.f32.mrf.mxu2  ;;  %v1603_v62 = vpop.f32.mrf.mxu0  ;;  %v1172_v53 = vpack.c.bf16 %v1012_v46, %v1008_v45 }
 0x220   : > { %v2108_v57 = vpop.f32.mrf.mxu3  ;;  %v1940_v61 = vadd.f32 %v1939_v56, %v1771_v50  ;;  %v1772_v63 = vpop.f32.mrf.mxu1  ;;  %v1010_v50 = vcvt.s32.f32 %v754_v41  ;;  %v1173_v60 = vpack.c.bf16 %v1013_v49, %v1009_v47  ;;  %v771_v47 = vunpack.c.3.s8 %v4588_v0 }
 0x221   : > { %v1773_v14 = vadd.f32 %v1772_v63, %v1603_v62  ;;  %v1236_v62 = vld [vmem:[#allocation2] sm:$0xff] }
 0x222   : > { %v2109_v6 = vadd.f32 %v2108_v57, %v1940_v61  ;;  %v1171_v57 = vpack.c.bf16 %v1011_v44, %v1007_v43  ;;  %v1174_v61 = vpack.c.bf16 %v1014_v51, %v1010_v50  ;;  %v767_v44 = vunpack.c.2.s8 %v4588_v0 }
 0x224   : > { %v2229_v10 = vadd.f32 %v2109_v6, %v1233_v3  ;;  %v4591_v3 = vld [vmem:[%s4272_s16 + $0x188] sm:$0xff]  ;;  %v4594_v6 = vld [vmem:[%s4272_s16 + $0x190] sm:$0xff] }
 0x225   : > { %v764_v11 = vunpack.c.1.s8 %v4591_v3  ;;  %v761_v12 = vunpack.c.0.s8 %v4594_v6  ;;  %v772_v49 = vunpack.c.3.s8 %v4591_v3  ;;  %v769_v50 = vunpack.c.2.s8 %v4594_v6 }
 0x226   : > { %2293 = vst [vmem:[#allocation2 + $0x160] sm:$0xff] %v2229_v10  ;;  %v760_v10 = vunpack.c.0.s8 %v4591_v3 }
 0x227   : > { %v1941_v15 = vpop.f32.mrf.mxu2  ;;  %v1606_v20 = vpop.f32.mrf.mxu0 }
 0x228   : > { %v2110_v16 = vpop.f32.mrf.mxu3  ;;  %v1942_v19 = vadd.f32 %v1941_v15, %v1773_v14  ;;  %v1775_v24 = vpop.f32.mrf.mxu1 }
 0x229   : > { %v1776_v27 = vadd.f32 %v1775_v24, %v1606_v20  ;;  %v1015_v24 = vcvt.s32.f32 %v759_v4 }
 0x22a   : > { %v2111_v23 = vadd.f32 %v2110_v16, %v1942_v19  ;;  %1645 = vmatmul.bf16.gmra.mxu0 %v1167_v17  ;;  %v765_v16 = vunpack.c.1.s8 %v4594_v6  ;;  %v762_v17 = vunpack.c.0.s8 %v4597_v7  ;;  %v1237_v19 = vld [vmem:[#allocation2 + $0xf0] sm:$0xff] }
 0x22b   : > { %1814 = vmatmul.bf16.gmra.mxu1 %v1168_v18  ;;  %v766_v18 = vunpack.c.1.s8 %v4597_v7 }
 0x22c   : > { %v2230_v26 = vadd.f32 %v2111_v23, %v1234_v21  ;;  %1983 = vmatmul.bf16.gmra.mxu2 %v1169_v22  ;;  %v1019_v22 = vcvt.s32.f32 %v763_v5  ;;  %v1020_v21 = vcvt.s32.f32 %v764_v11  ;;  %v1017_v23 = vcvt.s32.f32 %v761_v12 }
 0x22d   : > { %2152 = vmatmul.bf16.gmra.mxu3 %v1170_v25  ;;  %v1016_v25 = vcvt.s32.f32 %v760_v10  ;;  %v1018_v28 = vcvt.s32.f32 %v762_v17 }
 0x22e   : > { %2294 = vst [vmem:[#allocation2 + $0x30] sm:$0xff] %v2230_v26  ;;  %v1175_v33 = vpack.c.bf16 %v1019_v22, %v1015_v24  ;;  %v4625_v24 = vld [vmem:[%s4272_s16 + $0x1b8] sm:$0xff] }
 0x22f   : > { %v1944_v29 = vpop.f32.mrf.mxu2  ;;  %v1608_v36 = vpop.f32.mrf.mxu0  ;;  %v1176_v34 = vpack.c.bf16 %v1020_v21, %v1016_v25 }
 0x230   : > { %v2113_v30 = vpop.f32.mrf.mxu3  ;;  %v1945_v35 = vadd.f32 %v1944_v29, %v1776_v27  ;;  %v1777_v40 = vpop.f32.mrf.mxu1  ;;  %v1021_v27 = vcvt.s32.f32 %v765_v16  ;;  %v1022_v29 = vcvt.s32.f32 %v766_v18  ;;  %v4616_v16 = vld [vmem:[%s4272_s16 + $0x1a0] sm:$0xff] }
 0x231   : > { %v1778_v52 = vadd.f32 %v1777_v40, %v1608_v36  ;;  %v775_v22 = vunpack.c.0.s8 %v4616_v16 }
 0x232   : > { %v2114_v42 = vadd.f32 %v2113_v30, %v1945_v35  ;;  %v1177_v38 = vpack.c.bf16 %v1021_v27, %v1017_v23  ;;  %v1178_v41 = vpack.c.bf16 %v1022_v29, %v1018_v28  ;;  %v779_v23 = vunpack.c.1.s8 %v4616_v16 }
 0x234   : > { %v2231_v48 = vadd.f32 %v2114_v42, %v1235_v39 }
 0x236   : > { %2295 = vst [vmem:[#allocation2 + $0x1e0] sm:$0xff] %v2231_v48  ;;  %v768_v48 = vunpack.c.2.s8 %v4591_v3 }
 0x237   : > { %v1946_v56 = vpop.f32.mrf.mxu2  ;;  %v1611_v58 = vpop.f32.mrf.mxu0 }
 0x238   : > { %v2115_v54 = vpop.f32.mrf.mxu3  ;;  %v1947_v55 = vadd.f32 %v1946_v56, %v1778_v52  ;;  %v1780_v59 = vpop.f32.mrf.mxu1 }
 0x239   : > { %v1781_v2 = vadd.f32 %v1780_v59, %v1611_v58  ;;  %v1023_v59 = vcvt.s32.f32 %v767_v44 }
 0x23a   : > { %v2116_v63 = vadd.f32 %v2115_v54, %v1947_v55  ;;  %1650 = vmatmul.bf16.gmra.mxu0 %v1171_v57  ;;  %v773_v54 = vunpack.c.3.s8 %v4594_v6  ;;  %v770_v57 = vunpack.c.2.s8 %v4597_v7  ;;  %v1239_v55 = vld [vmem:[#allocation2 + $0x148] sm:$0xff] }
 0x23b   : > { %1819 = vmatmul.bf16.gmra.mxu1 %v1172_v53  ;;  %v774_v53 = vunpack.c.3.s8 %v4597_v7 }
 0x23c   : > { %v2232_v1 = vadd.f32 %v2116_v63, %v1236_v62  ;;  %1988 = vmatmul.bf16.gmra.mxu2 %v1173_v60  ;;  %v1027_v60 = vcvt.s32.f32 %v771_v47  ;;  %v1028_v62 = vcvt.s32.f32 %v772_v49  ;;  %v1025_v63 = vcvt.s32.f32 %v769_v50 }
 0x23d   : > { %2157 = vmatmul.bf16.gmra.mxu3 %v1174_v61  ;;  %v1024_v61 = vcvt.s32.f32 %v768_v48  ;;  %v1030_v3 = vcvt.s32.f32 %v774_v53  ;;  %v1242_v53 = vld [vmem:[#allocation2 + $0xc8] sm:$0xff] }
 0x23e   : > { %2296 = vst [vmem:[#allocation2] sm:$0xff] %v2232_v1  ;;  %v1029_v1 = vcvt.s32.f32 %v773_v54 }
 0x23f   : > { %v1949_v8 = vpop.f32.mrf.mxu2  ;;  %v1613_v14 = vpop.f32.mrf.mxu0  ;;  %v1180_v5 = vpack.c.bf16 %v1028_v62, %v1024_v61 }
 0x240   : > { %v2118_v9 = vpop.f32.mrf.mxu3  ;;  %v1950_v13 = vadd.f32 %v1949_v8, %v1781_v2  ;;  %v1782_v15 = vpop.f32.mrf.mxu1  ;;  %v1026_v2 = vcvt.s32.f32 %v770_v57  ;;  %v1181_v12 = vpack.c.bf16 %v1029_v1, %v1025_v63  ;;  %v787_v63 = vunpack.c.3.s8 %v4616_v16 }
 0x241   : > { %v1783_v30 = vadd.f32 %v1782_v15, %v1613_v14  ;;  %v1240_v14 = vld [vmem:[#allocation2 + $0x1d0] sm:$0xff] }
 0x242   : > { %v2119_v20 = vadd.f32 %v2118_v9, %v1950_v13  ;;  %v1179_v9 = vpack.c.bf16 %v1027_v60, %v1023_v59  ;;  %v1182_v13 = vpack.c.bf16 %v1030_v3, %v1026_v2  ;;  %v783_v60 = vunpack.c.2.s8 %v4616_v16 }
 0x244   : > { %v2233_v26 = vadd.f32 %v2119_v20, %v1237_v19  ;;  %v4619_v19 = vld [vmem:[%s4272_s16 + $0x1a8] sm:$0xff]  ;;  %v4622_v20 = vld [vmem:[%s4272_s16 + $0x1b0] sm:$0xff] }
 0x245   : > { %v780_v27 = vunpack.c.1.s8 %v4619_v19  ;;  %v777_v28 = vunpack.c.0.s8 %v4622_v20  ;;  %v788_v1 = vunpack.c.3.s8 %v4619_v19  ;;  %v785_v2 = vunpack.c.2.s8 %v4622_v20 }
 0x246   : > { %2297 = vst [vmem:[#allocation2 + $0xf0] sm:$0xff] %v2233_v26  ;;  %v776_v26 = vunpack.c.0.s8 %v4619_v19 }
 0x247   : > { %v1951_v31 = vpop.f32.mrf.mxu2  ;;  %v1616_v36 = vpop.f32.mrf.mxu0 }
 0x248   : > { %v2120_v32 = vpop.f32.mrf.mxu3  ;;  %v1952_v35 = vadd.f32 %v1951_v31, %v1783_v30  ;;  %v1785_v40 = vpop.f32.mrf.mxu1 }
 0x249   : > { %v1786_v43 = vadd.f32 %v1785_v40, %v1616_v36  ;;  %v1031_v40 = vcvt.s32.f32 %v775_v22 }
 0x24a   : > { %v2121_v39 = vadd.f32 %v2120_v32, %v1952_v35  ;;  %1655 = vmatmul.bf16.gmra.mxu0 %v1175_v33  ;;  %v781_v32 = vunpack.c.1.s8 %v4622_v20  ;;  %v778_v33 = vunpack.c.0.s8 %v4625_v24  ;;  %v1241_v35 = vld [vmem:[#allocation2 + $0x100] sm:$0xff] }
 0x24b   : > { %1824 = vmatmul.bf16.gmra.mxu1 %v1176_v34  ;;  %v782_v34 = vunpack.c.1.s8 %v4625_v24 }
 0x24c   : > { %v2234_v42 = vadd.f32 %v2121_v39, %v1238_v37  ;;  %1993 = vmatmul.bf16.gmra.mxu2 %v1177_v38  ;;  %v1035_v38 = vcvt.s32.f32 %v779_v23  ;;  %v1036_v37 = vcvt.s32.f32 %v780_v27  ;;  %v1033_v39 = vcvt.s32.f32 %v777_v28 }
 0x24d   : > { %2162 = vmatmul.bf16.gmra.mxu3 %v1178_v41  ;;  %v1032_v41 = vcvt.s32.f32 %v776_v26  ;;  %v1034_v44 = vcvt.s32.f32 %v778_v33 }
 0x24e   : > { %2298 = vst [vmem:[#allocation2 + $0x8] sm:$0xff] %v2234_v42  ;;  %v1183_v49 = vpack.c.bf16 %v1035_v38, %v1031_v40  ;;  %v4653_v40 = vld [vmem:[%s4272_s16 + $0x1d8] sm:$0xff] }
 0x24f   : > { %v1954_v45 = vpop.f32.mrf.mxu2  ;;  %v1618_v52 = vpop.f32.mrf.mxu0  ;;  %v1184_v50 = vpack.c.bf16 %v1036_v37, %v1032_v41 }
 0x250   : > { %v2123_v46 = vpop.f32.mrf.mxu3  ;;  %v1955_v51 = vadd.f32 %v1954_v45, %v1786_v43  ;;  %v1787_v56 = vpop.f32.mrf.mxu1  ;;  %v1037_v43 = vcvt.s32.f32 %v781_v32  ;;  %v1038_v45 = vcvt.s32.f32 %v782_v34  ;;  %v4644_v32 = vld [vmem:[%s4272_s16 + $0x1c0] sm:$0xff] }
 0x251   : > { %v1788_v4 = vadd.f32 %v1787_v56, %v1618_v52  ;;  %v791_v38 = vunpack.c.0.s8 %v4644_v32 }
 0x252   : > { %v2124_v58 = vadd.f32 %v2123_v46, %v1955_v51  ;;  %v1185_v54 = vpack.c.bf16 %v1037_v43, %v1033_v39  ;;  %v1186_v57 = vpack.c.bf16 %v1038_v45, %v1034_v44  ;;  %v795_v39 = vunpack.c.1.s8 %v4644_v32 }
 0x254   : > { %v2235_v0 = vadd.f32 %v2124_v58, %v1239_v55 }
 0x256   : > { %2299 = vst [vmem:[#allocation2 + $0x148] sm:$0xff] %v2235_v0  ;;  %v784_v0 = vunpack.c.2.s8 %v4619_v19 }
 0x257   : > { %v1956_v8 = vpop.f32.mrf.mxu2  ;;  %v1621_v10 = vpop.f32.mrf.mxu0 }
 0x258   : > { %v2125_v6 = vpop.f32.mrf.mxu3  ;;  %v1957_v7 = vadd.f32 %v1956_v8, %v1788_v4  ;;  %v1790_v11 = vpop.f32.mrf.mxu1 }
 0x259   : > { %v1791_v18 = vadd.f32 %v1790_v11, %v1621_v10  ;;  %v1039_v11 = vcvt.s32.f32 %v783_v60 }
 0x25a   : > { %v2126_v15 = vadd.f32 %v2125_v6, %v1957_v7  ;;  %1660 = vmatmul.bf16.gmra.mxu0 %v1179_v9  ;;  %v789_v6 = vunpack.c.3.s8 %v4622_v20  ;;  %v786_v9 = vunpack.c.2.s8 %v4625_v24  ;;  %v1243_v7 = vld [vmem:[#allocation2 + $0x40] sm:$0xff] }
 0x25b   : > { %1829 = vmatmul.bf16.gmra.mxu1 %v1180_v5  ;;  %v790_v5 = vunpack.c.3.s8 %v4625_v24 }
 0x25c   : > { %v2236_v17 = vadd.f32 %v2126_v15, %v1240_v14  ;;  %1998 = vmatmul.bf16.gmra.mxu2 %v1181_v12  ;;  %v1043_v12 = vcvt.s32.f32 %v787_v63  ;;  %v1044_v14 = vcvt.s32.f32 %v788_v1  ;;  %v1041_v15 = vcvt.s32.f32 %v785_v2 }
 0x25d   : > { %2167 = vmatmul.bf16.gmra.mxu3 %v1182_v13  ;;  %v1040_v13 = vcvt.s32.f32 %v784_v0  ;;  %v1046_v19 = vcvt.s32.f32 %v790_v5  ;;  %v1246_v5 = vld [vmem:[#allocation2 + $0x128] sm:$0xff] }
 0x25e   : > { %2300 = vst [vmem:[#allocation2 + $0x1d0] sm:$0xff] %v2236_v17  ;;  %v1045_v17 = vcvt.s32.f32 %v789_v6 }
 0x25f   : > { %v1959_v25 = vpop.f32.mrf.mxu2  ;;  %v1623_v30 = vpop.f32.mrf.mxu0  ;;  %v1188_v23 = vpack.c.bf16 %v1044_v14, %v1040_v13 }
 0x260   : > { %v2128_v21 = vpop.f32.mrf.mxu3  ;;  %v1960_v29 = vadd.f32 %v1959_v25, %v1791_v18  ;;  %v1792_v31 = vpop.f32.mrf.mxu1  ;;  %v1042_v18 = vcvt.s32.f32 %v786_v9  ;;  %v1189_v28 = vpack.c.bf16 %v1045_v17, %v1041_v15  ;;  %v803_v15 = vunpack.c.3.s8 %v4644_v32 }
 0x261   : > { %v1793_v46 = vadd.f32 %v1792_v31, %v1623_v30  ;;  %v1244_v30 = vld [vmem:[#allocation2 + $0x1f8] sm:$0xff] }
 0x262   : > { %v2129_v36 = vadd.f32 %v2128_v21, %v1960_v29  ;;  %v1187_v21 = vpack.c.bf16 %v1043_v12, %v1039_v11  ;;  %v1190_v29 = vpack.c.bf16 %v1046_v19, %v1042_v18  ;;  %v799_v12 = vunpack.c.2.s8 %v4644_v32 }
 0x264   : > { %v2237_v42 = vadd.f32 %v2129_v36, %v1241_v35  ;;  %v4647_v35 = vld [vmem:[%s4272_s16 + $0x1c8] sm:$0xff]  ;;  %v4650_v36 = vld [vmem:[%s4272_s16 + $0x1d0] sm:$0xff] }
 0x265   : > { %v796_v43 = vunpack.c.1.s8 %v4647_v35  ;;  %v793_v44 = vunpack.c.0.s8 %v4650_v36  ;;  %v804_v17 = vunpack.c.3.s8 %v4647_v35  ;;  %v801_v18 = vunpack.c.2.s8 %v4650_v36 }
 0x266   : > { %2301 = vst [vmem:[#allocation2 + $0x100] sm:$0xff] %v2237_v42  ;;  %v792_v42 = vunpack.c.0.s8 %v4647_v35 }
 0x267   : > { %v1961_v47 = vpop.f32.mrf.mxu2  ;;  %v1626_v52 = vpop.f32.mrf.mxu0 }
 0x268   : > { %v2130_v48 = vpop.f32.mrf.mxu3  ;;  %v1962_v51 = vadd.f32 %v1961_v47, %v1793_v46  ;;  %v1795_v56 = vpop.f32.mrf.mxu1 }
 0x269   : > { %v1796_v59 = vadd.f32 %v1795_v56, %v1626_v52  ;;  %v1047_v56 = vcvt.s32.f32 %v791_v38 }
 0x26a   : > { %v2131_v55 = vadd.f32 %v2130_v48, %v1962_v51  ;;  %1665 = vmatmul.bf16.gmra.mxu0 %v1183_v49  ;;  %v797_v48 = vunpack.c.1.s8 %v4650_v36  ;;  %v794_v49 = vunpack.c.0.s8 %v4653_v40  ;;  %v1245_v51 = vld [vmem:[#allocation2 + $0x20] sm:$0xff] }
 0x26b   : > { %1834 = vmatmul.bf16.gmra.mxu1 %v1184_v50  ;;  %v798_v50 = vunpack.c.1.s8 %v4653_v40 }
 0x26c   : > { %v2238_v58 = vadd.f32 %v2131_v55, %v1242_v53  ;;  %2003 = vmatmul.bf16.gmra.mxu2 %v1185_v54  ;;  %v1051_v54 = vcvt.s32.f32 %v795_v39  ;;  %v1052_v53 = vcvt.s32.f32 %v796_v43  ;;  %v1049_v55 = vcvt.s32.f32 %v793_v44 }
 0x26d   : > { %2172 = vmatmul.bf16.gmra.mxu3 %v1186_v57  ;;  %v1048_v57 = vcvt.s32.f32 %v792_v42  ;;  %v1050_v60 = vcvt.s32.f32 %v794_v49 }
 0x26e   : > { %2302 = vst [vmem:[#allocation2 + $0xc8] sm:$0xff] %v2238_v58  ;;  %v1191_v1 = vpack.c.bf16 %v1051_v54, %v1047_v56  ;;  %v4681_v56 = vld [vmem:[%s4272_s16 + $0x1f8] sm:$0xff] }
 0x26f   : > { %v1964_v61 = vpop.f32.mrf.mxu2  ;;  %v1628_v4 = vpop.f32.mrf.mxu0  ;;  %v1192_v2 = vpack.c.bf16 %v1052_v53, %v1048_v57 }
 0x270   : > { %v2133_v62 = vpop.f32.mrf.mxu3  ;;  %v1965_v3 = vadd.f32 %v1964_v61, %v1796_v59  ;;  %v1797_v8 = vpop.f32.mrf.mxu1  ;;  %v1053_v59 = vcvt.s32.f32 %v797_v48  ;;  %v1054_v61 = vcvt.s32.f32 %v798_v50  ;;  %v4672_v48 = vld [vmem:[%s4272_s16 + $0x1e0] sm:$0xff] }
 0x271   : > { %v1798_v22 = vadd.f32 %v1797_v8, %v1628_v4  ;;  %v807_v54 = vunpack.c.0.s8 %v4672_v48 }
 0x272   : > { %v2134_v10 = vadd.f32 %v2133_v62, %v1965_v3  ;;  %v1193_v6 = vpack.c.bf16 %v1053_v59, %v1049_v55  ;;  %v1194_v9 = vpack.c.bf16 %v1054_v61, %v1050_v60  ;;  %v811_v55 = vunpack.c.1.s8 %v4672_v48 }
 0x274   : > { %v2239_v16 = vadd.f32 %v2134_v10, %v1243_v7 }
 0x276   : > { %2303 = vst [vmem:[#allocation2 + $0x40] sm:$0xff] %v2239_v16  ;;  %v800_v16 = vunpack.c.2.s8 %v4647_v35 }
 0x277   : > { %v1966_v25 = vpop.f32.mrf.mxu2  ;;  %v1631_v26 = vpop.f32.mrf.mxu0 }
 0x278   : > { %v2135_v20 = vpop.f32.mrf.mxu3  ;;  %v1967_v24 = vadd.f32 %v1966_v25, %v1798_v22  ;;  %v1800_v27 = vpop.f32.mrf.mxu1 }
 0x279   : > { %v1801_v34 = vadd.f32 %v1800_v27, %v1631_v26  ;;  %v1055_v27 = vcvt.s32.f32 %v799_v12 }
 0x27a   : > { %v2136_v31 = vadd.f32 %v2135_v20, %v1967_v24  ;;  %1670 = vmatmul.bf16.gmra.mxu0 %v1187_v21  ;;  %v805_v20 = vunpack.c.3.s8 %v4650_v36  ;;  %v802_v21 = vunpack.c.2.s8 %v4653_v40  ;;  %v1247_v24 = vld [vmem:[#allocation2 + $0x1a0] sm:$0xff] }
 0x27b   : > { %1839 = vmatmul.bf16.gmra.mxu1 %v1188_v23  ;;  %v806_v23 = vunpack.c.3.s8 %v4653_v40 }
 0x27c   : > { %v2240_v33 = vadd.f32 %v2136_v31, %v1244_v30  ;;  %2008 = vmatmul.bf16.gmra.mxu2 %v1189_v28  ;;  %v1059_v28 = vcvt.s32.f32 %v803_v15  ;;  %v1060_v30 = vcvt.s32.f32 %v804_v17  ;;  %v1057_v31 = vcvt.s32.f32 %v801_v18 }
 0x27d   : > { %2177 = vmatmul.bf16.gmra.mxu3 %v1190_v29  ;;  %v1056_v29 = vcvt.s32.f32 %v800_v16  ;;  %v1062_v35 = vcvt.s32.f32 %v806_v23  ;;  %v1250_v23 = vld [vmem:[#allocation2 + $0x78] sm:$0xff] }
 0x27e   : > { %2304 = vst [vmem:[#allocation2 + $0x1f8] sm:$0xff] %v2240_v33  ;;  %v1061_v33 = vcvt.s32.f32 %v805_v20 }
 0x27f   : > { %v1969_v41 = vpop.f32.mrf.mxu2  ;;  %v1633_v46 = vpop.f32.mrf.mxu0  ;;  %v1196_v39 = vpack.c.bf16 %v1060_v30, %v1056_v29 }
 0x280   : > { %v2138_v37 = vpop.f32.mrf.mxu3  ;;  %v1970_v45 = vadd.f32 %v1969_v41, %v1801_v34  ;;  %v1802_v47 = vpop.f32.mrf.mxu1  ;;  %v1058_v34 = vcvt.s32.f32 %v802_v21  ;;  %v1197_v44 = vpack.c.bf16 %v1061_v33, %v1057_v31  ;;  %v819_v31 = vunpack.c.3.s8 %v4672_v48 }
 0x281   : > { %v1803_v62 = vadd.f32 %v1802_v47, %v1633_v46  ;;  %v1248_v46 = vld [vmem:[#allocation2 + $0x1f0] sm:$0xff] }
 0x282   : > { %v2139_v52 = vadd.f32 %v2138_v37, %v1970_v45  ;;  %v1195_v37 = vpack.c.bf16 %v1059_v28, %v1055_v27  ;;  %v1198_v45 = vpack.c.bf16 %v1062_v35, %v1058_v34  ;;  %v815_v28 = vunpack.c.2.s8 %v4672_v48 }
 0x284   : > { %v2241_v58 = vadd.f32 %v2139_v52, %v1245_v51  ;;  %v4675_v51 = vld [vmem:[%s4272_s16 + $0x1e8] sm:$0xff]  ;;  %v4678_v52 = vld [vmem:[%s4272_s16 + $0x1f0] sm:$0xff] }
 0x285   : > { %v812_v59 = vunpack.c.1.s8 %v4675_v51  ;;  %v809_v60 = vunpack.c.0.s8 %v4678_v52  ;;  %v820_v33 = vunpack.c.3.s8 %v4675_v51  ;;  %v817_v34 = vunpack.c.2.s8 %v4678_v52 }
 0x286   : > { %2305 = vst [vmem:[#allocation2 + $0x20] sm:$0xff] %v2241_v58  ;;  %v808_v58 = vunpack.c.0.s8 %v4675_v51 }
 0x287   : > { %v1971_v63 = vpop.f32.mrf.mxu2  ;;  %v1636_v4 = vpop.f32.mrf.mxu0 }
 0x288   : > { %v2140_v0 = vpop.f32.mrf.mxu3  ;;  %v1972_v3 = vadd.f32 %v1971_v63, %v1803_v62  ;;  %v1805_v8 = vpop.f32.mrf.mxu1 }
 0x289   : > { %v1806_v11 = vadd.f32 %v1805_v8, %v1636_v4  ;;  %v1063_v8 = vcvt.s32.f32 %v807_v54 }
 0x28a   : > { %v2141_v7 = vadd.f32 %v2140_v0, %v1972_v3  ;;  %1675 = vmatmul.bf16.gmra.mxu0 %v1191_v1  ;;  %v813_v0 = vunpack.c.1.s8 %v4678_v52  ;;  %v810_v1 = vunpack.c.0.s8 %v4681_v56  ;;  %v1249_v3 = vld [vmem:[#allocation2 + $0xe8] sm:$0xff] }
 0x28b   : > { %1844 = vmatmul.bf16.gmra.mxu1 %v1192_v2  ;;  %v814_v2 = vunpack.c.1.s8 %v4681_v56 }
 0x28c   : > { %v2242_v10 = vadd.f32 %v2141_v7, %v1246_v5  ;;  %2013 = vmatmul.bf16.gmra.mxu2 %v1193_v6  ;;  %v1067_v6 = vcvt.s32.f32 %v811_v55  ;;  %v1068_v5 = vcvt.s32.f32 %v812_v59  ;;  %v1065_v7 = vcvt.s32.f32 %v809_v60 }
 0x28d   : > { %2182 = vmatmul.bf16.gmra.mxu3 %v1194_v9  ;;  %v1064_v9 = vcvt.s32.f32 %v808_v58  ;;  %v1066_v12 = vcvt.s32.f32 %v810_v1 }
 0x28e   : > { %2306 = vst [vmem:[#allocation2 + $0x128] sm:$0xff] %v2242_v10  ;;  %v1199_v17 = vpack.c.bf16 %v1067_v6, %v1063_v8 }
 0x28f   : > { %v1974_v13 = vpop.f32.mrf.mxu2  ;;  %v1638_v22 = vpop.f32.mrf.mxu0  ;;  %v1200_v18 = vpack.c.bf16 %v1068_v5, %v1064_v9  ;;  %v1253_v9 = vld [vmem:[#allocation2 + $0x1d8] sm:$0xff] }
 0x290   : > { %v2143_v14 = vpop.f32.mrf.mxu3  ;;  %v1975_v19 = vadd.f32 %v1974_v13, %v1806_v11  ;;  %v1807_v25 = vpop.f32.mrf.mxu1  ;;  %v1069_v11 = vcvt.s32.f32 %v813_v0  ;;  %v1070_v13 = vcvt.s32.f32 %v814_v2 }
 0x291   : > { %v1808_v38 = vadd.f32 %v1807_v25, %v1638_v22 }
 0x292   : > { %v2144_v26 = vadd.f32 %v2143_v14, %v1975_v19  ;;  %v1201_v20 = vpack.c.bf16 %v1069_v11, %v1065_v7  ;;  %v1202_v21 = vpack.c.bf16 %v1070_v13, %v1066_v12 }
 0x294   : > { %v2243_v32 = vadd.f32 %v2144_v26, %v1247_v24 }
 0x296   : > { %2307 = vst [vmem:[#allocation2 + $0x1a0] sm:$0xff] %v2243_v32  ;;  %v816_v32 = vunpack.c.2.s8 %v4675_v51 }
 0x297   : > { %v1976_v41 = vpop.f32.mrf.mxu2  ;;  %v1641_v42 = vpop.f32.mrf.mxu0 }
 0x298   : > { %v2145_v36 = vpop.f32.mrf.mxu3  ;;  %v1977_v40 = vadd.f32 %v1976_v41, %v1808_v38  ;;  %v1810_v43 = vpop.f32.mrf.mxu1 }
 0x299   : > { %v1811_v50 = vadd.f32 %v1810_v43, %v1641_v42  ;;  %v1071_v43 = vcvt.s32.f32 %v815_v28 }
 0x29a   : > { %v2146_v47 = vadd.f32 %v2145_v36, %v1977_v40  ;;  %1680 = vmatmul.bf16.gmra.mxu0 %v1195_v37  ;;  %v821_v36 = vunpack.c.3.s8 %v4678_v52  ;;  %v818_v37 = vunpack.c.2.s8 %v4681_v56  ;;  %v1251_v40 = vld [vmem:[#allocation2 + $0x70] sm:$0xff] }
 0x29b   : > { %1849 = vmatmul.bf16.gmra.mxu1 %v1196_v39  ;;  %v822_v39 = vunpack.c.3.s8 %v4681_v56 }
 0x29c   : > { %v2244_v49 = vadd.f32 %v2146_v47, %v1248_v46  ;;  %2018 = vmatmul.bf16.gmra.mxu2 %v1197_v44  ;;  %v1075_v44 = vcvt.s32.f32 %v819_v31  ;;  %v1076_v46 = vcvt.s32.f32 %v820_v33  ;;  %v1073_v47 = vcvt.s32.f32 %v817_v34  ;;  %v1256_v34 = vld [vmem:[#allocation2 + $0x88] sm:$0xff] }
 0x29d   : > { %2187 = vmatmul.bf16.gmra.mxu3 %v1198_v45  ;;  %v1072_v45 = vcvt.s32.f32 %v816_v32  ;;  %v1078_v51 = vcvt.s32.f32 %v822_v39 }
 0x29e   : > { %2308 = vst [vmem:[#allocation2 + $0x1f0] sm:$0xff] %v2244_v49  ;;  %v1077_v49 = vcvt.s32.f32 %v821_v36  ;;  %v1203_v52 = vpack.c.bf16 %v1075_v44, %v1071_v43  ;;  %v1257_v43 = vld [vmem:[#allocation2 + $0xa8] sm:$0xff] }
 0x29f   : > { %v1979_v57 = vpop.f32.mrf.mxu2  ;;  %v1643_v62 = vpop.f32.mrf.mxu0  ;;  %v1204_v55 = vpack.c.bf16 %v1076_v46, %v1072_v45 }
 0x2a0   : > { %v2148_v53 = vpop.f32.mrf.mxu3  ;;  %v1980_v61 = vadd.f32 %v1979_v57, %v1811_v50  ;;  %v1812_v63 = vpop.f32.mrf.mxu1  ;;  %v1074_v50 = vcvt.s32.f32 %v818_v37  ;;  %v1205_v60 = vpack.c.bf16 %v1077_v49, %v1073_v47 }
 0x2a1   : > { %v1813_v14 = vadd.f32 %v1812_v63, %v1643_v62  ;;  %v1252_v62 = vld [vmem:[#allocation2 + $0x90] sm:$0xff] }
 0x2a2   : > { %v2149_v4 = vadd.f32 %v2148_v53, %v1980_v61  ;;  %v1206_v61 = vpack.c.bf16 %v1078_v51, %v1074_v50 }
 0x2a4   : > { %v2245_v10 = vadd.f32 %v2149_v4, %v1249_v3 }
 0x2a6   : > { %2309 = vst [vmem:[#allocation2 + $0xe8] sm:$0xff] %v2245_v10 }
 0x2a7   : > { %v1981_v15 = vpop.f32.mrf.mxu2  ;;  %v1646_v22 = vpop.f32.mrf.mxu0 }
 0x2a8   : > { %v2150_v16 = vpop.f32.mrf.mxu3  ;;  %v1982_v19 = vadd.f32 %v1981_v15, %v1813_v14  ;;  %v1815_v25 = vpop.f32.mrf.mxu1 }
 0x2a9   : > { %v1816_v27 = vadd.f32 %v1815_v25, %v1646_v22 }
 0x2aa   : > { %v2151_v24 = vadd.f32 %v2150_v16, %v1982_v19  ;;  %1685 = vmatmul.bf16.gmra.mxu0 %v1199_v17  ;;  %v1254_v16 = vld [vmem:[#allocation2 + $0xd0] sm:$0xff] }
 0x2ab   : > { %1854 = vmatmul.bf16.gmra.mxu1 %v1200_v18 }
 0x2ac   : > { %v2246_v26 = vadd.f32 %v2151_v24, %v1250_v23  ;;  %2023 = vmatmul.bf16.gmra.mxu2 %v1201_v20  ;;  %v1255_v24 = vld [vmem:[#allocation2 + $0xb8] sm:$0xff] }
 0x2ad   : > { %2192 = vmatmul.bf16.gmra.mxu3 %v1202_v21 }
 0x2ae   : > { %2310 = vst [vmem:[#allocation2 + $0x78] sm:$0xff] %v2246_v26 }
 0x2af   : > { %v1984_v29 = vpop.f32.mrf.mxu2  ;;  %v1648_v38 = vpop.f32.mrf.mxu0 }
 0x2b0   : > { %v2153_v30 = vpop.f32.mrf.mxu3  ;;  %v1985_v35 = vadd.f32 %v1984_v29, %v1816_v27  ;;  %v1817_v41 = vpop.f32.mrf.mxu1 }
 0x2b1   : > { %v1818_v54 = vadd.f32 %v1817_v41, %v1648_v38 }
 0x2b2   : > { %v2154_v42 = vadd.f32 %v2153_v30, %v1985_v35 }
 0x2b4   : > { %v2247_v48 = vadd.f32 %v2154_v42, %v1251_v40 }
 0x2b6   : > { %2311 = vst [vmem:[#allocation2 + $0x70] sm:$0xff] %v2247_v48 }
 0x2b7   : > { %v1986_v57 = vpop.f32.mrf.mxu2  ;;  %v1651_v59 = vpop.f32.mrf.mxu0 }
 0x2b8   : > { %v2155_v53 = vpop.f32.mrf.mxu3  ;;  %v1987_v58 = vadd.f32 %v1986_v57, %v1818_v54  ;;  %v1820_v56 = vpop.f32.mrf.mxu1  ;;  %v1258_v54 = vld [vmem:[#allocation2 + $0x1c8] sm:$0xff] }
 0x2b9   : > { %v1821_v1 = vadd.f32 %v1820_v56, %v1651_v59 }
 0x2ba   : > { %v2156_v63 = vadd.f32 %v2155_v53, %v1987_v58  ;;  %1690 = vmatmul.bf16.gmra.mxu0 %v1203_v52 }
 0x2bb   : > { %1859 = vmatmul.bf16.gmra.mxu1 %v1204_v55 }
 0x2bc   : > { %v2248_v0 = vadd.f32 %v2156_v63, %v1252_v62  ;;  %2028 = vmatmul.bf16.gmra.mxu2 %v1205_v60 }
 0x2bd   : > { %2197 = vmatmul.bf16.gmra.mxu3 %v1206_v61  ;;  %v1259_v61 = vld [vmem:[#allocation2 + $0x170] sm:$0xff] }
 0x2be   : > { %2312 = vst [vmem:[#allocation2 + $0x90] sm:$0xff] %v2248_v0 }
 0x2bf   : > { %v1989_v2 = vpop.f32.mrf.mxu2  ;;  %v1653_v8 = vpop.f32.mrf.mxu0 }
 0x2c0   : > { %v2158_v3 = vpop.f32.mrf.mxu3  ;;  %v1990_v4 = vadd.f32 %v1989_v2, %v1821_v1  ;;  %v1822_v6 = vpop.f32.mrf.mxu1 }
 0x2c1   : > { %v1823_v10 = vadd.f32 %v1822_v6, %v1653_v8  ;;  %v1260_v6 = vld [vmem:[#allocation2 + $0x178] sm:$0xff] }
 0x2c2   : > { %v2159_v5 = vadd.f32 %v2158_v3, %v1990_v4 }
 0x2c4   : > { %v2249_v7 = vadd.f32 %v2159_v5, %v1253_v9 }
 0x2c6   : > { %2313 = vst [vmem:[#allocation2 + $0x1d8] sm:$0xff] %v2249_v7 }
 0x2c7   : > { %v1991_v11 = vpop.f32.mrf.mxu2  ;;  %v1656_v14 = vpop.f32.mrf.mxu0 }
 0x2c8   : > { %v2160_v12 = vpop.f32.mrf.mxu3  ;;  %v1992_v13 = vadd.f32 %v1991_v11, %v1823_v10  ;;  %v1825_v15 = vpop.f32.mrf.mxu1 }
 0x2c9   : > { %v1826_v19 = vadd.f32 %v1825_v15, %v1656_v14  ;;  %v1261_v15 = vld [vmem:[#allocation2 + $0x68] sm:$0xff] }
 0x2ca   : > { %v2161_v17 = vadd.f32 %v2160_v12, %v1992_v13 }
 0x2cc   : > { %v2250_v18 = vadd.f32 %v2161_v17, %v1254_v16 }
 0x2ce   : > { %2314 = vst [vmem:[#allocation2 + $0xd0] sm:$0xff] %v2250_v18 }
 0x2cf   : > { %v1994_v22 = vpop.f32.mrf.mxu2  ;;  %v1658_v21 = vpop.f32.mrf.mxu0 }
 0x2d0   : > { %v2163_v25 = vpop.f32.mrf.mxu3  ;;  %v1995_v20 = vadd.f32 %v1994_v22, %v1826_v19  ;;  %v1827_v23 = vpop.f32.mrf.mxu1 }
 0x2d1   : > { %v1828_v28 = vadd.f32 %v1827_v23, %v1658_v21  ;;  %v1262_v23 = vld [vmem:[#allocation2 + $0x190] sm:$0xff] }
 0x2d2   : > { %v2164_v26 = vadd.f32 %v2163_v25, %v1995_v20 }
 0x2d4   : > { %v2251_v27 = vadd.f32 %v2164_v26, %v1255_v24 }
 0x2d6   : > { %2315 = vst [vmem:[#allocation2 + $0xb8] sm:$0xff] %v2251_v27 }
 0x2d7   : > { %v1996_v29 = vpop.f32.mrf.mxu2  ;;  %v1661_v32 = vpop.f32.mrf.mxu0 }
 0x2d8   : > { %v2165_v30 = vpop.f32.mrf.mxu3  ;;  %v1997_v31 = vadd.f32 %v1996_v29, %v1828_v28  ;;  %v1830_v33 = vpop.f32.mrf.mxu1 }
 0x2d9   : > { %v1831_v41 = vadd.f32 %v1830_v33, %v1661_v32  ;;  %v1263_v33 = vld [vmem:[#allocation2 + $0x198] sm:$0xff] }
 0x2da   : > { %v2166_v35 = vadd.f32 %v2165_v30, %v1997_v31 }
 0x2dc   : > { %v2252_v38 = vadd.f32 %v2166_v35, %v1256_v34 }
 0x2de   : > { %2316 = vst [vmem:[#allocation2 + $0x88] sm:$0xff] %v2252_v38 }
 0x2df   : > { %v1999_v36 = vpop.f32.mrf.mxu2  ;;  %v1663_v40 = vpop.f32.mrf.mxu0 }
 0x2e0   : > { %v2168_v37 = vpop.f32.mrf.mxu3  ;;  %v2000_v39 = vadd.f32 %v1999_v36, %v1831_v41  ;;  %v1832_v42 = vpop.f32.mrf.mxu1 }
 0x2e1   : > { %v1833_v46 = vadd.f32 %v1832_v42, %v1663_v40  ;;  %v1264_v42 = vld [vmem:[#allocation2 + $0x38] sm:$0xff] }
 0x2e2   : > { %v2169_v44 = vadd.f32 %v2168_v37, %v2000_v39 }
 0x2e4   : > { %v2253_v45 = vadd.f32 %v2169_v44, %v1257_v43 }
 0x2e6   : > { %2317 = vst [vmem:[#allocation2 + $0xa8] sm:$0xff] %v2253_v45 }
 0x2e7   : > { %v2001_v47 = vpop.f32.mrf.mxu2  ;;  %v1666_v50 = vpop.f32.mrf.mxu0 }
 0x2e8   : > { %v2170_v48 = vpop.f32.mrf.mxu3  ;;  %v2002_v49 = vadd.f32 %v2001_v47, %v1833_v46  ;;  %v1835_v51 = vpop.f32.mrf.mxu1 }
 0x2e9   : > { %v1836_v52 = vadd.f32 %v1835_v51, %v1666_v50  ;;  %v1265_v51 = vld [vmem:[#allocation2 + $0xc0] sm:$0xff] }
 0x2ea   : > { %v2171_v57 = vadd.f32 %v2170_v48, %v2002_v49 }
 0x2ec   : > { %v2254_v53 = vadd.f32 %v2171_v57, %v1258_v54 }
 0x2ee   : > { %2318 = vst [vmem:[#allocation2 + $0x1c8] sm:$0xff] %v2254_v53 }
 0x2ef   : > { %v2004_v55 = vpop.f32.mrf.mxu2  ;;  %v1668_v56 = vpop.f32.mrf.mxu0 }
 0x2f0   : > { %v2173_v58 = vpop.f32.mrf.mxu3  ;;  %v2005_v59 = vadd.f32 %v2004_v55, %v1836_v52  ;;  %v1837_v60 = vpop.f32.mrf.mxu1 }
 0x2f1   : > { %v1838_v0 = vadd.f32 %v1837_v60, %v1668_v56  ;;  %v1266_v60 = vld [vmem:[#allocation2 + $0x1c0] sm:$0xff] }
 0x2f2   : > { %v2174_v62 = vadd.f32 %v2173_v58, %v2005_v59 }
 0x2f4   : > { %v2255_v63 = vadd.f32 %v2174_v62, %v1259_v61 }
 0x2f6   : > { %2319 = vst [vmem:[#allocation2 + $0x170] sm:$0xff] %v2255_v63 }
 0x2f7   : > { %v2006_v1 = vpop.f32.mrf.mxu2  ;;  %v1671_v4 = vpop.f32.mrf.mxu0 }
 0x2f8   : > { %v2175_v2 = vpop.f32.mrf.mxu3  ;;  %v2007_v3 = vadd.f32 %v2006_v1, %v1838_v0  ;;  %v1840_v8 = vpop.f32.mrf.mxu1 }
 0x2f9   : > { %v1841_v7 = vadd.f32 %v1840_v8, %v1671_v4  ;;  %v1267_v8 = vld [vmem:[#allocation2 + $0x158] sm:$0xff] }
 0x2fa   : > { %v2176_v9 = vadd.f32 %v2175_v2, %v2007_v3 }
 0x2fc   : > { %v2256_v5 = vadd.f32 %v2176_v9, %v1260_v6 }
 0x2fe   : > { %2320 = vst [vmem:[#allocation2 + $0x178] sm:$0xff] %v2256_v5 }
 0x2ff   : > { %v2009_v10 = vpop.f32.mrf.mxu2  ;;  %v1673_v13 = vpop.f32.mrf.mxu0 }
 0x300   : > { %v2178_v11 = vpop.f32.mrf.mxu3  ;;  %v2010_v12 = vadd.f32 %v2009_v10, %v1841_v7  ;;  %v1842_v14 = vpop.f32.mrf.mxu1 }
 0x301   : > { %v1843_v18 = vadd.f32 %v1842_v14, %v1673_v13 }
 0x302   : > { %v2179_v16 = vadd.f32 %v2178_v11, %v2010_v12  ;;  %v1268_v12 = vld [vmem:[#allocation2 + $0x10] sm:$0xff] }
 0x304   : > { %v2257_v17 = vadd.f32 %v2179_v16, %v1261_v15 }
 0x306   : > { %2321 = vst [vmem:[#allocation2 + $0x68] sm:$0xff] %v2257_v17 }
 0x307   : > { %v2011_v19 = vpop.f32.mrf.mxu2  ;;  %v1676_v20 = vpop.f32.mrf.mxu0 }
 0x308   : > { %v2180_v22 = vpop.f32.mrf.mxu3  ;;  %v2012_v25 = vadd.f32 %v2011_v19, %v1843_v18  ;;  %v1845_v21 = vpop.f32.mrf.mxu1 }
 0x309   : > { %v1846_v27 = vadd.f32 %v1845_v21, %v1676_v20 }
 0x30a   : > { %v2181_v24 = vadd.f32 %v2180_v22, %v2012_v25  ;;  %v1269_v25 = vld [vmem:[#allocation2 + $0x58] sm:$0xff] }
 0x30c   : > { %v2258_v26 = vadd.f32 %v2181_v24, %v1262_v23 }
 0x30e   : > { %2322 = vst [vmem:[#allocation2 + $0x190] sm:$0xff] %v2258_v26 }
 0x30f   : > { %v2014_v28 = vpop.f32.mrf.mxu2  ;;  %v1678_v31 = vpop.f32.mrf.mxu0 }
 0x310   : > { %v2183_v29 = vpop.f32.mrf.mxu3  ;;  %v2015_v30 = vadd.f32 %v2014_v28, %v1846_v27  ;;  %v1847_v32 = vpop.f32.mrf.mxu1 }
 0x311   : > { %v1848_v38 = vadd.f32 %v1847_v32, %v1678_v31 }
 0x312   : > { %v2184_v34 = vadd.f32 %v2183_v29, %v2015_v30  ;;  %v1270_v29 = vld [vmem:[#allocation2 + $0xa0] sm:$0xff] }
 0x314   : > { %v2259_v35 = vadd.f32 %v2184_v34, %v1263_v33 }
 0x316   : > { %2323 = vst [vmem:[#allocation2 + $0x198] sm:$0xff] %v2259_v35 }
 0x317   : > { %v2016_v41 = vpop.f32.mrf.mxu2  ;;  %v1681_v39 = vpop.f32.mrf.mxu0 }
 0x318   : > { %v2185_v36 = vpop.f32.mrf.mxu3  ;;  %v2017_v37 = vadd.f32 %v2016_v41, %v1848_v38  ;;  %v1850_v40 = vpop.f32.mrf.mxu1 }
 0x319   : > { %v1851_v45 = vadd.f32 %v1850_v40, %v1681_v39 }
 0x31a   : > { %v2186_v43 = vadd.f32 %v2185_v36, %v2017_v37 }
 0x31c   : > { %v2260_v44 = vadd.f32 %v2186_v43, %v1264_v42 }
 0x31e   : > { %2324 = vst [vmem:[#allocation2 + $0x38] sm:$0xff] %v2260_v44 }
 0x31f   : > { %v2019_v46 = vpop.f32.mrf.mxu2  ;;  %v1683_v49 = vpop.f32.mrf.mxu0 }
 0x320   : > { %v2188_v47 = vpop.f32.mrf.mxu3  ;;  %v2020_v48 = vadd.f32 %v2019_v46, %v1851_v45  ;;  %v1852_v50 = vpop.f32.mrf.mxu1 }
 0x321   : > { %v1853_v53 = vadd.f32 %v1852_v50, %v1683_v49 }
 0x322   : > { %v2189_v54 = vadd.f32 %v2188_v47, %v2020_v48 }
 0x324   : > { %v2261_v57 = vadd.f32 %v2189_v54, %v1265_v51 }
 0x326   : > { %2325 = vst [vmem:[#allocation2 + $0xc0] sm:$0xff] %v2261_v57 }
 0x327   : > { %v2021_v52 = vpop.f32.mrf.mxu2  ;;  %v1686_v59 = vpop.f32.mrf.mxu0 }
 0x328   : > { %v2190_v55 = vpop.f32.mrf.mxu3  ;;  %v2022_v58 = vadd.f32 %v2021_v52, %v1853_v53  ;;  %v1855_v56 = vpop.f32.mrf.mxu1 }
 0x329   : > { %v1856_v63 = vadd.f32 %v1855_v56, %v1686_v59 }
 0x32a   : > { %v2191_v61 = vadd.f32 %v2190_v55, %v2022_v58 }
 0x32c   : > { %v2262_v62 = vadd.f32 %v2191_v61, %v1266_v60 }
 0x32e   : > { %2326 = vst [vmem:[#allocation2 + $0x1c0] sm:$0xff] %v2262_v62 }
 0x32f   : > { %v2024_v0 = vpop.f32.mrf.mxu2  ;;  %v1688_v3 = vpop.f32.mrf.mxu0 }
 0x330   : > { %v2193_v1 = vpop.f32.mrf.mxu3  ;;  %v2025_v2 = vadd.f32 %v2024_v0, %v1856_v63  ;;  %v1857_v4 = vpop.f32.mrf.mxu1 }
 0x331   : > { %v1858_v5 = vadd.f32 %v1857_v4, %v1688_v3 }
 0x332   : > { %v2194_v6 = vadd.f32 %v2193_v1, %v2025_v2 }
 0x334   : > { %v2263_v9 = vadd.f32 %v2194_v6, %v1267_v8 }
 0x336   : > { %2327 = vst [vmem:[#allocation2 + $0x158] sm:$0xff] %v2263_v9 }
 0x337   : > { %v2026_v7 = vpop.f32.mrf.mxu2  ;;  %v1691_v13 = vpop.f32.mrf.mxu0 }
 0x338   : > { %v2195_v10 = vpop.f32.mrf.mxu3  ;;  %v2027_v11 = vadd.f32 %v2026_v7, %v1858_v5  ;;  %v1860_v14 = vpop.f32.mrf.mxu1 }
 0x339   : > { %v1861_v17 = vadd.f32 %v1860_v14, %v1691_v13 }
 0x33a   : > { %v2196_v15 = vadd.f32 %v2195_v10, %v2027_v11 }
 0x33c   : > { %v2264_v16 = vadd.f32 %v2196_v15, %v1268_v12 }
 0x33e   : > { %2328 = vst [vmem:[#allocation2 + $0x10] sm:$0xff] %v2264_v16 }
 0x33f   : > { %v2029_v18 = vpop.f32.mrf.mxu2  ;;  %v1693_v21 = vpop.f32.mrf.mxu0 }
 0x340   : > { %v2198_v19 = vpop.f32.mrf.mxu3  ;;  %v2030_v22 = vadd.f32 %v2029_v18, %v1861_v17  ;;  %v1862_v23 = vpop.f32.mrf.mxu1 }
 0x341   : > { %v1863_v26 = vadd.f32 %v1862_v23, %v1693_v21 }
 0x342   : > { %v2199_v20 = vadd.f32 %v2198_v19, %v2030_v22 }
 0x344   : > { %v2265_v24 = vadd.f32 %v2199_v20, %v1269_v25 }
 0x346   : > { %2329 = vst [vmem:[#allocation2 + $0x58] sm:$0xff] %v2265_v24 }
 0x347   : > { %v2031_v27 = vpop.f32.mrf.mxu2 }
 0x348   : > { %v2032_v28 = vadd.f32 %v2031_v27, %v1863_v26  ;;  %v2200_v30 = vpop.f32.mrf.mxu3 }
 0x34a   : > { %v2201_v31 = vadd.f32 %v2200_v30, %v2032_v28  ;;  %2334 = sbr.rel (%p3619_p13) target bundleno = 1278 (0x4fe), region = 71 }
 0x34c   : > { %v2266_v32 = vadd.f32 %v2201_v31, %v1270_v29 }
 0x34e   : > { %2330 = vst [vmem:[#allocation2 + $0xa0] sm:$0xff] %v2266_v32 }
 0x34f   : > { %v2403_v33 = vld [vmem:[%s4265_s14 + $0x20] sm:$0xff]  ;;  %v2401_v34 = vld [vmem:[%s4265_s14 + $0x10] sm:$0xff]  ;;  %v4029_v38 = vmov 0   ;;  %v2404_v41 = vld [vmem:[%s4265_s14 + $0x28] sm:$0xff] }
 0x350   : > { %v2399_v35 = vld [vmem:[%s4265_s14] sm:$0xff]  ;;  %3970 = vset.pattern.permute.xlu2 %v4029_v38  ;;  %3969 = vset.pattern.permute.xlu1 %v4029_v38  ;;  %v2402_v36 = vld [vmem:[%s4265_s14 + $0x18] sm:$0xff]  ;;  %v2400_v37 = vld [vmem:[%s4265_s14 + $0x8] sm:$0xff] }
 0x351   : > { %3968 = vset.pattern.permute.xlu0 %v4029_v38  ;;  %2485 = vperm.xlu2 %3970, %v2403_v33   ;;  %v2407_v39 = vld [vmem:[%s4265_s14 + $0x40] sm:$0xff]  ;;  %v2406_v40 = vld [vmem:[%s4265_s14 + $0x38] sm:$0xff]  ;;  %v2405_v42 = vld [vmem:[%s4265_s14 + $0x30] sm:$0xff] }
 0x352   : > { %2475 = vperm.xlu1 %3969, %v2401_v34   ;;  %2465 = vperm.xlu0 %3968, %v2399_v35   ;;  %v2410_v43 = vld [vmem:[%s4265_s14 + $0x58] sm:$0xff]  ;;  %v2409_v44 = vld [vmem:[%s4265_s14 + $0x50] sm:$0xff]  ;;  %v2408_v45 = vld [vmem:[%s4265_s14 + $0x48] sm:$0xff] }
 0x353   : > { %v2431_v46 = vld [vmem:[%s4265_s14 + $0x100] sm:$0xff]  ;;  %v2412_v47 = vld [vmem:[%s4265_s14 + $0x68] sm:$0xff]  ;;  %v2433_v54 = vld [vmem:[%s4265_s14 + $0x110] sm:$0xff] }
 0x354   : > { %v2411_v48 = vld [vmem:[%s4265_s14 + $0x60] sm:$0xff]  ;;  %v2448_v49 = vld [vmem:[%s4265_s14 + $0x188] sm:$0xff]  ;;  %v2450_v52 = vld [vmem:[%s4265_s14 + $0x198] sm:$0xff] }
 0x355   : > { %v2447_v50 = vld [vmem:[%s4265_s14 + $0x180] sm:$0xff]  ;;  %v2432_v51 = vld [vmem:[%s4265_s14 + $0x108] sm:$0xff]  ;;  %v2449_v55 = vld [vmem:[%s4265_s14 + $0x190] sm:$0xff] }
 0x356   : > { %v2416_v57 = vld [vmem:[%s4265_s14 + $0x88] sm:$0xff]  ;;  %v2415_v53 = vld [vmem:[%s4265_s14 + $0x80] sm:$0xff]  ;;  %v2434_v58 = vld [vmem:[%s4265_s14 + $0x118] sm:$0xff] }
 0x357   : > { %v2435_v59 = vld [vmem:[%s4265_s14 + $0x120] sm:$0xff]  ;;  %v2418_v56 = vld [vmem:[%s4265_s14 + $0x98] sm:$0xff]  ;;  %v2417_v60 = vld [vmem:[%s4265_s14 + $0x90] sm:$0xff] }
 0x358   : > { %v3694_v61 = vld [vmem:[%s4959_s4 + $0x38] sm:$0xff]  ;;  %v2452_v62 = vld [vmem:[%s4265_s14 + $0x1a8] sm:$0xff]  ;;  %v2451_v63 = vld [vmem:[%s4265_s14 + $0x1a0] sm:$0xff] }
 0x359   : > { %2490 = vperm.xlu2 %3970, %v2404_v41   ;;  %3075 = vmatpush.bf16.msra.mxu0 %v3694_v61  ;;  %v2436_v0 = vld [vmem:[%s4265_s14 + $0x128] sm:$0xff]  ;;  %v3693_v1 = vld [vmem:[%s4959_s4 + $0x30] sm:$0xff]  ;;  %v2419_v8 = vld [vmem:[%s4265_s14 + $0xa0] sm:$0xff] }
 0x35a   : > { %2480 = vperm.xlu1 %3969, %v2402_v36   ;;  %2470 = vperm.xlu0 %3968, %v2400_v37   ;;  %v3692_v2 = vld [vmem:[%s4959_s4 + $0x28] sm:$0xff]  ;;  %v2437_v3 = vld [vmem:[%s4265_s14 + $0x130] sm:$0xff]  ;;  %v3691_v6 = vld [vmem:[%s4959_s4 + $0x20] sm:$0xff] }
 0x35b   : > { %3887 = vmatpush.bf16.msra.mxu2 %v3694_v61  ;;  %3888 = vmatpush.bf16.msra.mxu3 %v3694_v61  ;;  %v2420_v4 = vld [vmem:[%s4265_s14 + $0xa8] sm:$0xff]  ;;  %v3690_v9 = vld [vmem:[%s4959_s4 + $0x18] sm:$0xff]  ;;  %v2453_v7 = vld [vmem:[%s4265_s14 + $0x1b0] sm:$0xff] }
 0x35c   : > { %3886 = vmatpush.bf16.msra.mxu1 %v3694_v61  ;;  %v2454_v5 = vld [vmem:[%s4265_s14 + $0x1b8] sm:$0xff]  ;;  %v3689_v11 = vld [vmem:[%s4959_s4 + $0x10] sm:$0xff]  ;;  %v3688_v13 = vld [vmem:[%s4959_s4 + $0x8] sm:$0xff] }
 0x35d   : > { %3076 = vmatpush.bf16.msra.mxu0 %v3693_v1  ;;  %v2438_v10 = vld [vmem:[%s4265_s14 + $0x138] sm:$0xff]  ;;  %v2439_v14 = vld [vmem:[%s4265_s14 + $0x140] sm:$0xff]  ;;  %v2421_v16 = vld [vmem:[%s4265_s14 + $0xb0] sm:$0xff] }
 0x35e   : > { %v2422_v15 = vld [vmem:[%s4265_s14 + $0xb8] sm:$0xff]  ;;  %v3687_v17 = vld [vmem:[%s4959_s4] sm:$0xff]  ;;  %v2456_v19 = vld [vmem:[%s4265_s14 + $0x1c8] sm:$0xff] }
 0x35f   : > { %3890 = vmatpush.bf16.msra.mxu2 %v3693_v1  ;;  %3891 = vmatpush.bf16.msra.mxu3 %v3693_v1  ;;  %v2455_v22 = vld [vmem:[%s4265_s14 + $0x1c0] sm:$0xff]  ;;  %v2440_v25 = vld [vmem:[%s4265_s14 + $0x148] sm:$0xff]  ;;  %v2441_v21 = vld [vmem:[%s4265_s14 + $0x150] sm:$0xff] }
 0x360   : > { %3889 = vmatpush.bf16.msra.mxu1 %v3693_v1  ;;  %v2424_v23 = vld [vmem:[%s4265_s14 + $0xc8] sm:$0xff]  ;;  %v2423_v24 = vld [vmem:[%s4265_s14 + $0xc0] sm:$0xff]  ;;  %v2335_v29 = vld [vmem:[#allocation2 + $0xb0] sm:$0xff] }
 0x361   : > { %2505 = vperm.xlu2 %3970, %v2407_v39   ;;  %3077 = vmatpush.bf16.msra.mxu0 %v3692_v2  ;;  %v2458_v30 = vld [vmem:[%s4265_s14 + $0x1d8] sm:$0xff]  ;;  %v2457_v31 = vld [vmem:[%s4265_s14 + $0x1d0] sm:$0xff]  ;;  %v4783_v33 = vld [vmem:[%s4958_s3] ss:$0 sm:$0xff] }
 0x362   : > { %2500 = vperm.xlu1 %3969, %v2406_v40   ;;  %2495 = vperm.xlu0 %3968, %v2405_v42   ;;  %v2442_v32 = vld [vmem:[%s4265_s14 + $0x158] sm:$0xff]  ;;  %v2336_v35 = vld [vmem:[#allocation2 + $0x1b0] sm:$0xff]  ;;  %v2443_v40 = vld [vmem:[%s4265_s14 + $0x160] sm:$0xff] }
 0x363   : > { %3893 = vmatpush.bf16.msra.mxu2 %v3692_v2  ;;  %3894 = vmatpush.bf16.msra.mxu3 %v3692_v2 }
 0x364   : > { %3892 = vmatpush.bf16.msra.mxu1 %v3692_v2  ;;  %v2428_v2 = vld [vmem:[%s4265_s14 + $0xe8] sm:$0xff] }
 0x365   : > { %3078 = vmatpush.bf16.msra.mxu0 %v3691_v6 }
 0x367   : > { %3896 = vmatpush.bf16.msra.mxu2 %v3691_v6  ;;  %3897 = vmatpush.bf16.msra.mxu3 %v3691_v6 }
 0x368   : > { %3895 = vmatpush.bf16.msra.mxu1 %v3691_v6 }
 0x369   : > { %2520 = vperm.xlu2 %3970, %v2410_v43   ;;  %3079 = vmatpush.bf16.msra.mxu0 %v3690_v9  ;;  %v2426_v43 = vld [vmem:[%s4265_s14 + $0xd8] sm:$0xff] }
 0x36a   : > { %2515 = vperm.xlu1 %3969, %v2409_v44   ;;  %2510 = vperm.xlu0 %3968, %v2408_v45   ;;  %v2425_v44 = vld [vmem:[%s4265_s14 + $0xd0] sm:$0xff] }
 0x36b   : > { %3899 = vmatpush.bf16.msra.mxu2 %v3690_v9  ;;  %3900 = vmatpush.bf16.msra.mxu3 %v3690_v9 }
 0x36c   : > { %3898 = vmatpush.bf16.msra.mxu1 %v3690_v9 }
 0x36d   : > { %3080 = vmatpush.bf16.msra.mxu0 %v3689_v11 }
 0x36f   : > { %3902 = vmatpush.bf16.msra.mxu2 %v3689_v11  ;;  %3903 = vmatpush.bf16.msra.mxu3 %v3689_v11 }
 0x370   : > { %3901 = vmatpush.bf16.msra.mxu1 %v3689_v11 }
 0x371   : > { %2625 = vperm.xlu2 %3970, %v2431_v46   ;;  %3081 = vmatpush.bf16.msra.mxu0 %v3688_v13 }
 0x372   : > { %2530 = vperm.xlu1 %3969, %v2412_v47   ;;  %2525 = vperm.xlu0 %3968, %v2411_v48  }
 0x373   : > { %3905 = vmatpush.bf16.msra.mxu2 %v3688_v13  ;;  %3906 = vmatpush.bf16.msra.mxu3 %v3688_v13 }
 0x374   : > { %3904 = vmatpush.bf16.msra.mxu1 %v3688_v13 }
 0x375   : > { %3082 = vmatpush.bf16.msra.mxu0 %v3687_v17 }
 0x377   : > { %3908 = vmatpush.bf16.msra.mxu2 %v3687_v17  ;;  %3909 = vmatpush.bf16.msra.mxu3 %v3687_v17 }
 0x378   : > { %3907 = vmatpush.bf16.msra.mxu1 %v3687_v17  ;;  %v2462_v17 = vld [vmem:[%s4265_s14 + $0x1f8] sm:$0xff] }
 0x379   : > { %2710 = vperm.xlu2 %3970, %v2448_v49   ;;  %v2337_v49 = vld [vmem:[#allocation2 + $0xd8] sm:$0xff] }
 0x37a   : > { %2705 = vperm.xlu1 %3969, %v2447_v50   ;;  %2630 = vperm.xlu0 %3968, %v2432_v51   ;;  %v2338_v50 = vld [vmem:[#allocation2 + $0x18] sm:$0xff] }
 0x381   : > { %2635 = vperm.xlu2 %3970, %v2433_v54  }
 0x382   : > { %2550 = vperm.xlu1 %3969, %v2416_v57   ;;  %2545 = vperm.xlu0 %3968, %v2415_v53   ;;  %v2460_v57 = vld [vmem:[%s4265_s14 + $0x1e8] sm:$0xff] }
 0x389   : > { %2720 = vperm.xlu2 %3970, %v2450_v52  }
 0x38a   : > { %2715 = vperm.xlu1 %3969, %v2449_v55   ;;  %2640 = vperm.xlu0 %3968, %v2434_v58   ;;  %v2459_v55 = vld [vmem:[%s4265_s14 + $0x1e0] sm:$0xff]  ;;  %v2444_v58 = vld [vmem:[%s4265_s14 + $0x168] sm:$0xff] }
 0x391   : > { %2645 = vperm.xlu2 %3970, %v2435_v59  }
 0x392   : > { %2560 = vperm.xlu1 %3969, %v2418_v56   ;;  %2555 = vperm.xlu0 %3968, %v2417_v60  }
 0x399   : > { %2730 = vperm.xlu2 %3970, %v2452_v62  }
 0x39a   : > { %2725 = vperm.xlu1 %3969, %v2451_v63   ;;  %2650 = vperm.xlu0 %3968, %v2436_v0   ;;  %v2445_v63 = vld [vmem:[%s4265_s14 + $0x170] sm:$0xff] }
 0x3a1   : > { %2655 = vperm.xlu2 %3970, %v2437_v3   ;;  %v2427_v3 = vld [vmem:[%s4265_s14 + $0xe0] sm:$0xff] }
 0x3a2   : > { %2570 = vperm.xlu1 %3969, %v2420_v4   ;;  %2565 = vperm.xlu0 %3968, %v2419_v8   ;;  %v2348_v4 = vld [vmem:[#allocation2 + $0x150] sm:$0xff]  ;;  %v2347_v8 = vld [vmem:[#allocation2 + $0x120] sm:$0xff] }
 0x3a9   : > { %2740 = vperm.xlu2 %3970, %v2454_v5   ;;  %v2339_v5 = vld [vmem:[#allocation2 + $0x50] sm:$0xff] }
 0x3aa   : > { %2735 = vperm.xlu1 %3969, %v2453_v7   ;;  %2660 = vperm.xlu0 %3968, %v2438_v10   ;;  %v2340_v7 = vld [vmem:[#allocation2 + $0x168] sm:$0xff] }
 0x3ab   : > { %v4754_v12 = vpop.permute.xlu2 %2485 }
 0x3b1   : > { %2665 = vperm.xlu2 %3970, %v2439_v14  }
 0x3b2   : > { %2580 = vperm.xlu1 %3969, %v2422_v15   ;;  %2575 = vperm.xlu0 %3968, %v2421_v16   ;;  %v2367_v15 = vld [vmem:[#allocation2 + $0x148] sm:$0xff] }
 0x3b3   : > { %v4765_v18 = vpop.permute.xlu2 %2490  ;;  %v2384_v16 = vld [vmem:[#allocation2 + $0x88] sm:$0xff] }
 0x3b9   : > { %2750 = vperm.xlu2 %3970, %v2456_v19   ;;  %v2787_v19 = vmul.f32 %v4754_v12, %v2339_v5  ;;  %v2386_v5 = vld [vmem:[#allocation2 + $0x1c8] sm:$0xff] }
 0x3ba   : > { %2745 = vperm.xlu1 %3969, %v2455_v22   ;;  %2670 = vperm.xlu0 %3968, %v2440_v25   ;;  %v2788_v22 = vmul.f32 %v4765_v18, %v2340_v7 }
 0x3bb   : > { %v4770_v20 = vpop.permute.xlu2 %2505  ;;  %v2855_v12 = vadd.f32 %v4783_v33, %v2787_v19 }
 0x3bc   : > { %v2856_v18 = vadd.f32 %v4783_v33, %v2788_v22  ;;  %v2385_v22 = vld [vmem:[#allocation2 + $0xa8] sm:$0xff] }
 0x3c1   : > { %2675 = vperm.xlu2 %3970, %v2441_v21  }
 0x3c2   : > { %2590 = vperm.xlu1 %3969, %v2424_v23   ;;  %2585 = vperm.xlu0 %3968, %v2423_v24   ;;  %v2461_v23 = vld [vmem:[%s4265_s14 + $0x1f0] sm:$0xff]  ;;  %v2446_v24 = vld [vmem:[%s4265_s14 + $0x178] sm:$0xff] }
 0x3c3   : > { %v4775_v26 = vpop.permute.xlu2 %2520 }
 0x3c4   : > { %v2476_v27 = vpop.permute.xlu1 %2475  ;;  %v2466_v28 = vpop.permute.xlu0 %2465 }
 0x3c5   : > { %v2783_v34 = vmul.f32 %v2466_v28, %v2335_v29  ;;  %v2785_v53 = vmul.f32 %v2476_v27, %v2337_v49 }
 0x3c7   : > { %v2851_v37 = vadd.f32 %v4783_v33, %v2783_v34  ;;  %v2853_v59 = vadd.f32 %v4783_v33, %v2785_v53 }
 0x3c9   : > { %2760 = vperm.xlu2 %3970, %v2458_v30   ;;  %v2915_v45 = vmax.f32 %v2851_v37, 0.0  ;;  %v2917_v0 = vmax.f32 %v2853_v59, 0.0 }
 0x3ca   : > { %2755 = vperm.xlu1 %3969, %v2457_v31   ;;  %2680 = vperm.xlu0 %3968, %v2442_v32   ;;  %v2383_v31 = vld [vmem:[#allocation2 + $0xb8] sm:$0xff]  ;;  %v2368_v32 = vld [vmem:[#allocation2 + $0x1d0] sm:$0xff] }
 0x3cb   : > { %v2626_v38 = vpop.permute.xlu2 %2625 }
 0x3cc   : > { %v2481_v41 = vpop.permute.xlu1 %2480  ;;  %v2471_v36 = vpop.permute.xlu0 %2470  ;;  %v2815_v27 = vmul.f32 %v2626_v38, %v2367_v15 }
 0x3cd   : > { %v2784_v39 = vmul.f32 %v2471_v36, %v2336_v35  ;;  %v2786_v52 = vmul.f32 %v2481_v41, %v2338_v50 }
 0x3ce   : > { %v2883_v36 = vadd.f32 %v4783_v33, %v2815_v27 }
 0x3cf   : > { %v2852_v42 = vadd.f32 %v4783_v33, %v2784_v39  ;;  %v2854_v56 = vadd.f32 %v4783_v33, %v2786_v52  ;;  %v2352_v52 = vld [vmem:[#allocation2 + $0x188] sm:$0xff] }
 0x3d0   : > { %v2947_v49 = vmax.f32 %v2883_v36, 0.0 }
 0x3d1   : > { %v2916_v46 = vmax.f32 %v2852_v42, 0.0  ;;  %2685 = vperm.xlu2 %3970, %v2443_v40   ;;  %v2918_v1 = vmax.f32 %v2854_v56, 0.0  ;;  %v2429_v42 = vld [vmem:[%s4265_s14 + $0xf0] sm:$0xff] }
 0x3d2   : > { %2600 = vperm.xlu1 %3969, %v2426_v43   ;;  %2595 = vperm.xlu0 %3968, %v2425_v44   ;;  %v2919_v43 = vmax.f32 %v2855_v12, 0.0  ;;  %v2920_v44 = vmax.f32 %v2856_v18, 0.0 }
 0x3d3   : > { %v2711_v47 = vpop.permute.xlu2 %2710  ;;  %v2979_v48 = vpack.c.bf16 %v2916_v46, %v2915_v45  ;;  %v2980_v9 = vpack.c.bf16 %v2918_v1, %v2917_v0  ;;  %v2342_v0 = vld [vmem:[#allocation2 + $0x48] sm:$0xff]  ;;  %v2341_v1 = vld [vmem:[#allocation2 + $0x130] sm:$0xff] }
 0x3d4   : > { %v4790_v51 = vpop.permute.xlu1 %2500  ;;  %v4792_v54 = vpop.permute.xlu0 %2495  ;;  %v2832_v28 = vmul.f32 %v2711_v47, %v2384_v16  ;;  %v2414_v47 = vld [vmem:[%s4265_s14 + $0x78] sm:$0xff]  ;;  %v2981_v59 = vpack.c.bf16 %v2920_v44, %v2919_v43  ;;  %v2344_v44 = vld [vmem:[#allocation2 + $0x110] sm:$0xff] }
 0x3d5   : > { %3083 = vmatmul.bf16.vlgmr.msra.gmra.mxu0 %v2979_v48  ;;  %v2413_v48 = vld [vmem:[%s4265_s14 + $0x70] sm:$0xff]  ;;  %v2790_v7 = vmul.f32 %v4790_v51, %v2342_v0 }
 0x3d6   : > { %v2900_v37 = vadd.f32 %v4783_v33, %v2832_v28 }
 0x3d8   : > { %v2964_v50 = vmax.f32 %v2900_v37, 0.0  ;;  %v2354_v37 = vld [vmem:[#allocation2 + $0x140] sm:$0xff] }
 0x3d9   : > { %2770 = vperm.xlu2 %3970, %v2460_v57  }
 0x3da   : > { %2765 = vperm.xlu1 %3969, %v2459_v55   ;;  %2690 = vperm.xlu0 %3968, %v2444_v58   ;;  %v2351_v55 = vld [vmem:[#allocation2 + $0xe0] sm:$0xff] }
 0x3db   : > { %v4799_v60 = vpop.permute.xlu2 %2635 }
 0x3dc   : > { %v4801_v61 = vpop.permute.xlu1 %2515  ;;  %v4803_v62 = vpop.permute.xlu0 %2510 }
 0x3e1   : > { %2695 = vperm.xlu2 %3970, %v2445_v63  }
 0x3e2   : > { %2610 = vperm.xlu1 %3969, %v2428_v2   ;;  %2605 = vperm.xlu0 %3968, %v2427_v3  }
 0x3e3   : > { %v4808_v6 = vpop.permute.xlu2 %2720 }
 0x3e4   : > { %v2531_v10 = vpop.permute.xlu1 %2530  ;;  %v2526_v11 = vpop.permute.xlu0 %2525  ;;  %v2834_v16 = vmul.f32 %v4808_v6, %v2386_v5 }
 0x3e5   : > { %v2796_v13 = vmul.f32 %v2531_v10, %v2348_v4  ;;  %v2795_v14 = vmul.f32 %v2526_v11, %v2347_v8  ;;  %3088 = vmatmul.bf16.gmra.mxu0 %v2980_v9  ;;  %v2369_v9 = vld [vmem:[#allocation2 + $0x100] sm:$0xff]  ;;  %v2789_v10 = vmul.f32 %v4792_v54, %v2341_v1 }
 0x3e6   : > { %v2817_v15 = vmul.f32 %v4799_v60, %v2369_v9  ;;  %v2902_v60 = vadd.f32 %v4783_v33, %v2834_v16 }
 0x3e7   : > { %v2864_v25 = vadd.f32 %v4783_v33, %v2796_v13  ;;  %v2863_v21 = vadd.f32 %v4783_v33, %v2795_v14  ;;  %v2430_v14 = vld [vmem:[%s4265_s14 + $0xf8] sm:$0xff]  ;;  %v2857_v51 = vadd.f32 %v4783_v33, %v2789_v10 }
 0x3e8   : > { %v2885_v28 = vadd.f32 %v4783_v33, %v2817_v15 }
 0x3e9   : > { %v2928_v29 = vmax.f32 %v2864_v25, 0.0  ;;  %v2927_v30 = vmax.f32 %v2863_v21, 0.0  ;;  %2780 = vperm.xlu2 %3970, %v2462_v17   ;;  %v2370_v25 = vld [vmem:[#allocation2 + $0xc8] sm:$0xff]  ;;  %v2858_v21 = vadd.f32 %v4783_v33, %v2790_v7 }
 0x3ea   : > { %2775 = vperm.xlu1 %3969, %v2461_v23   ;;  %2700 = vperm.xlu0 %3968, %v2446_v24   ;;  %v2949_v18 = vmax.f32 %v2885_v28, 0.0  ;;  %v2345_v28 = vld [vmem:[#allocation2 + $0x118] sm:$0xff] }
 0x3eb   : > { %v4819_v34 = vpop.permute.xlu2 %2645  ;;  %v4821_v35 = vpack.c.bf16 %v2928_v29, %v2927_v30  ;;  %v2922_v30 = vmax.f32 %v2858_v21, 0.0  ;;  %v2356_v21 = vld [vmem:[#allocation2 + $0x1a8] sm:$0xff] }
 0x3ec   : > { %v2706_v38 = vpop.permute.xlu1 %2705  ;;  %v2631_v41 = vpop.permute.xlu0 %2630 }
 0x3ed   : > { %v2831_v39 = vmul.f32 %v2706_v38, %v2383_v31  ;;  %v2816_v40 = vmul.f32 %v2631_v41, %v2368_v32  ;;  %v2921_v31 = vmax.f32 %v2857_v51, 0.0  ;;  %v2966_v38 = vmax.f32 %v2902_v60, 0.0  ;;  %v2355_v51 = vld [vmem:[#allocation2 + $0x80] sm:$0xff] }
 0x3ef   : > { %v2899_v45 = vadd.f32 %v4783_v33, %v2831_v39  ;;  %v2884_v46 = vadd.f32 %v4783_v33, %v2816_v40  ;;  %v2353_v39 = vld [vmem:[#allocation2 + $0x138] sm:$0xff]  ;;  %v2982_v40 = vpack.c.bf16 %v2922_v30, %v2921_v31 }
 0x3f1   : > { %v2963_v57 = vmax.f32 %v2899_v45, 0.0  ;;  %v2948_v53 = vmax.f32 %v2884_v46, 0.0  ;;  %2615 = vperm.xlu2 %3970, %v2429_v42  }
 0x3f2   : > { %2540 = vperm.xlu1 %3969, %v2414_v47   ;;  %2535 = vperm.xlu0 %3968, %v2413_v48   ;;  %v2343_v47 = vld [vmem:[#allocation2 + $0x180] sm:$0xff] }
 0x3f3   : > { %v4830_v58 = vpop.permute.xlu2 %2730  ;;  %v2995_v56 = vpack.c.bf16 %v2948_v53, %v2947_v49  ;;  %v3003_v63 = vpack.c.bf16 %v2964_v50, %v2963_v57  ;;  %v2371_v57 = vld [vmem:[#allocation2 + $0x40] sm:$0xff]  ;;  %v2388_v53 = vld [vmem:[#allocation2 + $0x178] sm:$0xff] }
 0x3f4   : > { %v2551_v2 = vpop.permute.xlu1 %2550  ;;  %v2546_v3 = vpop.permute.xlu0 %2545  ;;  %v2836_v0 = vmul.f32 %v4830_v58, %v2388_v53 }
 0x3f5   : > { %v2800_v4 = vmul.f32 %v2551_v2, %v2352_v52  ;;  %v2799_v8 = vmul.f32 %v2546_v3, %v2351_v55  ;;  %3093 = vmatmul.bf16.gmra.mxu0 %v2981_v59  ;;  %3163 = vmatmul.bf16.vlgmr.msra.gmra.mxu2 %v2995_v56  ;;  %v2792_v52 = vmul.f32 %v4803_v62, %v2344_v44  ;;  %v2387_v3 = vld [vmem:[#allocation2 + $0x170] sm:$0xff]  ;;  %v2389_v44 = vld [vmem:[#allocation2 + $0x68] sm:$0xff] }
 0x3f6   : > { %3203 = vmatmul.bf16.vlgmr.msra.gmra.mxu3 %v3003_v63  ;;  %v2791_v56 = vmul.f32 %v4770_v20, %v2343_v47  ;;  %v2819_v63 = vmul.f32 %v4819_v34, %v2371_v57 }
 0x3f7   : > { %v2868_v11 = vadd.f32 %v4783_v33, %v2800_v4  ;;  %v2867_v13 = vadd.f32 %v4783_v33, %v2799_v8  ;;  %v2372_v4 = vld [vmem:[#allocation2 + $0x1f8] sm:$0xff]  ;;  %v2860_v8 = vadd.f32 %v4783_v33, %v2792_v52 }
 0x3f8   : > { %v2859_v5 = vadd.f32 %v4783_v33, %v2791_v56  ;;  %v2887_v10 = vadd.f32 %v4783_v33, %v2819_v63 }
 0x3f9   : > { %v2932_v17 = vmax.f32 %v2868_v11, 0.0  ;;  %v2931_v19 = vmax.f32 %v2867_v13, 0.0  ;;  %v2904_v11 = vadd.f32 %v4783_v33, %v2836_v0  ;;  %v2924_v34 = vmax.f32 %v2860_v8, 0.0 }
 0x3fa   : > { %2620 = vperm.xlu0 %3968, %v2430_v14   ;;  %v2923_v16 = vmax.f32 %v2859_v5, 0.0 }
 0x3fb   : > { %v4841_v23 = vpop.permute.xlu2 %2655  ;;  %v2987_v54 = vpack.c.bf16 %v2932_v17, %v2931_v19  ;;  %v2951_v17 = vmax.f32 %v2887_v10, 0.0  ;;  %v2968_v19 = vmax.f32 %v2904_v11, 0.0 }
 0x3fc   : > { %v2716_v24 = vpop.permute.xlu1 %2715  ;;  %v2641_v27 = vpop.permute.xlu0 %2640 }
 0x3fd   : > { %v2833_v29 = vmul.f32 %v2716_v24, %v2385_v22  ;;  %v2818_v6 = vmul.f32 %v2641_v27, %v2370_v25  ;;  %3123 = vmatmul.bf16.vlgmr.msra.gmra.mxu1 %v2987_v54  ;;  %v2983_v54 = vpack.c.bf16 %v2924_v34, %v2923_v16 }
 0x3ff   : > { %v2901_v32 = vadd.f32 %v4783_v33, %v2833_v29  ;;  %v2886_v12 = vadd.f32 %v4783_v33, %v2818_v6  ;;  %v2346_v6 = vld [vmem:[#allocation2 + $0x98] sm:$0xff] }
 0x401   : > { %v2965_v41 = vmax.f32 %v2901_v32, 0.0  ;;  %v2950_v36 = vmax.f32 %v2886_v12, 0.0  ;;  %v2373_v32 = vld [vmem:[#allocation2 + $0x20] sm:$0xff]  ;;  %v2390_v12 = vld [vmem:[#allocation2 + $0x190] sm:$0xff] }
 0x403   : > { %v2996_v42 = vpack.c.bf16 %v2950_v36, %v2949_v18  ;;  %v3004_v43 = vpack.c.bf16 %v2966_v38, %v2965_v41  ;;  %v2741_v48 = vpop.permute.xlu2 %2740  ;;  %v2793_v18 = vmul.f32 %v4801_v61, %v2345_v28  ;;  %v2794_v36 = vmul.f32 %v4775_v26, %v2346_v6 }
 0x404   : > { %v2561_v45 = vpop.permute.xlu1 %2560  ;;  %v2556_v46 = vpop.permute.xlu0 %2555 }
 0x405   : > { %v2802_v49 = vmul.f32 %v2561_v45, %v2354_v37  ;;  %v2801_v50 = vmul.f32 %v2556_v46, %v2353_v39  ;;  %3098 = vmatmul.bf16.gmra.mxu0 %v2982_v40  ;;  %3168 = vmatmul.bf16.gmra.mxu2 %v2996_v42  ;;  %v2821_v37 = vmul.f32 %v4841_v23, %v2373_v32  ;;  %v2374_v45 = vld [vmem:[#allocation2 + $0x128] sm:$0xff] }
 0x406   : > { %3208 = vmatmul.bf16.gmra.mxu3 %v3004_v43  ;;  %v2838_v39 = vmul.f32 %v2741_v48, %v2390_v12  ;;  %v2861_v46 = vadd.f32 %v4783_v33, %v2793_v18  ;;  %v2360_v18 = vld [vmem:[#allocation2 + $0xf8] sm:$0xff] }
 0x407   : > { %v2870_v55 = vadd.f32 %v4783_v33, %v2802_v49  ;;  %v2869_v59 = vadd.f32 %v4783_v33, %v2801_v50  ;;  %v2862_v49 = vadd.f32 %v4783_v33, %v2794_v36  ;;  %v2889_v57 = vadd.f32 %v4783_v33, %v2821_v37 }
 0x408   : > { %v2906_v53 = vadd.f32 %v4783_v33, %v2838_v39  ;;  %v2925_v23 = vmax.f32 %v2861_v46, 0.0 }
 0x409   : > { %v2934_v1 = vmax.f32 %v2870_v55, 0.0  ;;  %v2933_v2 = vmax.f32 %v2869_v59, 0.0  ;;  %v2926_v59 = vmax.f32 %v2862_v49, 0.0  ;;  %v2953_v56 = vmax.f32 %v2889_v57, 0.0 }
 0x40a   : > { %v2970_v63 = vmax.f32 %v2906_v53, 0.0  ;;  %v2393_v53 = vld [vmem:[#allocation2 + $0xc0] sm:$0xff] }
 0x40b   : > { %v2988_v9 = vpack.c.bf16 %v2934_v1, %v2933_v2  ;;  %v4857_v58 = vpop.permute.xlu2 %2665  ;;  %v2358_v2 = vld [vmem:[#allocation2 + $0x28] sm:$0xff]  ;;  %v2984_v8 = vpack.c.bf16 %v2926_v59, %v2925_v23 }
 0x40c   : > { %v2726_v62 = vpop.permute.xlu1 %2725  ;;  %v2651_v7 = vpop.permute.xlu0 %2650 }
 0x40d   : > { %v2835_v20 = vmul.f32 %v2726_v62, %v2387_v3  ;;  %v2820_v13 = vmul.f32 %v2651_v7, %v2372_v4  ;;  %3128 = vmatmul.bf16.gmra.mxu1 %v2988_v9  ;;  %v2357_v3 = vld [vmem:[#allocation2 + $0x1b8] sm:$0xff] }
 0x40f   : > { %v2903_v14 = vadd.f32 %v4783_v33, %v2835_v20  ;;  %v2888_v15 = vadd.f32 %v4783_v33, %v2820_v13  ;;  %v2375_v20 = vld [vmem:[#allocation2 + $0x1a0] sm:$0xff]  ;;  %v2392_v13 = vld [vmem:[#allocation2 + $0x38] sm:$0xff] }
 0x411   : > { %v2967_v22 = vmax.f32 %v2903_v14, 0.0  ;;  %v2952_v25 = vmax.f32 %v2888_v15, 0.0  ;;  %v2823_v15 = vmul.f32 %v4857_v58, %v2375_v20 }
 0x413   : > { %v2997_v24 = vpack.c.bf16 %v2952_v25, %v2951_v17  ;;  %v3005_v27 = vpack.c.bf16 %v2968_v19, %v2967_v22  ;;  %v2751_v40 = vpop.permute.xlu2 %2750  ;;  %v2391_v22 = vld [vmem:[#allocation2 + $0x198] sm:$0xff]  ;;  %v2376_v25 = vld [vmem:[#allocation2 + $0x1f0] sm:$0xff] }
 0x414   : > { %v2571_v60 = vpop.permute.xlu1 %2570  ;;  %v2566_v29 = vpop.permute.xlu0 %2565  ;;  %v2840_v16 = vmul.f32 %v2751_v40, %v2392_v13 }
 0x415   : > { %v2804_v30 = vmul.f32 %v2571_v60, %v2356_v21  ;;  %v2803_v31 = vmul.f32 %v2566_v29, %v2355_v51  ;;  %3103 = vmatmul.bf16.gmra.mxu0 %v2983_v54  ;;  %3173 = vmatmul.bf16.gmra.mxu2 %v2997_v24  ;;  %v2891_v24 = vadd.f32 %v4783_v33, %v2823_v15 }
 0x416   : > { %3213 = vmatmul.bf16.gmra.mxu3 %v3005_v27  ;;  %v2908_v27 = vadd.f32 %v4783_v33, %v2840_v16 }
 0x417   : > { %v2872_v38 = vadd.f32 %v4783_v33, %v2804_v30  ;;  %v2871_v41 = vadd.f32 %v4783_v33, %v2803_v31  ;;  %v2955_v30 = vmax.f32 %v2891_v24, 0.0 }
 0x418   : > { %v2972_v31 = vmax.f32 %v2908_v27, 0.0 }
 0x419   : > { %v2936_v42 = vmax.f32 %v2872_v38, 0.0  ;;  %v2935_v43 = vmax.f32 %v2871_v41, 0.0  ;;  %v2359_v38 = vld [vmem:[#allocation2 + $0x1e8] sm:$0xff] }
 0x41b   : > { %v2989_v47 = vpack.c.bf16 %v2936_v42, %v2935_v43  ;;  %v2676_v4 = vpop.permute.xlu2 %2675  ;;  %v2377_v43 = vld [vmem:[#allocation2 + $0xe8] sm:$0xff] }
 0x41c   : > { %v2736_v61 = vpop.permute.xlu1 %2735  ;;  %v2661_v50 = vpop.permute.xlu0 %2660  ;;  %v2825_v49 = vmul.f32 %v2676_v4, %v2377_v43 }
 0x41d   : > { %v2837_v26 = vmul.f32 %v2736_v61, %v2389_v44  ;;  %v2822_v52 = vmul.f32 %v2661_v50, %v2374_v45  ;;  %3133 = vmatmul.bf16.gmra.mxu1 %v2989_v47  ;;  %v2394_v44 = vld [vmem:[#allocation2 + $0x1c0] sm:$0xff] }
 0x41f   : > { %v2905_v48 = vadd.f32 %v4783_v33, %v2837_v26  ;;  %v2890_v55 = vadd.f32 %v4783_v33, %v2822_v52  ;;  %v2378_v26 = vld [vmem:[#allocation2 + $0x78] sm:$0xff] }
 0x421   : > { %v2969_v0 = vmax.f32 %v2905_v48, 0.0  ;;  %v2954_v1 = vmax.f32 %v2890_v55, 0.0 }
 0x423   : > { %v2998_v9 = vpack.c.bf16 %v2954_v1, %v2953_v56  ;;  %v3006_v5 = vpack.c.bf16 %v2970_v63, %v2969_v0  ;;  %v2761_v28 = vpop.permute.xlu2 %2760 }
 0x424   : > { %v2581_v62 = vpop.permute.xlu1 %2580  ;;  %v2576_v7 = vpop.permute.xlu0 %2575  ;;  %v2842_v61 = vmul.f32 %v2761_v28, %v2394_v44  ;;  %v2381_v44 = vld [vmem:[#allocation2 + $0x1d8] sm:$0xff] }
 0x425   : > { %v2806_v10 = vmul.f32 %v2581_v62, %v2358_v2  ;;  %v2805_v11 = vmul.f32 %v2576_v7, %v2357_v3  ;;  %3108 = vmatmul.bf16.gmra.mxu0 %v2984_v8  ;;  %3178 = vmatmul.bf16.gmra.mxu2 %v2998_v9  ;;  %v2362_v9 = vld [vmem:[#allocation2 + $0x30] sm:$0xff] }
 0x426   : > { %3218 = vmatmul.bf16.gmra.mxu3 %v3006_v5  ;;  %v2910_v55 = vadd.f32 %v4783_v33, %v2842_v61  ;;  %v2361_v5 = vld [vmem:[#allocation2 + $0x160] sm:$0xff] }
 0x427   : > { %v2874_v34 = vadd.f32 %v4783_v33, %v2806_v10  ;;  %v2873_v14 = vadd.f32 %v4783_v33, %v2805_v11 }
 0x428   : > { %v2974_v2 = vmax.f32 %v2910_v55, 0.0 }
 0x429   : > { %v2938_v17 = vmax.f32 %v2874_v34, 0.0  ;;  %v2937_v19 = vmax.f32 %v2873_v14, 0.0  ;;  %v2379_v34 = vld [vmem:[#allocation2 + $0x70] sm:$0xff] }
 0x42a   : > { %v2396_v14 = vld [vmem:[#allocation2 + $0x10] sm:$0xff] }
 0x42b   : > { %v2990_v21 = vpack.c.bf16 %v2938_v17, %v2937_v19  ;;  %v2686_v45 = vpop.permute.xlu2 %2685 }
 0x42c   : > { %v2746_v51 = vpop.permute.xlu1 %2745  ;;  %v2671_v54 = vpop.permute.xlu0 %2670  ;;  %v2827_v17 = vmul.f32 %v2686_v45, %v2379_v34 }
 0x42d   : > { %v2839_v60 = vmul.f32 %v2746_v51, %v2391_v22  ;;  %v2824_v29 = vmul.f32 %v2671_v54, %v2376_v25  ;;  %3138 = vmatmul.bf16.gmra.mxu1 %v2990_v21  ;;  %v2395_v21 = vld [vmem:[#allocation2 + $0x158] sm:$0xff]  ;;  %v2380_v51 = vld [vmem:[#allocation2 + $0x90] sm:$0xff] }
 0x42f   : > { %v2907_v6 = vadd.f32 %v4783_v33, %v2839_v60  ;;  %v2892_v58 = vadd.f32 %v4783_v33, %v2824_v29  ;;  %v2895_v60 = vadd.f32 %v4783_v33, %v2827_v17 }
 0x431   : > { %v2971_v32 = vmax.f32 %v2907_v6, 0.0  ;;  %v2956_v12 = vmax.f32 %v2892_v58, 0.0 }
 0x433   : > { %v2999_v41 = vpack.c.bf16 %v2956_v12, %v2955_v30  ;;  %v3007_v36 = vpack.c.bf16 %v2972_v31, %v2971_v32  ;;  %v2771_v3 = vpop.permute.xlu2 %2770  ;;  %v2959_v32 = vmax.f32 %v2895_v60, 0.0 }
 0x434   : > { %v2591_v37 = vpop.permute.xlu1 %2590  ;;  %v2586_v39 = vpop.permute.xlu0 %2585  ;;  %v2844_v19 = vmul.f32 %v2771_v3, %v2396_v14 }
 0x435   : > { %v2808_v40 = vmul.f32 %v2591_v37, %v2360_v18  ;;  %v2807_v42 = vmul.f32 %v2586_v39, %v2359_v38  ;;  %3113 = vmatmul.bf16.gmra.mxu0 %v4821_v35  ;;  %3183 = vmatmul.bf16.gmra.mxu2 %v2999_v41  ;;  %v2893_v35 = vadd.f32 %v4783_v33, %v2825_v49  ;;  %v2363_v37 = vld [vmem:[#allocation2 + $0x1e0] sm:$0xff] }
 0x436   : > { %3223 = vmatmul.bf16.gmra.mxu3 %v3007_v36  ;;  %v2912_v29 = vadd.f32 %v4783_v33, %v2844_v19  ;;  %v2364_v36 = vld [vmem:[#allocation2] sm:$0xff] }
 0x437   : > { %v2876_v46 = vadd.f32 %v4783_v33, %v2808_v40  ;;  %v2875_v47 = vadd.f32 %v4783_v33, %v2807_v42  ;;  %v2957_v1 = vmax.f32 %v2893_v35, 0.0  ;;  %v2398_v49 = vld [vmem:[#allocation2 + $0xa0] sm:$0xff]  ;;  %v2382_v35 = vld [vmem:[#allocation2 + $0xd0] sm:$0xff] }
 0x438   : > { %v2976_v12 = vmax.f32 %v2912_v29, 0.0 }
 0x439   : > { %v2940_v50 = vmax.f32 %v2876_v46, 0.0  ;;  %v2939_v57 = vmax.f32 %v2875_v47, 0.0 }
 0x43b   : > { %v2991_v52 = vpack.c.bf16 %v2940_v50, %v2939_v57  ;;  %v2696_v54 = vpop.permute.xlu2 %2695 }
 0x43c   : > { %v2756_v23 = vpop.permute.xlu1 %2755  ;;  %v2681_v48 = vpop.permute.xlu0 %2680  ;;  %v2829_v57 = vmul.f32 %v2696_v54, %v2381_v44 }
 0x43d   : > { %v2841_v59 = vmul.f32 %v2756_v23, %v2393_v53  ;;  %v2826_v56 = vmul.f32 %v2681_v48, %v2378_v26  ;;  %3143 = vmatmul.bf16.gmra.mxu1 %v2991_v52  ;;  %v2397_v48 = vld [vmem:[#allocation2 + $0x58] sm:$0xff] }
 0x43f   : > { %v2909_v63 = vadd.f32 %v4783_v33, %v2841_v59  ;;  %v2894_v0 = vadd.f32 %v4783_v33, %v2826_v56  ;;  %v2897_v56 = vadd.f32 %v4783_v33, %v2829_v57 }
 0x441   : > { %v2973_v4 = vmax.f32 %v2909_v63, 0.0  ;;  %v2958_v8 = vmax.f32 %v2894_v0, 0.0 }
 0x443   : > { %v3000_v62 = vpack.c.bf16 %v2958_v8, %v2957_v1  ;;  %v3008_v7 = vpack.c.bf16 %v2974_v2, %v2973_v4  ;;  %v2781_v47 = vpop.permute.xlu2 %2780 }
 0x444   : > { %v2601_v10 = vpop.permute.xlu1 %2600  ;;  %v2596_v11 = vpop.permute.xlu0 %2595  ;;  %v2846_v53 = vmul.f32 %v2781_v47, %v2398_v49 }
 0x445   : > { %v2810_v20 = vmul.f32 %v2601_v10, %v2362_v9  ;;  %v2809_v13 = vmul.f32 %v2596_v11, %v2361_v5  ;;  %3188 = vmatmul.bf16.gmra.mxu2 %v3000_v62  ;;  %v2961_v9 = vmax.f32 %v2897_v56, 0.0  ;;  %v2350_v11 = vld [vmem:[#allocation2 + $0x60] sm:$0xff] }
 0x446   : > { %3228 = vmatmul.bf16.gmra.mxu3 %v3008_v7  ;;  %v2914_v1 = vadd.f32 %v4783_v33, %v2846_v53 }
 0x447   : > { %v2878_v15 = vadd.f32 %v4783_v33, %v2810_v20  ;;  %v2877_v16 = vadd.f32 %v4783_v33, %v2809_v13  ;;  %v2349_v20 = vld [vmem:[#allocation2 + $0x108] sm:$0xff] }
 0x448   : > { %v2978_v5 = vmax.f32 %v2914_v1, 0.0 }
 0x449   : > { %v2942_v22 = vmax.f32 %v2878_v15, 0.0  ;;  %v2941_v25 = vmax.f32 %v2877_v16, 0.0 }
 0x44b   : > { %v2992_v24 = vpack.c.bf16 %v2942_v22, %v2941_v25  ;;  %v2616_v19 = vpop.permute.xlu2 %2615  ;;  %v2365_v22 = vld [vmem:[#allocation2 + $0xf0] sm:$0xff] }
 0x44c   : > { %v2766_v27 = vpop.permute.xlu1 %2765  ;;  %v2691_v28 = vpop.permute.xlu0 %2690 }
 0x44d   : > { %v2843_v6 = vmul.f32 %v2766_v27, %v2395_v21  ;;  %v2828_v58 = vmul.f32 %v2691_v28, %v2380_v51  ;;  %3148 = vmatmul.bf16.gmra.mxu1 %v2992_v24  ;;  %v2813_v51 = vmul.f32 %v2616_v19, %v2365_v22  ;;  %v2366_v28 = vld [vmem:[#allocation2 + $0x8] sm:$0xff] }
 0x44f   : > { %v2911_v30 = vadd.f32 %v4783_v33, %v2843_v6  ;;  %v2896_v31 = vadd.f32 %v4783_v33, %v2828_v58  ;;  %v2881_v58 = vadd.f32 %v4783_v33, %v2813_v51 }
 0x451   : > { %v2975_v18 = vmax.f32 %v2911_v30, 0.0  ;;  %v2960_v38 = vmax.f32 %v2896_v31, 0.0 }
 0x452   : > { %v3084_v41 = vpop.f32.mrf.mxu0 }
 0x453   : > { %v3001_v39 = vpack.c.bf16 %v2960_v38, %v2959_v32  ;;  %v3009_v40 = vpack.c.bf16 %v2976_v12, %v2975_v18  ;;  %v2945_v32 = vmax.f32 %v2881_v58, 0.0 }
 0x454   : > { %v2611_v42 = vpop.permute.xlu1 %2610  ;;  %v2606_v43 = vpop.permute.xlu0 %2605 }
 0x455   : > { %v2812_v45 = vmul.f32 %v2611_v42, %v2364_v36  ;;  %v2811_v46 = vmul.f32 %v2606_v43, %v2363_v37  ;;  %3193 = vmatmul.bf16.gmra.mxu2 %v3001_v39 }
 0x456   : > { %3233 = vmatmul.bf16.gmra.mxu3 %v3009_v40 }
 0x457   : > { %v2880_v61 = vadd.f32 %v4783_v33, %v2812_v45  ;;  %v2879_v50 = vadd.f32 %v4783_v33, %v2811_v46 }
 0x459   : > { %v2944_v26 = vmax.f32 %v2880_v61, 0.0  ;;  %v2943_v52 = vmax.f32 %v2879_v50, 0.0 }
 0x45a   : > { %v3086_v23 = vpop.f32.mrf.mxu0 }
 0x45b   : > { %v3698_v55 = vpack.c.bf16 %v3086_v23, %v3084_v41  ;;  %v2993_v59 = vpack.c.bf16 %v2944_v26, %v2943_v52 }
 0x45c   : > { %v2776_v63 = vpop.permute.xlu1 %2775  ;;  %v2701_v0 = vpop.permute.xlu0 %2700 }
 0x45d   : > { %3699 = vst [vmem:[%s4270_s21] sm:$0xff] %v3698_v55   ;;  %v2845_v2 = vmul.f32 %v2776_v63, %v2397_v48  ;;  %v2830_v3 = vmul.f32 %v2701_v0, %v2382_v35  ;;  %3153 = vmatmul.bf16.gmra.mxu1 %v2993_v59 }
 0x45f   : > { %v2913_v4 = vadd.f32 %v4783_v33, %v2845_v2  ;;  %v2898_v8 = vadd.f32 %v4783_v33, %v2830_v3 }
 0x461   : > { %v2977_v62 = vmax.f32 %v2913_v4, 0.0  ;;  %v2962_v7 = vmax.f32 %v2898_v8, 0.0 }
 0x462   : > { %v3089_v10 = vpop.f32.mrf.mxu0 }
 0x463   : > { %v3002_v13 = vpack.c.bf16 %v2962_v7, %v2961_v9  ;;  %v3010_v34 = vpack.c.bf16 %v2978_v5, %v2977_v62 }
 0x464   : > { %v2541_v14 = vpop.permute.xlu1 %2540  ;;  %v2536_v15 = vpop.permute.xlu0 %2535 }
 0x465   : > { %v2798_v16 = vmul.f32 %v2541_v14, %v2350_v11  ;;  %v2797_v17 = vmul.f32 %v2536_v15, %v2349_v20  ;;  %3198 = vmatmul.bf16.gmra.mxu2 %v3002_v13 }
 0x466   : > { %3238 = vmatmul.bf16.gmra.mxu3 %v3010_v34 }
 0x467   : > { %v2866_v25 = vadd.f32 %v4783_v33, %v2798_v16  ;;  %v2865_v21 = vadd.f32 %v4783_v33, %v2797_v17 }
 0x469   : > { %v2930_v54 = vmax.f32 %v2866_v25, 0.0  ;;  %v2929_v24 = vmax.f32 %v2865_v21, 0.0 }
 0x46a   : > { %v3091_v27 = vpop.f32.mrf.mxu0 }
 0x46b   : > { %v3703_v60 = vpack.c.bf16 %v3091_v27, %v3089_v10  ;;  %v2986_v29 = vpack.c.bf16 %v2930_v54, %v2929_v24 }
 0x46c   : > { %v2621_v6 = vpop.permute.xlu0 %2620 }
 0x46d   : > { %3855 = vst [vmem:[%s4270_s21 + $0x8] sm:$0xff] %v3703_v60   ;;  %v2814_v30 = vmul.f32 %v2621_v6, %v2366_v28  ;;  %3118 = vmatmul.bf16.gmra.mxu0 %v2986_v29 }
 0x46f   : > { %v2882_v31 = vadd.f32 %v4783_v33, %v2814_v30 }
 0x471   : > { %v2946_v12 = vmax.f32 %v2882_v31, 0.0 }
 0x472   : > { %v3094_v18 = vpop.f32.mrf.mxu0 }
 0x473   : > { %v2994_v38 = vpack.c.bf16 %v2946_v12, %v2945_v32 }
 0x475   : > { %3158 = vmatmul.bf16.gmra.mxu1 %v2994_v38 }
 0x478   : > { %v3164_v41 = vpop.f32.mrf.mxu2 }
 0x479   : > { %v3204_v36 = vpop.f32.mrf.mxu3 }
 0x47a   : > { %v3096_v37 = vpop.f32.mrf.mxu0  ;;  %v3124_v39 = vpop.f32.mrf.mxu1 }
 0x47b   : > { %v3708_v40 = vpack.c.bf16 %v3096_v37, %v3094_v18 }
 0x47d   : > { %3856 = vst [vmem:[%s4270_s21 + $0x10] sm:$0xff] %v3708_v40  }
 0x480   : > { %v3166_v42 = vpop.f32.mrf.mxu2 }
 0x481   : > { %v3778_v43 = vpack.c.bf16 %v3166_v42, %v3164_v41  ;;  %v3206_v44 = vpop.f32.mrf.mxu3 }
 0x482   : > { %v3818_v45 = vpack.c.bf16 %v3206_v44, %v3204_v36  ;;  %v3099_v33 = vpop.f32.mrf.mxu0  ;;  %v3126_v46 = vpop.f32.mrf.mxu1 }
 0x483   : > { %3870 = vst [vmem:[%s4270_s21 + $0x80] sm:$0xff] %v3778_v43   ;;  %v3738_v47 = vpack.c.bf16 %v3126_v46, %v3124_v39 }
 0x484   : > { %3878 = vst [vmem:[%s4270_s21 + $0xc0] sm:$0xff] %v3818_v45  }
 0x485   : > { %3862 = vst [vmem:[%s4270_s21 + $0x40] sm:$0xff] %v3738_v47  }
 0x488   : > { %v3169_v49 = vpop.f32.mrf.mxu2 }
 0x489   : > { %v3209_v61 = vpop.f32.mrf.mxu3 }
 0x48a   : > { %v3101_v50 = vpop.f32.mrf.mxu0  ;;  %v3129_v57 = vpop.f32.mrf.mxu1 }
 0x48b   : > { %v3713_v53 = vpack.c.bf16 %v3101_v50, %v3099_v33 }
 0x48d   : > { %3857 = vst [vmem:[%s4270_s21 + $0x18] sm:$0xff] %v3713_v53  }
 0x490   : > { %v3171_v26 = vpop.f32.mrf.mxu2 }
 0x491   : > { %v3783_v52 = vpack.c.bf16 %v3171_v26, %v3169_v49  ;;  %v3211_v23 = vpop.f32.mrf.mxu3 }
 0x492   : > { %v3823_v48 = vpack.c.bf16 %v3211_v23, %v3209_v61  ;;  %v3104_v35 = vpop.f32.mrf.mxu0  ;;  %v3131_v55 = vpop.f32.mrf.mxu1 }
 0x493   : > { %3871 = vst [vmem:[%s4270_s21 + $0x88] sm:$0xff] %v3783_v52   ;;  %v3743_v59 = vpack.c.bf16 %v3131_v55, %v3129_v57 }
 0x494   : > { %3879 = vst [vmem:[%s4270_s21 + $0xc8] sm:$0xff] %v3823_v48  }
 0x495   : > { %3863 = vst [vmem:[%s4270_s21 + $0x48] sm:$0xff] %v3743_v59  }
 0x498   : > { %v3174_v56 = vpop.f32.mrf.mxu2 }
 0x499   : > { %v3214_v63 = vpop.f32.mrf.mxu3 }
 0x49a   : > { %v3106_v0 = vpop.f32.mrf.mxu0  ;;  %v3134_v1 = vpop.f32.mrf.mxu1 }
 0x49b   : > { %v3718_v2 = vpack.c.bf16 %v3106_v0, %v3104_v35 }
 0x49d   : > { %3858 = vst [vmem:[%s4270_s21 + $0x20] sm:$0xff] %v3718_v2  }
 0x4a0   : > { %v3176_v3 = vpop.f32.mrf.mxu2 }
 0x4a1   : > { %v3788_v4 = vpack.c.bf16 %v3176_v3, %v3174_v56  ;;  %v3216_v8 = vpop.f32.mrf.mxu3 }
 0x4a2   : > { %v3828_v9 = vpack.c.bf16 %v3216_v8, %v3214_v63  ;;  %v3109_v5 = vpop.f32.mrf.mxu0  ;;  %v3136_v62 = vpop.f32.mrf.mxu1 }
 0x4a3   : > { %3872 = vst [vmem:[%s4270_s21 + $0x90] sm:$0xff] %v3788_v4   ;;  %v3748_v7 = vpack.c.bf16 %v3136_v62, %v3134_v1 }
 0x4a4   : > { %3880 = vst [vmem:[%s4270_s21 + $0xd0] sm:$0xff] %v3828_v9  }
 0x4a5   : > { %3864 = vst [vmem:[%s4270_s21 + $0x50] sm:$0xff] %v3748_v7  }
 0x4a8   : > { %v3179_v10 = vpop.f32.mrf.mxu2 }
 0x4a9   : > { %v3219_v11 = vpop.f32.mrf.mxu3 }
 0x4aa   : > { %v3111_v20 = vpop.f32.mrf.mxu0  ;;  %v3139_v13 = vpop.f32.mrf.mxu1 }
 0x4ab   : > { %v3723_v34 = vpack.c.bf16 %v3111_v20, %v3109_v5 }
 0x4ad   : > { %3859 = vst [vmem:[%s4270_s21 + $0x28] sm:$0xff] %v3723_v34  }
 0x4b0   : > { %v3181_v14 = vpop.f32.mrf.mxu2 }
 0x4b1   : > { %v3793_v15 = vpack.c.bf16 %v3181_v14, %v3179_v10  ;;  %v3221_v16 = vpop.f32.mrf.mxu3 }
 0x4b2   : > { %v3833_v17 = vpack.c.bf16 %v3221_v16, %v3219_v11  ;;  %v3114_v19 = vpop.f32.mrf.mxu0  ;;  %v3141_v22 = vpop.f32.mrf.mxu1 }
 0x4b3   : > { %3873 = vst [vmem:[%s4270_s21 + $0x98] sm:$0xff] %v3793_v15   ;;  %v3753_v25 = vpack.c.bf16 %v3141_v22, %v3139_v13 }
 0x4b4   : > { %3881 = vst [vmem:[%s4270_s21 + $0xd8] sm:$0xff] %v3833_v17  }
 0x4b5   : > { %3865 = vst [vmem:[%s4270_s21 + $0x58] sm:$0xff] %v3753_v25  }
 0x4b8   : > { %v3184_v21 = vpop.f32.mrf.mxu2 }
 0x4b9   : > { %v3224_v51 = vpop.f32.mrf.mxu3 }
 0x4ba   : > { %v3116_v54 = vpop.f32.mrf.mxu0  ;;  %v3144_v24 = vpop.f32.mrf.mxu1 }
 0x4bb   : > { %v3728_v27 = vpack.c.bf16 %v3116_v54, %v3114_v19 }
 0x4bd   : > { %3860 = vst [vmem:[%s4270_s21 + $0x30] sm:$0xff] %v3728_v27  }
 0x4c0   : > { %v3186_v28 = vpop.f32.mrf.mxu2 }
 0x4c1   : > { %v3798_v60 = vpack.c.bf16 %v3186_v28, %v3184_v21  ;;  %v3226_v29 = vpop.f32.mrf.mxu3 }
 0x4c2   : > { %v3838_v6 = vpack.c.bf16 %v3226_v29, %v3224_v51  ;;  %v3146_v58 = vpop.f32.mrf.mxu1 }
 0x4c3   : > { %3874 = vst [vmem:[%s4270_s21 + $0xa0] sm:$0xff] %v3798_v60   ;;  %v3758_v30 = vpack.c.bf16 %v3146_v58, %v3144_v24 }
 0x4c4   : > { %3882 = vst [vmem:[%s4270_s21 + $0xe0] sm:$0xff] %v3838_v6  }
 0x4c5   : > { %3866 = vst [vmem:[%s4270_s21 + $0x60] sm:$0xff] %v3758_v30  }
 0x4c8   : > { %v3189_v31 = vpop.f32.mrf.mxu2 }
 0x4c9   : > { %v3229_v32 = vpop.f32.mrf.mxu3 }
 0x4ca   : > { %v3149_v12 = vpop.f32.mrf.mxu1 }
 0x4d0   : > { %v3191_v18 = vpop.f32.mrf.mxu2 }
 0x4d1   : > { %v3803_v38 = vpack.c.bf16 %v3191_v18, %v3189_v31  ;;  %v3231_v41 = vpop.f32.mrf.mxu3 }
 0x4d2   : > { %v3843_v36 = vpack.c.bf16 %v3231_v41, %v3229_v32  ;;  %v3151_v37 = vpop.f32.mrf.mxu1 }
 0x4d3   : > { %3875 = vst [vmem:[%s4270_s21 + $0xa8] sm:$0xff] %v3803_v38   ;;  %v3763_v39 = vpack.c.bf16 %v3151_v37, %v3149_v12 }
 0x4d4   : > { %3883 = vst [vmem:[%s4270_s21 + $0xe8] sm:$0xff] %v3843_v36  }
 0x4d5   : > { %3867 = vst [vmem:[%s4270_s21 + $0x68] sm:$0xff] %v3763_v39  }
 0x4d8   : > { %v3194_v40 = vpop.f32.mrf.mxu2 }
 0x4d9   : > { %v3234_v42 = vpop.f32.mrf.mxu3 }
 0x4da   : > { %v3154_v43 = vpop.f32.mrf.mxu1 }
 0x4e0   : > { %v3196_v44 = vpop.f32.mrf.mxu2 }
 0x4e1   : > { %v3808_v45 = vpack.c.bf16 %v3196_v44, %v3194_v40  ;;  %v3236_v33 = vpop.f32.mrf.mxu3 }
 0x4e2   : > { %v3848_v46 = vpack.c.bf16 %v3236_v33, %v3234_v42  ;;  %v3156_v47 = vpop.f32.mrf.mxu1 }
 0x4e3   : > { %3876 = vst [vmem:[%s4270_s21 + $0xb0] sm:$0xff] %v3808_v45   ;;  %v3768_v49 = vpack.c.bf16 %v3156_v47, %v3154_v43 }
 0x4e4   : > { %3884 = vst [vmem:[%s4270_s21 + $0xf0] sm:$0xff] %v3848_v46  }
 0x4e5   : > { %3868 = vst [vmem:[%s4270_s21 + $0x70] sm:$0xff] %v3768_v49  }
 0x4e8   : > { %v3199_v61 = vpop.f32.mrf.mxu2 }
 0x4e9   : > { %v3239_v50 = vpop.f32.mrf.mxu3 }
 0x4ea   : > { %v3119_v57 = vpop.f32.mrf.mxu0 }
 0x4f0   : > { %v3201_v53 = vpop.f32.mrf.mxu2 }
 0x4f1   : > { %v3813_v26 = vpack.c.bf16 %v3201_v53, %v3199_v61  ;;  %v3241_v52 = vpop.f32.mrf.mxu3 }
 0x4f2   : > { %v3853_v23 = vpack.c.bf16 %v3241_v52, %v3239_v50  ;;  %v3121_v48 = vpop.f32.mrf.mxu0  ;;  %v3159_v35 = vpop.f32.mrf.mxu1 }
 0x4f3   : > { %3877 = vst [vmem:[%s4270_s21 + $0xb8] sm:$0xff] %v3813_v26   ;;  %v3733_v55 = vpack.c.bf16 %v3121_v48, %v3119_v57 }
 0x4f4   : > { %3885 = vst [vmem:[%s4270_s21 + $0xf8] sm:$0xff] %v3853_v23  }
 0x4f5   : > { %3861 = vst [vmem:[%s4270_s21 + $0x38] sm:$0xff] %v3733_v55  }
 0x4fa   : > { %v3161_v59 = vpop.f32.mrf.mxu1 }
 0x4fb   : > { %v3773_v56 = vpack.c.bf16 %v3161_v59, %v3159_v35 }
 0x4fd   : > { %3869 = vst [vmem:[%s4270_s21 + $0x78] sm:$0xff] %v3773_v56  }
 0x4fe PF: > { %s15_s24 = sadd.s32 1, %s4026_s24   ;;  %s4961_s18 = smov %s4006_s19 }
 0x4ff   : > { %p12_p0 = scmp.ge.s32.totalorder %s15_s24, 6   ;;  %s4962_s19 = smov %s4111_s6 }
 0x500   : > { %s4963_s20 = smov %s4018_s22  ;;  %s4964_s21 = smov %s4022_s23 }
 0x501   : > { %s4965_s22 = smov %s4968_s25  ;;  %s4966_s23 = smov %s4972_s26 }
 0x502   :  { %14 = sbr.rel (!%p12_p0) target bundleno = 4 (0x4), region = 112 }

// kernel: gcn_forward.5
= control target key start
LH: loop header
LB: loop body
LE: loop exit
PB: predicated region body
PF: predicated region fallthrough
CT: control target
= control target key end

     0   :  { %s4407_s15 = smov 0   ;;  %s4409_s16 = smov 0   ;;  %s6417_s0 = inlined_call_operand.vmem [shape: s8[1024,1024], index: 0, kind: input, shape index: {}]   ;;  %s6418_s1 = inlined_call_operand.vmem [shape: bf16[1024,128], index: 1, kind: input, shape index: {}]   ;;  %s6419_s2 = inlined_call_operand.vmem [shape: f32[1024,1], index: 2, kind: input, shape index: {}]   ;;  %s6420_s3 = inlined_call_operand.vmem [shape: f32[1,128], index: 3, kind: input, shape index: {}]   ;;  %s6421_s4 = inlined_call_operand.vmem [shape: f32[1024,128], index: 4, kind: output, shape index: {}]  }
   0x1   :  { %s4411_s17 = smov 0   ;;  %s4413_s18 = smov 0  }
   0x2   :  { %s4415_s19 = smov 0   ;;  %s4417_s20 = smov 0  }
   0x3   :  { %s4419_s21 = smov 0  }
   0x4 LB: > { %s23_s22 = sadd.s32 1, %s4370_s19  ;;  %s26_s23 = sadd.s32 1, %s4374_s20  ;;  %s4378_s21 = sphi %s4419_s21, %s14_s21   ;;  %s4374_s20 = sphi %s4417_s20, %s6574_s20   ;;  %s4370_s19 = sphi %s4415_s19, %s6573_s19   ;;  %s4366_s18 = sphi %s4413_s18, %s6572_s18   ;;  %s4362_s17 = sphi %s4411_s17, %s6571_s17   ;;  %s4358_s16 = sphi %s4409_s16, %s6570_s16   ;;  %s4354_s15 = sphi %s4407_s15, %s6569_s15  }
   0x5   : > { %p24_p0 = scmp.ge.s32.totalorder %s23_s22, 2  ;;  %p42_p1 = scmp.ne.s32.totalorder %s4358_s16, %s4354_s15 }
   0x6   : > { %p43_p2 = scmp.eq.s32.totalorder %s4378_s21, 0  ;;  %s35_s27 = sadd.s32 1, %s4358_s16 }
   0x7   : > { %s6576_s22 = smov (%p24_p0, %s23_s22), 0  ;;  %s6578_s23 = smov (!%p24_p0, %s26_s23), %s4374_s20 }
   0x8   : > { %p44_p3 = por %p43_p2, %p42_p1  ;;  %p28_p4 = scmp.ge.s32.totalorder %s6578_s23, 2 }
   0x9   : > { %s31_s24 = ssub.s32 %s4370_s19, %s6576_s22  ;;  %p3827_p6 = scmp.ge.s32.totalorder %s4378_s21, 4 }
   0xa   : > { %s6580_s23 = smov (%p28_p4, %s6578_s23), 0 }
   0xb   : > { %s30_s25 = ssub.s32 %s4374_s20, %s6580_s23  ;;  %170 = sbr.rel (%p3827_p6) target bundleno = 87 (0x57), region = 20 }
   0xc   : > { %s32_s26 = sor.u32 %s31_s24, %s30_s25 }
   0xd   : > { %p33_p5 = scmp.eq.s32.totalorder %s32_s26, 0 }
   0xf   : > { %s4458_s28 = scalar_select %p33_p5, %s4358_s16, %s35_s27  }
  0x10   : > { %173 = sbr.rel (!%p44_p3) target bundleno = 87 (0x57), region = 24  ;;  %s175_s29 = sand.u32 (%p44_p3), 1, %s4358_s16  }
  0x11   : > { %s3830_s30 = sshll.u32 (%p44_p3), %s4370_s19, 2  ;;  %s3828_s5 = sshll.u32 (%p44_p3), %s175_s29, 9 }
  0x12   : > { %s3973_s6 = sshll.u32 (%p44_p3), %s4374_s20, 7  ;;  %s4472_s12 = scalar_lea.vmem (%p44_p3), [#allocation3], %s3828_s5 }
  0x13   : > { %s181_s7 = sadd.s32 (%p44_p3), %s3973_s6, %s3830_s30 }
  0x14   : > { %s3832_s8 = sshll.u32 (%p44_p3), %s181_s7, 3 }
  0x15   : > { %s4467_s11 = scalar_lea.vmem %s6417_s0, %s3832_s8 }
  0x16   : > { %v196_v0 = vld [vmem:[%s4467_s11] sm:$0xff]  ;;  %v198_v1 = vld [vmem:[%s4467_s11 + $0x8] sm:$0xff]  ;;  %v200_v2 = vld [vmem:[%s4467_s11 + $0x10] sm:$0xff] }
  0x17   : > { %197 = vst [vmem:[%s4472_s12] sm:$0xff] %v196_v0  ;;  %v202_v3 = vld [vmem:[%s4467_s11 + $0x18] sm:$0xff]  ;;  %v204_v4 = vld [vmem:[%s4467_s11 + $0x40] sm:$0xff]  ;;  %v206_v5 = vld [vmem:[%s4467_s11 + $0x48] sm:$0xff] }
  0x18   : > { %199 = vst [vmem:[%s4472_s12 + $0x8] sm:$0xff] %v198_v1  ;;  %v208_v6 = vld [vmem:[%s4467_s11 + $0x50] sm:$0xff]  ;;  %v210_v7 = vld [vmem:[%s4467_s11 + $0x58] sm:$0xff]  ;;  %v212_v8 = vld [vmem:[%s4467_s11 + $0x80] sm:$0xff] }
  0x19   : > { %201 = vst [vmem:[%s4472_s12 + $0x10] sm:$0xff] %v200_v2  ;;  %v214_v9 = vld [vmem:[%s4467_s11 + $0x88] sm:$0xff]  ;;  %v216_v10 = vld [vmem:[%s4467_s11 + $0x90] sm:$0xff]  ;;  %v218_v11 = vld [vmem:[%s4467_s11 + $0x98] sm:$0xff] }
  0x1a   : > { %203 = vst [vmem:[%s4472_s12 + $0x18] sm:$0xff] %v202_v3  ;;  %v220_v12 = vld [vmem:[%s4467_s11 + $0xc0] sm:$0xff]  ;;  %v222_v13 = vld [vmem:[%s4467_s11 + $0xc8] sm:$0xff]  ;;  %v224_v14 = vld [vmem:[%s4467_s11 + $0xd0] sm:$0xff] }
  0x1b   : > { %205 = vst [vmem:[%s4472_s12 + $0x20] sm:$0xff] %v204_v4  ;;  %v226_v15 = vld [vmem:[%s4467_s11 + $0xd8] sm:$0xff]  ;;  %v228_v16 = vld [vmem:[%s4467_s11 + $0x100] sm:$0xff]  ;;  %v230_v17 = vld [vmem:[%s4467_s11 + $0x108] sm:$0xff] }
  0x1c   : > { %207 = vst [vmem:[%s4472_s12 + $0x28] sm:$0xff] %v206_v5  ;;  %v232_v18 = vld [vmem:[%s4467_s11 + $0x110] sm:$0xff]  ;;  %v234_v19 = vld [vmem:[%s4467_s11 + $0x118] sm:$0xff]  ;;  %v236_v20 = vld [vmem:[%s4467_s11 + $0x140] sm:$0xff] }
  0x1d   : > { %209 = vst [vmem:[%s4472_s12 + $0x30] sm:$0xff] %v208_v6  ;;  %v238_v21 = vld [vmem:[%s4467_s11 + $0x148] sm:$0xff]  ;;  %v240_v22 = vld [vmem:[%s4467_s11 + $0x150] sm:$0xff]  ;;  %v242_v23 = vld [vmem:[%s4467_s11 + $0x158] sm:$0xff] }
  0x1e   : > { %211 = vst [vmem:[%s4472_s12 + $0x38] sm:$0xff] %v210_v7  ;;  %v244_v24 = vld [vmem:[%s4467_s11 + $0x180] sm:$0xff]  ;;  %v246_v25 = vld [vmem:[%s4467_s11 + $0x188] sm:$0xff]  ;;  %v248_v26 = vld [vmem:[%s4467_s11 + $0x190] sm:$0xff] }
  0x1f   : > { %213 = vst [vmem:[%s4472_s12 + $0x40] sm:$0xff] %v212_v8  ;;  %v250_v27 = vld [vmem:[%s4467_s11 + $0x198] sm:$0xff]  ;;  %v252_v28 = vld [vmem:[%s4467_s11 + $0x1c0] sm:$0xff]  ;;  %v254_v29 = vld [vmem:[%s4467_s11 + $0x1c8] sm:$0xff] }
  0x20   : > { %215 = vst [vmem:[%s4472_s12 + $0x48] sm:$0xff] %v214_v9  ;;  %v256_v30 = vld [vmem:[%s4467_s11 + $0x1d0] sm:$0xff]  ;;  %v258_v31 = vld [vmem:[%s4467_s11 + $0x1d8] sm:$0xff]  ;;  %v260_v32 = vld [vmem:[%s4467_s11 + $0x200] sm:$0xff] }
  0x21   : > { %217 = vst [vmem:[%s4472_s12 + $0x50] sm:$0xff] %v216_v10  ;;  %v262_v33 = vld [vmem:[%s4467_s11 + $0x208] sm:$0xff]  ;;  %v264_v34 = vld [vmem:[%s4467_s11 + $0x210] sm:$0xff]  ;;  %v266_v35 = vld [vmem:[%s4467_s11 + $0x218] sm:$0xff] }
  0x22   : > { %219 = vst [vmem:[%s4472_s12 + $0x58] sm:$0xff] %v218_v11  ;;  %v268_v36 = vld [vmem:[%s4467_s11 + $0x240] sm:$0xff]  ;;  %v270_v37 = vld [vmem:[%s4467_s11 + $0x248] sm:$0xff]  ;;  %v272_v38 = vld [vmem:[%s4467_s11 + $0x250] sm:$0xff] }
  0x23   : > { %221 = vst [vmem:[%s4472_s12 + $0x60] sm:$0xff] %v220_v12  ;;  %v274_v39 = vld [vmem:[%s4467_s11 + $0x258] sm:$0xff]  ;;  %v276_v40 = vld [vmem:[%s4467_s11 + $0x280] sm:$0xff]  ;;  %v278_v41 = vld [vmem:[%s4467_s11 + $0x288] sm:$0xff] }
  0x24   : > { %223 = vst [vmem:[%s4472_s12 + $0x68] sm:$0xff] %v222_v13  ;;  %v280_v42 = vld [vmem:[%s4467_s11 + $0x290] sm:$0xff]  ;;  %v282_v43 = vld [vmem:[%s4467_s11 + $0x298] sm:$0xff]  ;;  %v284_v44 = vld [vmem:[%s4467_s11 + $0x2c0] sm:$0xff] }
  0x25   : > { %225 = vst [vmem:[%s4472_s12 + $0x70] sm:$0xff] %v224_v14  ;;  %v286_v45 = vld [vmem:[%s4467_s11 + $0x2c8] sm:$0xff]  ;;  %v288_v46 = vld [vmem:[%s4467_s11 + $0x2d0] sm:$0xff]  ;;  %v290_v47 = vld [vmem:[%s4467_s11 + $0x2d8] sm:$0xff] }
  0x26   : > { %227 = vst [vmem:[%s4472_s12 + $0x78] sm:$0xff] %v226_v15  ;;  %v292_v48 = vld [vmem:[%s4467_s11 + $0x300] sm:$0xff]  ;;  %v294_v49 = vld [vmem:[%s4467_s11 + $0x308] sm:$0xff]  ;;  %v296_v50 = vld [vmem:[%s4467_s11 + $0x310] sm:$0xff] }
  0x27   : > { %229 = vst [vmem:[%s4472_s12 + $0x80] sm:$0xff] %v228_v16  ;;  %v298_v51 = vld [vmem:[%s4467_s11 + $0x318] sm:$0xff]  ;;  %v300_v52 = vld [vmem:[%s4467_s11 + $0x340] sm:$0xff]  ;;  %v302_v53 = vld [vmem:[%s4467_s11 + $0x348] sm:$0xff] }
  0x28   : > { %231 = vst [vmem:[%s4472_s12 + $0x88] sm:$0xff] %v230_v17  ;;  %v304_v54 = vld [vmem:[%s4467_s11 + $0x350] sm:$0xff]  ;;  %v306_v55 = vld [vmem:[%s4467_s11 + $0x358] sm:$0xff]  ;;  %v308_v56 = vld [vmem:[%s4467_s11 + $0x380] sm:$0xff] }
  0x29   : > { %233 = vst [vmem:[%s4472_s12 + $0x90] sm:$0xff] %v232_v18  ;;  %v310_v57 = vld [vmem:[%s4467_s11 + $0x388] sm:$0xff]  ;;  %v312_v58 = vld [vmem:[%s4467_s11 + $0x390] sm:$0xff]  ;;  %v314_v59 = vld [vmem:[%s4467_s11 + $0x398] sm:$0xff] }
  0x2a   : > { %235 = vst [vmem:[%s4472_s12 + $0x98] sm:$0xff] %v234_v19  ;;  %v316_v60 = vld [vmem:[%s4467_s11 + $0x3c0] sm:$0xff]  ;;  %v318_v61 = vld [vmem:[%s4467_s11 + $0x3c8] sm:$0xff]  ;;  %v320_v62 = vld [vmem:[%s4467_s11 + $0x3d0] sm:$0xff] }
  0x2b   : > { %237 = vst [vmem:[%s4472_s12 + $0xa0] sm:$0xff] %v236_v20  ;;  %v322_v63 = vld [vmem:[%s4467_s11 + $0x3d8] sm:$0xff] }
  0x2c   : > { %239 = vst [vmem:[%s4472_s12 + $0xa8] sm:$0xff] %v238_v21 }
  0x2d   : > { %241 = vst [vmem:[%s4472_s12 + $0xb0] sm:$0xff] %v240_v22 }
  0x2e   : > { %243 = vst [vmem:[%s4472_s12 + $0xb8] sm:$0xff] %v242_v23 }
  0x2f   : > { %245 = vst [vmem:[%s4472_s12 + $0xc0] sm:$0xff] %v244_v24 }
  0x30   : > { %247 = vst [vmem:[%s4472_s12 + $0xc8] sm:$0xff] %v246_v25 }
  0x31   : > { %249 = vst [vmem:[%s4472_s12 + $0xd0] sm:$0xff] %v248_v26 }
  0x32   : > { %251 = vst [vmem:[%s4472_s12 + $0xd8] sm:$0xff] %v250_v27 }
  0x33   : > { %253 = vst [vmem:[%s4472_s12 + $0xe0] sm:$0xff] %v252_v28 }
  0x34   : > { %255 = vst [vmem:[%s4472_s12 + $0xe8] sm:$0xff] %v254_v29 }
  0x35   : > { %257 = vst [vmem:[%s4472_s12 + $0xf0] sm:$0xff] %v256_v30 }
  0x36   : > { %259 = vst [vmem:[%s4472_s12 + $0xf8] sm:$0xff] %v258_v31 }
  0x37   : > { %261 = vst [vmem:[%s4472_s12 + $0x100] sm:$0xff] %v260_v32 }
  0x38   : > { %263 = vst [vmem:[%s4472_s12 + $0x108] sm:$0xff] %v262_v33 }
  0x39   : > { %265 = vst [vmem:[%s4472_s12 + $0x110] sm:$0xff] %v264_v34 }
  0x3a   : > { %267 = vst [vmem:[%s4472_s12 + $0x118] sm:$0xff] %v266_v35 }
  0x3b   : > { %269 = vst [vmem:[%s4472_s12 + $0x120] sm:$0xff] %v268_v36 }
  0x3c   : > { %271 = vst [vmem:[%s4472_s12 + $0x128] sm:$0xff] %v270_v37 }
  0x3d   : > { %273 = vst [vmem:[%s4472_s12 + $0x130] sm:$0xff] %v272_v38 }
  0x3e   : > { %275 = vst [vmem:[%s4472_s12 + $0x138] sm:$0xff] %v274_v39 }
  0x3f   : > { %277 = vst [vmem:[%s4472_s12 + $0x140] sm:$0xff] %v276_v40 }
  0x40   : > { %279 = vst [vmem:[%s4472_s12 + $0x148] sm:$0xff] %v278_v41 }
  0x41   : > { %281 = vst [vmem:[%s4472_s12 + $0x150] sm:$0xff] %v280_v42 }
  0x42   : > { %283 = vst [vmem:[%s4472_s12 + $0x158] sm:$0xff] %v282_v43 }
  0x43   : > { %285 = vst [vmem:[%s4472_s12 + $0x160] sm:$0xff] %v284_v44 }
  0x44   : > { %287 = vst [vmem:[%s4472_s12 + $0x168] sm:$0xff] %v286_v45 }
  0x45   : > { %289 = vst [vmem:[%s4472_s12 + $0x170] sm:$0xff] %v288_v46 }
  0x46   : > { %291 = vst [vmem:[%s4472_s12 + $0x178] sm:$0xff] %v290_v47 }
  0x47   : > { %293 = vst [vmem:[%s4472_s12 + $0x180] sm:$0xff] %v292_v48 }
  0x48   : > { %295 = vst [vmem:[%s4472_s12 + $0x188] sm:$0xff] %v294_v49 }
  0x49   : > { %297 = vst [vmem:[%s4472_s12 + $0x190] sm:$0xff] %v296_v50 }
  0x4a   : > { %299 = vst [vmem:[%s4472_s12 + $0x198] sm:$0xff] %v298_v51 }
  0x4b   : > { %301 = vst [vmem:[%s4472_s12 + $0x1a0] sm:$0xff] %v300_v52 }
  0x4c   : > { %303 = vst [vmem:[%s4472_s12 + $0x1a8] sm:$0xff] %v302_v53 }
  0x4d   : > { %305 = vst [vmem:[%s4472_s12 + $0x1b0] sm:$0xff] %v304_v54 }
  0x4e   : > { %307 = vst [vmem:[%s4472_s12 + $0x1b8] sm:$0xff] %v306_v55 }
  0x4f   : > { %309 = vst [vmem:[%s4472_s12 + $0x1c0] sm:$0xff] %v308_v56 }
  0x50   : > { %311 = vst [vmem:[%s4472_s12 + $0x1c8] sm:$0xff] %v310_v57 }
  0x51   : > { %313 = vst [vmem:[%s4472_s12 + $0x1d0] sm:$0xff] %v312_v58 }
  0x52   : > { %315 = vst [vmem:[%s4472_s12 + $0x1d8] sm:$0xff] %v314_v59 }
  0x53   : > { %317 = vst [vmem:[%s4472_s12 + $0x1e0] sm:$0xff] %v316_v60 }
  0x54   : > { %319 = vst [vmem:[%s4472_s12 + $0x1e8] sm:$0xff] %v318_v61 }
  0x55   : > { %321 = vst [vmem:[%s4472_s12 + $0x1f0] sm:$0xff] %v320_v62 }
  0x56   : > { %323 = vst [vmem:[%s4472_s12 + $0x1f8] sm:$0xff] %v322_v63 }
  0x57 PF: > { %p3833_p7 = scmp.ge.s32.totalorder %s4378_s21, 1  ;;  %p346_p8 = scmp.lt.s32.totalorder %s4378_s21, 5 }
  0x59   : > { %p347_p9 = pnand %p3833_p7, %p346_p8 }
  0x5a   : > { %s353_s13 = sand.u32 (!%p347_p9), 1, %s4354_s15   ;;  %s3835_s14 = sshll.u32 (!%p347_p9), %s4362_s17, 6 }
  0x5b   : > { %350 = sbr.rel (%p347_p9) target bundleno = 1516 (0x5ec), region = 55  ;;  %s3834_s24 = sshll.u32 (!%p347_p9), %s353_s13, 9 }
  0x5c   : > { %p391_p10 = scmp.lt.s32.totalorder (!%p347_p9), %s3835_s14, 127  ;;  %s3837_s25 = sshll.u32 (!%p347_p9), %s4366_s18, 6 }
  0x5d   : > { %p397_p11 = scmp.lt.s32.totalorder (!%p347_p9), %s3837_s25, 127  ;;  %s4619_s18 = scalar_lea.vmem (!%p347_p9), [#allocation3], %s3834_s24 }
  0x5e   : > { %p3841_p12 = scmp.ne.s32.totalorder (!%p347_p9), %s4362_s17, 0 }
  0x60   : > { %s6582_s14 = smov (!%p391_p10, %s3835_s14), 127  ;;  %s6584_s25 = smov (!%p397_p11, %s3837_s25), 127 }
  0x61   : > { %s3836_s26 = sshll.u32 %s6582_s14, 2  ;;  %s3838_s5 = sshll.u32 %s6584_s25, 3 }
  0x62   : > { %s4607_s30 = scalar_lea.vmem %s6418_s1, %s3836_s26  ;;  %s4612_s8 = scalar_lea.vmem %s6419_s2, %s3838_s5 }
  0x63   : > { %s4617_s10 = scalar_lea.vmem %s6421_s4, %s3838_s5  ;;  %411 = sbr.rel (%p3841_p12) target bundleno = 169 (0xa9), region = 63 }
  0x68   : > { %v4380_v0 = vmov 0.0  }
  0x69   : > { %412 = vst [vmem:[#allocation2 + $0xb0] sm:$0xff] %v4380_v0 }
  0x6a   : > { %413 = vst [vmem:[#allocation2 + $0x1b0] sm:$0xff] %v4380_v0 }
  0x6b   : > { %414 = vst [vmem:[#allocation2 + $0xd8] sm:$0xff] %v4380_v0 }
  0x6c   : > { %415 = vst [vmem:[#allocation2 + $0x18] sm:$0xff] %v4380_v0 }
  0x6d   : > { %416 = vst [vmem:[#allocation2 + $0x50] sm:$0xff] %v4380_v0 }
  0x6e   : > { %417 = vst [vmem:[#allocation2 + $0x168] sm:$0xff] %v4380_v0 }
  0x6f   : > { %418 = vst [vmem:[#allocation2 + $0x130] sm:$0xff] %v4380_v0 }
  0x70   : > { %419 = vst [vmem:[#allocation2 + $0x48] sm:$0xff] %v4380_v0 }
  0x71   : > { %420 = vst [vmem:[#allocation2 + $0x180] sm:$0xff] %v4380_v0 }
  0x72   : > { %421 = vst [vmem:[#allocation2 + $0x110] sm:$0xff] %v4380_v0 }
  0x73   : > { %422 = vst [vmem:[#allocation2 + $0x118] sm:$0xff] %v4380_v0 }
  0x74   : > { %423 = vst [vmem:[#allocation2 + $0x98] sm:$0xff] %v4380_v0 }
  0x75   : > { %424 = vst [vmem:[#allocation2 + $0x120] sm:$0xff] %v4380_v0 }
  0x76   : > { %425 = vst [vmem:[#allocation2 + $0x150] sm:$0xff] %v4380_v0 }
  0x77   : > { %426 = vst [vmem:[#allocation2 + $0x108] sm:$0xff] %v4380_v0 }
  0x78   : > { %427 = vst [vmem:[#allocation2 + $0x60] sm:$0xff] %v4380_v0 }
  0x79   : > { %428 = vst [vmem:[#allocation2 + $0xe0] sm:$0xff] %v4380_v0 }
  0x7a   : > { %429 = vst [vmem:[#allocation2 + $0x188] sm:$0xff] %v4380_v0 }
  0x7b   : > { %430 = vst [vmem:[#allocation2 + $0x138] sm:$0xff] %v4380_v0 }
  0x7c   : > { %431 = vst [vmem:[#allocation2 + $0x140] sm:$0xff] %v4380_v0 }
  0x7d   : > { %432 = vst [vmem:[#allocation2 + $0x80] sm:$0xff] %v4380_v0 }
  0x7e   : > { %433 = vst [vmem:[#allocation2 + $0x1a8] sm:$0xff] %v4380_v0 }
  0x7f   : > { %434 = vst [vmem:[#allocation2 + $0x1b8] sm:$0xff] %v4380_v0 }
  0x80   : > { %435 = vst [vmem:[#allocation2 + $0x28] sm:$0xff] %v4380_v0 }
  0x81   : > { %436 = vst [vmem:[#allocation2 + $0x1e8] sm:$0xff] %v4380_v0 }
  0x82   : > { %437 = vst [vmem:[#allocation2 + $0xf8] sm:$0xff] %v4380_v0 }
  0x83   : > { %438 = vst [vmem:[#allocation2 + $0x160] sm:$0xff] %v4380_v0 }
  0x84   : > { %439 = vst [vmem:[#allocation2 + $0x30] sm:$0xff] %v4380_v0 }
  0x85   : > { %440 = vst [vmem:[#allocation2 + $0x1e0] sm:$0xff] %v4380_v0 }
  0x86   : > { %441 = vst [vmem:[#allocation2] sm:$0xff] %v4380_v0 }
  0x87   : > { %442 = vst [vmem:[#allocation2 + $0xf0] sm:$0xff] %v4380_v0 }
  0x88   : > { %443 = vst [vmem:[#allocation2 + $0x8] sm:$0xff] %v4380_v0 }
  0x89   : > { %444 = vst [vmem:[#allocation2 + $0x148] sm:$0xff] %v4380_v0 }
  0x8a   : > { %445 = vst [vmem:[#allocation2 + $0x1d0] sm:$0xff] %v4380_v0 }
  0x8b   : > { %446 = vst [vmem:[#allocation2 + $0x100] sm:$0xff] %v4380_v0 }
  0x8c   : > { %447 = vst [vmem:[#allocation2 + $0xc8] sm:$0xff] %v4380_v0 }
  0x8d   : > { %448 = vst [vmem:[#allocation2 + $0x40] sm:$0xff] %v4380_v0 }
  0x8e   : > { %449 = vst [vmem:[#allocation2 + $0x1f8] sm:$0xff] %v4380_v0 }
  0x8f   : > { %450 = vst [vmem:[#allocation2 + $0x20] sm:$0xff] %v4380_v0 }
  0x90   : > { %451 = vst [vmem:[#allocation2 + $0x128] sm:$0xff] %v4380_v0 }
  0x91   : > { %452 = vst [vmem:[#allocation2 + $0x1a0] sm:$0xff] %v4380_v0 }
  0x92   : > { %453 = vst [vmem:[#allocation2 + $0x1f0] sm:$0xff] %v4380_v0 }
  0x93   : > { %454 = vst [vmem:[#allocation2 + $0xe8] sm:$0xff] %v4380_v0 }
  0x94   : > { %455 = vst [vmem:[#allocation2 + $0x78] sm:$0xff] %v4380_v0 }
  0x95   : > { %456 = vst [vmem:[#allocation2 + $0x70] sm:$0xff] %v4380_v0 }
  0x96   : > { %457 = vst [vmem:[#allocation2 + $0x90] sm:$0xff] %v4380_v0 }
  0x97   : > { %458 = vst [vmem:[#allocation2 + $0x1d8] sm:$0xff] %v4380_v0 }
  0x98   : > { %459 = vst [vmem:[#allocation2 + $0xd0] sm:$0xff] %v4380_v0 }
  0x99   : > { %460 = vst [vmem:[#allocation2 + $0xb8] sm:$0xff] %v4380_v0 }
  0x9a   : > { %461 = vst [vmem:[#allocation2 + $0x88] sm:$0xff] %v4380_v0 }
  0x9b   : > { %462 = vst [vmem:[#allocation2 + $0xa8] sm:$0xff] %v4380_v0 }
  0x9c   : > { %463 = vst [vmem:[#allocation2 + $0x1c8] sm:$0xff] %v4380_v0 }
  0x9d   : > { %464 = vst [vmem:[#allocation2 + $0x170] sm:$0xff] %v4380_v0 }
  0x9e   : > { %465 = vst [vmem:[#allocation2 + $0x178] sm:$0xff] %v4380_v0 }
  0x9f   : > { %466 = vst [vmem:[#allocation2 + $0x68] sm:$0xff] %v4380_v0 }
  0xa0   : > { %467 = vst [vmem:[#allocation2 + $0x190] sm:$0xff] %v4380_v0 }
  0xa1   : > { %468 = vst [vmem:[#allocation2 + $0x198] sm:$0xff] %v4380_v0 }
  0xa2   : > { %469 = vst [vmem:[#allocation2 + $0x38] sm:$0xff] %v4380_v0 }
  0xa3   : > { %470 = vst [vmem:[#allocation2 + $0xc0] sm:$0xff] %v4380_v0 }
  0xa4   : > { %471 = vst [vmem:[#allocation2 + $0x1c0] sm:$0xff] %v4380_v0 }
  0xa5   : > { %472 = vst [vmem:[#allocation2 + $0x158] sm:$0xff] %v4380_v0 }
  0xa6   : > { %473 = vst [vmem:[#allocation2 + $0x10] sm:$0xff] %v4380_v0 }
  0xa7   : > { %474 = vst [vmem:[#allocation2 + $0x58] sm:$0xff] %v4380_v0 }
  0xa8   : > { %475 = vst [vmem:[#allocation2 + $0xa0] sm:$0xff] %v4380_v0 }
  0xa9 PF: > { %v3981_v1 = vld [vmem:[%s4607_s30 + $0x38] sm:$0xff]  ;;  %v3980_v5 = vld [vmem:[%s4607_s30 + $0x30] sm:$0xff]  ;;  %v3979_v9 = vld [vmem:[%s4607_s30 + $0x28] sm:$0xff]  ;;  %p3970_p13 = scmp.ne.s32.totalorder %s4362_s17, 1 }
  0xaa   : > { %v3989_v2 = vld [vmem:[%s4607_s30 + $0x78] sm:$0xff]  ;;  %1500 = vmatpush.bf16.msra.mxu0 %v3981_v1  ;;  %v3988_v6 = vld [vmem:[%s4607_s30 + $0x70] sm:$0xff]  ;;  %v3987_v10 = vld [vmem:[%s4607_s30 + $0x68] sm:$0xff] }
  0xab   : > { %v3997_v3 = vld [vmem:[%s4607_s30 + $0xb8] sm:$0xff]  ;;  %1669 = vmatpush.bf16.msra.mxu1 %v3989_v2  ;;  %v3996_v7 = vld [vmem:[%s4607_s30 + $0xb0] sm:$0xff]  ;;  %v3995_v11 = vld [vmem:[%s4607_s30 + $0xa8] sm:$0xff] }
  0xac   : > { %v4005_v4 = vld [vmem:[%s4607_s30 + $0xf8] sm:$0xff]  ;;  %1838 = vmatpush.bf16.msra.mxu2 %v3997_v3  ;;  %v4004_v8 = vld [vmem:[%s4607_s30 + $0xf0] sm:$0xff]  ;;  %v4003_v12 = vld [vmem:[%s4607_s30 + $0xe8] sm:$0xff] }
  0xad   : > { %2007 = vmatpush.bf16.msra.mxu3 %v4005_v4  ;;  %v3978_v13 = vld [vmem:[%s4607_s30 + $0x20] sm:$0xff]  ;;  %v3977_v17 = vld [vmem:[%s4607_s30 + $0x18] sm:$0xff]  ;;  %v3976_v21 = vld [vmem:[%s4607_s30 + $0x10] sm:$0xff] }
  0xae   : > { %1501 = vmatpush.bf16.msra.mxu0 %v3980_v5  ;;  %v3986_v14 = vld [vmem:[%s4607_s30 + $0x60] sm:$0xff]  ;;  %v3985_v18 = vld [vmem:[%s4607_s30 + $0x58] sm:$0xff]  ;;  %v3984_v22 = vld [vmem:[%s4607_s30 + $0x50] sm:$0xff] }
  0xaf   : > { %1670 = vmatpush.bf16.msra.mxu1 %v3988_v6  ;;  %v3994_v15 = vld [vmem:[%s4607_s30 + $0xa0] sm:$0xff]  ;;  %v3993_v19 = vld [vmem:[%s4607_s30 + $0x98] sm:$0xff]  ;;  %v3992_v23 = vld [vmem:[%s4607_s30 + $0x90] sm:$0xff] }
  0xb0   : > { %1839 = vmatpush.bf16.msra.mxu2 %v3996_v7  ;;  %v4002_v16 = vld [vmem:[%s4607_s30 + $0xe0] sm:$0xff]  ;;  %v4001_v20 = vld [vmem:[%s4607_s30 + $0xd8] sm:$0xff]  ;;  %v477_v25 = vld [vmem:[%s4619_s18 + $0x8] sm:$0xff] }
  0xb1   : > { %2008 = vmatpush.bf16.msra.mxu3 %v4004_v8  ;;  %v476_v24 = vld [vmem:[%s4619_s18] sm:$0xff]  ;;  %v4000_v26 = vld [vmem:[%s4607_s30 + $0xd0] sm:$0xff]  ;;  %v479_v28 = vld [vmem:[%s4619_s18 + $0x18] sm:$0xff]  ;;  %v541_v31 = vunpack.c.0.s8 %v477_v25  ;;  %v545_v32 = vunpack.c.1.s8 %v477_v25  ;;  %v549_v59 = vunpack.c.2.s8 %v477_v25  ;;  %v553_v60 = vunpack.c.3.s8 %v477_v25 }
  0xb2   : > { %1502 = vmatpush.bf16.msra.mxu0 %v3979_v9  ;;  %v478_v27 = vld [vmem:[%s4619_s18 + $0x10] sm:$0xff]  ;;  %v540_v29 = vunpack.c.0.s8 %v476_v24  ;;  %v544_v30 = vunpack.c.1.s8 %v476_v24  ;;  %v3975_v33 = vld [vmem:[%s4607_s30 + $0x8] sm:$0xff]  ;;  %v543_v37 = vunpack.c.0.s8 %v479_v28  ;;  %v547_v38 = vunpack.c.1.s8 %v479_v28  ;;  %v3974_v45 = vld [vmem:[%s4607_s30] sm:$0xff] }
  0xb3   : > { %1671 = vmatpush.bf16.msra.mxu1 %v3987_v10  ;;  %v3983_v34 = vld [vmem:[%s4607_s30 + $0x48] sm:$0xff]  ;;  %v542_v35 = vunpack.c.0.s8 %v478_v27  ;;  %v546_v36 = vunpack.c.1.s8 %v478_v27  ;;  %v797_v43 = vcvt.s32.f32 %v541_v31  ;;  %v801_v44 = vcvt.s32.f32 %v545_v32  ;;  %v3982_v46 = vld [vmem:[%s4607_s30 + $0x40] sm:$0xff] }
  0xb4   : > { %1840 = vmatpush.bf16.msra.mxu2 %v3995_v11  ;;  %v3991_v39 = vld [vmem:[%s4607_s30 + $0x88] sm:$0xff]  ;;  %v796_v41 = vcvt.s32.f32 %v540_v29  ;;  %v800_v42 = vcvt.s32.f32 %v544_v30  ;;  %v799_v49 = vcvt.s32.f32 %v543_v37  ;;  %v803_v50 = vcvt.s32.f32 %v547_v38  ;;  %v3990_v51 = vld [vmem:[%s4607_s30 + $0x80] sm:$0xff] }
  0xb5   : > { %2009 = vmatpush.bf16.msra.mxu3 %v4003_v12  ;;  %v3999_v40 = vld [vmem:[%s4607_s30 + $0xc8] sm:$0xff]  ;;  %v798_v47 = vcvt.s32.f32 %v542_v35  ;;  %v802_v48 = vcvt.s32.f32 %v546_v36  ;;  %v3998_v52 = vld [vmem:[%s4607_s30 + $0xc0] sm:$0xff]  ;;  %v1053_v54 = vpack.c.bf16 %v801_v44, %v797_v43  ;;  %v548_v57 = vunpack.c.2.s8 %v476_v24 }
  0xb6   : > { %1503 = vmatpush.bf16.msra.mxu0 %v3978_v13  ;;  %v1052_v53 = vpack.c.bf16 %v800_v42, %v796_v41  ;;  %v1055_v56 = vpack.c.bf16 %v803_v50, %v799_v49  ;;  %v552_v58 = vunpack.c.3.s8 %v476_v24  ;;  %v550_v61 = vunpack.c.2.s8 %v478_v27  ;;  %v480_v13 = vld [vmem:[%s4619_s18 + $0x20] sm:$0xff] }
  0xb7   : > { %1672 = vmatpush.bf16.msra.mxu1 %v3986_v14  ;;  %v1054_v55 = vpack.c.bf16 %v802_v48, %v798_v47  ;;  %v554_v62 = vunpack.c.3.s8 %v478_v27  ;;  %v551_v63 = vunpack.c.2.s8 %v479_v28  ;;  %v555_v0 = vunpack.c.3.s8 %v479_v28  ;;  %v481_v14 = vld [vmem:[%s4619_s18 + $0x28] sm:$0xff] }
  0xb8   : > { %1841 = vmatpush.bf16.msra.mxu2 %v3994_v15  ;;  %v804_v1 = vcvt.s32.f32 %v548_v57  ;;  %v808_v2 = vcvt.s32.f32 %v552_v58  ;;  %v805_v3 = vcvt.s32.f32 %v549_v59  ;;  %v809_v4 = vcvt.s32.f32 %v553_v60  ;;  %v482_v15 = vld [vmem:[%s4619_s18 + $0x30] sm:$0xff]  ;;  %v484_v57 = vld [vmem:[%s4619_s18 + $0x40] sm:$0xff]  ;;  %v485_v58 = vld [vmem:[%s4619_s18 + $0x48] sm:$0xff] }
  0xb9   : > { %2010 = vmatpush.bf16.msra.mxu3 %v4002_v16  ;;  %v806_v5 = vcvt.s32.f32 %v550_v61  ;;  %v810_v6 = vcvt.s32.f32 %v554_v62  ;;  %v807_v7 = vcvt.s32.f32 %v551_v63  ;;  %v811_v8 = vcvt.s32.f32 %v555_v0  ;;  %v483_v16 = vld [vmem:[%s4619_s18 + $0x38] sm:$0xff]  ;;  %v486_v59 = vld [vmem:[%s4619_s18 + $0x50] sm:$0xff] }
  0xba   : > { %1504 = vmatpush.bf16.msra.mxu0 %v3977_v17  ;;  %v1056_v9 = vpack.c.bf16 %v808_v2, %v804_v1  ;;  %v1057_v10 = vpack.c.bf16 %v809_v4, %v805_v3  ;;  %v556_v17 = vunpack.c.0.s8 %v480_v13  ;;  %v563_v24 = vunpack.c.1.s8 %v483_v16  ;;  %v487_v60 = vld [vmem:[%s4619_s18 + $0x58] sm:$0xff] }
  0xbb   : > { %1673 = vmatpush.bf16.msra.mxu1 %v3985_v18  ;;  %v1058_v11 = vpack.c.bf16 %v810_v6, %v806_v5  ;;  %v1059_v12 = vpack.c.bf16 %v811_v8, %v807_v7  ;;  %v560_v18 = vunpack.c.1.s8 %v480_v13  ;;  %v564_v37 = vunpack.c.2.s8 %v480_v13 }
  0xbc   : > { %1842 = vmatpush.bf16.msra.mxu2 %v3993_v19  ;;  %v557_v19 = vunpack.c.0.s8 %v481_v14  ;;  %v812_v25 = vcvt.s32.f32 %v556_v17  ;;  %v819_v32 = vcvt.s32.f32 %v563_v24  ;;  %v568_v38 = vunpack.c.3.s8 %v480_v13 }
  0xbd   : > { %2011 = vmatpush.bf16.msra.mxu3 %v4001_v20  ;;  %v561_v20 = vunpack.c.1.s8 %v481_v14  ;;  %v566_v41 = vunpack.c.2.s8 %v482_v15  ;;  %v570_v42 = vunpack.c.3.s8 %v482_v15  ;;  %v567_v43 = vunpack.c.2.s8 %v483_v16 }
  0xbe   : > { %1505 = vmatpush.bf16.msra.mxu0 %v3976_v21  ;;  %v558_v21 = vunpack.c.0.s8 %v482_v15  ;;  %v813_v27 = vcvt.s32.f32 %v557_v19  ;;  %v571_v44 = vunpack.c.3.s8 %v483_v16  ;;  %v572_v61 = vunpack.c.0.s8 %v484_v57 }
  0xbf   : > { %1674 = vmatpush.bf16.msra.mxu1 %v3984_v22  ;;  %v562_v22 = vunpack.c.1.s8 %v482_v15  ;;  %v817_v28 = vcvt.s32.f32 %v561_v20  ;;  %v822_v49 = vcvt.s32.f32 %v566_v41  ;;  %v826_v50 = vcvt.s32.f32 %v570_v42 }
  0xc0   : > { %1843 = vmatpush.bf16.msra.mxu2 %v3992_v23  ;;  %v559_v23 = vunpack.c.0.s8 %v483_v16  ;;  %v814_v29 = vcvt.s32.f32 %v558_v21  ;;  %v576_v62 = vunpack.c.1.s8 %v484_v57  ;;  %v573_v63 = vunpack.c.0.s8 %v485_v58 }
  0xc1   : > { %2012 = vmatpush.bf16.msra.mxu3 %v4000_v26  ;;  %v816_v26 = vcvt.s32.f32 %v560_v18  ;;  %v818_v30 = vcvt.s32.f32 %v562_v22  ;;  %v577_v0 = vunpack.c.1.s8 %v485_v58  ;;  %v574_v1 = vunpack.c.0.s8 %v486_v59 }
  0xc2   : > { %1506 = vmatpush.bf16.msra.mxu0 %v3975_v33  ;;  %v815_v31 = vcvt.s32.f32 %v559_v23  ;;  %v578_v2 = vunpack.c.1.s8 %v486_v59  ;;  %v575_v3 = vunpack.c.0.s8 %v487_v60  ;;  %v579_v4 = vunpack.c.1.s8 %v487_v60 }
  0xc3   : > { %1675 = vmatpush.bf16.msra.mxu1 %v3983_v34  ;;  %v1060_v33 = vpack.c.bf16 %v816_v26, %v812_v25  ;;  %v1061_v34 = vpack.c.bf16 %v817_v28, %v813_v27  ;;  %v1062_v35 = vpack.c.bf16 %v818_v30, %v814_v29  ;;  %v828_v5 = vcvt.s32.f32 %v572_v61 }
  0xc4   : > { %1844 = vmatpush.bf16.msra.mxu2 %v3991_v39  ;;  %v1063_v36 = vpack.c.bf16 %v819_v32, %v815_v31  ;;  %v565_v39 = vunpack.c.2.s8 %v481_v14  ;;  %v832_v6 = vcvt.s32.f32 %v576_v62  ;;  %v829_v7 = vcvt.s32.f32 %v573_v63 }
  0xc5   : > { %2013 = vmatpush.bf16.msra.mxu3 %v3999_v40  ;;  %v569_v40 = vunpack.c.3.s8 %v481_v14  ;;  %v833_v8 = vcvt.s32.f32 %v577_v0  ;;  %v580_v17 = vunpack.c.2.s8 %v484_v57  ;;  %v584_v18 = vunpack.c.3.s8 %v484_v57 }
  0xc6   : > { %1507 = vmatpush.bf16.msra.mxu0 %v3974_v45  ;;  %v820_v45 = vcvt.s32.f32 %v564_v37  ;;  %v821_v47 = vcvt.s32.f32 %v565_v39  ;;  %v1068_v13 = vpack.c.bf16 %v832_v6, %v828_v5  ;;  %v581_v19 = vunpack.c.2.s8 %v485_v58  ;;  %v488_v37 = vld [vmem:[%s4619_s18 + $0x60] sm:$0xff]  ;;  %v490_v39 = vld [vmem:[%s4619_s18 + $0x70] sm:$0xff] }
  0xc7   : > { %1676 = vmatpush.bf16.msra.mxu1 %v3982_v46  ;;  %v824_v46 = vcvt.s32.f32 %v568_v38  ;;  %v825_v48 = vcvt.s32.f32 %v569_v40  ;;  %v1069_v14 = vpack.c.bf16 %v833_v8, %v829_v7  ;;  %v585_v20 = vunpack.c.3.s8 %v485_v58  ;;  %v489_v38 = vld [vmem:[%s4619_s18 + $0x68] sm:$0xff]  ;;  %v491_v40 = vld [vmem:[%s4619_s18 + $0x78] sm:$0xff] }
  0xc8   : > { %1845 = vmatpush.bf16.msra.mxu2 %v3990_v51  ;;  %v823_v51 = vcvt.s32.f32 %v567_v43  ;;  %v582_v21 = vunpack.c.2.s8 %v486_v59  ;;  %v586_v22 = vunpack.c.3.s8 %v486_v59  ;;  %v583_v23 = vunpack.c.2.s8 %v487_v60 }
  0xc9   : > { %2014 = vmatpush.bf16.msra.mxu3 %v3998_v52  ;;  %1508 = vmatmul.bf16.vlgmr.msra.gmra.mxu0 %v1052_v53  ;;  %v827_v52 = vcvt.s32.f32 %v571_v44  ;;  %v1064_v53 = vpack.c.bf16 %v824_v46, %v820_v45  ;;  %v587_v24 = vunpack.c.3.s8 %v487_v60  ;;  %v836_v25 = vcvt.s32.f32 %v580_v17  ;;  %v492_v17 = vld [vmem:[%s4619_s18 + $0x80] sm:$0xff] }
  0xca   : > { %1677 = vmatmul.bf16.vlgmr.msra.gmra.mxu1 %v1053_v54  ;;  %v1065_v54 = vpack.c.bf16 %v825_v48, %v821_v47  ;;  %v840_v26 = vcvt.s32.f32 %v584_v18  ;;  %v837_v27 = vcvt.s32.f32 %v581_v19  ;;  %v841_v28 = vcvt.s32.f32 %v585_v20  ;;  %v493_v18 = vld [vmem:[%s4619_s18 + $0x88] sm:$0xff]  ;;  %v494_v19 = vld [vmem:[%s4619_s18 + $0x90] sm:$0xff]  ;;  %v495_v20 = vld [vmem:[%s4619_s18 + $0x98] sm:$0xff] }
  0xcb   : > { %1846 = vmatmul.bf16.vlgmr.msra.gmra.mxu2 %v1054_v55  ;;  %v1066_v55 = vpack.c.bf16 %v826_v50, %v822_v49  ;;  %v838_v29 = vcvt.s32.f32 %v582_v21  ;;  %v842_v30 = vcvt.s32.f32 %v586_v22  ;;  %v839_v31 = vcvt.s32.f32 %v583_v23 }
  0xcc   : > { %2015 = vmatmul.bf16.vlgmr.msra.gmra.mxu3 %v1055_v56  ;;  %v1067_v56 = vpack.c.bf16 %v827_v52, %v823_v51  ;;  %v843_v32 = vcvt.s32.f32 %v587_v24  ;;  %v588_v41 = vunpack.c.0.s8 %v488_v37  ;;  %v592_v42 = vunpack.c.1.s8 %v488_v37 }
  0xcd   : > { %v589_v43 = vunpack.c.0.s8 %v489_v38  ;;  %v593_v44 = vunpack.c.1.s8 %v489_v38  ;;  %v590_v45 = vunpack.c.0.s8 %v490_v39  ;;  %v594_v46 = vunpack.c.1.s8 %v490_v39 }
  0xce   : > { %v591_v47 = vunpack.c.0.s8 %v491_v40  ;;  %v595_v48 = vunpack.c.1.s8 %v491_v40  ;;  %v844_v49 = vcvt.s32.f32 %v588_v41  ;;  %v848_v50 = vcvt.s32.f32 %v592_v42 }
  0xcf   : > { %v845_v51 = vcvt.s32.f32 %v589_v43  ;;  %v849_v52 = vcvt.s32.f32 %v593_v44  ;;  %v596_v61 = vunpack.c.2.s8 %v488_v37  ;;  %v600_v62 = vunpack.c.3.s8 %v488_v37 }
  0xd0   : > { %v1076_v57 = vpack.c.bf16 %v848_v50, %v844_v49  ;;  %v597_v63 = vunpack.c.2.s8 %v489_v38  ;;  %v601_v0 = vunpack.c.3.s8 %v489_v38  ;;  %v604_v21 = vunpack.c.0.s8 %v492_v17 }
  0xd1   : > { %v1077_v58 = vpack.c.bf16 %v849_v52, %v845_v51  ;;  %v852_v5 = vcvt.s32.f32 %v596_v61  ;;  %v856_v6 = vcvt.s32.f32 %v600_v62  ;;  %v608_v22 = vunpack.c.1.s8 %v492_v17 }
  0xd2   : > { %v853_v7 = vcvt.s32.f32 %v597_v63  ;;  %v857_v8 = vcvt.s32.f32 %v601_v0  ;;  %v605_v23 = vunpack.c.0.s8 %v493_v18  ;;  %v609_v24 = vunpack.c.1.s8 %v493_v18 }
  0xd3   : > { %v612_v44 = vunpack.c.2.s8 %v492_v17  ;;  %v617_v49 = vunpack.c.3.s8 %v493_v18  ;;  %v614_v50 = vunpack.c.2.s8 %v494_v19 }
  0xd5   : > { %v873_v62 = vcvt.s32.f32 %v617_v49  ;;  %v870_v63 = vcvt.s32.f32 %v614_v50 }
  0xd9   : > { %1513 = vmatmul.bf16.gmra.mxu0 %v1056_v9  ;;  %v830_v9 = vcvt.s32.f32 %v574_v1  ;;  %v598_v1 = vunpack.c.2.s8 %v490_v39 }
  0xda   : > { %1682 = vmatmul.bf16.gmra.mxu1 %v1057_v10  ;;  %v834_v10 = vcvt.s32.f32 %v578_v2  ;;  %v602_v2 = vunpack.c.3.s8 %v490_v39 }
  0xdb   : > { %1851 = vmatmul.bf16.gmra.mxu2 %v1058_v11  ;;  %v831_v11 = vcvt.s32.f32 %v575_v3  ;;  %v599_v3 = vunpack.c.2.s8 %v491_v40 }
  0xdc   : > { %2020 = vmatmul.bf16.gmra.mxu3 %v1059_v12  ;;  %v835_v12 = vcvt.s32.f32 %v579_v4  ;;  %v1070_v15 = vpack.c.bf16 %v834_v10, %v830_v9  ;;  %v603_v4 = vunpack.c.3.s8 %v491_v40  ;;  %v854_v9 = vcvt.s32.f32 %v598_v1 }
  0xdd   : > { %v858_v10 = vcvt.s32.f32 %v602_v2 }
  0xde   : > { %v1071_v16 = vpack.c.bf16 %v835_v12, %v831_v11  ;;  %v855_v11 = vcvt.s32.f32 %v599_v3  ;;  %v859_v12 = vcvt.s32.f32 %v603_v4 }
  0xe9   : > { %1518 = vmatmul.bf16.gmra.mxu0 %v1060_v33  ;;  %v1072_v33 = vpack.c.bf16 %v840_v26, %v836_v25  ;;  %v606_v25 = vunpack.c.0.s8 %v494_v19  ;;  %v610_v26 = vunpack.c.1.s8 %v494_v19 }
  0xea   : > { %1687 = vmatmul.bf16.gmra.mxu1 %v1061_v34  ;;  %v1073_v34 = vpack.c.bf16 %v841_v28, %v837_v27  ;;  %v607_v27 = vunpack.c.0.s8 %v495_v20  ;;  %v611_v28 = vunpack.c.1.s8 %v495_v20 }
  0xeb   : > { %1856 = vmatmul.bf16.gmra.mxu2 %v1062_v35  ;;  %v1074_v35 = vpack.c.bf16 %v842_v30, %v838_v29  ;;  %v860_v29 = vcvt.s32.f32 %v604_v21  ;;  %v864_v30 = vcvt.s32.f32 %v608_v22  ;;  %v4748_v21 = vld [vmem:[%s4619_s18 + $0xb8] sm:$0xff] }
  0xec   : > { %2025 = vmatmul.bf16.gmra.mxu3 %v1063_v36  ;;  %v1075_v36 = vpack.c.bf16 %v843_v32, %v839_v31  ;;  %v861_v31 = vcvt.s32.f32 %v605_v23  ;;  %v865_v32 = vcvt.s32.f32 %v609_v24 }
  0xed   : > { %v1084_v37 = vpack.c.bf16 %v864_v30, %v860_v29 }
  0xee   : > { %v1085_v38 = vpack.c.bf16 %v865_v32, %v861_v31 }
  0xf9   : > { %1523 = vmatmul.bf16.gmra.mxu0 %v1064_v53  ;;  %v846_v53 = vcvt.s32.f32 %v590_v45 }
  0xfa   : > { %1692 = vmatmul.bf16.gmra.mxu1 %v1065_v54  ;;  %v850_v54 = vcvt.s32.f32 %v594_v46 }
  0xfb   : > { %1861 = vmatmul.bf16.gmra.mxu2 %v1066_v55  ;;  %v847_v55 = vcvt.s32.f32 %v591_v47  ;;  %v616_v47 = vunpack.c.3.s8 %v492_v17 }
  0xfc   : > { %2030 = vmatmul.bf16.gmra.mxu3 %v1067_v56  ;;  %v851_v56 = vcvt.s32.f32 %v595_v48  ;;  %v1078_v59 = vpack.c.bf16 %v850_v54, %v846_v53  ;;  %v613_v48 = vunpack.c.2.s8 %v493_v18  ;;  %v618_v54 = vunpack.c.3.s8 %v494_v19  ;;  %v4742_v19 = vld [vmem:[%s4619_s18 + $0xa8] sm:$0xff] }
  0xfe   : > { %v1079_v60 = vpack.c.bf16 %v851_v56, %v847_v55  ;;  %v615_v55 = vunpack.c.2.s8 %v495_v20  ;;  %v619_v56 = vunpack.c.3.s8 %v495_v20  ;;  %v869_v61 = vcvt.s32.f32 %v613_v48  ;;  %v4745_v20 = vld [vmem:[%s4619_s18 + $0xb0] sm:$0xff] }
  0xff   : > { %v874_v1 = vcvt.s32.f32 %v618_v54  ;;  %v626_v32 = vunpack.c.1.s8 %v4745_v20 }
 0x100   : > { %v871_v2 = vcvt.s32.f32 %v615_v55  ;;  %v875_v3 = vcvt.s32.f32 %v619_v56  ;;  %v1183_v56 = vld [vmem:[#allocation2 + $0x18] sm:$0xff] }
 0x109   : > { %1528 = vmatmul.bf16.gmra.mxu0 %v1068_v13  ;;  %v1080_v13 = vpack.c.bf16 %v856_v6, %v852_v5 }
 0x10a   : > { %1697 = vmatmul.bf16.gmra.mxu1 %v1069_v14  ;;  %v1081_v14 = vpack.c.bf16 %v857_v8, %v853_v7  ;;  %v1089_v8 = vpack.c.bf16 %v873_v62, %v869_v61 }
 0x10b   : > { %1866 = vmatmul.bf16.gmra.mxu2 %v1070_v15  ;;  %v1082_v15 = vpack.c.bf16 %v858_v10, %v854_v9 }
 0x10c   : > { %2035 = vmatmul.bf16.gmra.mxu3 %v1071_v16  ;;  %v1083_v16 = vpack.c.bf16 %v859_v12, %v855_v11  ;;  %v1090_v12 = vpack.c.bf16 %v874_v1, %v870_v63  ;;  %v633_v1 = vunpack.c.3.s8 %v4742_v19 }
 0x119   : > { %1533 = vmatmul.bf16.gmra.mxu0 %v1072_v33  ;;  %v862_v33 = vcvt.s32.f32 %v606_v25 }
 0x11a   : > { %1702 = vmatmul.bf16.gmra.mxu1 %v1073_v34  ;;  %v866_v34 = vcvt.s32.f32 %v610_v26  ;;  %v621_v26 = vunpack.c.0.s8 %v4742_v19 }
 0x11b   : > { %1871 = vmatmul.bf16.gmra.mxu2 %v1074_v35  ;;  %v863_v35 = vcvt.s32.f32 %v607_v27  ;;  %v625_v27 = vunpack.c.1.s8 %v4742_v19 }
 0x11c   : > { %2040 = vmatmul.bf16.gmra.mxu3 %v1075_v36  ;;  %v867_v36 = vcvt.s32.f32 %v611_v28  ;;  %v1086_v41 = vpack.c.bf16 %v866_v34, %v862_v33  ;;  %v622_v28 = vunpack.c.0.s8 %v4745_v20  ;;  %v623_v33 = vunpack.c.0.s8 %v4748_v21 }
 0x11d   : > { %v627_v34 = vunpack.c.1.s8 %v4748_v21 }
 0x11e   : > { %v1087_v42 = vpack.c.bf16 %v867_v36, %v863_v35  ;;  %v1182_v35 = vld [vmem:[#allocation2 + $0xd8] sm:$0xff] }
 0x129   : > { %1538 = vmatmul.bf16.gmra.mxu0 %v1076_v57  ;;  %v1180_v57 = vld [vmem:[#allocation2 + $0xb0] sm:$0xff] }
 0x12a   : > { %1707 = vmatmul.bf16.gmra.mxu1 %v1077_v58 }
 0x12b   : > { %1876 = vmatmul.bf16.gmra.mxu2 %v1078_v59  ;;  %v868_v59 = vcvt.s32.f32 %v612_v44  ;;  %v879_v44 = vcvt.s32.f32 %v623_v33 }
 0x12c   : > { %2045 = vmatmul.bf16.gmra.mxu3 %v1079_v60  ;;  %v872_v60 = vcvt.s32.f32 %v616_v47 }
 0x12e   : > { %v1088_v7 = vpack.c.bf16 %v872_v60, %v868_v59 }
 0x139   : > { %1543 = vmatmul.bf16.gmra.mxu0 %v1080_v13  ;;  %v1091_v13 = vpack.c.bf16 %v875_v3, %v871_v2  ;;  %v630_v2 = vunpack.c.2.s8 %v4745_v20 }
 0x13a   : > { %1712 = vmatmul.bf16.gmra.mxu1 %v1081_v14  ;;  %v1181_v14 = vld [vmem:[#allocation2 + $0x1b0] sm:$0xff] }
 0x13b   : > { %1881 = vmatmul.bf16.gmra.mxu2 %v1082_v15 }
 0x13c   : > { %2050 = vmatmul.bf16.gmra.mxu3 %v1083_v16  ;;  %v4739_v16 = vld [vmem:[%s4619_s18 + $0xa0] sm:$0xff] }
 0x13d   : > { %v620_v22 = vunpack.c.0.s8 %v4739_v16  ;;  %v624_v25 = vunpack.c.1.s8 %v4739_v16  ;;  %v628_v60 = vunpack.c.2.s8 %v4739_v16  ;;  %v632_v63 = vunpack.c.3.s8 %v4739_v16 }
 0x146   : > { %v1509_v39 = vpop.f32.mrf.mxu0 }
 0x147   : > { %v1678_v40 = vpop.f32.mrf.mxu1 }
 0x148   : > { %v1679_v43 = vadd.f32 %v1678_v40, %v1509_v39  ;;  %v877_v39 = vcvt.s32.f32 %v621_v26  ;;  %v881_v40 = vcvt.s32.f32 %v625_v27 }
 0x149   : > { %1548 = vmatmul.bf16.gmra.mxu0 %v1084_v37  ;;  %v876_v37 = vcvt.s32.f32 %v620_v22 }
 0x14a   : > { %1717 = vmatmul.bf16.gmra.mxu1 %v1085_v38  ;;  %v880_v38 = vcvt.s32.f32 %v624_v25  ;;  %v1093_v50 = vpack.c.bf16 %v881_v40, %v877_v39 }
 0x14b   : > { %1886 = vmatmul.bf16.gmra.mxu2 %v1086_v41  ;;  %v878_v41 = vcvt.s32.f32 %v622_v28 }
 0x14c   : > { %2055 = vmatmul.bf16.gmra.mxu3 %v1087_v42  ;;  %v1092_v49 = vpack.c.bf16 %v880_v38, %v876_v37  ;;  %v4776_v37 = vld [vmem:[%s4619_s18 + $0xd8] sm:$0xff] }
 0x14e   : > { %v1847_v45 = vpop.f32.mrf.mxu2  ;;  %v1511_v52 = vpop.f32.mrf.mxu0 }
 0x14f   : > { %v2016_v46 = vpop.f32.mrf.mxu3  ;;  %v1848_v51 = vadd.f32 %v1847_v45, %v1679_v43  ;;  %v1680_v53 = vpop.f32.mrf.mxu1  ;;  %v882_v43 = vcvt.s32.f32 %v626_v32  ;;  %v883_v45 = vcvt.s32.f32 %v627_v34  ;;  %v4767_v32 = vld [vmem:[%s4619_s18 + $0xc0] sm:$0xff] }
 0x150   : > { %v1681_v4 = vadd.f32 %v1680_v53, %v1511_v52  ;;  %v636_v38 = vunpack.c.0.s8 %v4767_v32 }
 0x151   : > { %v2017_v58 = vadd.f32 %v2016_v46, %v1848_v51  ;;  %v1094_v54 = vpack.c.bf16 %v882_v43, %v878_v41  ;;  %v1095_v55 = vpack.c.bf16 %v883_v45, %v879_v44  ;;  %v640_v41 = vunpack.c.1.s8 %v4767_v32 }
 0x153   : > { %v2176_v0 = vadd.f32 %v2017_v58, %v1180_v57 }
 0x155   : > { %2240 = vst [vmem:[#allocation2 + $0xb0] sm:$0xff] %v2176_v0  ;;  %v629_v0 = vunpack.c.2.s8 %v4742_v19 }
 0x156   : > { %v1849_v5 = vpop.f32.mrf.mxu2  ;;  %v1514_v10 = vpop.f32.mrf.mxu0 }
 0x157   : > { %v2018_v6 = vpop.f32.mrf.mxu3  ;;  %v1850_v9 = vadd.f32 %v1849_v5, %v1681_v4  ;;  %v1683_v11 = vpop.f32.mrf.mxu1 }
 0x158   : > { %v1684_v18 = vadd.f32 %v1683_v11, %v1514_v10  ;;  %v884_v11 = vcvt.s32.f32 %v628_v60 }
 0x159   : > { %v2019_v15 = vadd.f32 %v2018_v6, %v1850_v9  ;;  %1553 = vmatmul.bf16.gmra.mxu0 %v1088_v7  ;;  %v634_v6 = vunpack.c.3.s8 %v4745_v20  ;;  %v631_v7 = vunpack.c.2.s8 %v4748_v21  ;;  %v1184_v9 = vld [vmem:[#allocation2 + $0x50] sm:$0xff] }
 0x15a   : > { %1722 = vmatmul.bf16.gmra.mxu1 %v1089_v8  ;;  %v635_v8 = vunpack.c.3.s8 %v4748_v21 }
 0x15b   : > { %v2177_v17 = vadd.f32 %v2019_v15, %v1181_v14  ;;  %1891 = vmatmul.bf16.gmra.mxu2 %v1090_v12  ;;  %v888_v12 = vcvt.s32.f32 %v632_v63  ;;  %v889_v14 = vcvt.s32.f32 %v633_v1  ;;  %v886_v15 = vcvt.s32.f32 %v630_v2 }
 0x15c   : > { %2060 = vmatmul.bf16.gmra.mxu3 %v1091_v13  ;;  %v885_v13 = vcvt.s32.f32 %v629_v0  ;;  %v891_v19 = vcvt.s32.f32 %v635_v8  ;;  %v1187_v8 = vld [vmem:[#allocation2 + $0x48] sm:$0xff] }
 0x15d   : > { %2241 = vst [vmem:[#allocation2 + $0x1b0] sm:$0xff] %v2177_v17  ;;  %v890_v17 = vcvt.s32.f32 %v634_v6 }
 0x15e   : > { %v1852_v23 = vpop.f32.mrf.mxu2  ;;  %v1516_v30 = vpop.f32.mrf.mxu0  ;;  %v1097_v25 = vpack.c.bf16 %v889_v14, %v885_v13 }
 0x15f   : > { %v2021_v24 = vpop.f32.mrf.mxu3  ;;  %v1853_v29 = vadd.f32 %v1852_v23, %v1684_v18  ;;  %v1685_v31 = vpop.f32.mrf.mxu1  ;;  %v887_v18 = vcvt.s32.f32 %v631_v7  ;;  %v1098_v28 = vpack.c.bf16 %v890_v17, %v886_v15  ;;  %v648_v15 = vunpack.c.3.s8 %v4767_v32 }
 0x160   : > { %v1686_v46 = vadd.f32 %v1685_v31, %v1516_v30  ;;  %v1185_v30 = vld [vmem:[#allocation2 + $0x168] sm:$0xff] }
 0x161   : > { %v2022_v36 = vadd.f32 %v2021_v24, %v1853_v29  ;;  %v1096_v24 = vpack.c.bf16 %v888_v12, %v884_v11  ;;  %v1099_v29 = vpack.c.bf16 %v891_v19, %v887_v18  ;;  %v644_v12 = vunpack.c.2.s8 %v4767_v32 }
 0x163   : > { %v2178_v42 = vadd.f32 %v2022_v36, %v1182_v35  ;;  %v4770_v35 = vld [vmem:[%s4619_s18 + $0xc8] sm:$0xff]  ;;  %v4773_v36 = vld [vmem:[%s4619_s18 + $0xd0] sm:$0xff] }
 0x164   : > { %v641_v43 = vunpack.c.1.s8 %v4770_v35  ;;  %v638_v44 = vunpack.c.0.s8 %v4773_v36  ;;  %v649_v17 = vunpack.c.3.s8 %v4770_v35  ;;  %v646_v18 = vunpack.c.2.s8 %v4773_v36 }
 0x165   : > { %2242 = vst [vmem:[#allocation2 + $0xd8] sm:$0xff] %v2178_v42  ;;  %v637_v42 = vunpack.c.0.s8 %v4770_v35 }
 0x166   : > { %v1854_v47 = vpop.f32.mrf.mxu2  ;;  %v1519_v52 = vpop.f32.mrf.mxu0 }
 0x167   : > { %v2023_v48 = vpop.f32.mrf.mxu3  ;;  %v1855_v51 = vadd.f32 %v1854_v47, %v1686_v46  ;;  %v1688_v53 = vpop.f32.mrf.mxu1 }
 0x168   : > { %v1689_v59 = vadd.f32 %v1688_v53, %v1519_v52  ;;  %v892_v53 = vcvt.s32.f32 %v636_v38 }
 0x169   : > { %v2024_v57 = vadd.f32 %v2023_v48, %v1855_v51  ;;  %1558 = vmatmul.bf16.gmra.mxu0 %v1092_v49  ;;  %v642_v48 = vunpack.c.1.s8 %v4773_v36  ;;  %v639_v49 = vunpack.c.0.s8 %v4776_v37  ;;  %v1186_v51 = vld [vmem:[#allocation2 + $0x130] sm:$0xff] }
 0x16a   : > { %1727 = vmatmul.bf16.gmra.mxu1 %v1093_v50  ;;  %v643_v50 = vunpack.c.1.s8 %v4776_v37 }
 0x16b   : > { %v2179_v58 = vadd.f32 %v2024_v57, %v1183_v56  ;;  %1896 = vmatmul.bf16.gmra.mxu2 %v1094_v54  ;;  %v896_v54 = vcvt.s32.f32 %v640_v41  ;;  %v897_v56 = vcvt.s32.f32 %v641_v43  ;;  %v894_v57 = vcvt.s32.f32 %v638_v44 }
 0x16c   : > { %2065 = vmatmul.bf16.gmra.mxu3 %v1095_v55  ;;  %v893_v55 = vcvt.s32.f32 %v637_v42  ;;  %v895_v60 = vcvt.s32.f32 %v639_v49 }
 0x16d   : > { %2243 = vst [vmem:[#allocation2 + $0x18] sm:$0xff] %v2179_v58  ;;  %v1100_v1 = vpack.c.bf16 %v896_v54, %v892_v53  ;;  %v4804_v53 = vld [vmem:[%s4619_s18 + $0xf8] sm:$0xff] }
 0x16e   : > { %v1857_v61 = vpop.f32.mrf.mxu2  ;;  %v1521_v4 = vpop.f32.mrf.mxu0  ;;  %v1101_v2 = vpack.c.bf16 %v897_v56, %v893_v55 }
 0x16f   : > { %v2026_v62 = vpop.f32.mrf.mxu3  ;;  %v1858_v3 = vadd.f32 %v1857_v61, %v1689_v59  ;;  %v1690_v5 = vpop.f32.mrf.mxu1  ;;  %v898_v59 = vcvt.s32.f32 %v642_v48  ;;  %v899_v61 = vcvt.s32.f32 %v643_v50  ;;  %v4795_v48 = vld [vmem:[%s4619_s18 + $0xe0] sm:$0xff] }
 0x170   : > { %v1691_v22 = vadd.f32 %v1690_v5, %v1521_v4  ;;  %v652_v54 = vunpack.c.0.s8 %v4795_v48 }
 0x171   : > { %v2027_v10 = vadd.f32 %v2026_v62, %v1858_v3  ;;  %v1102_v6 = vpack.c.bf16 %v898_v59, %v894_v57  ;;  %v1103_v7 = vpack.c.bf16 %v899_v61, %v895_v60  ;;  %v656_v57 = vunpack.c.1.s8 %v4795_v48 }
 0x173   : > { %v2180_v16 = vadd.f32 %v2027_v10, %v1184_v9 }
 0x175   : > { %2244 = vst [vmem:[#allocation2 + $0x50] sm:$0xff] %v2180_v16  ;;  %v645_v16 = vunpack.c.2.s8 %v4770_v35 }
 0x176   : > { %v1859_v23 = vpop.f32.mrf.mxu2  ;;  %v1524_v26 = vpop.f32.mrf.mxu0 }
 0x177   : > { %v2028_v20 = vpop.f32.mrf.mxu3  ;;  %v1860_v21 = vadd.f32 %v1859_v23, %v1691_v22  ;;  %v1693_v27 = vpop.f32.mrf.mxu1 }
 0x178   : > { %v1694_v34 = vadd.f32 %v1693_v27, %v1524_v26  ;;  %v900_v27 = vcvt.s32.f32 %v644_v12 }
 0x179   : > { %v2029_v31 = vadd.f32 %v2028_v20, %v1860_v21  ;;  %1563 = vmatmul.bf16.gmra.mxu0 %v1096_v24  ;;  %v650_v20 = vunpack.c.3.s8 %v4773_v36  ;;  %v647_v24 = vunpack.c.2.s8 %v4776_v37  ;;  %v1188_v21 = vld [vmem:[#allocation2 + $0x180] sm:$0xff] }
 0x17a   : > { %1732 = vmatmul.bf16.gmra.mxu1 %v1097_v25  ;;  %v651_v25 = vunpack.c.3.s8 %v4776_v37 }
 0x17b   : > { %v2181_v33 = vadd.f32 %v2029_v31, %v1185_v30  ;;  %1901 = vmatmul.bf16.gmra.mxu2 %v1098_v28  ;;  %v904_v28 = vcvt.s32.f32 %v648_v15  ;;  %v905_v30 = vcvt.s32.f32 %v649_v17  ;;  %v902_v31 = vcvt.s32.f32 %v646_v18 }
 0x17c   : > { %2070 = vmatmul.bf16.gmra.mxu3 %v1099_v29  ;;  %v901_v29 = vcvt.s32.f32 %v645_v16  ;;  %v907_v35 = vcvt.s32.f32 %v651_v25  ;;  %v1191_v25 = vld [vmem:[#allocation2 + $0x98] sm:$0xff] }
 0x17d   : > { %2245 = vst [vmem:[#allocation2 + $0x168] sm:$0xff] %v2181_v33  ;;  %v906_v33 = vcvt.s32.f32 %v650_v20 }
 0x17e   : > { %v1862_v39 = vpop.f32.mrf.mxu2  ;;  %v1526_v46 = vpop.f32.mrf.mxu0  ;;  %v1105_v41 = vpack.c.bf16 %v905_v30, %v901_v29 }
 0x17f   : > { %v2031_v40 = vpop.f32.mrf.mxu3  ;;  %v1863_v45 = vadd.f32 %v1862_v39, %v1694_v34  ;;  %v1695_v47 = vpop.f32.mrf.mxu1  ;;  %v903_v34 = vcvt.s32.f32 %v647_v24  ;;  %v1106_v44 = vpack.c.bf16 %v906_v33, %v902_v31  ;;  %v664_v31 = vunpack.c.3.s8 %v4795_v48 }
 0x180   : > { %v1696_v62 = vadd.f32 %v1695_v47, %v1526_v46  ;;  %v1189_v46 = vld [vmem:[#allocation2 + $0x110] sm:$0xff] }
 0x181   : > { %v2032_v52 = vadd.f32 %v2031_v40, %v1863_v45  ;;  %v1104_v40 = vpack.c.bf16 %v904_v28, %v900_v27  ;;  %v1107_v45 = vpack.c.bf16 %v907_v35, %v903_v34  ;;  %v660_v28 = vunpack.c.2.s8 %v4795_v48 }
 0x183   : > { %v2182_v58 = vadd.f32 %v2032_v52, %v1186_v51  ;;  %v4798_v51 = vld [vmem:[%s4619_s18 + $0xe8] sm:$0xff]  ;;  %v4801_v52 = vld [vmem:[%s4619_s18 + $0xf0] sm:$0xff] }
 0x184   : > { %v657_v59 = vunpack.c.1.s8 %v4798_v51  ;;  %v654_v60 = vunpack.c.0.s8 %v4801_v52  ;;  %v665_v33 = vunpack.c.3.s8 %v4798_v51  ;;  %v662_v34 = vunpack.c.2.s8 %v4801_v52 }
 0x185   : > { %2246 = vst [vmem:[#allocation2 + $0x130] sm:$0xff] %v2182_v58  ;;  %v653_v58 = vunpack.c.0.s8 %v4798_v51 }
 0x186   : > { %v1864_v63 = vpop.f32.mrf.mxu2  ;;  %v1529_v4 = vpop.f32.mrf.mxu0 }
 0x187   : > { %v2033_v0 = vpop.f32.mrf.mxu3  ;;  %v1865_v3 = vadd.f32 %v1864_v63, %v1696_v62  ;;  %v1698_v5 = vpop.f32.mrf.mxu1 }
 0x188   : > { %v1699_v11 = vadd.f32 %v1698_v5, %v1529_v4  ;;  %v908_v5 = vcvt.s32.f32 %v652_v54 }
 0x189   : > { %v2034_v9 = vadd.f32 %v2033_v0, %v1865_v3  ;;  %1568 = vmatmul.bf16.gmra.mxu0 %v1100_v1  ;;  %v658_v0 = vunpack.c.1.s8 %v4801_v52  ;;  %v655_v1 = vunpack.c.0.s8 %v4804_v53  ;;  %v1190_v3 = vld [vmem:[#allocation2 + $0x118] sm:$0xff] }
 0x18a   : > { %1737 = vmatmul.bf16.gmra.mxu1 %v1101_v2  ;;  %v659_v2 = vunpack.c.1.s8 %v4804_v53 }
 0x18b   : > { %v2183_v10 = vadd.f32 %v2034_v9, %v1187_v8  ;;  %1906 = vmatmul.bf16.gmra.mxu2 %v1102_v6  ;;  %v912_v6 = vcvt.s32.f32 %v656_v57  ;;  %v913_v8 = vcvt.s32.f32 %v657_v59  ;;  %v910_v9 = vcvt.s32.f32 %v654_v60 }
 0x18c   : > { %2075 = vmatmul.bf16.gmra.mxu3 %v1103_v7  ;;  %v909_v7 = vcvt.s32.f32 %v653_v58  ;;  %v911_v12 = vcvt.s32.f32 %v655_v1 }
 0x18d   : > { %2247 = vst [vmem:[#allocation2 + $0x48] sm:$0xff] %v2183_v10  ;;  %v1108_v17 = vpack.c.bf16 %v912_v6, %v908_v5  ;;  %v4832_v5 = vld [vmem:[%s4619_s18 + $0x118] sm:$0xff] }
 0x18e   : > { %v1867_v13 = vpop.f32.mrf.mxu2  ;;  %v1531_v22 = vpop.f32.mrf.mxu0  ;;  %v1109_v18 = vpack.c.bf16 %v913_v8, %v909_v7 }
 0x18f   : > { %v2036_v14 = vpop.f32.mrf.mxu3  ;;  %v1868_v19 = vadd.f32 %v1867_v13, %v1699_v11  ;;  %v1700_v23 = vpop.f32.mrf.mxu1  ;;  %v914_v11 = vcvt.s32.f32 %v658_v0  ;;  %v915_v13 = vcvt.s32.f32 %v659_v2  ;;  %v4823_v0 = vld [vmem:[%s4619_s18 + $0x100] sm:$0xff] }
 0x190   : > { %v1701_v38 = vadd.f32 %v1700_v23, %v1531_v22  ;;  %v668_v6 = vunpack.c.0.s8 %v4823_v0 }
 0x191   : > { %v2037_v26 = vadd.f32 %v2036_v14, %v1868_v19  ;;  %v1110_v20 = vpack.c.bf16 %v914_v11, %v910_v9  ;;  %v1111_v24 = vpack.c.bf16 %v915_v13, %v911_v12  ;;  %v672_v9 = vunpack.c.1.s8 %v4823_v0 }
 0x193   : > { %v2184_v32 = vadd.f32 %v2037_v26, %v1188_v21 }
 0x195   : > { %2248 = vst [vmem:[#allocation2 + $0x180] sm:$0xff] %v2184_v32  ;;  %v661_v32 = vunpack.c.2.s8 %v4798_v51 }
 0x196   : > { %v1869_v39 = vpop.f32.mrf.mxu2  ;;  %v1534_v42 = vpop.f32.mrf.mxu0 }
 0x197   : > { %v2038_v36 = vpop.f32.mrf.mxu3  ;;  %v1870_v37 = vadd.f32 %v1869_v39, %v1701_v38  ;;  %v1703_v43 = vpop.f32.mrf.mxu1 }
 0x198   : > { %v1704_v50 = vadd.f32 %v1703_v43, %v1534_v42  ;;  %v916_v43 = vcvt.s32.f32 %v660_v28 }
 0x199   : > { %v2039_v47 = vadd.f32 %v2038_v36, %v1870_v37  ;;  %1573 = vmatmul.bf16.gmra.mxu0 %v1104_v40  ;;  %v666_v36 = vunpack.c.3.s8 %v4801_v52  ;;  %v663_v40 = vunpack.c.2.s8 %v4804_v53  ;;  %v1192_v37 = vld [vmem:[#allocation2 + $0x120] sm:$0xff] }
 0x19a   : > { %1742 = vmatmul.bf16.gmra.mxu1 %v1105_v41  ;;  %v667_v41 = vunpack.c.3.s8 %v4804_v53 }
 0x19b   : > { %v2185_v49 = vadd.f32 %v2039_v47, %v1189_v46  ;;  %1911 = vmatmul.bf16.gmra.mxu2 %v1106_v44  ;;  %v920_v44 = vcvt.s32.f32 %v664_v31  ;;  %v921_v46 = vcvt.s32.f32 %v665_v33  ;;  %v918_v47 = vcvt.s32.f32 %v662_v34 }
 0x19c   : > { %2080 = vmatmul.bf16.gmra.mxu3 %v1107_v45  ;;  %v917_v45 = vcvt.s32.f32 %v661_v32  ;;  %v923_v51 = vcvt.s32.f32 %v667_v41  ;;  %v1195_v41 = vld [vmem:[#allocation2 + $0x60] sm:$0xff] }
 0x19d   : > { %2249 = vst [vmem:[#allocation2 + $0x110] sm:$0xff] %v2185_v49  ;;  %v922_v49 = vcvt.s32.f32 %v666_v36 }
 0x19e   : > { %v1872_v55 = vpop.f32.mrf.mxu2  ;;  %v1536_v62 = vpop.f32.mrf.mxu0  ;;  %v1113_v57 = vpack.c.bf16 %v921_v46, %v917_v45 }
 0x19f   : > { %v2041_v56 = vpop.f32.mrf.mxu3  ;;  %v1873_v61 = vadd.f32 %v1872_v55, %v1704_v50  ;;  %v1705_v63 = vpop.f32.mrf.mxu1  ;;  %v919_v50 = vcvt.s32.f32 %v663_v40  ;;  %v1114_v60 = vpack.c.bf16 %v922_v49, %v918_v47  ;;  %v680_v47 = vunpack.c.3.s8 %v4823_v0 }
 0x1a0   : > { %v1706_v14 = vadd.f32 %v1705_v63, %v1536_v62  ;;  %v1193_v62 = vld [vmem:[#allocation2 + $0x150] sm:$0xff] }
 0x1a1   : > { %v2042_v4 = vadd.f32 %v2041_v56, %v1873_v61  ;;  %v1112_v56 = vpack.c.bf16 %v920_v44, %v916_v43  ;;  %v1115_v61 = vpack.c.bf16 %v923_v51, %v919_v50  ;;  %v676_v44 = vunpack.c.2.s8 %v4823_v0 }
 0x1a3   : > { %v2186_v10 = vadd.f32 %v2042_v4, %v1190_v3  ;;  %v4826_v3 = vld [vmem:[%s4619_s18 + $0x108] sm:$0xff]  ;;  %v4829_v4 = vld [vmem:[%s4619_s18 + $0x110] sm:$0xff] }
 0x1a4   : > { %v673_v11 = vunpack.c.1.s8 %v4826_v3  ;;  %v670_v12 = vunpack.c.0.s8 %v4829_v4  ;;  %v681_v49 = vunpack.c.3.s8 %v4826_v3  ;;  %v678_v50 = vunpack.c.2.s8 %v4829_v4 }
 0x1a5   : > { %2250 = vst [vmem:[#allocation2 + $0x118] sm:$0xff] %v2186_v10  ;;  %v669_v10 = vunpack.c.0.s8 %v4826_v3 }
 0x1a6   : > { %v1874_v15 = vpop.f32.mrf.mxu2  ;;  %v1539_v22 = vpop.f32.mrf.mxu0 }
 0x1a7   : > { %v2043_v16 = vpop.f32.mrf.mxu3  ;;  %v1875_v19 = vadd.f32 %v1874_v15, %v1706_v14  ;;  %v1708_v23 = vpop.f32.mrf.mxu1 }
 0x1a8   : > { %v1709_v27 = vadd.f32 %v1708_v23, %v1539_v22  ;;  %v924_v23 = vcvt.s32.f32 %v668_v6 }
 0x1a9   : > { %v2044_v21 = vadd.f32 %v2043_v16, %v1875_v19  ;;  %1578 = vmatmul.bf16.gmra.mxu0 %v1108_v17  ;;  %v674_v16 = vunpack.c.1.s8 %v4829_v4  ;;  %v671_v17 = vunpack.c.0.s8 %v4832_v5  ;;  %v1194_v19 = vld [vmem:[#allocation2 + $0x108] sm:$0xff] }
 0x1aa   : > { %1747 = vmatmul.bf16.gmra.mxu1 %v1109_v18  ;;  %v675_v18 = vunpack.c.1.s8 %v4832_v5 }
 0x1ab   : > { %v2187_v26 = vadd.f32 %v2044_v21, %v1191_v25  ;;  %1916 = vmatmul.bf16.gmra.mxu2 %v1110_v20  ;;  %v928_v20 = vcvt.s32.f32 %v672_v9  ;;  %v929_v25 = vcvt.s32.f32 %v673_v11  ;;  %v926_v21 = vcvt.s32.f32 %v670_v12 }
 0x1ac   : > { %2085 = vmatmul.bf16.gmra.mxu3 %v1111_v24  ;;  %v925_v24 = vcvt.s32.f32 %v669_v10  ;;  %v927_v28 = vcvt.s32.f32 %v671_v17 }
 0x1ad   : > { %2251 = vst [vmem:[#allocation2 + $0x98] sm:$0xff] %v2187_v26  ;;  %v1116_v33 = vpack.c.bf16 %v928_v20, %v924_v23  ;;  %v4860_v23 = vld [vmem:[%s4619_s18 + $0x138] sm:$0xff] }
 0x1ae   : > { %v1877_v29 = vpop.f32.mrf.mxu2  ;;  %v1541_v38 = vpop.f32.mrf.mxu0  ;;  %v1117_v34 = vpack.c.bf16 %v929_v25, %v925_v24 }
 0x1af   : > { %v2046_v30 = vpop.f32.mrf.mxu3  ;;  %v1878_v35 = vadd.f32 %v1877_v29, %v1709_v27  ;;  %v1710_v39 = vpop.f32.mrf.mxu1  ;;  %v930_v27 = vcvt.s32.f32 %v674_v16  ;;  %v931_v29 = vcvt.s32.f32 %v675_v18  ;;  %v4851_v16 = vld [vmem:[%s4619_s18 + $0x120] sm:$0xff] }
 0x1b0   : > { %v1711_v54 = vadd.f32 %v1710_v39, %v1541_v38  ;;  %v684_v20 = vunpack.c.0.s8 %v4851_v16 }
 0x1b1   : > { %v2047_v42 = vadd.f32 %v2046_v30, %v1878_v35  ;;  %v1118_v36 = vpack.c.bf16 %v930_v27, %v926_v21  ;;  %v1119_v40 = vpack.c.bf16 %v931_v29, %v927_v28  ;;  %v688_v21 = vunpack.c.1.s8 %v4851_v16 }
 0x1b3   : > { %v2188_v48 = vadd.f32 %v2047_v42, %v1192_v37 }
 0x1b5   : > { %2252 = vst [vmem:[#allocation2 + $0x120] sm:$0xff] %v2188_v48  ;;  %v677_v48 = vunpack.c.2.s8 %v4826_v3 }
 0x1b6   : > { %v1879_v55 = vpop.f32.mrf.mxu2  ;;  %v1544_v58 = vpop.f32.mrf.mxu0 }
 0x1b7   : > { %v2048_v52 = vpop.f32.mrf.mxu3  ;;  %v1880_v53 = vadd.f32 %v1879_v55, %v1711_v54  ;;  %v1713_v59 = vpop.f32.mrf.mxu1 }
 0x1b8   : > { %v1714_v2 = vadd.f32 %v1713_v59, %v1544_v58  ;;  %v932_v59 = vcvt.s32.f32 %v676_v44 }
 0x1b9   : > { %v2049_v63 = vadd.f32 %v2048_v52, %v1880_v53  ;;  %1583 = vmatmul.bf16.gmra.mxu0 %v1112_v56  ;;  %v682_v52 = vunpack.c.3.s8 %v4829_v4  ;;  %v679_v56 = vunpack.c.2.s8 %v4832_v5  ;;  %v1196_v53 = vld [vmem:[#allocation2 + $0xe0] sm:$0xff] }
 0x1ba   : > { %1752 = vmatmul.bf16.gmra.mxu1 %v1113_v57  ;;  %v683_v57 = vunpack.c.3.s8 %v4832_v5 }
 0x1bb   : > { %v2189_v1 = vadd.f32 %v2049_v63, %v1193_v62  ;;  %1921 = vmatmul.bf16.gmra.mxu2 %v1114_v60  ;;  %v936_v60 = vcvt.s32.f32 %v680_v47  ;;  %v937_v62 = vcvt.s32.f32 %v681_v49  ;;  %v934_v63 = vcvt.s32.f32 %v678_v50 }
 0x1bc   : > { %2090 = vmatmul.bf16.gmra.mxu3 %v1115_v61  ;;  %v933_v61 = vcvt.s32.f32 %v677_v48  ;;  %v939_v3 = vcvt.s32.f32 %v683_v57  ;;  %v1199_v57 = vld [vmem:[#allocation2 + $0x140] sm:$0xff] }
 0x1bd   : > { %2253 = vst [vmem:[#allocation2 + $0x150] sm:$0xff] %v2189_v1  ;;  %v938_v1 = vcvt.s32.f32 %v682_v52 }
 0x1be   : > { %v1882_v7 = vpop.f32.mrf.mxu2  ;;  %v1546_v14 = vpop.f32.mrf.mxu0  ;;  %v1121_v9 = vpack.c.bf16 %v937_v62, %v933_v61 }
 0x1bf   : > { %v2051_v8 = vpop.f32.mrf.mxu3  ;;  %v1883_v13 = vadd.f32 %v1882_v7, %v1714_v2  ;;  %v1715_v15 = vpop.f32.mrf.mxu1  ;;  %v935_v2 = vcvt.s32.f32 %v679_v56  ;;  %v1122_v12 = vpack.c.bf16 %v938_v1, %v934_v63  ;;  %v696_v63 = vunpack.c.3.s8 %v4851_v16 }
 0x1c0   : > { %v1716_v30 = vadd.f32 %v1715_v15, %v1546_v14  ;;  %v1197_v14 = vld [vmem:[#allocation2 + $0x188] sm:$0xff] }
 0x1c1   : > { %v2052_v22 = vadd.f32 %v2051_v8, %v1883_v13  ;;  %v1120_v8 = vpack.c.bf16 %v936_v60, %v932_v59  ;;  %v1123_v13 = vpack.c.bf16 %v939_v3, %v935_v2  ;;  %v692_v60 = vunpack.c.2.s8 %v4851_v16 }
 0x1c3   : > { %v2190_v26 = vadd.f32 %v2052_v22, %v1194_v19  ;;  %v4854_v19 = vld [vmem:[%s4619_s18 + $0x128] sm:$0xff]  ;;  %v4857_v22 = vld [vmem:[%s4619_s18 + $0x130] sm:$0xff] }
 0x1c4   : > { %v689_v27 = vunpack.c.1.s8 %v4854_v19  ;;  %v686_v28 = vunpack.c.0.s8 %v4857_v22  ;;  %v697_v1 = vunpack.c.3.s8 %v4854_v19  ;;  %v694_v2 = vunpack.c.2.s8 %v4857_v22 }
 0x1c5   : > { %2254 = vst [vmem:[#allocation2 + $0x108] sm:$0xff] %v2190_v26  ;;  %v685_v26 = vunpack.c.0.s8 %v4854_v19 }
 0x1c6   : > { %v1884_v31 = vpop.f32.mrf.mxu2  ;;  %v1549_v38 = vpop.f32.mrf.mxu0 }
 0x1c7   : > { %v2053_v32 = vpop.f32.mrf.mxu3  ;;  %v1885_v35 = vadd.f32 %v1884_v31, %v1716_v30  ;;  %v1718_v39 = vpop.f32.mrf.mxu1 }
 0x1c8   : > { %v1719_v43 = vadd.f32 %v1718_v39, %v1549_v38  ;;  %v940_v39 = vcvt.s32.f32 %v684_v20 }
 0x1c9   : > { %v2054_v37 = vadd.f32 %v2053_v32, %v1885_v35  ;;  %1588 = vmatmul.bf16.gmra.mxu0 %v1116_v33  ;;  %v690_v32 = vunpack.c.1.s8 %v4857_v22  ;;  %v687_v33 = vunpack.c.0.s8 %v4860_v23  ;;  %v1198_v35 = vld [vmem:[#allocation2 + $0x138] sm:$0xff] }
 0x1ca   : > { %1757 = vmatmul.bf16.gmra.mxu1 %v1117_v34  ;;  %v691_v34 = vunpack.c.1.s8 %v4860_v23 }
 0x1cb   : > { %v2191_v42 = vadd.f32 %v2054_v37, %v1195_v41  ;;  %1926 = vmatmul.bf16.gmra.mxu2 %v1118_v36  ;;  %v944_v36 = vcvt.s32.f32 %v688_v21  ;;  %v945_v41 = vcvt.s32.f32 %v689_v27  ;;  %v942_v37 = vcvt.s32.f32 %v686_v28 }
 0x1cc   : > { %2095 = vmatmul.bf16.gmra.mxu3 %v1119_v40  ;;  %v941_v40 = vcvt.s32.f32 %v685_v26  ;;  %v943_v44 = vcvt.s32.f32 %v687_v33 }
 0x1cd   : > { %2255 = vst [vmem:[#allocation2 + $0x60] sm:$0xff] %v2191_v42  ;;  %v1124_v49 = vpack.c.bf16 %v944_v36, %v940_v39  ;;  %v4888_v39 = vld [vmem:[%s4619_s18 + $0x158] sm:$0xff] }
 0x1ce   : > { %v1887_v45 = vpop.f32.mrf.mxu2  ;;  %v1551_v54 = vpop.f32.mrf.mxu0  ;;  %v1125_v50 = vpack.c.bf16 %v945_v41, %v941_v40 }
 0x1cf   : > { %v2056_v46 = vpop.f32.mrf.mxu3  ;;  %v1888_v51 = vadd.f32 %v1887_v45, %v1719_v43  ;;  %v1720_v55 = vpop.f32.mrf.mxu1  ;;  %v946_v43 = vcvt.s32.f32 %v690_v32  ;;  %v947_v45 = vcvt.s32.f32 %v691_v34  ;;  %v4879_v32 = vld [vmem:[%s4619_s18 + $0x140] sm:$0xff] }
 0x1d0   : > { %v1721_v6 = vadd.f32 %v1720_v55, %v1551_v54  ;;  %v700_v36 = vunpack.c.0.s8 %v4879_v32 }
 0x1d1   : > { %v2057_v58 = vadd.f32 %v2056_v46, %v1888_v51  ;;  %v1126_v52 = vpack.c.bf16 %v946_v43, %v942_v37  ;;  %v1127_v56 = vpack.c.bf16 %v947_v45, %v943_v44  ;;  %v704_v37 = vunpack.c.1.s8 %v4879_v32 }
 0x1d3   : > { %v2192_v0 = vadd.f32 %v2057_v58, %v1196_v53 }
 0x1d5   : > { %2256 = vst [vmem:[#allocation2 + $0xe0] sm:$0xff] %v2192_v0  ;;  %v693_v0 = vunpack.c.2.s8 %v4854_v19 }
 0x1d6   : > { %v1889_v7 = vpop.f32.mrf.mxu2  ;;  %v1554_v10 = vpop.f32.mrf.mxu0 }
 0x1d7   : > { %v2058_v4 = vpop.f32.mrf.mxu3  ;;  %v1890_v5 = vadd.f32 %v1889_v7, %v1721_v6  ;;  %v1723_v11 = vpop.f32.mrf.mxu1 }
 0x1d8   : > { %v1724_v18 = vadd.f32 %v1723_v11, %v1554_v10  ;;  %v948_v11 = vcvt.s32.f32 %v692_v60 }
 0x1d9   : > { %v2059_v15 = vadd.f32 %v2058_v4, %v1890_v5  ;;  %1593 = vmatmul.bf16.gmra.mxu0 %v1120_v8  ;;  %v698_v4 = vunpack.c.3.s8 %v4857_v22  ;;  %v695_v8 = vunpack.c.2.s8 %v4860_v23  ;;  %v1200_v5 = vld [vmem:[#allocation2 + $0x80] sm:$0xff] }
 0x1da   : > { %1762 = vmatmul.bf16.gmra.mxu1 %v1121_v9  ;;  %v699_v9 = vunpack.c.3.s8 %v4860_v23 }
 0x1db   : > { %v2193_v17 = vadd.f32 %v2059_v15, %v1197_v14  ;;  %1931 = vmatmul.bf16.gmra.mxu2 %v1122_v12  ;;  %v952_v12 = vcvt.s32.f32 %v696_v63  ;;  %v953_v14 = vcvt.s32.f32 %v697_v1  ;;  %v950_v15 = vcvt.s32.f32 %v694_v2 }
 0x1dc   : > { %2100 = vmatmul.bf16.gmra.mxu3 %v1123_v13  ;;  %v949_v13 = vcvt.s32.f32 %v693_v0  ;;  %v955_v19 = vcvt.s32.f32 %v699_v9  ;;  %v1203_v9 = vld [vmem:[#allocation2 + $0x28] sm:$0xff] }
 0x1dd   : > { %2257 = vst [vmem:[#allocation2 + $0x188] sm:$0xff] %v2193_v17  ;;  %v954_v17 = vcvt.s32.f32 %v698_v4 }
 0x1de   : > { %v1892_v24 = vpop.f32.mrf.mxu2  ;;  %v1556_v30 = vpop.f32.mrf.mxu0  ;;  %v1129_v21 = vpack.c.bf16 %v953_v14, %v949_v13 }
 0x1df   : > { %v2061_v25 = vpop.f32.mrf.mxu3  ;;  %v1893_v29 = vadd.f32 %v1892_v24, %v1724_v18  ;;  %v1725_v31 = vpop.f32.mrf.mxu1  ;;  %v951_v18 = vcvt.s32.f32 %v695_v8  ;;  %v1130_v28 = vpack.c.bf16 %v954_v17, %v950_v15  ;;  %v712_v15 = vunpack.c.3.s8 %v4879_v32 }
 0x1e0   : > { %v1726_v46 = vadd.f32 %v1725_v31, %v1556_v30  ;;  %v1201_v30 = vld [vmem:[#allocation2 + $0x1a8] sm:$0xff] }
 0x1e1   : > { %v2062_v38 = vadd.f32 %v2061_v25, %v1893_v29  ;;  %v1128_v25 = vpack.c.bf16 %v952_v12, %v948_v11  ;;  %v1131_v29 = vpack.c.bf16 %v955_v19, %v951_v18  ;;  %v708_v12 = vunpack.c.2.s8 %v4879_v32 }
 0x1e3   : > { %v2194_v42 = vadd.f32 %v2062_v38, %v1198_v35  ;;  %v4882_v35 = vld [vmem:[%s4619_s18 + $0x148] sm:$0xff]  ;;  %v4885_v38 = vld [vmem:[%s4619_s18 + $0x150] sm:$0xff] }
 0x1e4   : > { %v705_v43 = vunpack.c.1.s8 %v4882_v35  ;;  %v702_v44 = vunpack.c.0.s8 %v4885_v38  ;;  %v713_v17 = vunpack.c.3.s8 %v4882_v35  ;;  %v710_v18 = vunpack.c.2.s8 %v4885_v38 }
 0x1e5   : > { %2258 = vst [vmem:[#allocation2 + $0x138] sm:$0xff] %v2194_v42  ;;  %v701_v42 = vunpack.c.0.s8 %v4882_v35 }
 0x1e6   : > { %v1894_v47 = vpop.f32.mrf.mxu2  ;;  %v1559_v54 = vpop.f32.mrf.mxu0 }
 0x1e7   : > { %v2063_v48 = vpop.f32.mrf.mxu3  ;;  %v1895_v51 = vadd.f32 %v1894_v47, %v1726_v46  ;;  %v1728_v55 = vpop.f32.mrf.mxu1 }
 0x1e8   : > { %v1729_v59 = vadd.f32 %v1728_v55, %v1559_v54  ;;  %v956_v55 = vcvt.s32.f32 %v700_v36 }
 0x1e9   : > { %v2064_v53 = vadd.f32 %v2063_v48, %v1895_v51  ;;  %1598 = vmatmul.bf16.gmra.mxu0 %v1124_v49  ;;  %v706_v48 = vunpack.c.1.s8 %v4885_v38  ;;  %v703_v49 = vunpack.c.0.s8 %v4888_v39  ;;  %v1202_v51 = vld [vmem:[#allocation2 + $0x1b8] sm:$0xff] }
 0x1ea   : > { %1767 = vmatmul.bf16.gmra.mxu1 %v1125_v50  ;;  %v707_v50 = vunpack.c.1.s8 %v4888_v39 }
 0x1eb   : > { %v2195_v58 = vadd.f32 %v2064_v53, %v1199_v57  ;;  %1936 = vmatmul.bf16.gmra.mxu2 %v1126_v52  ;;  %v960_v52 = vcvt.s32.f32 %v704_v37  ;;  %v961_v57 = vcvt.s32.f32 %v705_v43  ;;  %v958_v53 = vcvt.s32.f32 %v702_v44 }
 0x1ec   : > { %2105 = vmatmul.bf16.gmra.mxu3 %v1127_v56  ;;  %v957_v56 = vcvt.s32.f32 %v701_v42  ;;  %v959_v60 = vcvt.s32.f32 %v703_v49 }
 0x1ed   : > { %2259 = vst [vmem:[#allocation2 + $0x140] sm:$0xff] %v2195_v58  ;;  %v1132_v1 = vpack.c.bf16 %v960_v52, %v956_v55  ;;  %v4916_v55 = vld [vmem:[%s4619_s18 + $0x178] sm:$0xff] }
 0x1ee   : > { %v1897_v61 = vpop.f32.mrf.mxu2  ;;  %v1561_v6 = vpop.f32.mrf.mxu0  ;;  %v1133_v2 = vpack.c.bf16 %v961_v57, %v957_v56 }
 0x1ef   : > { %v2066_v62 = vpop.f32.mrf.mxu3  ;;  %v1898_v3 = vadd.f32 %v1897_v61, %v1729_v59  ;;  %v1730_v7 = vpop.f32.mrf.mxu1  ;;  %v962_v59 = vcvt.s32.f32 %v706_v48  ;;  %v963_v61 = vcvt.s32.f32 %v707_v50  ;;  %v4907_v48 = vld [vmem:[%s4619_s18 + $0x160] sm:$0xff] }
 0x1f0   : > { %v1731_v20 = vadd.f32 %v1730_v7, %v1561_v6  ;;  %v716_v52 = vunpack.c.0.s8 %v4907_v48 }
 0x1f1   : > { %v2067_v10 = vadd.f32 %v2066_v62, %v1898_v3  ;;  %v1134_v4 = vpack.c.bf16 %v962_v59, %v958_v53  ;;  %v1135_v8 = vpack.c.bf16 %v963_v61, %v959_v60  ;;  %v720_v53 = vunpack.c.1.s8 %v4907_v48 }
 0x1f3   : > { %v2196_v16 = vadd.f32 %v2067_v10, %v1200_v5 }
 0x1f5   : > { %2260 = vst [vmem:[#allocation2 + $0x80] sm:$0xff] %v2196_v16  ;;  %v709_v16 = vunpack.c.2.s8 %v4882_v35 }
 0x1f6   : > { %v1899_v24 = vpop.f32.mrf.mxu2  ;;  %v1564_v26 = vpop.f32.mrf.mxu0 }
 0x1f7   : > { %v2068_v22 = vpop.f32.mrf.mxu3  ;;  %v1900_v23 = vadd.f32 %v1899_v24, %v1731_v20  ;;  %v1733_v27 = vpop.f32.mrf.mxu1 }
 0x1f8   : > { %v1734_v34 = vadd.f32 %v1733_v27, %v1564_v26  ;;  %v964_v27 = vcvt.s32.f32 %v708_v12 }
 0x1f9   : > { %v2069_v31 = vadd.f32 %v2068_v22, %v1900_v23  ;;  %1603 = vmatmul.bf16.gmra.mxu0 %v1128_v25  ;;  %v714_v22 = vunpack.c.3.s8 %v4885_v38  ;;  %v711_v25 = vunpack.c.2.s8 %v4888_v39  ;;  %v1204_v23 = vld [vmem:[#allocation2 + $0x1e8] sm:$0xff] }
 0x1fa   : > { %1772 = vmatmul.bf16.gmra.mxu1 %v1129_v21  ;;  %v715_v21 = vunpack.c.3.s8 %v4888_v39 }
 0x1fb   : > { %v2197_v33 = vadd.f32 %v2069_v31, %v1201_v30  ;;  %1941 = vmatmul.bf16.gmra.mxu2 %v1130_v28  ;;  %v968_v28 = vcvt.s32.f32 %v712_v15  ;;  %v969_v30 = vcvt.s32.f32 %v713_v17  ;;  %v966_v31 = vcvt.s32.f32 %v710_v18 }
 0x1fc   : > { %2110 = vmatmul.bf16.gmra.mxu3 %v1131_v29  ;;  %v965_v29 = vcvt.s32.f32 %v709_v16  ;;  %v971_v35 = vcvt.s32.f32 %v715_v21  ;;  %v1207_v21 = vld [vmem:[#allocation2 + $0x30] sm:$0xff] }
 0x1fd   : > { %2261 = vst [vmem:[#allocation2 + $0x1a8] sm:$0xff] %v2197_v33  ;;  %v970_v33 = vcvt.s32.f32 %v714_v22 }
 0x1fe   : > { %v1902_v40 = vpop.f32.mrf.mxu2  ;;  %v1566_v46 = vpop.f32.mrf.mxu0  ;;  %v1137_v37 = vpack.c.bf16 %v969_v30, %v965_v29 }
 0x1ff   : > { %v2071_v41 = vpop.f32.mrf.mxu3  ;;  %v1903_v45 = vadd.f32 %v1902_v40, %v1734_v34  ;;  %v1735_v47 = vpop.f32.mrf.mxu1  ;;  %v967_v34 = vcvt.s32.f32 %v711_v25  ;;  %v1138_v44 = vpack.c.bf16 %v970_v33, %v966_v31  ;;  %v728_v31 = vunpack.c.3.s8 %v4907_v48 }
 0x200   : > { %v1736_v62 = vadd.f32 %v1735_v47, %v1566_v46  ;;  %v1205_v46 = vld [vmem:[#allocation2 + $0xf8] sm:$0xff] }
 0x201   : > { %v2072_v54 = vadd.f32 %v2071_v41, %v1903_v45  ;;  %v1136_v41 = vpack.c.bf16 %v968_v28, %v964_v27  ;;  %v1139_v45 = vpack.c.bf16 %v971_v35, %v967_v34  ;;  %v724_v28 = vunpack.c.2.s8 %v4907_v48 }
 0x203   : > { %v2198_v58 = vadd.f32 %v2072_v54, %v1202_v51  ;;  %v4910_v51 = vld [vmem:[%s4619_s18 + $0x168] sm:$0xff]  ;;  %v4913_v54 = vld [vmem:[%s4619_s18 + $0x170] sm:$0xff] }
 0x204   : > { %v721_v59 = vunpack.c.1.s8 %v4910_v51  ;;  %v718_v60 = vunpack.c.0.s8 %v4913_v54  ;;  %v729_v33 = vunpack.c.3.s8 %v4910_v51  ;;  %v726_v34 = vunpack.c.2.s8 %v4913_v54 }
 0x205   : > { %2262 = vst [vmem:[#allocation2 + $0x1b8] sm:$0xff] %v2198_v58  ;;  %v717_v58 = vunpack.c.0.s8 %v4910_v51 }
 0x206   : > { %v1904_v63 = vpop.f32.mrf.mxu2  ;;  %v1569_v6 = vpop.f32.mrf.mxu0 }
 0x207   : > { %v2073_v0 = vpop.f32.mrf.mxu3  ;;  %v1905_v3 = vadd.f32 %v1904_v63, %v1736_v62  ;;  %v1738_v7 = vpop.f32.mrf.mxu1 }
 0x208   : > { %v1739_v11 = vadd.f32 %v1738_v7, %v1569_v6  ;;  %v972_v7 = vcvt.s32.f32 %v716_v52 }
 0x209   : > { %v2074_v5 = vadd.f32 %v2073_v0, %v1905_v3  ;;  %1608 = vmatmul.bf16.gmra.mxu0 %v1132_v1  ;;  %v722_v0 = vunpack.c.1.s8 %v4913_v54  ;;  %v719_v1 = vunpack.c.0.s8 %v4916_v55  ;;  %v1206_v3 = vld [vmem:[#allocation2 + $0x160] sm:$0xff] }
 0x20a   : > { %1777 = vmatmul.bf16.gmra.mxu1 %v1133_v2  ;;  %v723_v2 = vunpack.c.1.s8 %v4916_v55 }
 0x20b   : > { %v2199_v10 = vadd.f32 %v2074_v5, %v1203_v9  ;;  %1946 = vmatmul.bf16.gmra.mxu2 %v1134_v4  ;;  %v976_v4 = vcvt.s32.f32 %v720_v53  ;;  %v977_v9 = vcvt.s32.f32 %v721_v59  ;;  %v974_v5 = vcvt.s32.f32 %v718_v60 }
 0x20c   : > { %2115 = vmatmul.bf16.gmra.mxu3 %v1135_v8  ;;  %v973_v8 = vcvt.s32.f32 %v717_v58  ;;  %v975_v12 = vcvt.s32.f32 %v719_v1 }
 0x20d   : > { %2263 = vst [vmem:[#allocation2 + $0x28] sm:$0xff] %v2199_v10  ;;  %v1140_v17 = vpack.c.bf16 %v976_v4, %v972_v7  ;;  %v4944_v7 = vld [vmem:[%s4619_s18 + $0x198] sm:$0xff] }
 0x20e   : > { %v1907_v13 = vpop.f32.mrf.mxu2  ;;  %v1571_v20 = vpop.f32.mrf.mxu0  ;;  %v1141_v18 = vpack.c.bf16 %v977_v9, %v973_v8 }
 0x20f   : > { %v2076_v14 = vpop.f32.mrf.mxu3  ;;  %v1908_v19 = vadd.f32 %v1907_v13, %v1739_v11  ;;  %v1740_v24 = vpop.f32.mrf.mxu1  ;;  %v978_v11 = vcvt.s32.f32 %v722_v0  ;;  %v979_v13 = vcvt.s32.f32 %v723_v2  ;;  %v4935_v0 = vld [vmem:[%s4619_s18 + $0x180] sm:$0xff] }
 0x210   : > { %v1741_v36 = vadd.f32 %v1740_v24, %v1571_v20  ;;  %v732_v4 = vunpack.c.0.s8 %v4935_v0 }
 0x211   : > { %v2077_v26 = vadd.f32 %v2076_v14, %v1908_v19  ;;  %v1142_v22 = vpack.c.bf16 %v978_v11, %v974_v5  ;;  %v1143_v25 = vpack.c.bf16 %v979_v13, %v975_v12  ;;  %v736_v5 = vunpack.c.1.s8 %v4935_v0 }
 0x213   : > { %v2200_v32 = vadd.f32 %v2077_v26, %v1204_v23 }
 0x215   : > { %2264 = vst [vmem:[#allocation2 + $0x1e8] sm:$0xff] %v2200_v32  ;;  %v725_v32 = vunpack.c.2.s8 %v4910_v51 }
 0x216   : > { %v1909_v40 = vpop.f32.mrf.mxu2  ;;  %v1574_v42 = vpop.f32.mrf.mxu0 }
 0x217   : > { %v2078_v38 = vpop.f32.mrf.mxu3  ;;  %v1910_v39 = vadd.f32 %v1909_v40, %v1741_v36  ;;  %v1743_v43 = vpop.f32.mrf.mxu1 }
 0x218   : > { %v1744_v50 = vadd.f32 %v1743_v43, %v1574_v42  ;;  %v980_v43 = vcvt.s32.f32 %v724_v28 }
 0x219   : > { %v2079_v47 = vadd.f32 %v2078_v38, %v1910_v39  ;;  %1613 = vmatmul.bf16.gmra.mxu0 %v1136_v41  ;;  %v730_v38 = vunpack.c.3.s8 %v4913_v54  ;;  %v727_v41 = vunpack.c.2.s8 %v4916_v55  ;;  %v1208_v39 = vld [vmem:[#allocation2 + $0x1e0] sm:$0xff] }
 0x21a   : > { %1782 = vmatmul.bf16.gmra.mxu1 %v1137_v37  ;;  %v731_v37 = vunpack.c.3.s8 %v4916_v55 }
 0x21b   : > { %v2201_v49 = vadd.f32 %v2079_v47, %v1205_v46  ;;  %1951 = vmatmul.bf16.gmra.mxu2 %v1138_v44  ;;  %v984_v44 = vcvt.s32.f32 %v728_v31  ;;  %v985_v46 = vcvt.s32.f32 %v729_v33  ;;  %v982_v47 = vcvt.s32.f32 %v726_v34 }
 0x21c   : > { %2120 = vmatmul.bf16.gmra.mxu3 %v1139_v45  ;;  %v981_v45 = vcvt.s32.f32 %v725_v32  ;;  %v987_v51 = vcvt.s32.f32 %v731_v37  ;;  %v1211_v37 = vld [vmem:[#allocation2 + $0x8] sm:$0xff] }
 0x21d   : > { %2265 = vst [vmem:[#allocation2 + $0xf8] sm:$0xff] %v2201_v49  ;;  %v986_v49 = vcvt.s32.f32 %v730_v38 }
 0x21e   : > { %v1912_v56 = vpop.f32.mrf.mxu2  ;;  %v1576_v62 = vpop.f32.mrf.mxu0  ;;  %v1145_v53 = vpack.c.bf16 %v985_v46, %v981_v45 }
 0x21f   : > { %v2081_v57 = vpop.f32.mrf.mxu3  ;;  %v1913_v61 = vadd.f32 %v1912_v56, %v1744_v50  ;;  %v1745_v63 = vpop.f32.mrf.mxu1  ;;  %v983_v50 = vcvt.s32.f32 %v727_v41  ;;  %v1146_v60 = vpack.c.bf16 %v986_v49, %v982_v47  ;;  %v744_v47 = vunpack.c.3.s8 %v4935_v0 }
 0x220   : > { %v1746_v14 = vadd.f32 %v1745_v63, %v1576_v62  ;;  %v1209_v62 = vld [vmem:[#allocation2] sm:$0xff] }
 0x221   : > { %v2082_v6 = vadd.f32 %v2081_v57, %v1913_v61  ;;  %v1144_v57 = vpack.c.bf16 %v984_v44, %v980_v43  ;;  %v1147_v61 = vpack.c.bf16 %v987_v51, %v983_v50  ;;  %v740_v44 = vunpack.c.2.s8 %v4935_v0 }
 0x223   : > { %v2202_v10 = vadd.f32 %v2082_v6, %v1206_v3  ;;  %v4938_v3 = vld [vmem:[%s4619_s18 + $0x188] sm:$0xff]  ;;  %v4941_v6 = vld [vmem:[%s4619_s18 + $0x190] sm:$0xff] }
 0x224   : > { %v737_v11 = vunpack.c.1.s8 %v4938_v3  ;;  %v734_v12 = vunpack.c.0.s8 %v4941_v6  ;;  %v745_v49 = vunpack.c.3.s8 %v4938_v3  ;;  %v742_v50 = vunpack.c.2.s8 %v4941_v6 }
 0x225   : > { %2266 = vst [vmem:[#allocation2 + $0x160] sm:$0xff] %v2202_v10  ;;  %v733_v10 = vunpack.c.0.s8 %v4938_v3 }
 0x226   : > { %v1914_v15 = vpop.f32.mrf.mxu2  ;;  %v1579_v20 = vpop.f32.mrf.mxu0 }
 0x227   : > { %v2083_v16 = vpop.f32.mrf.mxu3  ;;  %v1915_v19 = vadd.f32 %v1914_v15, %v1746_v14  ;;  %v1748_v24 = vpop.f32.mrf.mxu1 }
 0x228   : > { %v1749_v27 = vadd.f32 %v1748_v24, %v1579_v20  ;;  %v988_v24 = vcvt.s32.f32 %v732_v4 }
 0x229   : > { %v2084_v23 = vadd.f32 %v2083_v16, %v1915_v19  ;;  %1618 = vmatmul.bf16.gmra.mxu0 %v1140_v17  ;;  %v738_v16 = vunpack.c.1.s8 %v4941_v6  ;;  %v735_v17 = vunpack.c.0.s8 %v4944_v7  ;;  %v1210_v19 = vld [vmem:[#allocation2 + $0xf0] sm:$0xff] }
 0x22a   : > { %1787 = vmatmul.bf16.gmra.mxu1 %v1141_v18  ;;  %v739_v18 = vunpack.c.1.s8 %v4944_v7 }
 0x22b   : > { %v2203_v26 = vadd.f32 %v2084_v23, %v1207_v21  ;;  %1956 = vmatmul.bf16.gmra.mxu2 %v1142_v22  ;;  %v992_v22 = vcvt.s32.f32 %v736_v5  ;;  %v993_v21 = vcvt.s32.f32 %v737_v11  ;;  %v990_v23 = vcvt.s32.f32 %v734_v12 }
 0x22c   : > { %2125 = vmatmul.bf16.gmra.mxu3 %v1143_v25  ;;  %v989_v25 = vcvt.s32.f32 %v733_v10  ;;  %v991_v28 = vcvt.s32.f32 %v735_v17 }
 0x22d   : > { %2267 = vst [vmem:[#allocation2 + $0x30] sm:$0xff] %v2203_v26  ;;  %v1148_v33 = vpack.c.bf16 %v992_v22, %v988_v24  ;;  %v4972_v24 = vld [vmem:[%s4619_s18 + $0x1b8] sm:$0xff] }
 0x22e   : > { %v1917_v29 = vpop.f32.mrf.mxu2  ;;  %v1581_v36 = vpop.f32.mrf.mxu0  ;;  %v1149_v34 = vpack.c.bf16 %v993_v21, %v989_v25 }
 0x22f   : > { %v2086_v30 = vpop.f32.mrf.mxu3  ;;  %v1918_v35 = vadd.f32 %v1917_v29, %v1749_v27  ;;  %v1750_v40 = vpop.f32.mrf.mxu1  ;;  %v994_v27 = vcvt.s32.f32 %v738_v16  ;;  %v995_v29 = vcvt.s32.f32 %v739_v18  ;;  %v4963_v16 = vld [vmem:[%s4619_s18 + $0x1a0] sm:$0xff] }
 0x230   : > { %v1751_v52 = vadd.f32 %v1750_v40, %v1581_v36  ;;  %v748_v22 = vunpack.c.0.s8 %v4963_v16 }
 0x231   : > { %v2087_v42 = vadd.f32 %v2086_v30, %v1918_v35  ;;  %v1150_v38 = vpack.c.bf16 %v994_v27, %v990_v23  ;;  %v1151_v41 = vpack.c.bf16 %v995_v29, %v991_v28  ;;  %v752_v23 = vunpack.c.1.s8 %v4963_v16 }
 0x233   : > { %v2204_v48 = vadd.f32 %v2087_v42, %v1208_v39 }
 0x235   : > { %2268 = vst [vmem:[#allocation2 + $0x1e0] sm:$0xff] %v2204_v48  ;;  %v741_v48 = vunpack.c.2.s8 %v4938_v3 }
 0x236   : > { %v1919_v56 = vpop.f32.mrf.mxu2  ;;  %v1584_v58 = vpop.f32.mrf.mxu0 }
 0x237   : > { %v2088_v54 = vpop.f32.mrf.mxu3  ;;  %v1920_v55 = vadd.f32 %v1919_v56, %v1751_v52  ;;  %v1753_v59 = vpop.f32.mrf.mxu1 }
 0x238   : > { %v1754_v2 = vadd.f32 %v1753_v59, %v1584_v58  ;;  %v996_v59 = vcvt.s32.f32 %v740_v44 }
 0x239   : > { %v2089_v63 = vadd.f32 %v2088_v54, %v1920_v55  ;;  %1623 = vmatmul.bf16.gmra.mxu0 %v1144_v57  ;;  %v746_v54 = vunpack.c.3.s8 %v4941_v6  ;;  %v743_v57 = vunpack.c.2.s8 %v4944_v7  ;;  %v1212_v55 = vld [vmem:[#allocation2 + $0x148] sm:$0xff] }
 0x23a   : > { %1792 = vmatmul.bf16.gmra.mxu1 %v1145_v53  ;;  %v747_v53 = vunpack.c.3.s8 %v4944_v7 }
 0x23b   : > { %v2205_v1 = vadd.f32 %v2089_v63, %v1209_v62  ;;  %1961 = vmatmul.bf16.gmra.mxu2 %v1146_v60  ;;  %v1000_v60 = vcvt.s32.f32 %v744_v47  ;;  %v1001_v62 = vcvt.s32.f32 %v745_v49  ;;  %v998_v63 = vcvt.s32.f32 %v742_v50 }
 0x23c   : > { %2130 = vmatmul.bf16.gmra.mxu3 %v1147_v61  ;;  %v997_v61 = vcvt.s32.f32 %v741_v48  ;;  %v1003_v3 = vcvt.s32.f32 %v747_v53  ;;  %v1215_v53 = vld [vmem:[#allocation2 + $0xc8] sm:$0xff] }
 0x23d   : > { %2269 = vst [vmem:[#allocation2] sm:$0xff] %v2205_v1  ;;  %v1002_v1 = vcvt.s32.f32 %v746_v54 }
 0x23e   : > { %v1922_v8 = vpop.f32.mrf.mxu2  ;;  %v1586_v14 = vpop.f32.mrf.mxu0  ;;  %v1153_v5 = vpack.c.bf16 %v1001_v62, %v997_v61 }
 0x23f   : > { %v2091_v9 = vpop.f32.mrf.mxu3  ;;  %v1923_v13 = vadd.f32 %v1922_v8, %v1754_v2  ;;  %v1755_v15 = vpop.f32.mrf.mxu1  ;;  %v999_v2 = vcvt.s32.f32 %v743_v57  ;;  %v1154_v12 = vpack.c.bf16 %v1002_v1, %v998_v63  ;;  %v760_v63 = vunpack.c.3.s8 %v4963_v16 }
 0x240   : > { %v1756_v30 = vadd.f32 %v1755_v15, %v1586_v14  ;;  %v1213_v14 = vld [vmem:[#allocation2 + $0x1d0] sm:$0xff] }
 0x241   : > { %v2092_v20 = vadd.f32 %v2091_v9, %v1923_v13  ;;  %v1152_v9 = vpack.c.bf16 %v1000_v60, %v996_v59  ;;  %v1155_v13 = vpack.c.bf16 %v1003_v3, %v999_v2  ;;  %v756_v60 = vunpack.c.2.s8 %v4963_v16 }
 0x243   : > { %v2206_v26 = vadd.f32 %v2092_v20, %v1210_v19  ;;  %v4966_v19 = vld [vmem:[%s4619_s18 + $0x1a8] sm:$0xff]  ;;  %v4969_v20 = vld [vmem:[%s4619_s18 + $0x1b0] sm:$0xff] }
 0x244   : > { %v753_v27 = vunpack.c.1.s8 %v4966_v19  ;;  %v750_v28 = vunpack.c.0.s8 %v4969_v20  ;;  %v761_v1 = vunpack.c.3.s8 %v4966_v19  ;;  %v758_v2 = vunpack.c.2.s8 %v4969_v20 }
 0x245   : > { %2270 = vst [vmem:[#allocation2 + $0xf0] sm:$0xff] %v2206_v26  ;;  %v749_v26 = vunpack.c.0.s8 %v4966_v19 }
 0x246   : > { %v1924_v31 = vpop.f32.mrf.mxu2  ;;  %v1589_v36 = vpop.f32.mrf.mxu0 }
 0x247   : > { %v2093_v32 = vpop.f32.mrf.mxu3  ;;  %v1925_v35 = vadd.f32 %v1924_v31, %v1756_v30  ;;  %v1758_v40 = vpop.f32.mrf.mxu1 }
 0x248   : > { %v1759_v43 = vadd.f32 %v1758_v40, %v1589_v36  ;;  %v1004_v40 = vcvt.s32.f32 %v748_v22 }
 0x249   : > { %v2094_v39 = vadd.f32 %v2093_v32, %v1925_v35  ;;  %1628 = vmatmul.bf16.gmra.mxu0 %v1148_v33  ;;  %v754_v32 = vunpack.c.1.s8 %v4969_v20  ;;  %v751_v33 = vunpack.c.0.s8 %v4972_v24  ;;  %v1214_v35 = vld [vmem:[#allocation2 + $0x100] sm:$0xff] }
 0x24a   : > { %1797 = vmatmul.bf16.gmra.mxu1 %v1149_v34  ;;  %v755_v34 = vunpack.c.1.s8 %v4972_v24 }
 0x24b   : > { %v2207_v42 = vadd.f32 %v2094_v39, %v1211_v37  ;;  %1966 = vmatmul.bf16.gmra.mxu2 %v1150_v38  ;;  %v1008_v38 = vcvt.s32.f32 %v752_v23  ;;  %v1009_v37 = vcvt.s32.f32 %v753_v27  ;;  %v1006_v39 = vcvt.s32.f32 %v750_v28 }
 0x24c   : > { %2135 = vmatmul.bf16.gmra.mxu3 %v1151_v41  ;;  %v1005_v41 = vcvt.s32.f32 %v749_v26  ;;  %v1007_v44 = vcvt.s32.f32 %v751_v33 }
 0x24d   : > { %2271 = vst [vmem:[#allocation2 + $0x8] sm:$0xff] %v2207_v42  ;;  %v1156_v49 = vpack.c.bf16 %v1008_v38, %v1004_v40  ;;  %v5000_v40 = vld [vmem:[%s4619_s18 + $0x1d8] sm:$0xff] }
 0x24e   : > { %v1927_v45 = vpop.f32.mrf.mxu2  ;;  %v1591_v52 = vpop.f32.mrf.mxu0  ;;  %v1157_v50 = vpack.c.bf16 %v1009_v37, %v1005_v41 }
 0x24f   : > { %v2096_v46 = vpop.f32.mrf.mxu3  ;;  %v1928_v51 = vadd.f32 %v1927_v45, %v1759_v43  ;;  %v1760_v56 = vpop.f32.mrf.mxu1  ;;  %v1010_v43 = vcvt.s32.f32 %v754_v32  ;;  %v1011_v45 = vcvt.s32.f32 %v755_v34  ;;  %v4991_v32 = vld [vmem:[%s4619_s18 + $0x1c0] sm:$0xff] }
 0x250   : > { %v1761_v4 = vadd.f32 %v1760_v56, %v1591_v52  ;;  %v764_v38 = vunpack.c.0.s8 %v4991_v32 }
 0x251   : > { %v2097_v58 = vadd.f32 %v2096_v46, %v1928_v51  ;;  %v1158_v54 = vpack.c.bf16 %v1010_v43, %v1006_v39  ;;  %v1159_v57 = vpack.c.bf16 %v1011_v45, %v1007_v44  ;;  %v768_v39 = vunpack.c.1.s8 %v4991_v32 }
 0x253   : > { %v2208_v0 = vadd.f32 %v2097_v58, %v1212_v55 }
 0x255   : > { %2272 = vst [vmem:[#allocation2 + $0x148] sm:$0xff] %v2208_v0  ;;  %v757_v0 = vunpack.c.2.s8 %v4966_v19 }
 0x256   : > { %v1929_v8 = vpop.f32.mrf.mxu2  ;;  %v1594_v10 = vpop.f32.mrf.mxu0 }
 0x257   : > { %v2098_v6 = vpop.f32.mrf.mxu3  ;;  %v1930_v7 = vadd.f32 %v1929_v8, %v1761_v4  ;;  %v1763_v11 = vpop.f32.mrf.mxu1 }
 0x258   : > { %v1764_v18 = vadd.f32 %v1763_v11, %v1594_v10  ;;  %v1012_v11 = vcvt.s32.f32 %v756_v60 }
 0x259   : > { %v2099_v15 = vadd.f32 %v2098_v6, %v1930_v7  ;;  %1633 = vmatmul.bf16.gmra.mxu0 %v1152_v9  ;;  %v762_v6 = vunpack.c.3.s8 %v4969_v20  ;;  %v759_v9 = vunpack.c.2.s8 %v4972_v24  ;;  %v1216_v7 = vld [vmem:[#allocation2 + $0x40] sm:$0xff] }
 0x25a   : > { %1802 = vmatmul.bf16.gmra.mxu1 %v1153_v5  ;;  %v763_v5 = vunpack.c.3.s8 %v4972_v24 }
 0x25b   : > { %v2209_v17 = vadd.f32 %v2099_v15, %v1213_v14  ;;  %1971 = vmatmul.bf16.gmra.mxu2 %v1154_v12  ;;  %v1016_v12 = vcvt.s32.f32 %v760_v63  ;;  %v1017_v14 = vcvt.s32.f32 %v761_v1  ;;  %v1014_v15 = vcvt.s32.f32 %v758_v2 }
 0x25c   : > { %2140 = vmatmul.bf16.gmra.mxu3 %v1155_v13  ;;  %v1013_v13 = vcvt.s32.f32 %v757_v0  ;;  %v1019_v19 = vcvt.s32.f32 %v763_v5  ;;  %v1219_v5 = vld [vmem:[#allocation2 + $0x128] sm:$0xff] }
 0x25d   : > { %2273 = vst [vmem:[#allocation2 + $0x1d0] sm:$0xff] %v2209_v17  ;;  %v1018_v17 = vcvt.s32.f32 %v762_v6 }
 0x25e   : > { %v1932_v25 = vpop.f32.mrf.mxu2  ;;  %v1596_v30 = vpop.f32.mrf.mxu0  ;;  %v1161_v23 = vpack.c.bf16 %v1017_v14, %v1013_v13 }
 0x25f   : > { %v2101_v21 = vpop.f32.mrf.mxu3  ;;  %v1933_v29 = vadd.f32 %v1932_v25, %v1764_v18  ;;  %v1765_v31 = vpop.f32.mrf.mxu1  ;;  %v1015_v18 = vcvt.s32.f32 %v759_v9  ;;  %v1162_v28 = vpack.c.bf16 %v1018_v17, %v1014_v15  ;;  %v776_v15 = vunpack.c.3.s8 %v4991_v32 }
 0x260   : > { %v1766_v46 = vadd.f32 %v1765_v31, %v1596_v30  ;;  %v1217_v30 = vld [vmem:[#allocation2 + $0x1f8] sm:$0xff] }
 0x261   : > { %v2102_v36 = vadd.f32 %v2101_v21, %v1933_v29  ;;  %v1160_v21 = vpack.c.bf16 %v1016_v12, %v1012_v11  ;;  %v1163_v29 = vpack.c.bf16 %v1019_v19, %v1015_v18  ;;  %v772_v12 = vunpack.c.2.s8 %v4991_v32 }
 0x263   : > { %v2210_v42 = vadd.f32 %v2102_v36, %v1214_v35  ;;  %v4994_v35 = vld [vmem:[%s4619_s18 + $0x1c8] sm:$0xff]  ;;  %v4997_v36 = vld [vmem:[%s4619_s18 + $0x1d0] sm:$0xff] }
 0x264   : > { %v769_v43 = vunpack.c.1.s8 %v4994_v35  ;;  %v766_v44 = vunpack.c.0.s8 %v4997_v36  ;;  %v777_v17 = vunpack.c.3.s8 %v4994_v35  ;;  %v774_v18 = vunpack.c.2.s8 %v4997_v36 }
 0x265   : > { %2274 = vst [vmem:[#allocation2 + $0x100] sm:$0xff] %v2210_v42  ;;  %v765_v42 = vunpack.c.0.s8 %v4994_v35 }
 0x266   : > { %v1934_v47 = vpop.f32.mrf.mxu2  ;;  %v1599_v52 = vpop.f32.mrf.mxu0 }
 0x267   : > { %v2103_v48 = vpop.f32.mrf.mxu3  ;;  %v1935_v51 = vadd.f32 %v1934_v47, %v1766_v46  ;;  %v1768_v56 = vpop.f32.mrf.mxu1 }
 0x268   : > { %v1769_v59 = vadd.f32 %v1768_v56, %v1599_v52  ;;  %v1020_v56 = vcvt.s32.f32 %v764_v38 }
 0x269   : > { %v2104_v55 = vadd.f32 %v2103_v48, %v1935_v51  ;;  %1638 = vmatmul.bf16.gmra.mxu0 %v1156_v49  ;;  %v770_v48 = vunpack.c.1.s8 %v4997_v36  ;;  %v767_v49 = vunpack.c.0.s8 %v5000_v40  ;;  %v1218_v51 = vld [vmem:[#allocation2 + $0x20] sm:$0xff] }
 0x26a   : > { %1807 = vmatmul.bf16.gmra.mxu1 %v1157_v50  ;;  %v771_v50 = vunpack.c.1.s8 %v5000_v40 }
 0x26b   : > { %v2211_v58 = vadd.f32 %v2104_v55, %v1215_v53  ;;  %1976 = vmatmul.bf16.gmra.mxu2 %v1158_v54  ;;  %v1024_v54 = vcvt.s32.f32 %v768_v39  ;;  %v1025_v53 = vcvt.s32.f32 %v769_v43  ;;  %v1022_v55 = vcvt.s32.f32 %v766_v44 }
 0x26c   : > { %2145 = vmatmul.bf16.gmra.mxu3 %v1159_v57  ;;  %v1021_v57 = vcvt.s32.f32 %v765_v42  ;;  %v1023_v60 = vcvt.s32.f32 %v767_v49 }
 0x26d   : > { %2275 = vst [vmem:[#allocation2 + $0xc8] sm:$0xff] %v2211_v58  ;;  %v1164_v1 = vpack.c.bf16 %v1024_v54, %v1020_v56  ;;  %v5028_v56 = vld [vmem:[%s4619_s18 + $0x1f8] sm:$0xff] }
 0x26e   : > { %v1937_v61 = vpop.f32.mrf.mxu2  ;;  %v1601_v4 = vpop.f32.mrf.mxu0  ;;  %v1165_v2 = vpack.c.bf16 %v1025_v53, %v1021_v57 }
 0x26f   : > { %v2106_v62 = vpop.f32.mrf.mxu3  ;;  %v1938_v3 = vadd.f32 %v1937_v61, %v1769_v59  ;;  %v1770_v8 = vpop.f32.mrf.mxu1  ;;  %v1026_v59 = vcvt.s32.f32 %v770_v48  ;;  %v1027_v61 = vcvt.s32.f32 %v771_v50  ;;  %v5019_v48 = vld [vmem:[%s4619_s18 + $0x1e0] sm:$0xff] }
 0x270   : > { %v1771_v22 = vadd.f32 %v1770_v8, %v1601_v4  ;;  %v780_v54 = vunpack.c.0.s8 %v5019_v48 }
 0x271   : > { %v2107_v10 = vadd.f32 %v2106_v62, %v1938_v3  ;;  %v1166_v6 = vpack.c.bf16 %v1026_v59, %v1022_v55  ;;  %v1167_v9 = vpack.c.bf16 %v1027_v61, %v1023_v60  ;;  %v784_v55 = vunpack.c.1.s8 %v5019_v48 }
 0x273   : > { %v2212_v16 = vadd.f32 %v2107_v10, %v1216_v7 }
 0x275   : > { %2276 = vst [vmem:[#allocation2 + $0x40] sm:$0xff] %v2212_v16  ;;  %v773_v16 = vunpack.c.2.s8 %v4994_v35 }
 0x276   : > { %v1939_v25 = vpop.f32.mrf.mxu2  ;;  %v1604_v26 = vpop.f32.mrf.mxu0 }
 0x277   : > { %v2108_v20 = vpop.f32.mrf.mxu3  ;;  %v1940_v24 = vadd.f32 %v1939_v25, %v1771_v22  ;;  %v1773_v27 = vpop.f32.mrf.mxu1 }
 0x278   : > { %v1774_v34 = vadd.f32 %v1773_v27, %v1604_v26  ;;  %v1028_v27 = vcvt.s32.f32 %v772_v12 }
 0x279   : > { %v2109_v31 = vadd.f32 %v2108_v20, %v1940_v24  ;;  %1643 = vmatmul.bf16.gmra.mxu0 %v1160_v21  ;;  %v778_v20 = vunpack.c.3.s8 %v4997_v36  ;;  %v775_v21 = vunpack.c.2.s8 %v5000_v40  ;;  %v1220_v24 = vld [vmem:[#allocation2 + $0x1a0] sm:$0xff] }
 0x27a   : > { %1812 = vmatmul.bf16.gmra.mxu1 %v1161_v23  ;;  %v779_v23 = vunpack.c.3.s8 %v5000_v40 }
 0x27b   : > { %v2213_v33 = vadd.f32 %v2109_v31, %v1217_v30  ;;  %1981 = vmatmul.bf16.gmra.mxu2 %v1162_v28  ;;  %v1032_v28 = vcvt.s32.f32 %v776_v15  ;;  %v1033_v30 = vcvt.s32.f32 %v777_v17  ;;  %v1030_v31 = vcvt.s32.f32 %v774_v18 }
 0x27c   : > { %2150 = vmatmul.bf16.gmra.mxu3 %v1163_v29  ;;  %v1029_v29 = vcvt.s32.f32 %v773_v16  ;;  %v1035_v35 = vcvt.s32.f32 %v779_v23  ;;  %v1223_v23 = vld [vmem:[#allocation2 + $0x78] sm:$0xff] }
 0x27d   : > { %2277 = vst [vmem:[#allocation2 + $0x1f8] sm:$0xff] %v2213_v33  ;;  %v1034_v33 = vcvt.s32.f32 %v778_v20 }
 0x27e   : > { %v1942_v41 = vpop.f32.mrf.mxu2  ;;  %v1606_v46 = vpop.f32.mrf.mxu0  ;;  %v1169_v39 = vpack.c.bf16 %v1033_v30, %v1029_v29 }
 0x27f   : > { %v2111_v37 = vpop.f32.mrf.mxu3  ;;  %v1943_v45 = vadd.f32 %v1942_v41, %v1774_v34  ;;  %v1775_v47 = vpop.f32.mrf.mxu1  ;;  %v1031_v34 = vcvt.s32.f32 %v775_v21  ;;  %v1170_v44 = vpack.c.bf16 %v1034_v33, %v1030_v31  ;;  %v792_v31 = vunpack.c.3.s8 %v5019_v48 }
 0x280   : > { %v1776_v62 = vadd.f32 %v1775_v47, %v1606_v46  ;;  %v1221_v46 = vld [vmem:[#allocation2 + $0x1f0] sm:$0xff] }
 0x281   : > { %v2112_v52 = vadd.f32 %v2111_v37, %v1943_v45  ;;  %v1168_v37 = vpack.c.bf16 %v1032_v28, %v1028_v27  ;;  %v1171_v45 = vpack.c.bf16 %v1035_v35, %v1031_v34  ;;  %v788_v28 = vunpack.c.2.s8 %v5019_v48 }
 0x283   : > { %v2214_v58 = vadd.f32 %v2112_v52, %v1218_v51  ;;  %v5022_v51 = vld [vmem:[%s4619_s18 + $0x1e8] sm:$0xff]  ;;  %v5025_v52 = vld [vmem:[%s4619_s18 + $0x1f0] sm:$0xff] }
 0x284   : > { %v785_v59 = vunpack.c.1.s8 %v5022_v51  ;;  %v782_v60 = vunpack.c.0.s8 %v5025_v52  ;;  %v793_v33 = vunpack.c.3.s8 %v5022_v51  ;;  %v790_v34 = vunpack.c.2.s8 %v5025_v52 }
 0x285   : > { %2278 = vst [vmem:[#allocation2 + $0x20] sm:$0xff] %v2214_v58  ;;  %v781_v58 = vunpack.c.0.s8 %v5022_v51 }
 0x286   : > { %v1944_v63 = vpop.f32.mrf.mxu2  ;;  %v1609_v4 = vpop.f32.mrf.mxu0 }
 0x287   : > { %v2113_v0 = vpop.f32.mrf.mxu3  ;;  %v1945_v3 = vadd.f32 %v1944_v63, %v1776_v62  ;;  %v1778_v8 = vpop.f32.mrf.mxu1 }
 0x288   : > { %v1779_v11 = vadd.f32 %v1778_v8, %v1609_v4  ;;  %v1036_v8 = vcvt.s32.f32 %v780_v54 }
 0x289   : > { %v2114_v7 = vadd.f32 %v2113_v0, %v1945_v3  ;;  %1648 = vmatmul.bf16.gmra.mxu0 %v1164_v1  ;;  %v786_v0 = vunpack.c.1.s8 %v5025_v52  ;;  %v783_v1 = vunpack.c.0.s8 %v5028_v56  ;;  %v1222_v3 = vld [vmem:[#allocation2 + $0xe8] sm:$0xff] }
 0x28a   : > { %1817 = vmatmul.bf16.gmra.mxu1 %v1165_v2  ;;  %v787_v2 = vunpack.c.1.s8 %v5028_v56 }
 0x28b   : > { %v2215_v10 = vadd.f32 %v2114_v7, %v1219_v5  ;;  %1986 = vmatmul.bf16.gmra.mxu2 %v1166_v6  ;;  %v1040_v6 = vcvt.s32.f32 %v784_v55  ;;  %v1041_v5 = vcvt.s32.f32 %v785_v59  ;;  %v1038_v7 = vcvt.s32.f32 %v782_v60 }
 0x28c   : > { %2155 = vmatmul.bf16.gmra.mxu3 %v1167_v9  ;;  %v1037_v9 = vcvt.s32.f32 %v781_v58  ;;  %v1039_v12 = vcvt.s32.f32 %v783_v1 }
 0x28d   : > { %2279 = vst [vmem:[#allocation2 + $0x128] sm:$0xff] %v2215_v10  ;;  %v1172_v17 = vpack.c.bf16 %v1040_v6, %v1036_v8 }
 0x28e   : > { %v1947_v13 = vpop.f32.mrf.mxu2  ;;  %v1611_v22 = vpop.f32.mrf.mxu0  ;;  %v1173_v18 = vpack.c.bf16 %v1041_v5, %v1037_v9  ;;  %v1226_v9 = vld [vmem:[#allocation2 + $0x1d8] sm:$0xff] }
 0x28f   : > { %v2116_v14 = vpop.f32.mrf.mxu3  ;;  %v1948_v19 = vadd.f32 %v1947_v13, %v1779_v11  ;;  %v1780_v25 = vpop.f32.mrf.mxu1  ;;  %v1042_v11 = vcvt.s32.f32 %v786_v0  ;;  %v1043_v13 = vcvt.s32.f32 %v787_v2 }
 0x290   : > { %v1781_v38 = vadd.f32 %v1780_v25, %v1611_v22 }
 0x291   : > { %v2117_v26 = vadd.f32 %v2116_v14, %v1948_v19  ;;  %v1174_v20 = vpack.c.bf16 %v1042_v11, %v1038_v7  ;;  %v1175_v21 = vpack.c.bf16 %v1043_v13, %v1039_v12 }
 0x293   : > { %v2216_v32 = vadd.f32 %v2117_v26, %v1220_v24 }
 0x295   : > { %2280 = vst [vmem:[#allocation2 + $0x1a0] sm:$0xff] %v2216_v32  ;;  %v789_v32 = vunpack.c.2.s8 %v5022_v51 }
 0x296   : > { %v1949_v41 = vpop.f32.mrf.mxu2  ;;  %v1614_v42 = vpop.f32.mrf.mxu0 }
 0x297   : > { %v2118_v36 = vpop.f32.mrf.mxu3  ;;  %v1950_v40 = vadd.f32 %v1949_v41, %v1781_v38  ;;  %v1783_v43 = vpop.f32.mrf.mxu1 }
 0x298   : > { %v1784_v50 = vadd.f32 %v1783_v43, %v1614_v42  ;;  %v1044_v43 = vcvt.s32.f32 %v788_v28 }
 0x299   : > { %v2119_v47 = vadd.f32 %v2118_v36, %v1950_v40  ;;  %1653 = vmatmul.bf16.gmra.mxu0 %v1168_v37  ;;  %v794_v36 = vunpack.c.3.s8 %v5025_v52  ;;  %v791_v37 = vunpack.c.2.s8 %v5028_v56  ;;  %v1224_v40 = vld [vmem:[#allocation2 + $0x70] sm:$0xff] }
 0x29a   : > { %1822 = vmatmul.bf16.gmra.mxu1 %v1169_v39  ;;  %v795_v39 = vunpack.c.3.s8 %v5028_v56 }
 0x29b   : > { %v2217_v49 = vadd.f32 %v2119_v47, %v1221_v46  ;;  %1991 = vmatmul.bf16.gmra.mxu2 %v1170_v44  ;;  %v1048_v44 = vcvt.s32.f32 %v792_v31  ;;  %v1049_v46 = vcvt.s32.f32 %v793_v33  ;;  %v1046_v47 = vcvt.s32.f32 %v790_v34  ;;  %v1229_v34 = vld [vmem:[#allocation2 + $0x88] sm:$0xff] }
 0x29c   : > { %2160 = vmatmul.bf16.gmra.mxu3 %v1171_v45  ;;  %v1045_v45 = vcvt.s32.f32 %v789_v32  ;;  %v1051_v51 = vcvt.s32.f32 %v795_v39 }
 0x29d   : > { %2281 = vst [vmem:[#allocation2 + $0x1f0] sm:$0xff] %v2217_v49  ;;  %v1050_v49 = vcvt.s32.f32 %v794_v36  ;;  %v1176_v52 = vpack.c.bf16 %v1048_v44, %v1044_v43  ;;  %v1230_v43 = vld [vmem:[#allocation2 + $0xa8] sm:$0xff] }
 0x29e   : > { %v1952_v57 = vpop.f32.mrf.mxu2  ;;  %v1616_v62 = vpop.f32.mrf.mxu0  ;;  %v1177_v55 = vpack.c.bf16 %v1049_v46, %v1045_v45 }
 0x29f   : > { %v2121_v53 = vpop.f32.mrf.mxu3  ;;  %v1953_v61 = vadd.f32 %v1952_v57, %v1784_v50  ;;  %v1785_v63 = vpop.f32.mrf.mxu1  ;;  %v1047_v50 = vcvt.s32.f32 %v791_v37  ;;  %v1178_v60 = vpack.c.bf16 %v1050_v49, %v1046_v47 }
 0x2a0   : > { %v1786_v14 = vadd.f32 %v1785_v63, %v1616_v62  ;;  %v1225_v62 = vld [vmem:[#allocation2 + $0x90] sm:$0xff] }
 0x2a1   : > { %v2122_v4 = vadd.f32 %v2121_v53, %v1953_v61  ;;  %v1179_v61 = vpack.c.bf16 %v1051_v51, %v1047_v50 }
 0x2a3   : > { %v2218_v10 = vadd.f32 %v2122_v4, %v1222_v3 }
 0x2a5   : > { %2282 = vst [vmem:[#allocation2 + $0xe8] sm:$0xff] %v2218_v10 }
 0x2a6   : > { %v1954_v15 = vpop.f32.mrf.mxu2  ;;  %v1619_v22 = vpop.f32.mrf.mxu0 }
 0x2a7   : > { %v2123_v16 = vpop.f32.mrf.mxu3  ;;  %v1955_v19 = vadd.f32 %v1954_v15, %v1786_v14  ;;  %v1788_v25 = vpop.f32.mrf.mxu1 }
 0x2a8   : > { %v1789_v27 = vadd.f32 %v1788_v25, %v1619_v22 }
 0x2a9   : > { %v2124_v24 = vadd.f32 %v2123_v16, %v1955_v19  ;;  %1658 = vmatmul.bf16.gmra.mxu0 %v1172_v17  ;;  %v1227_v16 = vld [vmem:[#allocation2 + $0xd0] sm:$0xff] }
 0x2aa   : > { %1827 = vmatmul.bf16.gmra.mxu1 %v1173_v18 }
 0x2ab   : > { %v2219_v26 = vadd.f32 %v2124_v24, %v1223_v23  ;;  %1996 = vmatmul.bf16.gmra.mxu2 %v1174_v20  ;;  %v1228_v24 = vld [vmem:[#allocation2 + $0xb8] sm:$0xff] }
 0x2ac   : > { %2165 = vmatmul.bf16.gmra.mxu3 %v1175_v21 }
 0x2ad   : > { %2283 = vst [vmem:[#allocation2 + $0x78] sm:$0xff] %v2219_v26 }
 0x2ae   : > { %v1957_v29 = vpop.f32.mrf.mxu2  ;;  %v1621_v38 = vpop.f32.mrf.mxu0 }
 0x2af   : > { %v2126_v30 = vpop.f32.mrf.mxu3  ;;  %v1958_v35 = vadd.f32 %v1957_v29, %v1789_v27  ;;  %v1790_v41 = vpop.f32.mrf.mxu1 }
 0x2b0   : > { %v1791_v54 = vadd.f32 %v1790_v41, %v1621_v38 }
 0x2b1   : > { %v2127_v42 = vadd.f32 %v2126_v30, %v1958_v35 }
 0x2b3   : > { %v2220_v48 = vadd.f32 %v2127_v42, %v1224_v40 }
 0x2b5   : > { %2284 = vst [vmem:[#allocation2 + $0x70] sm:$0xff] %v2220_v48 }
 0x2b6   : > { %v1959_v57 = vpop.f32.mrf.mxu2  ;;  %v1624_v59 = vpop.f32.mrf.mxu0 }
 0x2b7   : > { %v2128_v53 = vpop.f32.mrf.mxu3  ;;  %v1960_v58 = vadd.f32 %v1959_v57, %v1791_v54  ;;  %v1793_v56 = vpop.f32.mrf.mxu1  ;;  %v1231_v54 = vld [vmem:[#allocation2 + $0x1c8] sm:$0xff] }
 0x2b8   : > { %v1794_v1 = vadd.f32 %v1793_v56, %v1624_v59 }
 0x2b9   : > { %v2129_v63 = vadd.f32 %v2128_v53, %v1960_v58  ;;  %1663 = vmatmul.bf16.gmra.mxu0 %v1176_v52 }
 0x2ba   : > { %1832 = vmatmul.bf16.gmra.mxu1 %v1177_v55 }
 0x2bb   : > { %v2221_v0 = vadd.f32 %v2129_v63, %v1225_v62  ;;  %2001 = vmatmul.bf16.gmra.mxu2 %v1178_v60 }
 0x2bc   : > { %2170 = vmatmul.bf16.gmra.mxu3 %v1179_v61  ;;  %v1232_v61 = vld [vmem:[#allocation2 + $0x170] sm:$0xff] }
 0x2bd   : > { %2285 = vst [vmem:[#allocation2 + $0x90] sm:$0xff] %v2221_v0 }
 0x2be   : > { %v1962_v2 = vpop.f32.mrf.mxu2  ;;  %v1626_v8 = vpop.f32.mrf.mxu0 }
 0x2bf   : > { %v2131_v3 = vpop.f32.mrf.mxu3  ;;  %v1963_v4 = vadd.f32 %v1962_v2, %v1794_v1  ;;  %v1795_v6 = vpop.f32.mrf.mxu1 }
 0x2c0   : > { %v1796_v10 = vadd.f32 %v1795_v6, %v1626_v8  ;;  %v1233_v6 = vld [vmem:[#allocation2 + $0x178] sm:$0xff] }
 0x2c1   : > { %v2132_v5 = vadd.f32 %v2131_v3, %v1963_v4 }
 0x2c3   : > { %v2222_v7 = vadd.f32 %v2132_v5, %v1226_v9 }
 0x2c5   : > { %2286 = vst [vmem:[#allocation2 + $0x1d8] sm:$0xff] %v2222_v7 }
 0x2c6   : > { %v1964_v11 = vpop.f32.mrf.mxu2  ;;  %v1629_v14 = vpop.f32.mrf.mxu0 }
 0x2c7   : > { %v2133_v12 = vpop.f32.mrf.mxu3  ;;  %v1965_v13 = vadd.f32 %v1964_v11, %v1796_v10  ;;  %v1798_v15 = vpop.f32.mrf.mxu1 }
 0x2c8   : > { %v1799_v19 = vadd.f32 %v1798_v15, %v1629_v14  ;;  %v1234_v15 = vld [vmem:[#allocation2 + $0x68] sm:$0xff] }
 0x2c9   : > { %v2134_v17 = vadd.f32 %v2133_v12, %v1965_v13 }
 0x2cb   : > { %v2223_v18 = vadd.f32 %v2134_v17, %v1227_v16 }
 0x2cd   : > { %2287 = vst [vmem:[#allocation2 + $0xd0] sm:$0xff] %v2223_v18 }
 0x2ce   : > { %v1967_v22 = vpop.f32.mrf.mxu2  ;;  %v1631_v21 = vpop.f32.mrf.mxu0 }
 0x2cf   : > { %v2136_v25 = vpop.f32.mrf.mxu3  ;;  %v1968_v20 = vadd.f32 %v1967_v22, %v1799_v19  ;;  %v1800_v23 = vpop.f32.mrf.mxu1 }
 0x2d0   : > { %v1801_v28 = vadd.f32 %v1800_v23, %v1631_v21  ;;  %v1235_v23 = vld [vmem:[#allocation2 + $0x190] sm:$0xff] }
 0x2d1   : > { %v2137_v26 = vadd.f32 %v2136_v25, %v1968_v20 }
 0x2d3   : > { %v2224_v27 = vadd.f32 %v2137_v26, %v1228_v24 }
 0x2d5   : > { %2288 = vst [vmem:[#allocation2 + $0xb8] sm:$0xff] %v2224_v27 }
 0x2d6   : > { %v1969_v29 = vpop.f32.mrf.mxu2  ;;  %v1634_v32 = vpop.f32.mrf.mxu0 }
 0x2d7   : > { %v2138_v30 = vpop.f32.mrf.mxu3  ;;  %v1970_v31 = vadd.f32 %v1969_v29, %v1801_v28  ;;  %v1803_v33 = vpop.f32.mrf.mxu1 }
 0x2d8   : > { %v1804_v41 = vadd.f32 %v1803_v33, %v1634_v32  ;;  %v1236_v33 = vld [vmem:[#allocation2 + $0x198] sm:$0xff] }
 0x2d9   : > { %v2139_v35 = vadd.f32 %v2138_v30, %v1970_v31 }
 0x2db   : > { %v2225_v38 = vadd.f32 %v2139_v35, %v1229_v34 }
 0x2dd   : > { %2289 = vst [vmem:[#allocation2 + $0x88] sm:$0xff] %v2225_v38 }
 0x2de   : > { %v1972_v36 = vpop.f32.mrf.mxu2  ;;  %v1636_v40 = vpop.f32.mrf.mxu0 }
 0x2df   : > { %v2141_v37 = vpop.f32.mrf.mxu3  ;;  %v1973_v39 = vadd.f32 %v1972_v36, %v1804_v41  ;;  %v1805_v42 = vpop.f32.mrf.mxu1 }
 0x2e0   : > { %v1806_v46 = vadd.f32 %v1805_v42, %v1636_v40  ;;  %v1237_v42 = vld [vmem:[#allocation2 + $0x38] sm:$0xff] }
 0x2e1   : > { %v2142_v44 = vadd.f32 %v2141_v37, %v1973_v39 }
 0x2e3   : > { %v2226_v45 = vadd.f32 %v2142_v44, %v1230_v43 }
 0x2e5   : > { %2290 = vst [vmem:[#allocation2 + $0xa8] sm:$0xff] %v2226_v45 }
 0x2e6   : > { %v1974_v47 = vpop.f32.mrf.mxu2  ;;  %v1639_v50 = vpop.f32.mrf.mxu0 }
 0x2e7   : > { %v2143_v48 = vpop.f32.mrf.mxu3  ;;  %v1975_v49 = vadd.f32 %v1974_v47, %v1806_v46  ;;  %v1808_v51 = vpop.f32.mrf.mxu1 }
 0x2e8   : > { %v1809_v52 = vadd.f32 %v1808_v51, %v1639_v50  ;;  %v1238_v51 = vld [vmem:[#allocation2 + $0xc0] sm:$0xff] }
 0x2e9   : > { %v2144_v57 = vadd.f32 %v2143_v48, %v1975_v49 }
 0x2eb   : > { %v2227_v53 = vadd.f32 %v2144_v57, %v1231_v54 }
 0x2ed   : > { %2291 = vst [vmem:[#allocation2 + $0x1c8] sm:$0xff] %v2227_v53 }
 0x2ee   : > { %v1977_v55 = vpop.f32.mrf.mxu2  ;;  %v1641_v56 = vpop.f32.mrf.mxu0 }
 0x2ef   : > { %v2146_v58 = vpop.f32.mrf.mxu3  ;;  %v1978_v59 = vadd.f32 %v1977_v55, %v1809_v52  ;;  %v1810_v60 = vpop.f32.mrf.mxu1 }
 0x2f0   : > { %v1811_v0 = vadd.f32 %v1810_v60, %v1641_v56  ;;  %v1239_v60 = vld [vmem:[#allocation2 + $0x1c0] sm:$0xff] }
 0x2f1   : > { %v2147_v62 = vadd.f32 %v2146_v58, %v1978_v59 }
 0x2f3   : > { %v2228_v63 = vadd.f32 %v2147_v62, %v1232_v61 }
 0x2f5   : > { %2292 = vst [vmem:[#allocation2 + $0x170] sm:$0xff] %v2228_v63 }
 0x2f6   : > { %v1979_v1 = vpop.f32.mrf.mxu2  ;;  %v1644_v4 = vpop.f32.mrf.mxu0 }
 0x2f7   : > { %v2148_v2 = vpop.f32.mrf.mxu3  ;;  %v1980_v3 = vadd.f32 %v1979_v1, %v1811_v0  ;;  %v1813_v8 = vpop.f32.mrf.mxu1 }
 0x2f8   : > { %v1814_v7 = vadd.f32 %v1813_v8, %v1644_v4  ;;  %v1240_v8 = vld [vmem:[#allocation2 + $0x158] sm:$0xff] }
 0x2f9   : > { %v2149_v9 = vadd.f32 %v2148_v2, %v1980_v3 }
 0x2fb   : > { %v2229_v5 = vadd.f32 %v2149_v9, %v1233_v6 }
 0x2fd   : > { %2293 = vst [vmem:[#allocation2 + $0x178] sm:$0xff] %v2229_v5 }
 0x2fe   : > { %v1982_v10 = vpop.f32.mrf.mxu2  ;;  %v1646_v13 = vpop.f32.mrf.mxu0 }
 0x2ff   : > { %v2151_v11 = vpop.f32.mrf.mxu3  ;;  %v1983_v12 = vadd.f32 %v1982_v10, %v1814_v7  ;;  %v1815_v14 = vpop.f32.mrf.mxu1 }
 0x300   : > { %v1816_v18 = vadd.f32 %v1815_v14, %v1646_v13 }
 0x301   : > { %v2152_v16 = vadd.f32 %v2151_v11, %v1983_v12  ;;  %v1241_v12 = vld [vmem:[#allocation2 + $0x10] sm:$0xff] }
 0x303   : > { %v2230_v17 = vadd.f32 %v2152_v16, %v1234_v15 }
 0x305   : > { %2294 = vst [vmem:[#allocation2 + $0x68] sm:$0xff] %v2230_v17 }
 0x306   : > { %v1984_v19 = vpop.f32.mrf.mxu2  ;;  %v1649_v20 = vpop.f32.mrf.mxu0 }
 0x307   : > { %v2153_v22 = vpop.f32.mrf.mxu3  ;;  %v1985_v25 = vadd.f32 %v1984_v19, %v1816_v18  ;;  %v1818_v21 = vpop.f32.mrf.mxu1 }
 0x308   : > { %v1819_v27 = vadd.f32 %v1818_v21, %v1649_v20 }
 0x309   : > { %v2154_v24 = vadd.f32 %v2153_v22, %v1985_v25  ;;  %v1242_v25 = vld [vmem:[#allocation2 + $0x58] sm:$0xff] }
 0x30b   : > { %v2231_v26 = vadd.f32 %v2154_v24, %v1235_v23 }
 0x30d   : > { %2295 = vst [vmem:[#allocation2 + $0x190] sm:$0xff] %v2231_v26 }
 0x30e   : > { %v1987_v28 = vpop.f32.mrf.mxu2  ;;  %v1651_v31 = vpop.f32.mrf.mxu0 }
 0x30f   : > { %v2156_v29 = vpop.f32.mrf.mxu3  ;;  %v1988_v30 = vadd.f32 %v1987_v28, %v1819_v27  ;;  %v1820_v32 = vpop.f32.mrf.mxu1 }
 0x310   : > { %v1821_v38 = vadd.f32 %v1820_v32, %v1651_v31 }
 0x311   : > { %v2157_v34 = vadd.f32 %v2156_v29, %v1988_v30  ;;  %v1243_v29 = vld [vmem:[#allocation2 + $0xa0] sm:$0xff] }
 0x313   : > { %v2232_v35 = vadd.f32 %v2157_v34, %v1236_v33 }
 0x315   : > { %2296 = vst [vmem:[#allocation2 + $0x198] sm:$0xff] %v2232_v35 }
 0x316   : > { %v1989_v41 = vpop.f32.mrf.mxu2  ;;  %v1654_v39 = vpop.f32.mrf.mxu0 }
 0x317   : > { %v2158_v36 = vpop.f32.mrf.mxu3  ;;  %v1990_v37 = vadd.f32 %v1989_v41, %v1821_v38  ;;  %v1823_v40 = vpop.f32.mrf.mxu1 }
 0x318   : > { %v1824_v45 = vadd.f32 %v1823_v40, %v1654_v39 }
 0x319   : > { %v2159_v43 = vadd.f32 %v2158_v36, %v1990_v37 }
 0x31b   : > { %v2233_v44 = vadd.f32 %v2159_v43, %v1237_v42 }
 0x31d   : > { %2297 = vst [vmem:[#allocation2 + $0x38] sm:$0xff] %v2233_v44 }
 0x31e   : > { %v1992_v46 = vpop.f32.mrf.mxu2  ;;  %v1656_v49 = vpop.f32.mrf.mxu0 }
 0x31f   : > { %v2161_v47 = vpop.f32.mrf.mxu3  ;;  %v1993_v48 = vadd.f32 %v1992_v46, %v1824_v45  ;;  %v1825_v50 = vpop.f32.mrf.mxu1 }
 0x320   : > { %v1826_v53 = vadd.f32 %v1825_v50, %v1656_v49 }
 0x321   : > { %v2162_v54 = vadd.f32 %v2161_v47, %v1993_v48 }
 0x323   : > { %v2234_v57 = vadd.f32 %v2162_v54, %v1238_v51 }
 0x325   : > { %2298 = vst [vmem:[#allocation2 + $0xc0] sm:$0xff] %v2234_v57 }
 0x326   : > { %v1994_v52 = vpop.f32.mrf.mxu2  ;;  %v1659_v59 = vpop.f32.mrf.mxu0 }
 0x327   : > { %v2163_v55 = vpop.f32.mrf.mxu3  ;;  %v1995_v58 = vadd.f32 %v1994_v52, %v1826_v53  ;;  %v1828_v56 = vpop.f32.mrf.mxu1 }
 0x328   : > { %v1829_v63 = vadd.f32 %v1828_v56, %v1659_v59 }
 0x329   : > { %v2164_v61 = vadd.f32 %v2163_v55, %v1995_v58 }
 0x32b   : > { %v2235_v62 = vadd.f32 %v2164_v61, %v1239_v60 }
 0x32d   : > { %2299 = vst [vmem:[#allocation2 + $0x1c0] sm:$0xff] %v2235_v62 }
 0x32e   : > { %v1997_v0 = vpop.f32.mrf.mxu2  ;;  %v1661_v3 = vpop.f32.mrf.mxu0 }
 0x32f   : > { %v2166_v1 = vpop.f32.mrf.mxu3  ;;  %v1998_v2 = vadd.f32 %v1997_v0, %v1829_v63  ;;  %v1830_v4 = vpop.f32.mrf.mxu1 }
 0x330   : > { %v1831_v5 = vadd.f32 %v1830_v4, %v1661_v3 }
 0x331   : > { %v2167_v6 = vadd.f32 %v2166_v1, %v1998_v2 }
 0x333   : > { %v2236_v9 = vadd.f32 %v2167_v6, %v1240_v8 }
 0x335   : > { %2300 = vst [vmem:[#allocation2 + $0x158] sm:$0xff] %v2236_v9 }
 0x336   : > { %v1999_v7 = vpop.f32.mrf.mxu2  ;;  %v1664_v13 = vpop.f32.mrf.mxu0 }
 0x337   : > { %v2168_v10 = vpop.f32.mrf.mxu3  ;;  %v2000_v11 = vadd.f32 %v1999_v7, %v1831_v5  ;;  %v1833_v14 = vpop.f32.mrf.mxu1 }
 0x338   : > { %v1834_v17 = vadd.f32 %v1833_v14, %v1664_v13 }
 0x339   : > { %v2169_v15 = vadd.f32 %v2168_v10, %v2000_v11 }
 0x33b   : > { %v2237_v16 = vadd.f32 %v2169_v15, %v1241_v12 }
 0x33d   : > { %2301 = vst [vmem:[#allocation2 + $0x10] sm:$0xff] %v2237_v16 }
 0x33e   : > { %v2002_v18 = vpop.f32.mrf.mxu2  ;;  %v1666_v21 = vpop.f32.mrf.mxu0 }
 0x33f   : > { %v2171_v19 = vpop.f32.mrf.mxu3  ;;  %v2003_v22 = vadd.f32 %v2002_v18, %v1834_v17  ;;  %v1835_v23 = vpop.f32.mrf.mxu1 }
 0x340   : > { %v1836_v26 = vadd.f32 %v1835_v23, %v1666_v21 }
 0x341   : > { %v2172_v20 = vadd.f32 %v2171_v19, %v2003_v22 }
 0x343   : > { %v2238_v24 = vadd.f32 %v2172_v20, %v1242_v25 }
 0x345   : > { %2302 = vst [vmem:[#allocation2 + $0x58] sm:$0xff] %v2238_v24 }
 0x346   : > { %v2004_v27 = vpop.f32.mrf.mxu2 }
 0x347   : > { %v2005_v28 = vadd.f32 %v2004_v27, %v1836_v26  ;;  %v2173_v30 = vpop.f32.mrf.mxu3 }
 0x349   : > { %v2174_v31 = vadd.f32 %v2173_v30, %v2005_v28  ;;  %2307 = sbr.rel (%p3970_p13) target bundleno = 1516 (0x5ec), region = 67 }
 0x34b   : > { %v2239_v32 = vadd.f32 %v2174_v31, %v1243_v29 }
 0x34d   : > { %2303 = vst [vmem:[#allocation2 + $0xa0] sm:$0xff] %v2239_v32 }
 0x34e   : > { %v2376_v33 = vld [vmem:[%s4612_s8 + $0x20] sm:$0xff]  ;;  %v2374_v34 = vld [vmem:[%s4612_s8 + $0x10] sm:$0xff]  ;;  %v4381_v38 = vmov 0   ;;  %v2377_v41 = vld [vmem:[%s4612_s8 + $0x28] sm:$0xff] }
 0x34f   : > { %v2372_v35 = vld [vmem:[%s4612_s8] sm:$0xff]  ;;  %4066 = vset.pattern.permute.xlu2 %v4381_v38  ;;  %4065 = vset.pattern.permute.xlu1 %v4381_v38  ;;  %v2375_v36 = vld [vmem:[%s4612_s8 + $0x18] sm:$0xff]  ;;  %v2373_v37 = vld [vmem:[%s4612_s8 + $0x8] sm:$0xff] }
 0x350   : > { %4064 = vset.pattern.permute.xlu0 %v4381_v38  ;;  %2458 = vperm.xlu2 %4066, %v2376_v33   ;;  %v2380_v39 = vld [vmem:[%s4612_s8 + $0x40] sm:$0xff]  ;;  %v2379_v40 = vld [vmem:[%s4612_s8 + $0x38] sm:$0xff]  ;;  %v2378_v42 = vld [vmem:[%s4612_s8 + $0x30] sm:$0xff] }
 0x351   : > { %2448 = vperm.xlu1 %4065, %v2374_v34   ;;  %2438 = vperm.xlu0 %4064, %v2372_v35   ;;  %v2383_v43 = vld [vmem:[%s4612_s8 + $0x58] sm:$0xff]  ;;  %v2382_v44 = vld [vmem:[%s4612_s8 + $0x50] sm:$0xff]  ;;  %v2381_v45 = vld [vmem:[%s4612_s8 + $0x48] sm:$0xff] }
 0x352   : > { %v2386_v46 = vld [vmem:[%s4612_s8 + $0x70] sm:$0xff]  ;;  %v2385_v47 = vld [vmem:[%s4612_s8 + $0x68] sm:$0xff]  ;;  %v2384_v48 = vld [vmem:[%s4612_s8 + $0x60] sm:$0xff] }
 0x353   : > { %v2389_v49 = vld [vmem:[%s4612_s8 + $0x88] sm:$0xff]  ;;  %v2388_v50 = vld [vmem:[%s4612_s8 + $0x80] sm:$0xff]  ;;  %v2387_v51 = vld [vmem:[%s4612_s8 + $0x78] sm:$0xff] }
 0x354   : > { %v2392_v54 = vld [vmem:[%s4612_s8 + $0xa0] sm:$0xff]  ;;  %v2391_v57 = vld [vmem:[%s4612_s8 + $0x98] sm:$0xff]  ;;  %v2390_v53 = vld [vmem:[%s4612_s8 + $0x90] sm:$0xff] }
 0x355   : > { %v2395_v52 = vld [vmem:[%s4612_s8 + $0xb8] sm:$0xff]  ;;  %v2394_v55 = vld [vmem:[%s4612_s8 + $0xb0] sm:$0xff]  ;;  %v2393_v58 = vld [vmem:[%s4612_s8 + $0xa8] sm:$0xff] }
 0x356   : > { %v2398_v59 = vld [vmem:[%s4612_s8 + $0xd0] sm:$0xff]  ;;  %v2397_v56 = vld [vmem:[%s4612_s8 + $0xc8] sm:$0xff]  ;;  %v2396_v60 = vld [vmem:[%s4612_s8 + $0xc0] sm:$0xff] }
 0x357   : > { %v2401_v61 = vld [vmem:[%s4612_s8 + $0xe8] sm:$0xff]  ;;  %v2400_v62 = vld [vmem:[%s4612_s8 + $0xe0] sm:$0xff]  ;;  %v2399_v63 = vld [vmem:[%s4612_s8 + $0xd8] sm:$0xff] }
 0x358   : > { %2463 = vperm.xlu2 %4066, %v2377_v41   ;;  %v2404_v0 = vld [vmem:[%s4612_s8 + $0x100] sm:$0xff]  ;;  %v2403_v1 = vld [vmem:[%s4612_s8 + $0xf8] sm:$0xff]  ;;  %v2402_v2 = vld [vmem:[%s4612_s8 + $0xf0] sm:$0xff] }
 0x359   : > { %2453 = vperm.xlu1 %4065, %v2375_v36   ;;  %2443 = vperm.xlu0 %4064, %v2373_v37   ;;  %v2407_v3 = vld [vmem:[%s4612_s8 + $0x118] sm:$0xff]  ;;  %v2406_v4 = vld [vmem:[%s4612_s8 + $0x110] sm:$0xff]  ;;  %v2405_v8 = vld [vmem:[%s4612_s8 + $0x108] sm:$0xff] }
 0x35a   : > { %v2410_v6 = vld [vmem:[%s4612_s8 + $0x130] sm:$0xff]  ;;  %v2409_v9 = vld [vmem:[%s4612_s8 + $0x128] sm:$0xff]  ;;  %v2408_v5 = vld [vmem:[%s4612_s8 + $0x120] sm:$0xff] }
 0x35b   : > { %v2413_v7 = vld [vmem:[%s4612_s8 + $0x148] sm:$0xff]  ;;  %v2412_v10 = vld [vmem:[%s4612_s8 + $0x140] sm:$0xff]  ;;  %v2411_v11 = vld [vmem:[%s4612_s8 + $0x138] sm:$0xff] }
 0x35c   : > { %v2416_v13 = vld [vmem:[%s4612_s8 + $0x160] sm:$0xff]  ;;  %v2415_v14 = vld [vmem:[%s4612_s8 + $0x158] sm:$0xff]  ;;  %v2414_v15 = vld [vmem:[%s4612_s8 + $0x150] sm:$0xff] }
 0x35d   : > { %v2419_v18 = vld [vmem:[%s4612_s8 + $0x178] sm:$0xff]  ;;  %v2418_v22 = vld [vmem:[%s4612_s8 + $0x170] sm:$0xff]  ;;  %v2417_v25 = vld [vmem:[%s4612_s8 + $0x168] sm:$0xff] }
 0x35e   : > { %v2422_v23 = vld [vmem:[%s4612_s8 + $0x190] sm:$0xff]  ;;  %v2421_v24 = vld [vmem:[%s4612_s8 + $0x188] sm:$0xff]  ;;  %v2420_v26 = vld [vmem:[%s4612_s8 + $0x180] sm:$0xff] }
 0x35f   : > { %v2425_v30 = vld [vmem:[%s4612_s8 + $0x1a8] sm:$0xff]  ;;  %v2424_v31 = vld [vmem:[%s4612_s8 + $0x1a0] sm:$0xff]  ;;  %v2423_v32 = vld [vmem:[%s4612_s8 + $0x198] sm:$0xff] }
 0x360   : > { %2478 = vperm.xlu2 %4066, %v2380_v39   ;;  %v2428_v38 = vld [vmem:[%s4612_s8 + $0x1c0] sm:$0xff]  ;;  %v2427_v41 = vld [vmem:[%s4612_s8 + $0x1b8] sm:$0xff]  ;;  %v2426_v36 = vld [vmem:[%s4612_s8 + $0x1b0] sm:$0xff] }
 0x361   : > { %2473 = vperm.xlu1 %4065, %v2379_v40   ;;  %2468 = vperm.xlu0 %4064, %v2378_v42   ;;  %v2431_v40 = vld [vmem:[%s4612_s8 + $0x1d8] sm:$0xff] }
 0x368   : > { %2493 = vperm.xlu2 %4066, %v2383_v43   ;;  %v2430_v43 = vld [vmem:[%s4612_s8 + $0x1d0] sm:$0xff] }
 0x369   : > { %2488 = vperm.xlu1 %4065, %v2382_v44   ;;  %2483 = vperm.xlu0 %4064, %v2381_v45   ;;  %v2429_v44 = vld [vmem:[%s4612_s8 + $0x1c8] sm:$0xff]  ;;  %v2434_v45 = vld [vmem:[%s4612_s8 + $0x1f0] sm:$0xff] }
 0x370   : > { %2508 = vperm.xlu2 %4066, %v2386_v46  }
 0x371   : > { %2503 = vperm.xlu1 %4065, %v2385_v47   ;;  %2498 = vperm.xlu0 %4064, %v2384_v48   ;;  %v2433_v48 = vld [vmem:[%s4612_s8 + $0x1e8] sm:$0xff] }
 0x378   : > { %2523 = vperm.xlu2 %4066, %v2389_v49   ;;  %v2432_v49 = vld [vmem:[%s4612_s8 + $0x1e0] sm:$0xff] }
 0x379   : > { %2518 = vperm.xlu1 %4065, %v2388_v50   ;;  %2513 = vperm.xlu0 %4064, %v2387_v51   ;;  %v2435_v51 = vld [vmem:[%s4612_s8 + $0x1f8] sm:$0xff] }
 0x380   : > { %2538 = vperm.xlu2 %4066, %v2392_v54  }
 0x381   : > { %2533 = vperm.xlu1 %4065, %v2391_v57   ;;  %2528 = vperm.xlu0 %4064, %v2390_v53  }
 0x388   : > { %2553 = vperm.xlu2 %4066, %v2395_v52  }
 0x389   : > { %2548 = vperm.xlu1 %4065, %v2394_v55   ;;  %2543 = vperm.xlu0 %4064, %v2393_v58  }
 0x390   : > { %2568 = vperm.xlu2 %4066, %v2398_v59  }
 0x391   : > { %2563 = vperm.xlu1 %4065, %v2397_v56   ;;  %2558 = vperm.xlu0 %4064, %v2396_v60   ;;  %v2309_v60 = vld [vmem:[#allocation2 + $0x1b0] sm:$0xff] }
 0x398   : > { %2583 = vperm.xlu2 %4066, %v2401_v61  }
 0x399   : > { %2578 = vperm.xlu1 %4065, %v2400_v62   ;;  %2573 = vperm.xlu0 %4064, %v2399_v63   ;;  %v2308_v62 = vld [vmem:[#allocation2 + $0xb0] sm:$0xff]  ;;  %v2888_v63 = vlaneseq }
 0x3a0   : > { %2598 = vperm.xlu2 %4066, %v2404_v0  }
 0x3a1   : > { %2593 = vperm.xlu1 %4065, %v2403_v1   ;;  %2588 = vperm.xlu0 %4064, %v2402_v2   ;;  %v5167_v2 = vld [vmem:[%s6420_s3] ss:$0 sm:$0xff] }
 0x3a8   : > { %2613 = vperm.xlu2 %4066, %v2407_v3   ;;  %v5169_v3 = vand.u32 127, %v2888_v63 }
 0x3a9   : > { %2608 = vperm.xlu1 %4065, %v2406_v4   ;;  %2603 = vperm.xlu0 %4064, %v2405_v8   ;;  %v2311_v8 = vld [vmem:[#allocation2 + $0x18] sm:$0xff] }
 0x3aa   : > { %v5089_v12 = vpop.permute.xlu2 %2458  ;;  %vm2890_vm0 = vcmp.lt.s32.totalorder %v5169_v3, 4 }
 0x3b0   : > { %2628 = vperm.xlu2 %4066, %v2410_v6  }
 0x3b1   : > { %2623 = vperm.xlu1 %4065, %v2409_v9   ;;  %2618 = vperm.xlu0 %4064, %v2408_v5  }
 0x3b2   : > { %v5099_v19 = vpop.permute.xlu2 %2463 }
 0x3b8   : > { %2643 = vperm.xlu2 %4066, %v2413_v7   ;;  %v2312_v7 = vld [vmem:[#allocation2 + $0x50] sm:$0xff] }
 0x3b9   : > { %2638 = vperm.xlu1 %4065, %v2412_v10   ;;  %2633 = vperm.xlu0 %4064, %v2411_v11   ;;  %v2310_v10 = vld [vmem:[#allocation2 + $0xd8] sm:$0xff] }
 0x3ba   : > { %v5108_v27 = vpop.permute.xlu2 %2478 }
 0x3c0   : > { %2658 = vperm.xlu2 %4066, %v2416_v13  }
 0x3c1   : > { %2653 = vperm.xlu1 %4065, %v2415_v14   ;;  %2648 = vperm.xlu0 %4064, %v2414_v15   ;;  %v2760_v15 = vmul.f32 %v5089_v12, %v2312_v7 }
 0x3c2   : > { %v5117_v33 = vpop.permute.xlu2 %2493 }
 0x3c3   : > { %v5094_v16 = vpop.permute.xlu1 %2448  ;;  %v5096_v17 = vpop.permute.xlu0 %2438 }
 0x3c4   : > { %v2756_v1 = vmul.f32 %v5096_v17, %v2308_v62  ;;  %v2758_v17 = vmul.f32 %v5094_v16, %v2310_v10 }
 0x3c6   : > { %v2824_v5 = vadd.f32 %v5167_v2, %v2756_v1 }
 0x3c8   : > { %2673 = vperm.xlu2 %4066, %v2419_v18   ;;  %v5190_v18 = vsel %vm2890_vm0, %v2824_v5, -1e+30  ;;  %v2320_v5 = vld [vmem:[#allocation2 + $0x120] sm:$0xff] }
 0x3c9   : > { %2668 = vperm.xlu1 %4065, %v2418_v22   ;;  %2663 = vperm.xlu0 %4064, %v2417_v25   ;;  %v2313_v25 = vld [vmem:[#allocation2 + $0x168] sm:$0xff] }
 0x3ca   : > { %v5126_v37 = vpop.permute.xlu2 %2508 }
 0x3cb   : > { %v5103_v20 = vpop.permute.xlu1 %2453  ;;  %v2444_v21 = vpop.permute.xlu0 %2443 }
 0x3cc   : > { %v2757_v0 = vmul.f32 %v2444_v21, %v2309_v60  ;;  %v2759_v11 = vmul.f32 %v5103_v20, %v2311_v8  ;;  %v2826_v20 = vadd.f32 %v5167_v2, %v2758_v17  ;;  %v2828_v21 = vadd.f32 %v5167_v2, %v2760_v15  ;;  %v2321_v8 = vld [vmem:[#allocation2 + $0x150] sm:$0xff] }
 0x3ce   : > { %v2825_v4 = vadd.f32 %v5167_v2, %v2757_v0  ;;  %v2827_v22 = vadd.f32 %v5167_v2, %v2759_v11 }
 0x3d0   : > { %2688 = vperm.xlu2 %4066, %v2422_v23   ;;  %v5183_v14 = vsel %vm2890_vm0, %v2825_v4, -1e+30  ;;  %v2315_v23 = vld [vmem:[#allocation2 + $0x48] sm:$0xff] }
 0x3d1   : > { %2683 = vperm.xlu1 %4065, %v2421_v24   ;;  %2678 = vperm.xlu0 %4064, %v2420_v26   ;;  %v2314_v24 = vld [vmem:[#allocation2 + $0x130] sm:$0xff]  ;;  %v2761_v26 = vmul.f32 %v5099_v19, %v2313_v25  ;;  %v5216_v19 = vsel %vm2890_vm0, %v2828_v21, -1e+30 }
 0x3d2   : > { %v5136_v46 = vpop.permute.xlu2 %2523 }
 0x3d3   : > { %v5110_v28 = vpop.permute.xlu1 %2473  ;;  %v5112_v29 = vpop.permute.xlu0 %2468 }
 0x3d8   : > { %2703 = vperm.xlu2 %4066, %v2425_v30   ;;  %v5203_v30 = vsel %vm2890_vm0, %v2827_v22, -1e+30 }
 0x3d9   : > { %2698 = vperm.xlu1 %4065, %v2424_v31   ;;  %2693 = vperm.xlu0 %4064, %v2423_v32   ;;  %v2763_v31 = vmul.f32 %v5110_v28, %v2315_v23  ;;  %v2762_v32 = vmul.f32 %v5112_v29, %v2314_v24  ;;  %v2324_v24 = vld [vmem:[#allocation2 + $0xe0] sm:$0xff] }
 0x3da   : > { %v5145_v54 = vpop.permute.xlu2 %2538 }
 0x3db   : > { %v5119_v34 = vpop.permute.xlu0 %2483  ;;  %v5121_v35 = vpop.permute.xlu1 %2488  ;;  %v2830_v28 = vadd.f32 %v5167_v2, %v2762_v32  ;;  %v2831_v29 = vadd.f32 %v5167_v2, %v2763_v31 }
 0x3dd   : > { %v5237_v63 = vsel %vm2890_vm0, %v2830_v28, -1e+30 }
 0x3e0   : > { %2718 = vperm.xlu2 %4066, %v2428_v38  }
 0x3e1   : > { %2713 = vperm.xlu1 %4065, %v2427_v41   ;;  %2708 = vperm.xlu0 %4064, %v2426_v36   ;;  %v5212_v41 = vsel %vm2890_vm0, %v2826_v20, -1e+30  ;;  %v2829_v36 = vadd.f32 %v5167_v2, %v2761_v26  ;;  %v2322_v20 = vld [vmem:[#allocation2 + $0x108] sm:$0xff]  ;;  %v2323_v26 = vld [vmem:[#allocation2 + $0x60] sm:$0xff] }
 0x3e2   : > { %v5151_v52 = vpop.permute.xlu2 %2553  ;;  %v2770_v31 = vmul.f32 %v5126_v37, %v2322_v20 }
 0x3e3   : > { %v5128_v39 = vpop.permute.xlu0 %2498  ;;  %v5131_v42 = vpop.permute.xlu1 %2503 }
 0x3e4   : > { %v2769_v11 = vmul.f32 %v5131_v42, %v2321_v8  ;;  %v2768_v15 = vmul.f32 %v5128_v39, %v2320_v5  ;;  %v2838_v37 = vadd.f32 %v5167_v2, %v2770_v31 }
 0x3e6   : > { %v2836_v21 = vadd.f32 %v5167_v2, %v2768_v15  ;;  %v2837_v23 = vadd.f32 %v5167_v2, %v2769_v11  ;;  %v2328_v11 = vld [vmem:[#allocation2 + $0x80] sm:$0xff] }
 0x3e7   : > { %v2776_v20 = vmul.f32 %v5145_v54, %v2328_v11 }
 0x3e8   : > { %2733 = vperm.xlu2 %4066, %v2431_v40   ;;  %v2316_v40 = vld [vmem:[#allocation2 + $0x180] sm:$0xff]  ;;  %v5287_v28 = vsel %vm2890_vm0, %v2836_v21, -1e+30 }
 0x3e9   : > { %2728 = vperm.xlu1 %4065, %v2430_v43   ;;  %2723 = vperm.xlu0 %4064, %v2429_v44   ;;  %v2318_v43 = vld [vmem:[#allocation2 + $0x118] sm:$0xff]  ;;  %v2317_v44 = vld [vmem:[#allocation2 + $0x110] sm:$0xff] }
 0x3ea   : > { %v5157_v59 = vpop.permute.xlu2 %2568 }
 0x3eb   : > { %v5138_v47 = vpop.permute.xlu0 %2513  ;;  %v5142_v50 = vpop.permute.xlu1 %2518 }
 0x3f0   : > { %2748 = vperm.xlu2 %4066, %v2434_v45   ;;  %v2764_v45 = vmul.f32 %v5108_v27, %v2316_v40  ;;  %v5241_v27 = vsel %vm2890_vm0, %v2831_v29, -1e+30  ;;  %v2771_v40 = vmul.f32 %v5138_v47, %v2323_v26  ;;  %v5291_v29 = vsel %vm2890_vm0, %v2837_v23, -1e+30 }
 0x3f1   : > { %2743 = vperm.xlu1 %4065, %v2433_v48   ;;  %2738 = vperm.xlu0 %4064, %v2432_v49   ;;  %v5226_v48 = vsel %vm2890_vm0, %v2829_v36, -1e+30  ;;  %v2766_v49 = vmul.f32 %v5121_v35, %v2318_v43  ;;  %v2319_v35 = vld [vmem:[#allocation2 + $0x98] sm:$0xff]  ;;  %v2772_v36 = vmul.f32 %v5142_v50, %v2324_v24  ;;  %v2325_v43 = vld [vmem:[#allocation2 + $0x188] sm:$0xff] }
 0x3f2   : > { %v5172_v6 = vpop.permute.xlu2 %2583  ;;  %v2767_v7 = vmul.f32 %v5117_v33, %v2319_v35  ;;  %v2839_v47 = vadd.f32 %v5167_v2, %v2771_v40 }
 0x3f3   : > { %v5147_v57 = vpop.permute.xlu0 %2528  ;;  %v5149_v53 = vpop.permute.xlu1 %2533  ;;  %v2834_v4 = vadd.f32 %v5167_v2, %v2766_v49  ;;  %v2327_v49 = vld [vmem:[#allocation2 + $0x140] sm:$0xff] }
 0x3f4   : > { %v2835_v42 = vadd.f32 %v5167_v2, %v2767_v7  ;;  %v5314_v5 = vsel %vm2890_vm0, %v2839_v47, -1e+30  ;;  %v2333_v47 = vld [vmem:[#allocation2 + $0xf8] sm:$0xff] }
 0x3f5   : > { %v5264_v22 = vsel %vm2890_vm0, %v2834_v4, -1e+30  ;;  %v2775_v4 = vmul.f32 %v5149_v53, %v2327_v49 }
 0x3f6   : > { %v5280_v32 = vsel %vm2890_vm0, %v2835_v42, -1e+30  ;;  %v2329_v42 = vld [vmem:[#allocation2 + $0x1a8] sm:$0xff] }
 0x3f7   : > { %v2843_v53 = vadd.f32 %v5167_v2, %v2775_v4 }
 0x3f9   : > { %2753 = vperm.xlu0 %4064, %v2435_v51   ;;  %v2765_v51 = vmul.f32 %v5119_v34, %v2317_v44  ;;  %v2832_v34 = vadd.f32 %v5167_v2, %v2764_v45  ;;  %v2840_v45 = vadd.f32 %v5167_v2, %v2772_v36  ;;  %v5345_v54 = vsel %vm2890_vm0, %v2843_v53, -1e+30 }
 0x3fa   : > { %v5197_v12 = vpop.permute.xlu2 %2598 }
 0x3fb   : > { %v5153_v55 = vpop.permute.xlu0 %2543  ;;  %v5155_v58 = vpop.permute.xlu1 %2548  ;;  %v2833_v1 = vadd.f32 %v5167_v2, %v2765_v51  ;;  %v5253_v10 = vsel %vm2890_vm0, %v2832_v34, -1e+30  ;;  %v2326_v51 = vld [vmem:[#allocation2 + $0x138] sm:$0xff]  ;;  %v2773_v34 = vmul.f32 %v5136_v46, %v2325_v43  ;;  %v5318_v7 = vsel %vm2890_vm0, %v2840_v45, -1e+30  ;;  %v2331_v43 = vld [vmem:[#allocation2 + $0x28] sm:$0xff] }
 0x3fc   : > { %v2774_v8 = vmul.f32 %v5147_v57, %v2326_v51  ;;  %v2330_v57 = vld [vmem:[#allocation2 + $0x1b8] sm:$0xff]  ;;  %v2777_v31 = vmul.f32 %v5153_v55, %v2329_v42  ;;  %v2332_v45 = vld [vmem:[#allocation2 + $0x1e8] sm:$0xff]  ;;  %v2779_v49 = vmul.f32 %v5151_v52, %v2331_v43  ;;  %v2336_v42 = vld [vmem:[#allocation2 + $0x1e0] sm:$0xff] }
 0x3fd   : > { %v5260_v17 = vsel %vm2890_vm0, %v2833_v1, -1e+30  ;;  %v5307_v1 = vsel %vm2890_vm0, %v2838_v37, -1e+30  ;;  %v2841_v46 = vadd.f32 %v5167_v2, %v2773_v34  ;;  %v2778_v26 = vmul.f32 %v5155_v58, %v2330_v57 }
 0x3fe   : > { %v2842_v15 = vadd.f32 %v5167_v2, %v2774_v8  ;;  %v2844_v37 = vadd.f32 %v5167_v2, %v2776_v20  ;;  %v2845_v58 = vadd.f32 %v5167_v2, %v2777_v31  ;;  %v2335_v20 = vld [vmem:[#allocation2 + $0x30] sm:$0xff] }
 0x3ff   : > { %v5332_v24 = vsel %vm2890_vm0, %v2841_v46, -1e+30  ;;  %v2846_v55 = vadd.f32 %v5167_v2, %v2778_v26 }
 0x400   : > { %v5341_v40 = vsel %vm2890_vm0, %v2842_v15, -1e+30  ;;  %v5355_v51 = vsel %vm2890_vm0, %v2844_v37, -1e+30  ;;  %v5366_v11 = vsel %vm2890_vm0, %v2845_v58, -1e+30 }
 0x401   : > { %v5370_v52 = vsel %vm2890_vm0, %v2846_v55, -1e+30 }
 0x402   : > { %v5231_v60 = vpop.permute.xlu2 %2613 }
 0x403   : > { %v5159_v56 = vpop.permute.xlu0 %2558  ;;  %v5161_v61 = vpop.permute.xlu1 %2563 }
 0x404   : > { %v2781_v34 = vmul.f32 %v5161_v61, %v2333_v47  ;;  %v2780_v4 = vmul.f32 %v5159_v56, %v2332_v45  ;;  %v2847_v56 = vadd.f32 %v5167_v2, %v2779_v49  ;;  %v2334_v61 = vld [vmem:[#allocation2 + $0x160] sm:$0xff] }
 0x405   : > { %v2782_v26 = vmul.f32 %v5157_v59, %v2334_v61  ;;  %v2337_v45 = vld [vmem:[#allocation2] sm:$0xff] }
 0x406   : > { %v2848_v53 = vadd.f32 %v5167_v2, %v2780_v4  ;;  %v2849_v57 = vadd.f32 %v5167_v2, %v2781_v34  ;;  %v5382_v31 = vsel %vm2890_vm0, %v2847_v56, -1e+30  ;;  %v2339_v4 = vld [vmem:[#allocation2 + $0x8] sm:$0xff]  ;;  %v2338_v56 = vld [vmem:[#allocation2 + $0xf0] sm:$0xff]  ;;  %v2785_v61 = vmul.f32 %v5172_v6, %v2337_v45  ;;  %v2342_v45 = vld [vmem:[#allocation2 + $0x100] sm:$0xff] }
 0x408   : > { %v5389_v58 = vsel %vm2890_vm0, %v2848_v53, -1e+30  ;;  %v5393_v55 = vsel %vm2890_vm0, %v2849_v57, -1e+30  ;;  %v2853_v6 = vadd.f32 %v5167_v2, %v2785_v61 }
 0x40a   : > { %v5268_v33 = vpop.permute.xlu2 %2628 }
 0x40b   : > { %v5174_v9 = vpop.permute.xlu0 %2573  ;;  %v5179_v13 = vpop.permute.xlu1 %2578 }
 0x40c   : > { %v2784_v37 = vmul.f32 %v5179_v13, %v2336_v42  ;;  %v2783_v43 = vmul.f32 %v5174_v9, %v2335_v20  ;;  %v2850_v13 = vadd.f32 %v5167_v2, %v2782_v26 }
 0x40e   : > { %v2851_v49 = vadd.f32 %v5167_v2, %v2783_v43  ;;  %v2852_v34 = vadd.f32 %v5167_v2, %v2784_v37  ;;  %v5409_v53 = vsel %vm2890_vm0, %v2850_v13, -1e+30  ;;  %v2340_v37 = vld [vmem:[#allocation2 + $0x148] sm:$0xff] }
 0x410   : > { %v5416_v20 = vsel %vm2890_vm0, %v2851_v49, -1e+30  ;;  %v5420_v26 = vsel %vm2890_vm0, %v2852_v34, -1e+30  ;;  %v2341_v49 = vld [vmem:[#allocation2 + $0x1d0] sm:$0xff]  ;;  %v2788_v34 = vmul.f32 %v5197_v12, %v2340_v37 }
 0x411   : > { %6471 = vst [vmem:[#allocation4_spill] sm:$0xff] %v5420_v26 }
 0x412   : > { %v5296_v44 = vpop.permute.xlu2 %2643  ;;  %v2856_v12 = vadd.f32 %v5167_v2, %v2788_v34 }
 0x413   : > { %v5199_v16 = vpop.permute.xlu0 %2588  ;;  %v5208_v38 = vpop.permute.xlu1 %2593 }
 0x414   : > { %v2787_v57 = vmul.f32 %v5208_v38, %v2339_v4  ;;  %v2786_v42 = vmul.f32 %v5199_v16, %v2338_v56  ;;  %v5436_v56 = vsel %vm2890_vm0, %v2853_v6, -1e+30  ;;  %v2343_v6 = vld [vmem:[#allocation2 + $0xc8] sm:$0xff] }
 0x415   : > { %6472 = vst [vmem:[#allocation5_spill] sm:$0xff] %v5436_v56 }
 0x416   : > { %v2854_v16 = vadd.f32 %v5167_v2, %v2786_v42  ;;  %v2855_v13 = vadd.f32 %v5167_v2, %v2787_v57 }
 0x418   : > { %v5443_v42 = vsel %vm2890_vm0, %v2854_v16, -1e+30  ;;  %v5447_v57 = vsel %vm2890_vm0, %v2855_v13, -1e+30  ;;  %v2791_v16 = vmul.f32 %v5231_v60, %v2343_v6  ;;  %v5461_v13 = vsel %vm2890_vm0, %v2856_v12, -1e+30 }
 0x419   : > { %2957 = vmax.xlane.f32.xlu2 %v5183_v14  ;;  %6473 = vst [vmem:[#allocation6_spill] sm:$0xff] %v5447_v57  ;;  %v2346_v6 = vld [vmem:[#allocation2 + $0x20] sm:$0xff] }
 0x41a   : > { %v5326_v21 = vpop.permute.xlu2 %2658  ;;  %6474 = vst [vmem:[#allocation7_spill] sm:$0xff] %v5461_v13  ;;  %v2859_v12 = vadd.f32 %v5167_v2, %v2791_v16 }
 0x41b   : > { %2955 = vmax.xlane.f32.xlu1 %v5190_v18  ;;  %v5233_v62 = vpop.permute.xlu0 %2603  ;;  %v5245_v0 = vpop.permute.xlu1 %2608 }
 0x41c   : > { %v2790_v61 = vmul.f32 %v5245_v0, %v2342_v45  ;;  %v2344_v45 = vld [vmem:[#allocation2 + $0x40] sm:$0xff] }
 0x41e   : > { %v2858_v0 = vadd.f32 %v5167_v2, %v2790_v61 }
 0x420   : > { %v5474_v60 = vsel %vm2890_vm0, %v2858_v0, -1e+30 }
 0x421   : > { %2961 = vmax.xlane.f32.xlu2 %v5203_v30  ;;  %6476 = vst [vmem:[#allocation9_spill] sm:$0xff] %v5474_v60 }
 0x422   : > { %v5360_v8 = vpop.permute.xlu2 %2673 }
 0x423   : > { %2959 = vmax.xlane.f32.xlu0 %v5212_v41  ;;  %2963 = vmax.xlane.f32.xlu1 %v5216_v19  ;;  %v5270_v25 = vpop.permute.xlu0 %2618  ;;  %v5273_v39 = vpop.permute.xlu1 %2623 }
 0x429   : > { %2965 = vmax.xlane.f32.xlu2 %v5226_v48 }
 0x42a   : > { %v5397_v59 = vpop.permute.xlu2 %2688 }
 0x42b   : > { %2967 = vmax.xlane.f32.xlu0 %v5237_v63  ;;  %2969 = vmax.xlane.f32.xlu1 %v5241_v27  ;;  %v5298_v50 = vpop.permute.xlu0 %2633  ;;  %v5303_v35 = vpop.permute.xlu1 %2638 }
 0x431   : > { %2971 = vmax.xlane.f32.xlu2 %v5253_v10 }
 0x432   : > { %v5425_v43 = vpop.permute.xlu2 %2703 }
 0x433   : > { %2973 = vmax.xlane.f32.xlu0 %v5260_v17  ;;  %2975 = vmax.xlane.f32.xlu1 %v5264_v22  ;;  %v5328_v23 = vpop.permute.xlu0 %2648  ;;  %v5337_v36 = vpop.permute.xlu1 %2653 }
 0x439   : > { %2977 = vmax.xlane.f32.xlu2 %v5280_v32 }
 0x43b   : > { %2979 = vmax.xlane.f32.xlu0 %v5287_v28  ;;  %2981 = vmax.xlane.f32.xlu1 %v5291_v29  ;;  %v5362_v46 = vpop.permute.xlu0 %2663  ;;  %v5374_v15 = vpop.permute.xlu1 %2668 }
 0x441   : > { %2983 = vmax.xlane.f32.xlu2 %v5307_v1 }
 0x443   : > { %2985 = vmax.xlane.f32.xlu0 %v5314_v5  ;;  %2987 = vmax.xlane.f32.xlu1 %v5318_v7  ;;  %v5399_v47 = vpop.permute.xlu0 %2678  ;;  %v5402_v9 = vpop.permute.xlu1 %2683 }
 0x449   : > { %2989 = vmax.xlane.f32.xlu2 %v5332_v24 }
 0x44b   : > { %2991 = vmax.xlane.f32.xlu0 %v5341_v40  ;;  %2993 = vmax.xlane.f32.xlu1 %v5345_v54  ;;  %v5427_v38 = vpop.permute.xlu0 %2693  ;;  %v5432_v4 = vpop.permute.xlu1 %2698 }
 0x451   : > { %2995 = vmax.xlane.f32.xlu2 %v5355_v51 }
 0x453   : > { %2997 = vmax.xlane.f32.xlu0 %v5366_v11  ;;  %2999 = vmax.xlane.f32.xlu1 %v5370_v52 }
 0x459   : > { %3001 = vmax.xlane.f32.xlu2 %v5382_v31 }
 0x45b   : > { %3003 = vmax.xlane.f32.xlu0 %v5389_v58  ;;  %3005 = vmax.xlane.f32.xlu1 %v5393_v55 }
 0x461   : > { %3007 = vmax.xlane.f32.xlu2 %v5409_v53 }
 0x463   : > { %3009 = vmax.xlane.f32.xlu0 %v5416_v20  ;;  %3011 = vmax.xlane.f32.xlu1 %v5420_v26  ;;  %v2789_v26 = vmul.f32 %v5233_v62, %v2341_v49  ;;  %v2345_v62 = vld [vmem:[#allocation2 + $0x1f8] sm:$0xff]  ;;  %v5455_v49 = vpop.permute.xlu2 %2718 }
 0x464   : > { %v2793_v34 = vmul.f32 %v5273_v39, %v2345_v62  ;;  %v2348_v62 = vld [vmem:[#allocation2 + $0x1a0] sm:$0xff] }
 0x465   : > { %v2857_v37 = vadd.f32 %v5167_v2, %v2789_v26  ;;  %v2792_v26 = vmul.f32 %v5270_v25, %v2344_v45  ;;  %v2347_v45 = vld [vmem:[#allocation2 + $0x128] sm:$0xff]  ;;  %v2796_v0 = vmul.f32 %v5303_v35, %v2348_v62  ;;  %v2349_v35 = vld [vmem:[#allocation2 + $0x1f0] sm:$0xff]  ;;  %v2351_v62 = vld [vmem:[#allocation2 + $0x78] sm:$0xff] }
 0x466   : > { %v2861_v25 = vadd.f32 %v5167_v2, %v2793_v34 }
 0x467   : > { %v5470_v61 = vsel %vm2890_vm0, %v2857_v37, -1e+30  ;;  %v2860_v39 = vadd.f32 %v5167_v2, %v2792_v26  ;;  %v2794_v37 = vmul.f32 %v5268_v33, %v2346_v6  ;;  %v2864_v6 = vadd.f32 %v5167_v2, %v2796_v0 }
 0x468   : > { %6475 = vst [vmem:[#allocation8_spill] sm:$0xff] %v5470_v61  ;;  %v5499_v33 = vsel %vm2890_vm0, %v2861_v25, -1e+30 }
 0x469   : > { %3013 = vmax.xlane.f32.xlu2 %v5436_v56  ;;  %v5457_v56 = vpop.permute.xlu0 %2708  ;;  %v5495_v34 = vsel %vm2890_vm0, %v2860_v39, -1e+30  ;;  %6478 = vst [vmem:[#allocation11_spill] sm:$0xff] %v5499_v33  ;;  %v2350_v39 = vld [vmem:[#allocation2 + $0xe8] sm:$0xff] }
 0x46a   : > { %6477 = vst [vmem:[#allocation10_spill] sm:$0xff] %v5495_v34 }
 0x46b   : > { %3015 = vmax.xlane.f32.xlu0 %v5443_v42  ;;  %3017 = vmax.xlane.f32.xlu1 %v5447_v57  ;;  %v5466_v57 = vpop.permute.xlu1 %2713  ;;  %v5489_v16 = vpop.permute.xlu2 %2733 }
 0x471   : > { %3019 = vmax.xlane.f32.xlu2 %v5461_v13  ;;  %v5484_v13 = vsel %vm2890_vm0, %v2859_v12, -1e+30 }
 0x473   : > { %3021 = vmax.xlane.f32.xlu0 %v5470_v61  ;;  %3023 = vmax.xlane.f32.xlu1 %v5474_v60  ;;  %v2795_v60 = vmul.f32 %v5298_v50, %v2347_v45  ;;  %v5491_v61 = vpop.permute.xlu0 %2723  ;;  %v5503_v26 = vpop.permute.xlu1 %2728  ;;  %v2862_v50 = vadd.f32 %v5167_v2, %v2794_v37  ;;  %v2797_v45 = vmul.f32 %v5296_v44, %v2349_v35 }
 0x474   : > { %v5526_v44 = vpop.permute.xlu2 %2748 }
 0x475   : > { %v2863_v12 = vadd.f32 %v5167_v2, %v2795_v60  ;;  %v5511_v25 = vsel %vm2890_vm0, %v2862_v50, -1e+30  ;;  %v5522_v60 = vsel %vm2890_vm0, %v2864_v6, -1e+30  ;;  %v2352_v50 = vld [vmem:[#allocation2 + $0x70] sm:$0xff] }
 0x476   : > { %6479 = vst [vmem:[#allocation12_spill] sm:$0xff] %v5511_v25  ;;  %v2353_v6 = vld [vmem:[#allocation2 + $0x90] sm:$0xff] }
 0x477   : > { %v5518_v37 = vsel %vm2890_vm0, %v2863_v12, -1e+30  ;;  %6481 = vst [vmem:[#allocation14_spill] sm:$0xff] %v5522_v60 }
 0x478   : > { %6480 = vst [vmem:[#allocation13_spill] sm:$0xff] %v5518_v37 }
 0x479   : > { %3025 = vmax.xlane.f32.xlu2 %v5484_v13 }
 0x47b   : > { %3027 = vmax.xlane.f32.xlu0 %v5495_v34  ;;  %3029 = vmax.xlane.f32.xlu1 %v5499_v33  ;;  %v2799_v33 = vmul.f32 %v5337_v36, %v2351_v62  ;;  %v2798_v34 = vmul.f32 %v5328_v23, %v2350_v39  ;;  %v5528_v0 = vpop.permute.xlu0 %2738  ;;  %v2865_v36 = vadd.f32 %v5167_v2, %v2797_v45  ;;  %v5531_v23 = vpop.permute.xlu1 %2743  ;;  %v2354_v62 = vld [vmem:[#allocation2 + $0x1d8] sm:$0xff] }
 0x47c   : > { %v2800_v39 = vmul.f32 %v5326_v21, %v2352_v50  ;;  %v2801_v45 = vmul.f32 %v5362_v46, %v2353_v6 }
 0x47d   : > { %v2866_v35 = vadd.f32 %v5167_v2, %v2798_v34  ;;  %v2867_v12 = vadd.f32 %v5167_v2, %v2799_v33 }
 0x47e   : > { %v2868_v33 = vadd.f32 %v5167_v2, %v2800_v39  ;;  %v2869_v50 = vadd.f32 %v5167_v2, %v2801_v45 }
 0x47f   : > { %v5549_v34 = vsel %vm2890_vm0, %v2867_v12, -1e+30  ;;  %v2356_v12 = vld [vmem:[#allocation2 + $0xb8] sm:$0xff] }
 0x480   : > { %6484 = vst [vmem:[#allocation17_spill] sm:$0xff] %v5549_v34 }
 0x481   : > { %3031 = vmax.xlane.f32.xlu2 %v5511_v25  ;;  %v5545_v25 = vsel %vm2890_vm0, %v2866_v35, -1e+30 }
 0x482   : > { %6483 = vst [vmem:[#allocation16_spill] sm:$0xff] %v5545_v25 }
 0x483   : > { %3033 = vmax.xlane.f32.xlu0 %v5518_v37  ;;  %3035 = vmax.xlane.f32.xlu1 %v5522_v60  ;;  %v5538_v60 = vsel %vm2890_vm0, %v2865_v36, -1e+30  ;;  %v2802_v37 = vmul.f32 %v5374_v15, %v2354_v62  ;;  %v2355_v36 = vld [vmem:[#allocation2 + $0xd0] sm:$0xff]  ;;  %v5556_v15 = vpop.permute.xlu0 %2753  ;;  %v2357_v62 = vld [vmem:[#allocation2 + $0x88] sm:$0xff] }
 0x484   : > { %6482 = vst [vmem:[#allocation15_spill] sm:$0xff] %v5538_v60  ;;  %v2803_v6 = vmul.f32 %v5360_v8, %v2355_v36  ;;  %v2805_v39 = vmul.f32 %v5402_v9, %v2357_v62  ;;  %v2360_v62 = vld [vmem:[#allocation2 + $0x170] sm:$0xff] }
 0x485   : > { %v2870_v35 = vadd.f32 %v5167_v2, %v2802_v37 }
 0x486   : > { %v2871_v45 = vadd.f32 %v5167_v2, %v2803_v6  ;;  %v2808_v6 = vmul.f32 %v5432_v4, %v2360_v62  ;;  %v2363_v62 = vld [vmem:[#allocation2 + $0x190] sm:$0xff] }
 0x487   : > { %v5576_v37 = vsel %vm2890_vm0, %v2870_v35, -1e+30  ;;  %v2359_v35 = vld [vmem:[#allocation2 + $0x1c8] sm:$0xff] }
 0x488   : > { %6487 = vst [vmem:[#allocation20_spill] sm:$0xff] %v5576_v37 }
 0x489   : > { %3037 = vmax.xlane.f32.xlu2 %v5538_v60  ;;  %v5572_v60 = vsel %vm2890_vm0, %v2869_v50, -1e+30  ;;  %v2873_v50 = vadd.f32 %v5167_v2, %v2805_v39 }
 0x48a   : > { %6486 = vst [vmem:[#allocation19_spill] sm:$0xff] %v5572_v60 }
 0x48b   : > { %3039 = vmax.xlane.f32.xlu0 %v5545_v25  ;;  %3041 = vmax.xlane.f32.xlu1 %v5549_v34  ;;  %v5565_v34 = vsel %vm2890_vm0, %v2868_v33, -1e+30  ;;  %v2804_v25 = vmul.f32 %v5399_v47, %v2356_v12  ;;  %v2358_v33 = vld [vmem:[#allocation2 + $0xa8] sm:$0xff] }
 0x48c   : > { %v5553_v21 = vpop.xlane.xlu2 %2957  ;;  %6485 = vst [vmem:[#allocation18_spill] sm:$0xff] %v5565_v34  ;;  %v2806_v12 = vmul.f32 %v5397_v59, %v2358_v33 }
 0x48d   : > { %v2872_v36 = vadd.f32 %v5167_v2, %v2804_v25  ;;  %v5603_v25 = vsel %vm2890_vm0, %v2873_v50, -1e+30  ;;  %v2362_v50 = vld [vmem:[#allocation2 + $0x68] sm:$0xff] }
 0x48e   : > { %v5558_v46 = vpop.xlane.xlu1 %2955  ;;  %6490 = vst [vmem:[#allocation23_spill] sm:$0xff] %v5603_v25  ;;  %v2874_v39 = vadd.f32 %v5167_v2, %v2806_v12  ;;  %v2811_v12 = vmul.f32 %v5466_v57, %v2363_v62  ;;  %v2366_v62 = vld [vmem:[#allocation2 + $0xc0] sm:$0xff] }
 0x491   : > { %3043 = vmax.xlane.f32.xlu2 %v5565_v34  ;;  %v5599_v34 = vsel %vm2890_vm0, %v2872_v36, -1e+30  ;;  %v2876_v36 = vadd.f32 %v5167_v2, %v2808_v6 }
 0x492   : > { %6489 = vst [vmem:[#allocation22_spill] sm:$0xff] %v5599_v34 }
 0x493   : > { %3045 = vmax.xlane.f32.xlu0 %v5572_v60  ;;  %3047 = vmax.xlane.f32.xlu1 %v5576_v37  ;;  %v5592_v37 = vsel %vm2890_vm0, %v2871_v45, -1e+30  ;;  %v2807_v60 = vmul.f32 %v5427_v38, %v2359_v35  ;;  %v2361_v45 = vld [vmem:[#allocation2 + $0x178] sm:$0xff] }
 0x494   : > { %v5580_v8 = vpop.xlane.xlu2 %2961  ;;  %6488 = vst [vmem:[#allocation21_spill] sm:$0xff] %v5592_v37  ;;  %v2809_v35 = vmul.f32 %v5425_v43, %v2361_v45 }
 0x495   : > { %v2875_v33 = vadd.f32 %v5167_v2, %v2807_v60  ;;  %v5630_v60 = vsel %vm2890_vm0, %v2876_v36, -1e+30  ;;  %v2365_v36 = vld [vmem:[#allocation2 + $0x38] sm:$0xff] }
 0x496   : > { %v5583_v9 = vpop.xlane.xlu0 %2959  ;;  %v5585_v47 = vpop.xlane.xlu1 %2963  ;;  %6493 = vst [vmem:[#allocation26_spill] sm:$0xff] %v5630_v60  ;;  %v2877_v6 = vadd.f32 %v5167_v2, %v2809_v35  ;;  %v2814_v35 = vmul.f32 %v5503_v26, %v2366_v62  ;;  %v2369_v62 = vld [vmem:[#allocation2 + $0x10] sm:$0xff] }
 0x499   : > { %3049 = vmax.xlane.f32.xlu2 %v5592_v37  ;;  %v5626_v37 = vsel %vm2890_vm0, %v2875_v33, -1e+30  ;;  %v2879_v33 = vadd.f32 %v5167_v2, %v2811_v12 }
 0x49a   : > { %6492 = vst [vmem:[#allocation25_spill] sm:$0xff] %v5626_v37 }
 0x49b   : > { %3051 = vmax.xlane.f32.xlu0 %v5599_v34  ;;  %3053 = vmax.xlane.f32.xlu1 %v5603_v25  ;;  %v5619_v25 = vsel %vm2890_vm0, %v2874_v39, -1e+30  ;;  %v2810_v34 = vmul.f32 %v5457_v56, %v2362_v50  ;;  %v2364_v39 = vld [vmem:[#allocation2 + $0x198] sm:$0xff] }
 0x49c   : > { %v5607_v59 = vpop.xlane.xlu2 %2965  ;;  %6491 = vst [vmem:[#allocation24_spill] sm:$0xff] %v5619_v25  ;;  %v2812_v50 = vmul.f32 %v5455_v49, %v2364_v39 }
 0x49d   : > { %v2878_v45 = vadd.f32 %v5167_v2, %v2810_v34  ;;  %v5657_v34 = vsel %vm2890_vm0, %v2879_v33, -1e+30  ;;  %v2368_v33 = vld [vmem:[#allocation2 + $0x158] sm:$0xff] }
 0x49e   : > { %v5610_v4 = vpop.xlane.xlu0 %2967  ;;  %v5612_v38 = vpop.xlane.xlu1 %2969  ;;  %6495 = vst [vmem:[#allocation28_spill] sm:$0xff] %v5657_v34  ;;  %v2880_v12 = vadd.f32 %v5167_v2, %v2812_v50  ;;  %v5677_v50 = vsub.f32 %v5190_v18, %v5558_v46 }
 0x4a1   : > { %3055 = vmax.xlane.f32.xlu2 %v5619_v25  ;;  %v5653_v25 = vsel %vm2890_vm0, %v2878_v45, -1e+30  ;;  %v2882_v45 = vadd.f32 %v5167_v2, %v2814_v35 }
 0x4a2   : > { %6494 = vst [vmem:[#allocation27_spill] sm:$0xff] %v5653_v25 }
 0x4a3   : > { %3057 = vmax.xlane.f32.xlu0 %v5626_v37  ;;  %3059 = vmax.xlane.f32.xlu1 %v5630_v60  ;;  %v5646_v60 = vsel %vm2890_vm0, %v2877_v6, -1e+30  ;;  %v2813_v37 = vmul.f32 %v5491_v61, %v2365_v36  ;;  %v2367_v6 = vld [vmem:[#allocation2 + $0x1c0] sm:$0xff] }
 0x4a4   : > { %v5634_v43 = vpop.xlane.xlu2 %2971  ;;  %v2815_v36 = vmul.f32 %v5489_v16, %v2367_v6  ;;  %v5688_v16 = vsel %vm2890_vm0, %v2882_v45, -1e+30 }
 0x4a5   : > { %v2881_v39 = vadd.f32 %v5167_v2, %v2813_v37  ;;  %v2816_v37 = vmul.f32 %v5528_v0, %v2368_v33  ;;  %6497 = vst [vmem:[#allocation30_spill] sm:$0xff] %v5688_v16  ;;  %v5704_v33 = vsub.f32 %v5183_v14, %v5553_v21 }
 0x4a6   : > { %v5637_v57 = vpop.xlane.xlu0 %2973  ;;  %v5639_v56 = vpop.xlane.xlu1 %2975  ;;  %v2883_v46 = vadd.f32 %v5167_v2, %v2815_v36  ;;  %v5709_v36 = vsub.f32 %v5203_v30, %v5580_v8 }
 0x4a7   : > { %v5684_v35 = vsel %vm2890_vm0, %v2881_v39, -1e+30  ;;  %v2884_v39 = vadd.f32 %v5167_v2, %v2816_v37  ;;  %v5717_v37 = vsub.f32 %v5212_v41, %v5583_v9  ;;  %v3149_v21 = vmul.f32 1.442695, %v5704_v33 }
 0x4a8   : > { %6496 = vst [vmem:[#allocation29_spill] sm:$0xff] %v5684_v35  ;;  %v3153_v41 = vmul.f32 1.442695, %v5709_v36 }
 0x4a9   : > { %3061 = vmax.xlane.f32.xlu2 %v5646_v60  ;;  %v3151_v9 = vmul.f32 1.442695, %v5717_v37 }
 0x4ab   : > { %3063 = vmax.xlane.f32.xlu0 %v5653_v25  ;;  %3065 = vmax.xlane.f32.xlu1 %v5657_v34  ;;  %v5673_v34 = vsel %vm2890_vm0, %v2880_v12, -1e+30  ;;  %v2817_v25 = vmul.f32 %v5531_v23, %v2369_v62  ;;  %v2370_v12 = vld [vmem:[#allocation2 + $0x58] sm:$0xff]  ;;  %v3147_v23 = vmul.f32 1.442695, %v5677_v50  ;;  %v2371_v62 = vld [vmem:[#allocation2 + $0xa0] sm:$0xff] }
 0x4ac   : > { %v5661_v49 = vpop.xlane.xlu2 %2977  ;;  %v2819_v14 = vmul.f32 %v5556_v15, %v2371_v62  ;;  %v5756_v62 = vsub.f32 %v5237_v63, %v5610_v4 }
 0x4ad   : > { %v2885_v45 = vadd.f32 %v5167_v2, %v2817_v25  ;;  %4068 = vpow2.f32 %v3147_v23 }
 0x4ae   : > { %v5664_v26 = vpop.xlane.xlu0 %2979  ;;  %v5666_v61 = vpop.xlane.xlu1 %2981  ;;  %4070 = vpow2.f32 %v3149_v21  ;;  %v3159_v4 = vmul.f32 1.442695, %v5756_v62 }
 0x4af   : > { %v5727_v30 = vsel %vm2890_vm0, %v2885_v45, -1e+30  ;;  %4072 = vpow2.f32 %v3153_v41  ;;  %v5748_v45 = vsub.f32 %v5226_v48, %v5607_v59 }
 0x4b0   : > { %4074 = vpow2.f32 %v3151_v9  ;;  %v5777_v9 = vsub.f32 %v5241_v27, %v5612_v38 }
 0x4b1   : > { %3067 = vmax.xlane.f32.xlu2 %v5673_v34 }
 0x4b2   : > { %v3161_v38 = vmul.f32 1.442695, %v5777_v9 }
 0x4b3   : > { %3069 = vmax.xlane.f32.xlu0 %v5684_v35  ;;  %3071 = vmax.xlane.f32.xlu1 %v5688_v16  ;;  %v2818_v16 = vmul.f32 %v5526_v44, %v2370_v12  ;;  %v5713_v35 = vsel %vm2890_vm0, %v2883_v46, -1e+30  ;;  %v5723_v44 = vsel %vm2890_vm0, %v2884_v39, -1e+30  ;;  %v2887_v12 = vadd.f32 %v5167_v2, %v2819_v14  ;;  %v4069_v23 = vpop.eup %4068 }
 0x4b4   : > { %v5692_v18 = vpop.xlane.xlu2 %2983  ;;  %v5744_v39 = vsub.f32 %v5216_v19, %v5585_v47  ;;  %v3275_v19 = vsel %vm2890_vm0, %v4069_v23, 0.0  ;;  %v3157_v47 = vmul.f32 1.442695, %v5748_v45  ;;  %v4071_v63 = vpop.eup %4070 }
 0x4b5   : > { %v2886_v15 = vadd.f32 %v5167_v2, %v2818_v16  ;;  %v5761_v2 = vsel %vm2890_vm0, %v2887_v12, -1e+30  ;;  %v4073_v14 = vpop.eup %4072  ;;  %v5781_v12 = vsub.f32 %v5253_v10, %v5634_v43  ;;  %v3276_v23 = vsel %vm2890_vm0, %v4071_v63, 0.0 }
 0x4b6   : > { %v5696_v0 = vpop.xlane.xlu0 %2985  ;;  %v5698_v6 = vpop.xlane.xlu1 %2987  ;;  %v3155_v48 = vmul.f32 1.442695, %v5744_v39  ;;  %v3278_v27 = vsel %vm2890_vm0, %v4073_v14, 0.0  ;;  %v5804_v14 = vsub.f32 %v5264_v22, %v5639_v56 }
 0x4b7   : > { %v5752_v16 = vsel %vm2890_vm0, %v2886_v15, -1e+30  ;;  %v4075_v15 = vpop.eup %4074  ;;  %v3163_v10 = vmul.f32 1.442695, %v5781_v12 }
 0x4b8   : > { %4076 = vpow2.f32 %v3155_v48  ;;  %v3277_v48 = vsel %vm2890_vm0, %v4075_v15, 0.0  ;;  %v3167_v56 = vmul.f32 1.442695, %v5804_v14 }
 0x4b9   : > { %3073 = vmax.xlane.f32.xlu2 %v5713_v35  ;;  %4078 = vpow2.f32 %v3157_v47 }
 0x4ba   : > { %4080 = vpow2.f32 %v3159_v4 }
 0x4bb   : > { %3075 = vmax.xlane.f32.xlu0 %v5723_v44  ;;  %3077 = vmax.xlane.f32.xlu1 %v5727_v30  ;;  %4082 = vpow2.f32 %v3161_v38 }
 0x4bc   : > { %v5733_v8 = vpop.xlane.xlu2 %2989  ;;  %4084 = vpow2.f32 %v3163_v10 }
 0x4be   : > { %v5737_v25 = vpop.xlane.xlu0 %2991  ;;  %v5739_v46 = vpop.xlane.xlu1 %2993 }
 0x4bf   : > { %v4077_v47 = vpop.eup %4076 }
 0x4c1   : > { %3079 = vmax.xlane.f32.xlu2 %v5752_v16 }
 0x4c3   : > { %3081 = vmax.xlane.f32.xlu0 %v5761_v2  ;;  %3339 = vadd.xlane.f32.xlu1 %v3275_v19  ;;  %v5787_v19 = vsub.f32 %v5260_v17, %v5637_v57  ;;  %v4079_v17 = vpop.eup %4078 }
 0x4c4   : > { %v5768_v59 = vpop.xlane.xlu2 %2995  ;;  %v4081_v15 = vpop.eup %4080  ;;  %v3280_v38 = vsel %vm2890_vm0, %v4079_v17, 0.0 }
 0x4c5   : > { %v3165_v63 = vmul.f32 1.442695, %v5787_v19  ;;  %v3281_v22 = vsel %vm2890_vm0, %v4081_v15, 0.0  ;;  %v4083_v10 = vpop.eup %4082  ;;  %v5831_v15 = vsub.f32 %v5291_v29, %v5666_v61 }
 0x4c6   : > { %v5771_v21 = vpop.xlane.xlu0 %2997  ;;  %v5773_v41 = vpop.xlane.xlu1 %2999 }
 0x4c7   : > { %4086 = vpow2.f32 %v3165_v63  ;;  %v3173_v61 = vmul.f32 1.442695, %v5831_v15 }
 0x4c8   : > { %4088 = vpow2.f32 %v3167_v56 }
 0x4c9   : > { %3341 = vadd.xlane.f32.xlu2 %v3276_v23  ;;  %v5808_v23 = vsub.f32 %v5280_v32, %v5661_v49 }
 0x4cb   : > { %3343 = vadd.xlane.f32.xlu0 %v3277_v48  ;;  %3345 = vadd.xlane.f32.xlu1 %v3278_v27  ;;  %v3279_v48 = vsel %vm2890_vm0, %v4077_v47, 0.0  ;;  %v5814_v27 = vsub.f32 %v5287_v28, %v5664_v26  ;;  %v3169_v32 = vmul.f32 1.442695, %v5808_v23  ;;  %v4085_v28 = vpop.eup %4084 }
 0x4cc   : > { %v5795_v43 = vpop.xlane.xlu2 %3001  ;;  %v3283_v56 = vsel %vm2890_vm0, %v4085_v28, 0.0 }
 0x4cd   : > { %v3171_v47 = vmul.f32 1.442695, %v5814_v27  ;;  %v4087_v17 = vpop.eup %4086  ;;  %4090 = vpow2.f32 %v3169_v32 }
 0x4ce   : > { %v5798_v57 = vpop.xlane.xlu0 %3003  ;;  %v5800_v4 = vpop.xlane.xlu1 %3005  ;;  %v3284_v29 = vsel %vm2890_vm0, %v4087_v17, 0.0  ;;  %v5858_v17 = vsub.f32 %v5318_v7, %v5698_v6 }
 0x4cf   : > { %4092 = vpow2.f32 %v3171_v47  ;;  %v4089_v32 = vpop.eup %4088 }
 0x4d0   : > { %4094 = vpow2.f32 %v3173_v61  ;;  %v3179_v6 = vmul.f32 1.442695, %v5858_v17 }
 0x4d1   : > { %3347 = vadd.xlane.f32.xlu2 %v3279_v48  ;;  %v5835_v48 = vsub.f32 %v5307_v1, %v5692_v18 }
 0x4d3   : > { %3349 = vadd.xlane.f32.xlu0 %v3280_v38  ;;  %3351 = vadd.xlane.f32.xlu1 %v3281_v22  ;;  %v3282_v38 = vsel %vm2890_vm0, %v4083_v10, 0.0  ;;  %v5841_v22 = vsub.f32 %v5314_v5, %v5696_v0  ;;  %v3175_v1 = vmul.f32 1.442695, %v5835_v48  ;;  %v4091_v5 = vpop.eup %4090 }
 0x4d4   : > { %v5822_v49 = vpop.xlane.xlu2 %3007  ;;  %v3286_v61 = vsel %vm2890_vm0, %v4091_v5, 0.0 }
 0x4d5   : > { %v3177_v10 = vmul.f32 1.442695, %v5841_v22  ;;  %v4093_v28 = vpop.eup %4092  ;;  %4096 = vpow2.f32 %v3175_v1 }
 0x4d6   : > { %v5825_v26 = vpop.xlane.xlu0 %3009  ;;  %v5827_v63 = vpop.xlane.xlu1 %3011  ;;  %v3287_v7 = vsel %vm2890_vm0, %v4093_v28, 0.0  ;;  %v5885_v28 = vsub.f32 %v5345_v54, %v5739_v46 }
 0x4d7   : > { %4098 = vpow2.f32 %v3177_v10  ;;  %v4095_v1 = vpop.eup %4094 }
 0x4d8   : > { %4100 = vpow2.f32 %v3179_v6  ;;  %v3185_v46 = vmul.f32 1.442695, %v5885_v28 }
 0x4d9   : > { %3353 = vadd.xlane.f32.xlu2 %v3282_v38  ;;  %v5862_v38 = vsub.f32 %v5332_v24, %v5733_v8 }
 0x4db   : > { %3355 = vadd.xlane.f32.xlu0 %v3283_v56  ;;  %3357 = vadd.xlane.f32.xlu1 %v3284_v29  ;;  %v3285_v56 = vsel %vm2890_vm0, %v4089_v32, 0.0  ;;  %v5868_v29 = vsub.f32 %v5341_v40, %v5737_v25  ;;  %v3181_v24 = vmul.f32 1.442695, %v5862_v38  ;;  %v4097_v40 = vpop.eup %4096 }
 0x4dc   : > { %v5849_v18 = vpop.xlane.xlu2 %3013  ;;  %v3289_v6 = vsel %vm2890_vm0, %v4097_v40, 0.0 }
 0x4dd   : > { %v3183_v32 = vmul.f32 1.442695, %v5868_v29  ;;  %v4099_v5 = vpop.eup %4098  ;;  %4102 = vpow2.f32 %v3181_v24 }
 0x4de   : > { %v5852_v0 = vpop.xlane.xlu0 %3015  ;;  %v5854_v47 = vpop.xlane.xlu1 %3017  ;;  %v3290_v54 = vsel %vm2890_vm0, %v4099_v5, 0.0  ;;  %v5912_v5 = vsub.f32 %v5370_v52, %v5773_v41 }
 0x4df   : > { %4104 = vpow2.f32 %v3183_v32  ;;  %v4101_v24 = vpop.eup %4100 }
 0x4e0   : > { %4106 = vpow2.f32 %v3185_v46  ;;  %v3191_v41 = vmul.f32 1.442695, %v5912_v5 }
 0x4e1   : > { %3359 = vadd.xlane.f32.xlu2 %v3285_v56  ;;  %v5889_v56 = vsub.f32 %v5355_v51, %v5768_v59 }
 0x4e3   : > { %3361 = vadd.xlane.f32.xlu0 %v3286_v61  ;;  %3363 = vadd.xlane.f32.xlu1 %v3287_v7  ;;  %v3288_v61 = vsel %vm2890_vm0, %v4095_v1, 0.0  ;;  %v5895_v7 = vsub.f32 %v5366_v11, %v5771_v21  ;;  %v3187_v51 = vmul.f32 1.442695, %v5889_v56  ;;  %v4103_v11 = vpop.eup %4102 }
 0x4e4   : > { %v5876_v8 = vpop.xlane.xlu2 %3019  ;;  %v3292_v46 = vsel %vm2890_vm0, %v4103_v11, 0.0 }
 0x4e5   : > { %v3189_v1 = vmul.f32 1.442695, %v5895_v7  ;;  %v4105_v40 = vpop.eup %4104  ;;  %4108 = vpow2.f32 %v3187_v51 }
 0x4e6   : > { %v5879_v25 = vpop.xlane.xlu0 %3021  ;;  %v5881_v10 = vpop.xlane.xlu1 %3023  ;;  %v3293_v52 = vsel %vm2890_vm0, %v4105_v40, 0.0  ;;  %v5939_v40 = vsub.f32 %v5393_v55, %v5800_v4 }
 0x4e7   : > { %4110 = vpow2.f32 %v3189_v1  ;;  %v4107_v51 = vpop.eup %4106 }
 0x4e8   : > { %4112 = vpow2.f32 %v3191_v41  ;;  %v3197_v4 = vmul.f32 1.442695, %v5939_v40 }
 0x4e9   : > { %3365 = vadd.xlane.f32.xlu2 %v3288_v61  ;;  %v5916_v61 = vsub.f32 %v5382_v31, %v5795_v43 }
 0x4eb   : > { %3367 = vadd.xlane.f32.xlu0 %v3289_v6  ;;  %3369 = vadd.xlane.f32.xlu1 %v3290_v54  ;;  %v3291_v6 = vsel %vm2890_vm0, %v4101_v24, 0.0  ;;  %v5922_v54 = vsub.f32 %v5389_v58, %v5798_v57  ;;  %v3193_v31 = vmul.f32 1.442695, %v5916_v61  ;;  %v4109_v58 = vpop.eup %4108 }
 0x4ec   : > { %v5903_v59 = vpop.xlane.xlu2 %3025  ;;  %v3295_v41 = vsel %vm2890_vm0, %v4109_v58, 0.0 }
 0x4ed   : > { %v3195_v24 = vmul.f32 1.442695, %v5922_v54  ;;  %v4111_v11 = vpop.eup %4110  ;;  %4114 = vpow2.f32 %v3193_v31 }
 0x4ee   : > { %v5906_v21 = vpop.xlane.xlu0 %3027  ;;  %v5908_v32 = vpop.xlane.xlu1 %3029  ;;  %v3296_v55 = vsel %vm2890_vm0, %v4111_v11, 0.0  ;;  %v6500_v11 = vld [vmem:[#allocation4_spill] sm:$0xff] }
 0x4ef   : > { %4116 = vpow2.f32 %v3195_v24  ;;  %v4113_v31 = vpop.eup %4112 }
 0x4f0   : > { %4118 = vpow2.f32 %v3197_v4 }
 0x4f1   : > { %3371 = vadd.xlane.f32.xlu2 %v3291_v6  ;;  %v5943_v6 = vsub.f32 %v5409_v53, %v5822_v49 }
 0x4f3   : > { %3373 = vadd.xlane.f32.xlu0 %v3292_v46  ;;  %3375 = vadd.xlane.f32.xlu1 %v3293_v52  ;;  %6498 = vst [vmem:[#allocation31_spill] sm:$0xff] %v5943_v6  ;;  %v3294_v46 = vsel %vm2890_vm0, %v4107_v51, 0.0  ;;  %v5949_v52 = vsub.f32 %v5416_v20, %v5825_v26  ;;  %v3199_v53 = vmul.f32 1.442695, %v5943_v6  ;;  %v4115_v20 = vpop.eup %4114  ;;  %v3297_v6 = vsel %vm2890_vm0, %v4113_v31, 0.0 }
 0x4f4   : > { %v5930_v43 = vpop.xlane.xlu2 %3031  ;;  %v3298_v4 = vsel %vm2890_vm0, %v4115_v20, 0.0 }
 0x4f5   : > { %6499 = vst [vmem:[#allocation32_spill] sm:$0xff] %v5949_v52  ;;  %v3201_v51 = vmul.f32 1.442695, %v5949_v52  ;;  %v4117_v58 = vpop.eup %4116  ;;  %4120 = vpow2.f32 %v3199_v53  ;;  %v5976_v52 = vsub.f32 %v5443_v42, %v5852_v0 }
 0x4f6   : > { %v5933_v57 = vpop.xlane.xlu0 %3033  ;;  %v5935_v1 = vpop.xlane.xlu1 %3035 }
 0x4f7   : > { %4122 = vpow2.f32 %v3201_v51  ;;  %6504 = vst [vmem:[#allocation33_spill] sm:$0xff] %v5976_v52  ;;  %v4119_v31 = vpop.eup %4118  ;;  %v3207_v51 = vmul.f32 1.442695, %v5976_v52  ;;  %v6508_v52 = vld [vmem:[#allocation8_spill] sm:$0xff] }
 0x4f9   : > { %3377 = vadd.xlane.f32.xlu2 %v3294_v46  ;;  %v5966_v46 = vsub.f32 %v6500_v11, %v5827_v63  ;;  %v3299_v63 = vsel %vm2890_vm0, %v4117_v58, 0.0  ;;  %v6505_v58 = vld [vmem:[#allocation6_spill] sm:$0xff] }
 0x4fb   : > { %3379 = vadd.xlane.f32.xlu0 %v3295_v41  ;;  %3381 = vadd.xlane.f32.xlu1 %v3296_v55  ;;  %6501 = vst [vmem:[#allocation4_spill] sm:$0xff] %v5966_v46  ;;  %v6502_v41 = vld [vmem:[#allocation5_spill] sm:$0xff]  ;;  %v3203_v53 = vmul.f32 1.442695, %v5966_v46  ;;  %v4121_v42 = vpop.eup %4120  ;;  %v6003_v46 = vsub.f32 %v6508_v52, %v5879_v25 }
 0x4fc   : > { %v5957_v49 = vpop.xlane.xlu2 %3037  ;;  %v5970_v55 = vsub.f32 %v6502_v41, %v5849_v18  ;;  %v5993_v41 = vsub.f32 %v6505_v58, %v5854_v47 }
 0x4fd   : > { %v4123_v20 = vpop.eup %4122  ;;  %4124 = vpow2.f32 %v3203_v53  ;;  %v3301_v53 = vsel %vm2890_vm0, %v4121_v42, 0.0 }
 0x4fe   : > { %v5960_v26 = vpop.xlane.xlu0 %3039  ;;  %v5962_v24 = vpop.xlane.xlu1 %3041  ;;  %6503 = vst [vmem:[#allocation5_spill] sm:$0xff] %v5970_v55  ;;  %v3205_v18 = vmul.f32 1.442695, %v5970_v55  ;;  %v3300_v55 = vsel %vm2890_vm0, %v4119_v31, 0.0  ;;  %v3302_v47 = vsel %vm2890_vm0, %v4123_v20, 0.0  ;;  %v6510_v20 = vld [vmem:[#allocation9_spill] sm:$0xff] }
 0x500   : > { %4126 = vpow2.f32 %v3205_v18  ;;  %v3209_v18 = vmul.f32 1.442695, %v5993_v41 }
 0x501   : > { %3383 = vadd.xlane.f32.xlu2 %v3297_v6  ;;  %4128 = vpow2.f32 %v3207_v51  ;;  %v3213_v51 = vmul.f32 1.442695, %v6003_v46 }
 0x502   : > { %4130 = vpow2.f32 %v3209_v18 }
 0x503   : > { %3385 = vadd.xlane.f32.xlu0 %v3298_v4  ;;  %3387 = vadd.xlane.f32.xlu1 %v3299_v63  ;;  %v6506_v4 = vld [vmem:[#allocation7_spill] sm:$0xff]  ;;  %v4125_v31 = vpop.eup %4124 }
 0x504   : > { %v5984_v11 = vpop.xlane.xlu2 %3043  ;;  %v5997_v63 = vsub.f32 %v6506_v4, %v5876_v8  ;;  %6509 = vst [vmem:[#allocation7_spill] sm:$0xff] %v6003_v46  ;;  %v6020_v4 = vsub.f32 %v6510_v20, %v5881_v10  ;;  %v6513_v46 = vld [vmem:[#allocation10_spill] sm:$0xff] }
 0x506   : > { %v5987_v0 = vpop.xlane.xlu0 %3045  ;;  %v5989_v6 = vpop.xlane.xlu1 %3047  ;;  %6507 = vst [vmem:[#allocation6_spill] sm:$0xff] %v5997_v63  ;;  %v3211_v8 = vmul.f32 1.442695, %v5997_v63  ;;  %v6030_v63 = vsub.f32 %v6513_v46, %v5906_v21 }
 0x507   : > { %v4127_v25 = vpop.eup %4126  ;;  %6511 = vst [vmem:[#allocation8_spill] sm:$0xff] %v6020_v4 }
 0x508   : > { %v4129_v42 = vpop.eup %4128  ;;  %4132 = vpow2.f32 %v3211_v8  ;;  %6514 = vst [vmem:[#allocation10_spill] sm:$0xff] %v6030_v63  ;;  %v3304_v18 = vsel %vm2890_vm0, %v4127_v25, 0.0  ;;  %v3215_v8 = vmul.f32 1.442695, %v6020_v4 }
 0x509   : > { %3389 = vadd.xlane.f32.xlu2 %v3300_v55  ;;  %4134 = vpow2.f32 %v3213_v51  ;;  %v3305_v10 = vsel %vm2890_vm0, %v4129_v42, 0.0  ;;  %v3219_v51 = vmul.f32 1.442695, %v6030_v63  ;;  %v6515_v42 = vld [vmem:[#allocation11_spill] sm:$0xff]  ;;  %v6519_v63 = vld [vmem:[#allocation13_spill] sm:$0xff] }
 0x50a   : > { %4136 = vpow2.f32 %v3215_v8  ;;  %v6057_v4 = vsub.f32 %v6519_v63, %v5933_v57 }
 0x50b   : > { %3391 = vadd.xlane.f32.xlu0 %v3301_v53  ;;  %3393 = vadd.xlane.f32.xlu1 %v3302_v47  ;;  %v6024_v53 = vsub.f32 %v5484_v13, %v5903_v59  ;;  %v3303_v47 = vsel %vm2890_vm0, %v4125_v31, 0.0  ;;  %v4131_v31 = vpop.eup %4130 }
 0x50c   : > { %v6011_v58 = vpop.xlane.xlu2 %3049  ;;  %6520 = vst [vmem:[#allocation13_spill] sm:$0xff] %v6057_v4 }
 0x50d   : > { %6512 = vst [vmem:[#allocation9_spill] sm:$0xff] %v6024_v53  ;;  %v3217_v13 = vmul.f32 1.442695, %v6024_v53  ;;  %v3306_v53 = vsel %vm2890_vm0, %v4131_v31, 0.0 }
 0x50e   : > { %v6014_v52 = vpop.xlane.xlu0 %3051  ;;  %v6016_v55 = vpop.xlane.xlu1 %3053 }
 0x50f   : > { %v4133_v21 = vpop.eup %4132  ;;  %4138 = vpow2.f32 %v3217_v13 }
 0x510   : > { %v4135_v25 = vpop.eup %4134  ;;  %4140 = vpow2.f32 %v3219_v51  ;;  %v3307_v8 = vsel %vm2890_vm0, %v4133_v21, 0.0  ;;  %v3225_v51 = vmul.f32 1.442695, %v6057_v4  ;;  %v6525_v4 = vld [vmem:[#allocation16_spill] sm:$0xff] }
 0x511   : > { %3395 = vadd.xlane.f32.xlu2 %v3303_v47  ;;  %v6047_v47 = vsub.f32 %v6515_v42, %v5908_v32  ;;  %v3308_v32 = vsel %vm2890_vm0, %v4135_v25, 0.0  ;;  %v4137_v31 = vpop.eup %4136  ;;  %v6521_v25 = vld [vmem:[#allocation14_spill] sm:$0xff] }
 0x513   : > { %3397 = vadd.xlane.f32.xlu0 %v3304_v18  ;;  %3399 = vadd.xlane.f32.xlu1 %v3305_v10  ;;  %6516 = vst [vmem:[#allocation11_spill] sm:$0xff] %v6047_v47  ;;  %v6517_v18 = vld [vmem:[#allocation12_spill] sm:$0xff]  ;;  %v3221_v13 = vmul.f32 1.442695, %v6047_v47  ;;  %v6084_v47 = vsub.f32 %v6525_v4, %v5960_v26 }
 0x514   : > { %v6038_v59 = vpop.xlane.xlu2 %3055  ;;  %v6051_v10 = vsub.f32 %v6517_v18, %v5930_v43  ;;  %v6074_v18 = vsub.f32 %v6521_v25, %v5935_v1 }
 0x515   : > { %v4139_v57 = vpop.eup %4138  ;;  %4142 = vpow2.f32 %v3221_v13  ;;  %6526 = vst [vmem:[#allocation16_spill] sm:$0xff] %v6084_v47 }
 0x516   : > { %v6041_v46 = vpop.xlane.xlu0 %3057  ;;  %v6043_v20 = vpop.xlane.xlu1 %3059  ;;  %6518 = vst [vmem:[#allocation12_spill] sm:$0xff] %v6051_v10  ;;  %v3223_v43 = vmul.f32 1.442695, %v6051_v10  ;;  %v3309_v10 = vsel %vm2890_vm0, %v4137_v31, 0.0  ;;  %v3310_v13 = vsel %vm2890_vm0, %v4139_v57, 0.0 }
 0x517   : > { %v4141_v21 = vpop.eup %4140  ;;  %6522 = vst [vmem:[#allocation14_spill] sm:$0xff] %v6074_v18 }
 0x518   : > { %4144 = vpow2.f32 %v3223_v43  ;;  %v3311_v1 = vsel %vm2890_vm0, %v4141_v21, 0.0  ;;  %v3227_v43 = vmul.f32 1.442695, %v6074_v18  ;;  %v6527_v21 = vld [vmem:[#allocation17_spill] sm:$0xff] }
 0x519   : > { %3401 = vadd.xlane.f32.xlu2 %v3306_v53  ;;  %4146 = vpow2.f32 %v3225_v51  ;;  %v3231_v51 = vmul.f32 1.442695, %v6084_v47  ;;  %v6531_v47 = vld [vmem:[#allocation19_spill] sm:$0xff] }
 0x51a   : > { %4148 = vpow2.f32 %v3227_v43  ;;  %v6111_v18 = vsub.f32 %v6531_v47, %v5987_v0  ;;  %v6533_v47 = vld [vmem:[#allocation20_spill] sm:$0xff] }
 0x51b   : > { %3403 = vadd.xlane.f32.xlu0 %v3307_v8  ;;  %3405 = vadd.xlane.f32.xlu1 %v3308_v32  ;;  %v6523_v8 = vld [vmem:[#allocation15_spill] sm:$0xff]  ;;  %v4143_v31 = vpop.eup %4142 }
 0x51c   : > { %v6065_v42 = vpop.xlane.xlu2 %3061  ;;  %v6078_v32 = vsub.f32 %v6523_v8, %v5957_v49  ;;  %v6101_v8 = vsub.f32 %v6527_v21, %v5962_v24  ;;  %6532 = vst [vmem:[#allocation19_spill] sm:$0xff] %v6111_v18 }
 0x51e   : > { %v6068_v63 = vpop.xlane.xlu0 %3063  ;;  %v6070_v53 = vpop.xlane.xlu1 %3065  ;;  %6524 = vst [vmem:[#allocation15_spill] sm:$0xff] %v6078_v32  ;;  %v3229_v49 = vmul.f32 1.442695, %v6078_v32  ;;  %v3312_v32 = vsel %vm2890_vm0, %v4143_v31, 0.0 }
 0x51f   : > { %v4145_v26 = vpop.eup %4144  ;;  %6528 = vst [vmem:[#allocation17_spill] sm:$0xff] %v6101_v8 }
 0x520   : > { %v4147_v57 = vpop.eup %4146  ;;  %4150 = vpow2.f32 %v3229_v49  ;;  %v3313_v43 = vsel %vm2890_vm0, %v4145_v26, 0.0  ;;  %v3233_v49 = vmul.f32 1.442695, %v6101_v8 }
 0x521   : > { %3407 = vadd.xlane.f32.xlu2 %v3309_v10  ;;  %4152 = vpow2.f32 %v3231_v51  ;;  %v3314_v24 = vsel %vm2890_vm0, %v4147_v57, 0.0  ;;  %v4149_v31 = vpop.eup %4148  ;;  %v3237_v51 = vmul.f32 1.442695, %v6111_v18  ;;  %v6536_v18 = vld [vmem:[#allocation22_spill] sm:$0xff] }
 0x522   : > { %4154 = vpow2.f32 %v3233_v49  ;;  %v6138_v8 = vsub.f32 %v6536_v18, %v6014_v52 }
 0x523   : > { %3409 = vadd.xlane.f32.xlu0 %v3310_v13  ;;  %3411 = vadd.xlane.f32.xlu1 %v3311_v1  ;;  %v6529_v13 = vld [vmem:[#allocation18_spill] sm:$0xff] }
 0x524   : > { %v6092_v25 = vpop.xlane.xlu2 %3067  ;;  %v6105_v1 = vsub.f32 %v6529_v13, %v5984_v11  ;;  %v3243_v18 = vmul.f32 1.442695, %v6138_v8 }
 0x526   : > { %v6095_v4 = vpop.xlane.xlu0 %3069  ;;  %v6097_v10 = vpop.xlane.xlu1 %3071  ;;  %6530 = vst [vmem:[#allocation18_spill] sm:$0xff] %v6105_v1  ;;  %v3235_v11 = vmul.f32 1.442695, %v6105_v1  ;;  %v3315_v1 = vsel %vm2890_vm0, %v4149_v31, 0.0 }
 0x527   : > { %v4151_v0 = vpop.eup %4150 }
 0x528   : > { %v4153_v57 = vpop.eup %4152  ;;  %4156 = vpow2.f32 %v3235_v11  ;;  %v6538_v11 = vld [vmem:[#allocation23_spill] sm:$0xff] }
 0x529   : > { %3413 = vadd.xlane.f32.xlu2 %v3312_v32  ;;  %v6124_v32 = vsub.f32 %v6533_v47, %v5989_v6  ;;  %4158 = vpow2.f32 %v3237_v51  ;;  %v3316_v47 = vsel %vm2890_vm0, %v4151_v0, 0.0  ;;  %v3317_v49 = vsel %vm2890_vm0, %v4153_v57, 0.0  ;;  %v4155_v52 = vpop.eup %4154  ;;  %v6539_v0 = vld [vmem:[#allocation24_spill] sm:$0xff] }
 0x52a   : > { %v6148_v31 = vsub.f32 %v6538_v11, %v6016_v55  ;;  %v3318_v11 = vsel %vm2890_vm0, %v4155_v52, 0.0  ;;  %v6542_v52 = vld [vmem:[#allocation26_spill] sm:$0xff] }
 0x52b   : > { %3415 = vadd.xlane.f32.xlu0 %v3313_v43  ;;  %3417 = vadd.xlane.f32.xlu1 %v3314_v24  ;;  %v6534_v43 = vld [vmem:[#allocation21_spill] sm:$0xff]  ;;  %v3239_v6 = vmul.f32 1.442695, %v6124_v32 }
 0x52c   : > { %v6119_v21 = vpop.xlane.xlu2 %3073  ;;  %v6132_v24 = vsub.f32 %v6534_v43, %v6011_v58  ;;  %6537 = vst [vmem:[#allocation21_spill] sm:$0xff] %v6138_v8  ;;  %v6155_v43 = vsub.f32 %v6539_v0, %v6038_v59  ;;  %v3245_v55 = vmul.f32 1.442695, %v6148_v31  ;;  %v6540_v8 = vld [vmem:[#allocation25_spill] sm:$0xff] }
 0x52d   : > { %4160 = vpow2.f32 %v3239_v6 }
 0x52e   : > { %v6126_v26 = vpop.xlane.xlu0 %3075  ;;  %v6128_v13 = vpop.xlane.xlu1 %3077  ;;  %6535 = vst [vmem:[#allocation20_spill] sm:$0xff] %v6132_v24  ;;  %v3241_v58 = vmul.f32 1.442695, %v6132_v24  ;;  %v6164_v24 = vsub.f32 %v6540_v8, %v6041_v46  ;;  %v3247_v59 = vmul.f32 1.442695, %v6155_v43 }
 0x530   : > { %6541 = vst [vmem:[#allocation22_spill] sm:$0xff] %v6164_v24  ;;  %v3249_v8 = vmul.f32 1.442695, %v6164_v24 }
 0x531   : > { %3419 = vadd.xlane.f32.xlu2 %v3315_v1  ;;  %v4157_v1 = vpop.eup %4156 }
 0x532   : > { %v3319_v6 = vsel %vm2890_vm0, %v4157_v1, 0.0  ;;  %v6178_v1 = vsub.f32 %v5646_v60, %v6065_v42 }
 0x533   : > { %3421 = vadd.xlane.f32.xlu0 %v3316_v47  ;;  %3423 = vadd.xlane.f32.xlu1 %v3317_v49  ;;  %v4159_v49 = vpop.eup %4158 }
 0x534   : > { %v6150_v51 = vpop.xlane.xlu2 %3079  ;;  %v3320_v0 = vsel %vm2890_vm0, %v4159_v49, 0.0  ;;  %v3253_v42 = vmul.f32 1.442695, %v6178_v1 }
 0x536   : > { %v6157_v57 = vpop.xlane.xlu0 %3081  ;;  %v3340_v47 = vpop.xlane.xlu1 %3339 }
 0x537   : > { %4162 = vlog2.f32 %v3340_v47 }
 0x538   : > { %4164 = vpow2.f32 %v3241_v58  ;;  %v4161_v58 = vpop.eup %4160 }
 0x539   : > { %4166 = vpow2.f32 %v3243_v18  ;;  %3425 = vadd.xlane.f32.xlu2 %v3318_v11  ;;  %v6173_v18 = vsub.f32 %v6542_v52, %v6043_v20 }
 0x53a   : > { %4168 = vpow2.f32 %v3245_v55 }
 0x53b   : > { %3427 = vadd.xlane.f32.xlu0 %v3319_v6  ;;  %3429 = vadd.xlane.f32.xlu1 %v3320_v0  ;;  %v3251_v20 = vmul.f32 1.442695, %v6173_v18 }
 0x53c   : > { %v3342_v47 = vpop.xlane.xlu2 %3341 }
 0x53d   : > { %v4163_v46 = vpop.eup %4162  ;;  %4170 = vlog2.f32 %v3342_v47  ;;  %v3321_v47 = vsel %vm2890_vm0, %v4161_v58, 0.0 }
 0x53e   : > { %v4165_v11 = vpop.eup %4164  ;;  %4172 = vpow2.f32 %v3247_v59  ;;  %v3468_v49 = vmul.f32 0.6931472, %v4163_v46  ;;  %v3344_v6 = vpop.xlane.xlu0 %3343  ;;  %v6543_v59 = vld [vmem:[#allocation27_spill] sm:$0xff] }
 0x53f   : > { %v3346_v0 = vpop.xlane.xlu1 %3345  ;;  %v4167_v55 = vpop.eup %4166  ;;  %4174 = vlog2.f32 %v3344_v6  ;;  %v6186_v24 = vsub.f32 %v6543_v59, %v6068_v63  ;;  %v3322_v46 = vsel %vm2890_vm0, %v4165_v11, 0.0 }
 0x540   : > { %v3595_v52 = vsub.f32 %v5677_v50, %v3468_v49  ;;  %4176 = vlog2.f32 %v3346_v0  ;;  %v4169_v60 = vpop.eup %4168  ;;  %v3323_v50 = vsel %vm2890_vm0, %v4167_v55, 0.0  ;;  %v6201_v55 = vsub.f32 %v5673_v34, %v6092_v25 }
 0x541   : > { %4178 = vpow2.f32 %v3249_v8  ;;  %3431 = vadd.xlane.f32.xlu2 %v3321_v47  ;;  %v6544_v8 = vld [vmem:[#allocation28_spill] sm:$0xff]  ;;  %v3324_v34 = vsel %vm2890_vm0, %v4169_v60, 0.0 }
 0x542   : > { %3659 = vst [vmem:[%s4617_s10] sm:$0xff] %v3595_v52  ;;  %4180 = vpow2.f32 %v3251_v20  ;;  %v6196_v63 = vsub.f32 %v6544_v8, %v6070_v53  ;;  %v3255_v52 = vmul.f32 1.442695, %v6186_v24 }
 0x543   : > { %v4171_v49 = vpop.eup %4170  ;;  %3433 = vadd.xlane.f32.xlu0 %v3322_v46  ;;  %3435 = vadd.xlane.f32.xlu1 %v3323_v50 }
 0x544   : > { %v4173_v58 = vpop.eup %4172  ;;  %v3470_v6 = vmul.f32 0.6931472, %v4171_v49  ;;  %v3348_v0 = vpop.xlane.xlu2 %3347  ;;  %v3257_v8 = vmul.f32 1.442695, %v6196_v63 }
 0x545   : > { %v4175_v47 = vpop.eup %4174  ;;  %4182 = vlog2.f32 %v3348_v0 }
 0x546   : > { %v4177_v11 = vpop.eup %4176  ;;  %4184 = vpow2.f32 %v3253_v42  ;;  %v3596_v59 = vsub.f32 %v5704_v33, %v3470_v6  ;;  %v3472_v20 = vmul.f32 0.6931472, %v4175_v47  ;;  %v3350_v46 = vpop.xlane.xlu0 %3349  ;;  %v6545_v33 = vld [vmem:[#allocation29_spill] sm:$0xff]  ;;  %v3259_v47 = vmul.f32 1.442695, %v6201_v55 }
 0x547   : > { %v3352_v53 = vpop.xlane.xlu1 %3351  ;;  %v4179_v50 = vpop.eup %4178  ;;  %v3474_v49 = vmul.f32 0.6931472, %v4177_v11  ;;  %4186 = vlog2.f32 %v3350_v46  ;;  %v6211_v25 = vsub.f32 %v6545_v33, %v6095_v4  ;;  %v3325_v11 = vsel %vm2890_vm0, %v4173_v58, 0.0  ;;  %v6546_v4 = vld [vmem:[#allocation30_spill] sm:$0xff] }
 0x548   : > { %3660 = vst [vmem:[%s4617_s10 + $0x8] sm:$0xff] %v3596_v59  ;;  %v3597_v0 = vsub.f32 %v5717_v37, %v3472_v20  ;;  %4188 = vlog2.f32 %v3352_v53  ;;  %v4181_v6 = vpop.eup %4180  ;;  %v3326_v37 = vsel %vm2890_vm0, %v4179_v50, 0.0  ;;  %v6228_v50 = vsub.f32 %v5713_v35, %v6119_v21 }
 0x549   : > { %4190 = vpow2.f32 %v3255_v52  ;;  %v3598_v42 = vsub.f32 %v5709_v36, %v3474_v49  ;;  %3437 = vadd.xlane.f32.xlu2 %v3324_v34  ;;  %v6223_v36 = vsub.f32 %v6546_v4, %v6097_v10  ;;  %v3261_v53 = vmul.f32 1.442695, %v6211_v25 }
 0x54a   : > { %3661 = vst [vmem:[%s4617_s10 + $0x10] sm:$0xff] %v3597_v0  ;;  %4192 = vpow2.f32 %v3257_v8  ;;  %v3327_v35 = vsel %vm2890_vm0, %v4181_v6, 0.0 }
 0x54b   : > { %v4183_v59 = vpop.eup %4182  ;;  %3662 = vst [vmem:[%s4617_s10 + $0x18] sm:$0xff] %v3598_v42  ;;  %3439 = vadd.xlane.f32.xlu0 %v3325_v11  ;;  %3441 = vadd.xlane.f32.xlu1 %v3326_v37  ;;  %v3263_v42 = vmul.f32 1.442695, %v6223_v36  ;;  %v3265_v37 = vmul.f32 1.442695, %v6228_v50 }
 0x54c   : > { %v4185_v60 = vpop.eup %4184  ;;  %v3476_v52 = vmul.f32 0.6931472, %v4183_v59  ;;  %v3354_v20 = vpop.xlane.xlu2 %3353 }
 0x54d   : > { %v4187_v46 = vpop.eup %4186  ;;  %4194 = vlog2.f32 %v3354_v20  ;;  %v3328_v59 = vsel %vm2890_vm0, %v4185_v60, 0.0 }
 0x54e   : > { %v4189_v58 = vpop.eup %4188  ;;  %4196 = vpow2.f32 %v3259_v47  ;;  %v3599_v49 = vsub.f32 %v5744_v39, %v3476_v52  ;;  %v3478_v8 = vmul.f32 0.6931472, %v4187_v46  ;;  %v3356_v0 = vpop.xlane.xlu0 %3355  ;;  %v6238_v39 = vsub.f32 %v5723_v44, %v6126_v26 }
 0x54f   : > { %v3358_v10 = vpop.xlane.xlu1 %3357  ;;  %v4191_v34 = vpop.eup %4190  ;;  %v3480_v33 = vmul.f32 0.6931472, %v4189_v58  ;;  %4198 = vlog2.f32 %v3356_v0  ;;  %v6250_v44 = vsub.f32 %v5727_v30, %v6128_v13  ;;  %v6255_v46 = vsub.f32 %v5752_v16, %v6150_v51 }
 0x550   : > { %3663 = vst [vmem:[%s4617_s10 + $0x20] sm:$0xff] %v3599_v49  ;;  %v3600_v11 = vsub.f32 %v5748_v45, %v3478_v8  ;;  %4200 = vlog2.f32 %v3358_v10  ;;  %v4193_v47 = vpop.eup %4192  ;;  %v3329_v45 = vsel %vm2890_vm0, %v4191_v34, 0.0  ;;  %v3267_v20 = vmul.f32 1.442695, %v6238_v39 }
 0x551   : > { %4202 = vpow2.f32 %v3261_v53  ;;  %v3601_v21 = vsub.f32 %v5756_v62, %v3480_v33  ;;  %3443 = vadd.xlane.f32.xlu2 %v3327_v35  ;;  %v3269_v0 = vmul.f32 1.442695, %v6250_v44  ;;  %v3330_v16 = vsel %vm2890_vm0, %v4193_v47, 0.0 }
 0x552   : > { %3664 = vst [vmem:[%s4617_s10 + $0x28] sm:$0xff] %v3600_v11  ;;  %4204 = vpow2.f32 %v3263_v42  ;;  %v3271_v33 = vmul.f32 1.442695, %v6255_v46 }
 0x553   : > { %v4195_v4 = vpop.eup %4194  ;;  %3665 = vst [vmem:[%s4617_s10 + $0x30] sm:$0xff] %v3601_v21  ;;  %3445 = vadd.xlane.f32.xlu0 %v3328_v59  ;;  %3447 = vadd.xlane.f32.xlu1 %v3329_v45 }
 0x554   : > { %v4197_v6 = vpop.eup %4196  ;;  %v3482_v62 = vmul.f32 0.6931472, %v4195_v4  ;;  %v3360_v26 = vpop.xlane.xlu2 %3359 }
 0x555   : > { %v4199_v52 = vpop.eup %4198  ;;  %4206 = vlog2.f32 %v3360_v26  ;;  %v3331_v42 = vsel %vm2890_vm0, %v4197_v6, 0.0 }
 0x556   : > { %v4201_v60 = vpop.eup %4200  ;;  %4208 = vpow2.f32 %v3265_v37  ;;  %v3602_v53 = vsub.f32 %v5777_v9, %v3482_v62  ;;  %v3484_v58 = vmul.f32 0.6931472, %v4199_v52  ;;  %v3362_v49 = vpop.xlane.xlu0 %3361  ;;  %v6265_v9 = vsub.f32 %v5761_v2, %v6157_v57 }
 0x557   : > { %v3364_v30 = vpop.xlane.xlu1 %3363  ;;  %v4203_v13 = vpop.eup %4202  ;;  %v3486_v8 = vmul.f32 0.6931472, %v4201_v60  ;;  %4210 = vlog2.f32 %v3362_v49 }
 0x558   : > { %3666 = vst [vmem:[%s4617_s10 + $0x38] sm:$0xff] %v3602_v53  ;;  %v3603_v10 = vsub.f32 %v5781_v12, %v3484_v58  ;;  %4212 = vlog2.f32 %v3364_v30  ;;  %v4205_v34 = vpop.eup %4204  ;;  %v3332_v12 = vsel %vm2890_vm0, %v4203_v13, 0.0  ;;  %v3273_v21 = vmul.f32 1.442695, %v6265_v9 }
 0x559   : > { %4214 = vpow2.f32 %v3267_v20  ;;  %v3604_v51 = vsub.f32 %v5787_v19, %v3486_v8  ;;  %3449 = vadd.xlane.f32.xlu2 %v3330_v16  ;;  %v3333_v52 = vsel %vm2890_vm0, %v4205_v34, 0.0 }
 0x55a   : > { %3667 = vst [vmem:[%s4617_s10 + $0x40] sm:$0xff] %v3603_v10  ;;  %4216 = vpow2.f32 %v3269_v0 }
 0x55b   : > { %v4207_v11 = vpop.eup %4206  ;;  %3668 = vst [vmem:[%s4617_s10 + $0x48] sm:$0xff] %v3604_v51  ;;  %3451 = vadd.xlane.f32.xlu0 %v3331_v42  ;;  %3453 = vadd.xlane.f32.xlu1 %v3332_v12 }
 0x55c   : > { %v4209_v35 = vpop.eup %4208  ;;  %v3488_v2 = vmul.f32 0.6931472, %v4207_v11  ;;  %v3366_v19 = vpop.xlane.xlu2 %3365 }
 0x55d   : > { %v4211_v57 = vpop.eup %4210  ;;  %4218 = vlog2.f32 %v3366_v19 }
 0x55e   : > { %v4213_v47 = vpop.eup %4212  ;;  %4220 = vpow2.f32 %v3271_v33  ;;  %v3605_v37 = vsub.f32 %v5804_v14, %v3488_v2  ;;  %v3490_v59 = vmul.f32 0.6931472, %v4211_v57  ;;  %v3368_v45 = vpop.xlane.xlu0 %3367  ;;  %v3334_v14 = vsel %vm2890_vm0, %v4209_v35, 0.0 }
 0x55f   : > { %v3370_v4 = vpop.xlane.xlu1 %3369  ;;  %v4215_v6 = vpop.eup %4214  ;;  %v3492_v62 = vmul.f32 0.6931472, %v4213_v47  ;;  %4222 = vlog2.f32 %v3368_v45 }
 0x560   : > { %3669 = vst [vmem:[%s4617_s10 + $0x50] sm:$0xff] %v3605_v37  ;;  %v3606_v26 = vsub.f32 %v5808_v23, %v3490_v59  ;;  %4224 = vlog2.f32 %v3370_v4  ;;  %v4217_v60 = vpop.eup %4216  ;;  %v3335_v53 = vsel %vm2890_vm0, %v4215_v6, 0.0 }
 0x561   : > { %4226 = vpow2.f32 %v3273_v21  ;;  %v3607_v20 = vsub.f32 %v5814_v27, %v3492_v62  ;;  %3455 = vadd.xlane.f32.xlu2 %v3333_v52  ;;  %v3336_v42 = vsel %vm2890_vm0, %v4217_v60, 0.0 }
 0x562   : > { %3670 = vst [vmem:[%s4617_s10 + $0x58] sm:$0xff] %v3606_v26 }
 0x563   : > { %v4219_v58 = vpop.eup %4218  ;;  %3671 = vst [vmem:[%s4617_s10 + $0x60] sm:$0xff] %v3607_v20  ;;  %3457 = vadd.xlane.f32.xlu0 %v3334_v14  ;;  %3459 = vadd.xlane.f32.xlu1 %v3335_v53 }
 0x564   : > { %v4221_v23 = vpop.eup %4220  ;;  %v3494_v49 = vmul.f32 0.6931472, %v4219_v58  ;;  %v3372_v30 = vpop.xlane.xlu2 %3371 }
 0x565   : > { %v4223_v13 = vpop.eup %4222  ;;  %4228 = vlog2.f32 %v3372_v30 }
 0x566   : > { %v4225_v27 = vpop.eup %4224  ;;  %v3608_v8 = vsub.f32 %v5831_v15, %v3494_v49  ;;  %v3496_v0 = vmul.f32 0.6931472, %v4223_v13  ;;  %v3374_v10 = vpop.xlane.xlu0 %3373  ;;  %v3337_v15 = vsel %vm2890_vm0, %v4221_v23, 0.0 }
 0x567   : > { %v3376_v16 = vpop.xlane.xlu1 %3375  ;;  %v4227_v51 = vpop.eup %4226  ;;  %v3498_v34 = vmul.f32 0.6931472, %v4225_v27  ;;  %4230 = vlog2.f32 %v3374_v10 }
 0x568   : > { %3672 = vst [vmem:[%s4617_s10 + $0x68] sm:$0xff] %v3608_v8  ;;  %v3609_v33 = vsub.f32 %v5835_v48, %v3496_v0  ;;  %4232 = vlog2.f32 %v3376_v16  ;;  %v3338_v11 = vsel %vm2890_vm0, %v4227_v51, 0.0 }
 0x569   : > { %v3610_v12 = vsub.f32 %v5841_v22, %v3498_v34  ;;  %3461 = vadd.xlane.f32.xlu2 %v3336_v42 }
 0x56a   : > { %3673 = vst [vmem:[%s4617_s10 + $0x70] sm:$0xff] %v3609_v33 }
 0x56b   : > { %v4229_v35 = vpop.eup %4228  ;;  %3674 = vst [vmem:[%s4617_s10 + $0x78] sm:$0xff] %v3610_v12  ;;  %3463 = vadd.xlane.f32.xlu0 %v3337_v15  ;;  %3465 = vadd.xlane.f32.xlu1 %v3338_v11 }
 0x56c   : > { %v3500_v48 = vmul.f32 0.6931472, %v4229_v35  ;;  %v3378_v2 = vpop.xlane.xlu2 %3377  ;;  %v6547_v35 = vld [vmem:[#allocation31_spill] sm:$0xff] }
 0x56d   : > { %v4231_v19 = vpop.eup %4230  ;;  %4234 = vlog2.f32 %v3378_v2 }
 0x56e   : > { %v4233_v22 = vpop.eup %4232  ;;  %v3611_v57 = vsub.f32 %v5858_v17, %v3500_v48  ;;  %v3502_v21 = vmul.f32 0.6931472, %v4231_v19  ;;  %v3380_v47 = vpop.xlane.xlu0 %3379  ;;  %v6548_v48 = vld [vmem:[#allocation32_spill] sm:$0xff] }
 0x56f   : > { %v3382_v37 = vpop.xlane.xlu1 %3381  ;;  %v3504_v59 = vmul.f32 0.6931472, %v4233_v22  ;;  %4236 = vlog2.f32 %v3380_v47  ;;  %v6549_v47 = vld [vmem:[#allocation4_spill] sm:$0xff] }
 0x570   : > { %3675 = vst [vmem:[%s4617_s10 + $0x80] sm:$0xff] %v3611_v57  ;;  %v3612_v3 = vsub.f32 %v5862_v38, %v3502_v21  ;;  %4238 = vlog2.f32 %v3382_v37 }
 0x571   : > { %v3613_v45 = vsub.f32 %v5868_v29, %v3504_v59 }
 0x572   : > { %3676 = vst [vmem:[%s4617_s10 + $0x88] sm:$0xff] %v3612_v3 }
 0x573   : > { %v4235_v4 = vpop.eup %4234  ;;  %3677 = vst [vmem:[%s4617_s10 + $0x90] sm:$0xff] %v3613_v45 }
 0x574   : > { %v3506_v6 = vmul.f32 0.6931472, %v4235_v4  ;;  %v3384_v62 = vpop.xlane.xlu2 %3383 }
 0x575   : > { %v4237_v17 = vpop.eup %4236  ;;  %4240 = vlog2.f32 %v3384_v62 }
 0x576   : > { %v4239_v26 = vpop.eup %4238  ;;  %v3614_v52 = vsub.f32 %v5885_v28, %v3506_v6  ;;  %v3508_v20 = vmul.f32 0.6931472, %v4237_v17  ;;  %v3386_v60 = vpop.xlane.xlu0 %3385  ;;  %v6550_v6 = vld [vmem:[#allocation5_spill] sm:$0xff] }
 0x577   : > { %v3388_v14 = vpop.xlane.xlu1 %3387  ;;  %v3510_v38 = vmul.f32 0.6931472, %v4239_v26  ;;  %4242 = vlog2.f32 %v3386_v60  ;;  %v6551_v17 = vld [vmem:[#allocation33_spill] sm:$0xff] }
 0x578   : > { %3678 = vst [vmem:[%s4617_s10 + $0x98] sm:$0xff] %v3614_v52  ;;  %v3615_v29 = vsub.f32 %v5889_v56, %v3508_v20  ;;  %4244 = vlog2.f32 %v3388_v14 }
 0x579   : > { %v3616_v53 = vsub.f32 %v5895_v7, %v3510_v38 }
 0x57a   : > { %3679 = vst [vmem:[%s4617_s10 + $0xa0] sm:$0xff] %v3615_v29 }
 0x57b   : > { %v4241_v58 = vpop.eup %4240  ;;  %3680 = vst [vmem:[%s4617_s10 + $0xa8] sm:$0xff] %v3616_v53 }
 0x57c   : > { %v3512_v23 = vmul.f32 0.6931472, %v4241_v58  ;;  %v3390_v49 = vpop.xlane.xlu2 %3389 }
 0x57d   : > { %v4243_v28 = vpop.eup %4242  ;;  %4246 = vlog2.f32 %v3390_v49 }
 0x57e   : > { %v4245_v30 = vpop.eup %4244  ;;  %v3617_v13 = vsub.f32 %v5912_v5, %v3512_v23  ;;  %v3514_v27 = vmul.f32 0.6931472, %v4243_v28  ;;  %v3392_v8 = vpop.xlane.xlu0 %3391  ;;  %v6552_v28 = vld [vmem:[#allocation6_spill] sm:$0xff] }
 0x57f   : > { %v3394_v0 = vpop.xlane.xlu1 %3393  ;;  %v3516_v56 = vmul.f32 0.6931472, %v4245_v30  ;;  %4248 = vlog2.f32 %v3392_v8 }
 0x580   : > { %3681 = vst [vmem:[%s4617_s10 + $0xb0] sm:$0xff] %v3617_v13  ;;  %v3618_v7 = vsub.f32 %v5916_v61, %v3514_v27  ;;  %4250 = vlog2.f32 %v3394_v0  ;;  %v6553_v13 = vld [vmem:[#allocation7_spill] sm:$0xff] }
 0x581   : > { %v3619_v10 = vsub.f32 %v5922_v54, %v3516_v56 }
 0x582   : > { %3682 = vst [vmem:[%s4617_s10 + $0xb8] sm:$0xff] %v3618_v7 }
 0x583   : > { %v4247_v16 = vpop.eup %4246  ;;  %3683 = vst [vmem:[%s4617_s10 + $0xc0] sm:$0xff] %v3619_v10  ;;  %v6554_v10 = vld [vmem:[#allocation8_spill] sm:$0xff] }
 0x584   : > { %v3518_v51 = vmul.f32 0.6931472, %v4247_v16  ;;  %v3396_v34 = vpop.xlane.xlu2 %3395 }
 0x585   : > { %v4249_v5 = vpop.eup %4248  ;;  %4252 = vlog2.f32 %v3396_v34 }
 0x586   : > { %v4251_v33 = vpop.eup %4250  ;;  %v3620_v42 = vsub.f32 %v5939_v40, %v3518_v51  ;;  %v3520_v12 = vmul.f32 0.6931472, %v4249_v5  ;;  %v3398_v15 = vpop.xlane.xlu0 %3397 }
 0x587   : > { %v3400_v11 = vpop.xlane.xlu1 %3399  ;;  %v3522_v61 = vmul.f32 0.6931472, %v4251_v33  ;;  %4254 = vlog2.f32 %v3398_v15  ;;  %v6556_v15 = vld [vmem:[#allocation10_spill] sm:$0xff] }
 0x588   : > { %3684 = vst [vmem:[%s4617_s10 + $0xc8] sm:$0xff] %v3620_v42  ;;  %v3621_v54 = vsub.f32 %v6547_v35, %v3520_v12  ;;  %4256 = vlog2.f32 %v3400_v11  ;;  %v6555_v42 = vld [vmem:[#allocation9_spill] sm:$0xff] }
 0x589   : > { %v3622_v2 = vsub.f32 %v6548_v48, %v3522_v61 }
 0x58a   : > { %3685 = vst [vmem:[%s4617_s10 + $0xd0] sm:$0xff] %v3621_v54 }
 0x58b   : > { %v4253_v19 = vpop.eup %4252  ;;  %3686 = vst [vmem:[%s4617_s10 + $0xd8] sm:$0xff] %v3622_v2 }
 0x58c   : > { %v3524_v22 = vmul.f32 0.6931472, %v4253_v19  ;;  %v3402_v57 = vpop.xlane.xlu2 %3401  ;;  %v6557_v19 = vld [vmem:[#allocation11_spill] sm:$0xff] }
 0x58d   : > { %v4255_v40 = vpop.eup %4254  ;;  %4258 = vlog2.f32 %v3402_v57 }
 0x58e   : > { %v4257_v21 = vpop.eup %4256  ;;  %v3623_v37 = vsub.f32 %v6549_v47, %v3524_v22  ;;  %v3526_v59 = vmul.f32 0.6931472, %v4255_v40  ;;  %v3404_v3 = vpop.xlane.xlu0 %3403 }
 0x58f   : > { %v3406_v45 = vpop.xlane.xlu1 %3405  ;;  %v3528_v4 = vmul.f32 0.6931472, %v4257_v21  ;;  %4260 = vlog2.f32 %v3404_v3  ;;  %v6559_v3 = vld [vmem:[#allocation13_spill] sm:$0xff] }
 0x590   : > { %3687 = vst [vmem:[%s4617_s10 + $0xe0] sm:$0xff] %v3623_v37  ;;  %v3624_v62 = vsub.f32 %v6550_v6, %v3526_v59  ;;  %4262 = vlog2.f32 %v3406_v45  ;;  %v6558_v37 = vld [vmem:[#allocation12_spill] sm:$0xff] }
 0x591   : > { %v3625_v26 = vsub.f32 %v6551_v17, %v3528_v4 }
 0x592   : > { %3688 = vst [vmem:[%s4617_s10 + $0xe8] sm:$0xff] %v3624_v62 }
 0x593   : > { %v4259_v52 = vpop.eup %4258  ;;  %3689 = vst [vmem:[%s4617_s10 + $0xf0] sm:$0xff] %v3625_v26 }
 0x594   : > { %v3530_v20 = vmul.f32 0.6931472, %v4259_v52  ;;  %v3408_v60 = vpop.xlane.xlu2 %3407  ;;  %v6560_v52 = vld [vmem:[#allocation14_spill] sm:$0xff] }
 0x595   : > { %v4261_v14 = vpop.eup %4260  ;;  %4264 = vlog2.f32 %v3408_v60 }
 0x596   : > { %v4263_v38 = vpop.eup %4262  ;;  %v3626_v29 = vsub.f32 %v5993_v41, %v3530_v20  ;;  %v3532_v53 = vmul.f32 0.6931472, %v4261_v14  ;;  %v3410_v58 = vpop.xlane.xlu0 %3409 }
 0x597   : > { %v3412_v23 = vpop.xlane.xlu1 %3411  ;;  %v3534_v49 = vmul.f32 0.6931472, %v4263_v38  ;;  %4266 = vlog2.f32 %v3410_v58 }
 0x598   : > { %3690 = vst [vmem:[%s4617_s10 + $0xf8] sm:$0xff] %v3626_v29  ;;  %v3627_v30 = vsub.f32 %v6552_v28, %v3532_v53  ;;  %4268 = vlog2.f32 %v3412_v23  ;;  %v6561_v53 = vld [vmem:[#allocation15_spill] sm:$0xff]  ;;  %v6562_v23 = vld [vmem:[#allocation16_spill] sm:$0xff] }
 0x599   : > { %v3628_v27 = vsub.f32 %v6553_v13, %v3534_v49 }
 0x59a   : > { %3691 = vst [vmem:[%s4617_s10 + $0x100] sm:$0xff] %v3627_v30 }
 0x59b   : > { %v4265_v8 = vpop.eup %4264  ;;  %3692 = vst [vmem:[%s4617_s10 + $0x108] sm:$0xff] %v3628_v27 }
 0x59c   : > { %v3536_v0 = vmul.f32 0.6931472, %v4265_v8  ;;  %v3414_v56 = vpop.xlane.xlu2 %3413 }
 0x59d   : > { %v4267_v41 = vpop.eup %4266  ;;  %4270 = vlog2.f32 %v3414_v56 }
 0x59e   : > { %v4269_v7 = vpop.eup %4268  ;;  %v3629_v16 = vsub.f32 %v6554_v10, %v3536_v0  ;;  %v3538_v51 = vmul.f32 0.6931472, %v4267_v41  ;;  %v3416_v34 = vpop.xlane.xlu0 %3415  ;;  %v6563_v0 = vld [vmem:[#allocation17_spill] sm:$0xff] }
 0x59f   : > { %v3418_v5 = vpop.xlane.xlu1 %3417  ;;  %v3540_v33 = vmul.f32 0.6931472, %v4269_v7  ;;  %4272 = vlog2.f32 %v3416_v34 }
 0x5a0   : > { %3693 = vst [vmem:[%s4617_s10 + $0x110] sm:$0xff] %v3629_v16  ;;  %v3630_v12 = vsub.f32 %v6555_v42, %v3538_v51  ;;  %4274 = vlog2.f32 %v3418_v5  ;;  %v6564_v51 = vld [vmem:[#allocation18_spill] sm:$0xff]  ;;  %v6565_v5 = vld [vmem:[#allocation19_spill] sm:$0xff] }
 0x5a1   : > { %v3631_v11 = vsub.f32 %v6556_v15, %v3540_v33 }
 0x5a2   : > { %3694 = vst [vmem:[%s4617_s10 + $0x118] sm:$0xff] %v3630_v12 }
 0x5a3   : > { %v4271_v61 = vpop.eup %4270  ;;  %3695 = vst [vmem:[%s4617_s10 + $0x120] sm:$0xff] %v3631_v11 }
 0x5a4   : > { %v3542_v35 = vmul.f32 0.6931472, %v4271_v61  ;;  %v3420_v54 = vpop.xlane.xlu2 %3419 }
 0x5a5   : > { %v4273_v48 = vpop.eup %4272  ;;  %4276 = vlog2.f32 %v3420_v54 }
 0x5a6   : > { %v4275_v2 = vpop.eup %4274  ;;  %v3632_v22 = vsub.f32 %v6557_v19, %v3542_v35  ;;  %v3544_v57 = vmul.f32 0.6931472, %v4273_v48  ;;  %v3422_v40 = vpop.xlane.xlu0 %3421 }
 0x5a7   : > { %v3424_v21 = vpop.xlane.xlu1 %3423  ;;  %v3546_v47 = vmul.f32 0.6931472, %v4275_v2  ;;  %4278 = vlog2.f32 %v3422_v40  ;;  %v6567_v40 = vld [vmem:[#allocation21_spill] sm:$0xff] }
 0x5a8   : > { %3696 = vst [vmem:[%s4617_s10 + $0x128] sm:$0xff] %v3632_v22  ;;  %v3633_v59 = vsub.f32 %v6558_v37, %v3544_v57  ;;  %4280 = vlog2.f32 %v3424_v21  ;;  %v6566_v22 = vld [vmem:[#allocation20_spill] sm:$0xff] }
 0x5a9   : > { %v3634_v45 = vsub.f32 %v6559_v3, %v3546_v47 }
 0x5aa   : > { %3697 = vst [vmem:[%s4617_s10 + $0x130] sm:$0xff] %v3633_v59 }
 0x5ab   : > { %v4277_v4 = vpop.eup %4276  ;;  %3698 = vst [vmem:[%s4617_s10 + $0x138] sm:$0xff] %v3634_v45 }
 0x5ac   : > { %v3548_v6 = vmul.f32 0.6931472, %v4277_v4  ;;  %v3426_v62 = vpop.xlane.xlu2 %3425 }
 0x5ad   : > { %v4279_v17 = vpop.eup %4278  ;;  %4282 = vlog2.f32 %v3426_v62 }
 0x5ae   : > { %v4281_v26 = vpop.eup %4280  ;;  %v3635_v20 = vsub.f32 %v6560_v52, %v3548_v6  ;;  %v3550_v60 = vmul.f32 0.6931472, %v4279_v17  ;;  %v3428_v14 = vpop.xlane.xlu0 %3427  ;;  %v6568_v52 = vld [vmem:[#allocation22_spill] sm:$0xff] }
 0x5af   : > { %v3430_v38 = vpop.xlane.xlu1 %3429  ;;  %v3552_v29 = vmul.f32 0.6931472, %v4281_v26  ;;  %4284 = vlog2.f32 %v3428_v14 }
 0x5b0   : > { %3699 = vst [vmem:[%s4617_s10 + $0x140] sm:$0xff] %v3635_v20  ;;  %v3636_v58 = vsub.f32 %v6561_v53, %v3550_v60  ;;  %4286 = vlog2.f32 %v3430_v38 }
 0x5b1   : > { %v3637_v49 = vsub.f32 %v6562_v23, %v3552_v29 }
 0x5b2   : > { %3700 = vst [vmem:[%s4617_s10 + $0x148] sm:$0xff] %v3636_v58 }
 0x5b3   : > { %v4283_v28 = vpop.eup %4282  ;;  %3701 = vst [vmem:[%s4617_s10 + $0x150] sm:$0xff] %v3637_v49 }
 0x5b4   : > { %v3554_v30 = vmul.f32 0.6931472, %v4283_v28  ;;  %v3432_v13 = vpop.xlane.xlu2 %3431 }
 0x5b5   : > { %v4285_v27 = vpop.eup %4284  ;;  %4288 = vlog2.f32 %v3432_v13 }
 0x5b6   : > { %v4287_v8 = vpop.eup %4286  ;;  %v3638_v56 = vsub.f32 %v6563_v0, %v3554_v30  ;;  %v3556_v41 = vmul.f32 0.6931472, %v4285_v27  ;;  %v3434_v7 = vpop.xlane.xlu0 %3433 }
 0x5b7   : > { %v3436_v10 = vpop.xlane.xlu1 %3435  ;;  %v3558_v16 = vmul.f32 0.6931472, %v4287_v8  ;;  %4290 = vlog2.f32 %v3434_v7 }
 0x5b8   : > { %3702 = vst [vmem:[%s4617_s10 + $0x158] sm:$0xff] %v3638_v56  ;;  %v3639_v34 = vsub.f32 %v6564_v51, %v3556_v41  ;;  %4292 = vlog2.f32 %v3436_v10 }
 0x5b9   : > { %v3640_v33 = vsub.f32 %v6565_v5, %v3558_v16 }
 0x5ba   : > { %3703 = vst [vmem:[%s4617_s10 + $0x160] sm:$0xff] %v3639_v34 }
 0x5bb   : > { %v4289_v42 = vpop.eup %4288  ;;  %3704 = vst [vmem:[%s4617_s10 + $0x168] sm:$0xff] %v3640_v33 }
 0x5bc   : > { %v3560_v12 = vmul.f32 0.6931472, %v4289_v42  ;;  %v3438_v15 = vpop.xlane.xlu2 %3437 }
 0x5bd   : > { %v4291_v11 = vpop.eup %4290  ;;  %4294 = vlog2.f32 %v3438_v15 }
 0x5be   : > { %v4293_v61 = vpop.eup %4292  ;;  %v3641_v35 = vsub.f32 %v6124_v32, %v3560_v12  ;;  %v3562_v54 = vmul.f32 0.6931472, %v4291_v11  ;;  %v3440_v48 = vpop.xlane.xlu0 %3439 }
 0x5bf   : > { %v3442_v2 = vpop.xlane.xlu1 %3441  ;;  %v3564_v19 = vmul.f32 0.6931472, %v4293_v61  ;;  %4296 = vlog2.f32 %v3440_v48 }
 0x5c0   : > { %3705 = vst [vmem:[%s4617_s10 + $0x170] sm:$0xff] %v3641_v35  ;;  %v3642_v57 = vsub.f32 %v6566_v22, %v3562_v54  ;;  %4298 = vlog2.f32 %v3442_v2 }
 0x5c1   : > { %v3643_v21 = vsub.f32 %v6567_v40, %v3564_v19 }
 0x5c2   : > { %3706 = vst [vmem:[%s4617_s10 + $0x178] sm:$0xff] %v3642_v57 }
 0x5c3   : > { %v4295_v47 = vpop.eup %4294  ;;  %3707 = vst [vmem:[%s4617_s10 + $0x180] sm:$0xff] %v3643_v21 }
 0x5c4   : > { %v3566_v37 = vmul.f32 0.6931472, %v4295_v47  ;;  %v3444_v59 = vpop.xlane.xlu2 %3443 }
 0x5c5   : > { %v4297_v32 = vpop.eup %4296  ;;  %4300 = vlog2.f32 %v3444_v59 }
 0x5c6   : > { %v4299_v3 = vpop.eup %4298  ;;  %v3644_v45 = vsub.f32 %v6148_v31, %v3566_v37  ;;  %v3568_v4 = vmul.f32 0.6931472, %v4297_v32  ;;  %v3446_v6 = vpop.xlane.xlu0 %3445 }
 0x5c7   : > { %v3448_v62 = vpop.xlane.xlu1 %3447  ;;  %v3570_v17 = vmul.f32 0.6931472, %v4299_v3  ;;  %4302 = vlog2.f32 %v3446_v6 }
 0x5c8   : > { %3708 = vst [vmem:[%s4617_s10 + $0x188] sm:$0xff] %v3644_v45  ;;  %v3645_v26 = vsub.f32 %v6155_v43, %v3568_v4  ;;  %4304 = vlog2.f32 %v3448_v62 }
 0x5c9   : > { %v3646_v20 = vsub.f32 %v6568_v52, %v3570_v17 }
 0x5ca   : > { %3709 = vst [vmem:[%s4617_s10 + $0x190] sm:$0xff] %v3645_v26 }
 0x5cb   : > { %v4301_v60 = vpop.eup %4300  ;;  %3710 = vst [vmem:[%s4617_s10 + $0x198] sm:$0xff] %v3646_v20 }
 0x5cc   : > { %v3572_v14 = vmul.f32 0.6931472, %v4301_v60  ;;  %v3450_v38 = vpop.xlane.xlu2 %3449 }
 0x5cd   : > { %v4303_v31 = vpop.eup %4302  ;;  %4306 = vlog2.f32 %v3450_v38 }
 0x5ce   : > { %v4305_v29 = vpop.eup %4304  ;;  %v3647_v53 = vsub.f32 %v6173_v18, %v3572_v14  ;;  %v3574_v58 = vmul.f32 0.6931472, %v4303_v31  ;;  %v3452_v23 = vpop.xlane.xlu0 %3451 }
 0x5cf   : > { %v3454_v49 = vpop.xlane.xlu1 %3453  ;;  %v3576_v43 = vmul.f32 0.6931472, %v4305_v29  ;;  %4308 = vlog2.f32 %v3452_v23 }
 0x5d0   : > { %3711 = vst [vmem:[%s4617_s10 + $0x1a0] sm:$0xff] %v3647_v53  ;;  %v3648_v28 = vsub.f32 %v6178_v1, %v3574_v58  ;;  %4310 = vlog2.f32 %v3454_v49 }
 0x5d1   : > { %v3649_v30 = vsub.f32 %v6186_v24, %v3576_v43 }
 0x5d2   : > { %3712 = vst [vmem:[%s4617_s10 + $0x1a8] sm:$0xff] %v3648_v28 }
 0x5d3   : > { %v4307_v13 = vpop.eup %4306  ;;  %3713 = vst [vmem:[%s4617_s10 + $0x1b0] sm:$0xff] %v3649_v30 }
 0x5d4   : > { %v3578_v27 = vmul.f32 0.6931472, %v4307_v13  ;;  %v3456_v8 = vpop.xlane.xlu2 %3455 }
 0x5d5   : > { %v4309_v18 = vpop.eup %4308  ;;  %4312 = vlog2.f32 %v3456_v8 }
 0x5d6   : > { %v4311_v0 = vpop.eup %4310  ;;  %v3650_v56 = vsub.f32 %v6196_v63, %v3578_v27  ;;  %v3580_v41 = vmul.f32 0.6931472, %v4309_v18  ;;  %v3458_v7 = vpop.xlane.xlu0 %3457 }
 0x5d7   : > { %v3460_v10 = vpop.xlane.xlu1 %3459  ;;  %v3582_v1 = vmul.f32 0.6931472, %v4311_v0  ;;  %4314 = vlog2.f32 %v3458_v7 }
 0x5d8   : > { %3714 = vst [vmem:[%s4617_s10 + $0x1b8] sm:$0xff] %v3650_v56  ;;  %v3651_v24 = vsub.f32 %v6201_v55, %v3580_v41  ;;  %4316 = vlog2.f32 %v3460_v10 }
 0x5d9   : > { %v3652_v16 = vsub.f32 %v6211_v25, %v3582_v1 }
 0x5da   : > { %3715 = vst [vmem:[%s4617_s10 + $0x1c0] sm:$0xff] %v3651_v24 }
 0x5db   : > { %v4313_v51 = vpop.eup %4312  ;;  %3716 = vst [vmem:[%s4617_s10 + $0x1c8] sm:$0xff] %v3652_v16 }
 0x5dc   : > { %v3584_v34 = vmul.f32 0.6931472, %v4313_v51  ;;  %v3462_v5 = vpop.xlane.xlu2 %3461 }
 0x5dd   : > { %v4315_v63 = vpop.eup %4314  ;;  %4318 = vlog2.f32 %v3462_v5 }
 0x5de   : > { %v4317_v33 = vpop.eup %4316  ;;  %v3653_v42 = vsub.f32 %v6223_v36, %v3584_v34  ;;  %v3586_v12 = vmul.f32 0.6931472, %v4315_v63  ;;  %v3464_v15 = vpop.xlane.xlu0 %3463 }
 0x5df   : > { %v3466_v11 = vpop.xlane.xlu1 %3465  ;;  %v3588_v55 = vmul.f32 0.6931472, %v4317_v33  ;;  %4320 = vlog2.f32 %v3464_v15 }
 0x5e0   : > { %3717 = vst [vmem:[%s4617_s10 + $0x1d0] sm:$0xff] %v3653_v42  ;;  %v3654_v25 = vsub.f32 %v6228_v50, %v3586_v12  ;;  %4322 = vlog2.f32 %v3466_v11 }
 0x5e1   : > { %v3655_v61 = vsub.f32 %v6238_v39, %v3588_v55 }
 0x5e2   : > { %3718 = vst [vmem:[%s4617_s10 + $0x1d8] sm:$0xff] %v3654_v25 }
 0x5e3   : > { %v4319_v35 = vpop.eup %4318  ;;  %3719 = vst [vmem:[%s4617_s10 + $0x1e0] sm:$0xff] %v3655_v61 }
 0x5e4   : > { %v3590_v54 = vmul.f32 0.6931472, %v4319_v35 }
 0x5e5   : > { %v4321_v48 = vpop.eup %4320 }
 0x5e6   : > { %v4323_v36 = vpop.eup %4322  ;;  %v3656_v2 = vsub.f32 %v6250_v44, %v3590_v54  ;;  %v3592_v19 = vmul.f32 0.6931472, %v4321_v48 }
 0x5e7   : > { %v3594_v22 = vmul.f32 0.6931472, %v4323_v36 }
 0x5e8   : > { %3720 = vst [vmem:[%s4617_s10 + $0x1e8] sm:$0xff] %v3656_v2  ;;  %v3657_v57 = vsub.f32 %v6255_v46, %v3592_v19 }
 0x5e9   : > { %v3658_v40 = vsub.f32 %v6265_v9, %v3594_v22 }
 0x5ea   : > { %3721 = vst [vmem:[%s4617_s10 + $0x1f0] sm:$0xff] %v3657_v57 }
 0x5eb   : > { %3722 = vst [vmem:[%s4617_s10 + $0x1f8] sm:$0xff] %v3658_v40 }
 0x5ec PF: > { %s14_s21 = sadd.s32 1, %s4378_s21   ;;  %s6569_s15 = smov %s4358_s16 }
 0x5ed   : > { %p11_p0 = scmp.ge.s32.totalorder %s14_s21, 6   ;;  %s6570_s16 = smov %s4458_s28 }
 0x5ee   : > { %s6571_s17 = smov %s4370_s19  ;;  %s6572_s18 = smov %s4374_s20 }
 0x5ef   : > { %s6573_s19 = smov %s6576_s22  ;;  %s6574_s20 = smov %s6580_s23 }
 0x5f0   :  { %13 = sbr.rel (!%p11_p0) target bundleno = 4 (0x4), region = 108 }

</bundles_post_ra>
